<compile_context>
chip_gen: v7x
topology: tpu7x:2x2x1
jax: 0.10.0
libtpu: 0.0.40
codegen_flags: <defaults>
</compile_context>

<pallas_src>
import math
import functools

import jax
import jax.numpy as jnp
from jax.experimental import pallas as pl
from jax.experimental.pallas import tpu as pltpu

EPS_LN = 1e-5    # nn.LayerNorm default eps
EPS_COS = 1e-8   # nn.CosineSimilarity default eps


def _layernorm(x, g, b):
    mu = jnp.mean(x, axis=-1, keepdims=True)
    var = jnp.mean((x - mu) ** 2, axis=-1, keepdims=True)
    return (x - mu) * jax.lax.rsqrt(var + EPS_LN) * g + b


# ----------------------------------------------------------------------------
# Single fused kernel: mean+PE -> N encoder layers (both streams) -> pool ->
# cosine -> clamp.
# ----------------------------------------------------------------------------
def _make_fused_kernel(n_layers, n_head):
    def kernel(x_ref, pe_ref, wqkv_ref, wo_ref, w1_ref, w2_ref,
               bqkv_ref, b1_ref, vec_ref, o_ref):
        two, B, S, W, E = x_ref.shape          # two == 2 (the two input streams)
        N = two * B                            # sequences processed together
        head_dim = E // n_head
        scale = 1.0 / math.sqrt(head_dim)

        # ---- mean over words (both streams stacked on the leading axis) ----
        x = x_ref[...].astype(jnp.float32).reshape(N * S, W, E)
        y = jnp.mean(x, axis=1)                                    # (N*S, E)

        # ---- positional encoding --------------------------------------------
        # TODO(synk): PositionalEncoding / encoder-layer dropout is eval-mode identity.
        y = (y.reshape(N, S, E) + pe_ref[...][None, :, :]).reshape(N * S, E)

        # ---- transformer encoder layers (post-norm, ReLU) --------------------
        for l in range(n_layers):
            lvec = vec_ref[l]                  # (6, E): bo, ln1_g, ln1_b, b2, ln2_g, ln2_b
            bo, ln1_g, ln1_b = lvec[0:1], lvec[1:2], lvec[2:3]
            b2, ln2_g, ln2_b = lvec[3:4], lvec[4:5], lvec[5:6]

            # fused Q|K|V projection: ONE bf16 matmul, f32 accumulation
            qkv = jnp.dot(y.astype(jnp.bfloat16), wqkv_ref[l],
                          preferred_element_type=jnp.float32) + bqkv_ref[l]
            q3 = qkv[:, 0 * E:1 * E].reshape(N, S, E)
            k3 = qkv[:, 1 * E:2 * E].reshape(N, S, E)
            v3 = qkv[:, 2 * E:3 * E].reshape(N, S, E)

            # per-head attention, batched over all N sequences at once
            # TODO(synk): an all-head 'nqhd,nkhd->nhqk' einsum would need a
            # 2-batch-dim dot_general / (0,2,1,3) transposes; keeping proven
            # single-batch-dim einsums per head instead.
            heads = []
            for h in range(n_head):
                lo = h * head_dim
                qh = q3[:, :, lo:lo + head_dim].astype(jnp.bfloat16)
                kh = k3[:, :, lo:lo + head_dim].astype(jnp.bfloat16)
                vh = v3[:, :, lo:lo + head_dim].astype(jnp.bfloat16)
                s = jnp.einsum("nqd,nkd->nqk", qh, kh,
                               preferred_element_type=jnp.float32) * scale
                s = s - jnp.max(s, axis=-1, keepdims=True)
                p = jnp.exp(s)
                p = p * pl.reciprocal(jnp.sum(p, axis=-1, keepdims=True),
                                      approx=True)
                heads.append(jnp.einsum("nqk,nkd->nqd", p.astype(jnp.bfloat16),
                                        vh, preferred_element_type=jnp.float32))
            # one concat + ONE output projection
            attn = jnp.concatenate(heads, axis=-1).reshape(N * S, E)
            attn = jnp.dot(attn.astype(jnp.bfloat16), wo_ref[l],
                           preferred_element_type=jnp.float32) + bo

            # residual + LayerNorm 1
            y = _layernorm(y + attn, ln1_g, ln1_b)

            # feed-forward (bf16 matmuls, f32 accumulation)
            h1 = jnp.maximum(
                jnp.dot(y.astype(jnp.bfloat16), w1_ref[l],
                        preferred_element_type=jnp.float32) + b1_ref[l], 0.0)
            ffn = jnp.dot(h1.astype(jnp.bfloat16), w2_ref[l],
                          preferred_element_type=jnp.float32) + b2

            # residual + LayerNorm 2
            y = _layernorm(y + ffn, ln2_g, ln2_b)

        # ---- MaxPool1d over the sequence + cosine similarity + clamp --------
        pooled = jnp.max(y.reshape(N, S, E), axis=1)               # (N, E)
        p1 = pooled[:B]                                            # stream 1
        p2 = pooled[B:]                                            # stream 2
        dots = jnp.sum(p1 * p2, axis=-1, keepdims=True)
        n1 = jnp.maximum(jnp.sqrt(jnp.sum(p1 * p1, axis=-1, keepdims=True)), EPS_COS)
        n2 = jnp.maximum(jnp.sqrt(jnp.sum(p2 * p2, axis=-1, keepdims=True)), EPS_COS)
        cos = dots * pl.reciprocal(n1 * n2)        # torch CosineSimilarity eps handling
        # lane-dense, (8,128)-aligned write; wrapper slices out [:, 0, 0]
        o_ref[...] = jnp.broadcast_to(jnp.clip(cos, 0.0, 1.0)[:, :, None],
                                      o_ref.shape)

    return kernel


# ----------------------------------------------------------------------------
# Full forward pass: ONE pallas_call for everything.
# ----------------------------------------------------------------------------
def _on_v7x():
    """True only on 2-TensorCore-per-chip parts (v7x); enables the batch grid."""
    try:
        kind = jax.devices()[0].device_kind.lower()
    except Exception:
        return False
    return "v7" in kind


def transformer_model_forward(x1, x2, params, n_head):
    B, S, W, E = x1.shape
    layers = params["layers"]
    n_layers = len(layers)

    # ---- pack parameters: fused QKV weight/bias, consolidated E-width vecs --
    wqkv = jnp.stack([jnp.concatenate([lp["wq"], lp["wk"], lp["wv"]], axis=1)
                      for lp in layers]).astype(jnp.bfloat16)           # (L, E, 3E)
    bqkv = jnp.stack([jnp.concatenate([lp["bq"], lp["bk"], lp["bv"]], axis=1)
                      for lp in layers])                                 # (L, 1, 3E)
    wo = jnp.stack([lp["wo"] for lp in layers]).astype(jnp.bfloat16)     # (L, E, E)
    w1 = jnp.stack([lp["w1"] for lp in layers]).astype(jnp.bfloat16)     # (L, E, H)
    w2 = jnp.stack([lp["w2"] for lp in layers]).astype(jnp.bfloat16)     # (L, H, E)
    b1 = jnp.stack([lp["b1"] for lp in layers])                          # (L, 1, H)
    vecs = jnp.stack([jnp.concatenate([lp["bo"], lp["ln1_g"], lp["ln1_b"],
                                       lp["b2"], lp["ln2_g"], lp["ln2_b"]], axis=0)
                      for lp in layers])                                 # (L, 6, E)

    x = jnp.stack([x1, x2], axis=0)                                      # (2, B, S, W, E)
    args = (x, params["pe"], wqkv, wo, w1, w2, bqkv, b1, vecs)
    kernel = _make_fused_kernel(n_layers, n_head)
    # One aligned (8,128) f32 tile per batch element (lane-dense unmasked store).
    out_shape = jax.ShapeDtypeStruct((B, 8, 128), jnp.float32)

    if _on_v7x() and B > 1:
        # v7x megacore: shard the batch across the two TensorCores.
        def _full_spec(a):
            nd = a.ndim
            return pl.BlockSpec(a.shape, lambda b, _nd=nd: (0,) * _nd)

        in_specs = ([pl.BlockSpec((2, 1, S, W, E), lambda b: (0, b, 0, 0, 0))]
                    + [_full_spec(a) for a in args[1:]])
        out = pl.pallas_call(
            kernel,
            grid=(B,),
            in_specs=in_specs,
            out_specs=pl.BlockSpec((1, 8, 128), lambda b: (b, 0, 0)),
            out_shape=out_shape,
            compiler_params=pltpu.CompilerParams(
                dimension_semantics=("parallel",)),
        )(*args)
    else:
        # v5e / v6e (1 TC): single no-grid launch, everything VMEM-resident
        # (<1 MiB total).  If B/S/E/n_layers grow toward the 16/32 MiB scoped
        # VMEM default, add pltpu.CompilerParams(vmem_limit_bytes=...) or a
        # batch/sequence grid before hitting the limit.
        out = pl.pallas_call(kernel, out_shape=out_shape)(*args)
    return out[:, 0, 0]


# ----------------------------------------------------------------------------
# Parameter setup (deterministic, in-script)
# ----------------------------------------------------------------------------
def make_positional_encoding(max_n_sent, emb_size):
    position = jnp.arange(max_n_sent, dtype=jnp.float32)[:, None]
    div_term = jnp.exp(jnp.arange(0, emb_size, 2, dtype=jnp.float32)
                       * (-math.log(10000.0) / emb_size))
    pe = jnp.zeros((max_n_sent, emb_size), jnp.float32)
    pe = pe.at[:, 0::2].set(jnp.sin(position * div_term))
    pe = pe.at[:, 1::2].set(jnp.cos(position * div_term))
    return pe


def init_layer_params(key, emb_size, n_hidden):
    ks = jax.random.split(key, 6)
    s_e = 1.0 / math.sqrt(emb_size)
    s_h = 1.0 / math.sqrt(n_hidden)
    E, H = emb_size, n_hidden
    return dict(
        wq=jax.random.normal(ks[0], (E, E), jnp.float32) * s_e,
        wk=jax.random.normal(ks[1], (E, E), jnp.float32) * s_e,
        wv=jax.random.normal(ks[2], (E, E), jnp.float32) * s_e,
        bq=jnp.zeros((1, E), jnp.float32),
        bk=jnp.zeros((1, E), jnp.float32),
        bv=jnp.zeros((1, E), jnp.float32),
        wo=jax.random.normal(ks[3], (E, E), jnp.float32) * s_e,
        bo=jnp.zeros((1, E), jnp.float32),
        ln1_g=jnp.ones((1, E), jnp.float32),
        ln1_b=jnp.zeros((1, E), jnp.float32),
        w1=jax.random.normal(ks[4], (E, H), jnp.float32) * s_e,
        b1=jnp.zeros((1, H), jnp.float32),
        w2=jax.random.normal(ks[5], (H, E), jnp.float32) * s_h,
        b2=jnp.zeros((1, E), jnp.float32),
        ln2_g=jnp.ones((1, E), jnp.float32),
        ln2_b=jnp.zeros((1, E), jnp.float32),
    )


if __name__ == "__main__":
    B = 2              # batch
    MAX_N_SENT = 8     # MAX_PARA_LENGTH (= seq length, = MaxPool1d kernel)
    N_WORDS = 4        # words per sentence (reduced by mean)
    EMB_SIZE = 32
    N_HIDDEN = 64      # TRANS_N_HIDDEN (FFN width)
    N_HEAD = 4
    N_LAYERS = 2
    DROPOUT = 0.0      # eval mode

    key = jax.random.PRNGKey(0)
    k1, k2, kp = jax.random.split(key, 3)
    x1 = jax.random.normal(k1, (B, MAX_N_SENT, N_WORDS, EMB_SIZE), jnp.float32)
    x2 = jax.random.normal(k2, (B, MAX_N_SENT, N_WORDS, EMB_SIZE), jnp.float32)

    layer_keys = jax.random.split(kp, N_LAYERS)
    params = {
        "pe": make_positional_encoding(MAX_N_SENT, EMB_SIZE),
        "layers": [init_layer_params(k, EMB_SIZE, N_HIDDEN) for k in layer_keys],
    }

    fwd = jax.jit(functools.partial(transformer_model_forward, n_head=N_HEAD))
    out = fwd(x1, x2, params)
    out = jax.block_until_ready(out)
    assert out.shape == (B,)
    assert bool(jnp.all(jnp.isfinite(out)))
    print("KERNEL_OK")
</pallas_src>

<mosaic_0001>
module attributes {stable_mosaic.version = 11 : i64} {
  func.func @kernel(%arg0: memref<2x2x8x4x32xf32, #tpu.memory_space<vmem>>, %arg1: memref<8x32xf32, #tpu.memory_space<vmem>>, %arg2: memref<2x32x96xbf16, #tpu.memory_space<vmem>>, %arg3: memref<2x32x32xbf16, #tpu.memory_space<vmem>>, %arg4: memref<2x32x64xbf16, #tpu.memory_space<vmem>>, %arg5: memref<2x64x32xbf16, #tpu.memory_space<vmem>>, %arg6: memref<2x1x96xf32, #tpu.memory_space<vmem>>, %arg7: memref<2x1x64xf32, #tpu.memory_space<vmem>>, %arg8: memref<2x6x32xf32, #tpu.memory_space<vmem>>, %arg9: memref<2x8x128xf32, #tpu.memory_space<vmem>>) attributes {dimension_semantics = [], scalar_prefetch = 0 : i64, scratch_operands = 0 : i64, tpu.core_type = #tpu.core_type<tc>} {
    %c0 = arith.constant 0 : index
    %c0_0 = arith.constant 0 : index
    %c0_1 = arith.constant 0 : index
    %c0_2 = arith.constant 0 : index
    %c0_3 = arith.constant 0 : index
    %0 = vector.load %arg0[%c0, %c0_0, %c0_1, %c0_2, %c0_3] : memref<2x2x8x4x32xf32, #tpu.memory_space<vmem>>, vector<2x2x8x4x32xf32>
    %1 = vector.shape_cast %0 : vector<2x2x8x4x32xf32> to vector<32x4x32xf32>
    %cst = arith.constant dense<0.000000e+00> : vector<32x32xf32>
    %2 = vector.multi_reduction <add>, %1, %cst [1] : vector<32x4x32xf32> to vector<32x32xf32>
    %cst_4 = arith.constant 4.000000e+00 : f32
    %3 = vector.broadcast %cst_4 : f32 to vector<32x32xf32>
    %4 = arith.divf %2, %3 : vector<32x32xf32>
    %5 = vector.shape_cast %4 : vector<32x32xf32> to vector<4x8x32xf32>
    %c0_5 = arith.constant 0 : index
    %c0_6 = arith.constant 0 : index
    %6 = vector.load %arg1[%c0_5, %c0_6] : memref<8x32xf32, #tpu.memory_space<vmem>>, vector<8x32xf32>
    %7 = vector.shape_cast %6 : vector<8x32xf32> to vector<1x8x32xf32>
    %8 = vector.broadcast %7 : vector<1x8x32xf32> to vector<4x8x32xf32>
    %9 = arith.addf %5, %8 : vector<4x8x32xf32>
    %10 = vector.shape_cast %9 : vector<4x8x32xf32> to vector<32x32xf32>
    %c0_7 = arith.constant 0 : index
    %c0_8 = arith.constant 0 : index
    %c0_9 = arith.constant 0 : index
    %11 = vector.load %arg8[%c0_7, %c0_8, %c0_9] : memref<2x6x32xf32, #tpu.memory_space<vmem>>, vector<1x6x32xf32>
    %12 = vector.shape_cast %11 : vector<1x6x32xf32> to vector<6x32xf32>
    %13 = vector.extract_strided_slice %12 {offsets = [0, 0], sizes = [1, 32], strides = [1, 1]} : vector<6x32xf32> to vector<1x32xf32>
    %14 = vector.extract_strided_slice %12 {offsets = [1, 0], sizes = [1, 32], strides = [1, 1]} : vector<6x32xf32> to vector<1x32xf32>
    %15 = vector.extract_strided_slice %12 {offsets = [2, 0], sizes = [1, 32], strides = [1, 1]} : vector<6x32xf32> to vector<1x32xf32>
    %16 = vector.extract_strided_slice %12 {offsets = [3, 0], sizes = [1, 32], strides = [1, 1]} : vector<6x32xf32> to vector<1x32xf32>
    %17 = vector.extract_strided_slice %12 {offsets = [4, 0], sizes = [1, 32], strides = [1, 1]} : vector<6x32xf32> to vector<1x32xf32>
    %18 = vector.extract_strided_slice %12 {offsets = [5, 0], sizes = [1, 32], strides = [1, 1]} : vector<6x32xf32> to vector<1x32xf32>
    %19 = arith.truncf %10 : vector<32x32xf32> to vector<32x32xbf16>
    %c0_10 = arith.constant 0 : index
    %c0_11 = arith.constant 0 : index
    %c0_12 = arith.constant 0 : index
    %20 = vector.load %arg2[%c0_10, %c0_11, %c0_12] : memref<2x32x96xbf16, #tpu.memory_space<vmem>>, vector<1x32x96xbf16>
    %21 = vector.shape_cast %20 : vector<1x32x96xbf16> to vector<32x96xbf16>
    %cst_13 = arith.constant dense<0.000000e+00> : vector<32x96xf32>
    %22 = tpu.matmul %19, %21, %cst_13 {dimension_numbers = #tpu.dot_dimension_numbers<[1], [0], [0], [1], [0, 0, 1, 1], [], []>} : vector<32x32xbf16>, vector<32x96xbf16>, vector<32x96xf32> -> vector<32x96xf32>
    %c0_14 = arith.constant 0 : index
    %c0_15 = arith.constant 0 : index
    %c0_16 = arith.constant 0 : index
    %23 = vector.load %arg6[%c0_14, %c0_15, %c0_16] : memref<2x1x96xf32, #tpu.memory_space<vmem>>, vector<1x1x96xf32>
    %24 = vector.shape_cast %23 : vector<1x1x96xf32> to vector<1x96xf32>
    %25 = vector.broadcast %24 : vector<1x96xf32> to vector<32x96xf32>
    %26 = arith.addf %22, %25 : vector<32x96xf32>
    %27 = vector.extract_strided_slice %26 {offsets = [0, 0], sizes = [32, 32], strides = [1, 1]} : vector<32x96xf32> to vector<32x32xf32>
    %28 = vector.shape_cast %27 : vector<32x32xf32> to vector<4x8x32xf32>
    %29 = vector.extract_strided_slice %26 {offsets = [0, 32], sizes = [32, 32], strides = [1, 1]} : vector<32x96xf32> to vector<32x32xf32>
    %30 = vector.shape_cast %29 : vector<32x32xf32> to vector<4x8x32xf32>
    %31 = vector.extract_strided_slice %26 {offsets = [0, 64], sizes = [32, 32], strides = [1, 1]} : vector<32x96xf32> to vector<32x32xf32>
    %32 = vector.shape_cast %31 : vector<32x32xf32> to vector<4x8x32xf32>
    %33 = vector.extract_strided_slice %28 {offsets = [0, 0, 0], sizes = [4, 8, 8], strides = [1, 1, 1]} : vector<4x8x32xf32> to vector<4x8x8xf32>
    %34 = arith.truncf %33 : vector<4x8x8xf32> to vector<4x8x8xbf16>
    %35 = vector.extract_strided_slice %30 {offsets = [0, 0, 0], sizes = [4, 8, 8], strides = [1, 1, 1]} : vector<4x8x32xf32> to vector<4x8x8xf32>
    %36 = arith.truncf %35 : vector<4x8x8xf32> to vector<4x8x8xbf16>
    %37 = vector.extract_strided_slice %32 {offsets = [0, 0, 0], sizes = [4, 8, 8], strides = [1, 1, 1]} : vector<4x8x32xf32> to vector<4x8x8xf32>
    %38 = arith.truncf %37 : vector<4x8x8xf32> to vector<4x8x8xbf16>
    "tpu.trace_start"() <{level = 10 : i32, message = "nqd,nkd->nqk"}> : () -> ()
    %cst_17 = arith.constant dense<0.000000e+00> : vector<4x8x8xf32>
    %39 = tpu.matmul %34, %36, %cst_17 {dimension_numbers = #tpu.dot_dimension_numbers<[2], [2], [1], [1], [0, 0, 0, 1, 1, 1], [0], [0]>} : vector<4x8x8xbf16>, vector<4x8x8xbf16>, vector<4x8x8xf32> -> vector<4x8x8xf32>
    "tpu.trace_stop"() : () -> ()
    %cst_18 = arith.constant 0.353553385 : f32
    %40 = vector.broadcast %cst_18 : f32 to vector<4x8x8xf32>
    %41 = arith.mulf %39, %40 : vector<4x8x8xf32>
    %cst_19 = arith.constant dense<0xFF800000> : vector<4x8xf32>
    %42 = vector.multi_reduction <maximumf>, %41, %cst_19 [2] : vector<4x8x8xf32> to vector<4x8xf32>
    %43 = vector.shape_cast %42 : vector<4x8xf32> to vector<4x8x1xf32>
    %44 = vector.broadcast %43 : vector<4x8x1xf32> to vector<4x8x8xf32>
    %45 = arith.subf %41, %44 : vector<4x8x8xf32>
    %46 = math.exp %45 : vector<4x8x8xf32>
    %cst_20 = arith.constant dense<0.000000e+00> : vector<4x8xf32>
    %47 = vector.multi_reduction <add>, %46, %cst_20 [2] : vector<4x8x8xf32> to vector<4x8xf32>
    %48 = vector.shape_cast %47 : vector<4x8xf32> to vector<4x8x1xf32>
    %49 = tpu.reciprocal %48 {approx = true} : vector<4x8x1xf32> -> vector<4x8x1xf32>
    %50 = vector.broadcast %49 : vector<4x8x1xf32> to vector<4x8x8xf32>
    %51 = arith.mulf %46, %50 : vector<4x8x8xf32>
    %52 = arith.truncf %51 : vector<4x8x8xf32> to vector<4x8x8xbf16>
    "tpu.trace_start"() <{level = 10 : i32, message = "nqk,nkd->nqd"}> : () -> ()
    %cst_21 = arith.constant dense<0.000000e+00> : vector<4x8x8xf32>
    %53 = tpu.matmul %52, %38, %cst_21 {dimension_numbers = #tpu.dot_dimension_numbers<[2], [1], [1], [2], [0, 0, 0, 1, 1, 2], [0], [0]>} : vector<4x8x8xbf16>, vector<4x8x8xbf16>, vector<4x8x8xf32> -> vector<4x8x8xf32>
    "tpu.trace_stop"() : () -> ()
    %54 = vector.extract_strided_slice %28 {offsets = [0, 0, 8], sizes = [4, 8, 8], strides = [1, 1, 1]} : vector<4x8x32xf32> to vector<4x8x8xf32>
    %55 = arith.truncf %54 : vector<4x8x8xf32> to vector<4x8x8xbf16>
    %56 = vector.extract_strided_slice %30 {offsets = [0, 0, 8], sizes = [4, 8, 8], strides = [1, 1, 1]} : vector<4x8x32xf32> to vector<4x8x8xf32>
    %57 = arith.truncf %56 : vector<4x8x8xf32> to vector<4x8x8xbf16>
    %58 = vector.extract_strided_slice %32 {offsets = [0, 0, 8], sizes = [4, 8, 8], strides = [1, 1, 1]} : vector<4x8x32xf32> to vector<4x8x8xf32>
    %59 = arith.truncf %58 : vector<4x8x8xf32> to vector<4x8x8xbf16>
    "tpu.trace_start"() <{level = 10 : i32, message = "nqd,nkd->nqk"}> : () -> ()
    %cst_22 = arith.constant dense<0.000000e+00> : vector<4x8x8xf32>
    %60 = tpu.matmul %55, %57, %cst_22 {dimension_numbers = #tpu.dot_dimension_numbers<[2], [2], [1], [1], [0, 0, 0, 1, 1, 1], [0], [0]>} : vector<4x8x8xbf16>, vector<4x8x8xbf16>, vector<4x8x8xf32> -> vector<4x8x8xf32>
    "tpu.trace_stop"() : () -> ()
    %cst_23 = arith.constant 0.353553385 : f32
    %61 = vector.broadcast %cst_23 : f32 to vector<4x8x8xf32>
    %62 = arith.mulf %60, %61 : vector<4x8x8xf32>
    %cst_24 = arith.constant dense<0xFF800000> : vector<4x8xf32>
    %63 = vector.multi_reduction <maximumf>, %62, %cst_24 [2] : vector<4x8x8xf32> to vector<4x8xf32>
    %64 = vector.shape_cast %63 : vector<4x8xf32> to vector<4x8x1xf32>
    %65 = vector.broadcast %64 : vector<4x8x1xf32> to vector<4x8x8xf32>
    %66 = arith.subf %62, %65 : vector<4x8x8xf32>
    %67 = math.exp %66 : vector<4x8x8xf32>
    %cst_25 = arith.constant dense<0.000000e+00> : vector<4x8xf32>
    %68 = vector.multi_reduction <add>, %67, %cst_25 [2] : vector<4x8x8xf32> to vector<4x8xf32>
    %69 = vector.shape_cast %68 : vector<4x8xf32> to vector<4x8x1xf32>
    %70 = tpu.reciprocal %69 {approx = true} : vector<4x8x1xf32> -> vector<4x8x1xf32>
    %71 = vector.broadcast %70 : vector<4x8x1xf32> to vector<4x8x8xf32>
    %72 = arith.mulf %67, %71 : vector<4x8x8xf32>
    %73 = arith.truncf %72 : vector<4x8x8xf32> to vector<4x8x8xbf16>
    "tpu.trace_start"() <{level = 10 : i32, message = "nqk,nkd->nqd"}> : () -> ()
    %cst_26 = arith.constant dense<0.000000e+00> : vector<4x8x8xf32>
    %74 = tpu.matmul %73, %59, %cst_26 {dimension_numbers = #tpu.dot_dimension_numbers<[2], [1], [1], [2], [0, 0, 0, 1, 1, 2], [0], [0]>} : vector<4x8x8xbf16>, vector<4x8x8xbf16>, vector<4x8x8xf32> -> vector<4x8x8xf32>
    "tpu.trace_stop"() : () -> ()
    %75 = vector.extract_strided_slice %28 {offsets = [0, 0, 16], sizes = [4, 8, 8], strides = [1, 1, 1]} : vector<4x8x32xf32> to vector<4x8x8xf32>
    %76 = arith.truncf %75 : vector<4x8x8xf32> to vector<4x8x8xbf16>
    %77 = vector.extract_strided_slice %30 {offsets = [0, 0, 16], sizes = [4, 8, 8], strides = [1, 1, 1]} : vector<4x8x32xf32> to vector<4x8x8xf32>
    %78 = arith.truncf %77 : vector<4x8x8xf32> to vector<4x8x8xbf16>
    %79 = vector.extract_strided_slice %32 {offsets = [0, 0, 16], sizes = [4, 8, 8], strides = [1, 1, 1]} : vector<4x8x32xf32> to vector<4x8x8xf32>
    %80 = arith.truncf %79 : vector<4x8x8xf32> to vector<4x8x8xbf16>
    "tpu.trace_start"() <{level = 10 : i32, message = "nqd,nkd->nqk"}> : () -> ()
    %cst_27 = arith.constant dense<0.000000e+00> : vector<4x8x8xf32>
    %81 = tpu.matmul %76, %78, %cst_27 {dimension_numbers = #tpu.dot_dimension_numbers<[2], [2], [1], [1], [0, 0, 0, 1, 1, 1], [0], [0]>} : vector<4x8x8xbf16>, vector<4x8x8xbf16>, vector<4x8x8xf32> -> vector<4x8x8xf32>
    "tpu.trace_stop"() : () -> ()
    %cst_28 = arith.constant 0.353553385 : f32
    %82 = vector.broadcast %cst_28 : f32 to vector<4x8x8xf32>
    %83 = arith.mulf %81, %82 : vector<4x8x8xf32>
    %cst_29 = arith.constant dense<0xFF800000> : vector<4x8xf32>
    %84 = vector.multi_reduction <maximumf>, %83, %cst_29 [2] : vector<4x8x8xf32> to vector<4x8xf32>
    %85 = vector.shape_cast %84 : vector<4x8xf32> to vector<4x8x1xf32>
    %86 = vector.broadcast %85 : vector<4x8x1xf32> to vector<4x8x8xf32>
    %87 = arith.subf %83, %86 : vector<4x8x8xf32>
    %88 = math.exp %87 : vector<4x8x8xf32>
    %cst_30 = arith.constant dense<0.000000e+00> : vector<4x8xf32>
    %89 = vector.multi_reduction <add>, %88, %cst_30 [2] : vector<4x8x8xf32> to vector<4x8xf32>
    %90 = vector.shape_cast %89 : vector<4x8xf32> to vector<4x8x1xf32>
    %91 = tpu.reciprocal %90 {approx = true} : vector<4x8x1xf32> -> vector<4x8x1xf32>
    %92 = vector.broadcast %91 : vector<4x8x1xf32> to vector<4x8x8xf32>
    %93 = arith.mulf %88, %92 : vector<4x8x8xf32>
    %94 = arith.truncf %93 : vector<4x8x8xf32> to vector<4x8x8xbf16>
    "tpu.trace_start"() <{level = 10 : i32, message = "nqk,nkd->nqd"}> : () -> ()
    %cst_31 = arith.constant dense<0.000000e+00> : vector<4x8x8xf32>
    %95 = tpu.matmul %94, %80, %cst_31 {dimension_numbers = #tpu.dot_dimension_numbers<[2], [1], [1], [2], [0, 0, 0, 1, 1, 2], [0], [0]>} : vector<4x8x8xbf16>, vector<4x8x8xbf16>, vector<4x8x8xf32> -> vector<4x8x8xf32>
    "tpu.trace_stop"() : () -> ()
    %96 = vector.extract_strided_slice %28 {offsets = [0, 0, 24], sizes = [4, 8, 8], strides = [1, 1, 1]} : vector<4x8x32xf32> to vector<4x8x8xf32>
    %97 = arith.truncf %96 : vector<4x8x8xf32> to vector<4x8x8xbf16>
    %98 = vector.extract_strided_slice %30 {offsets = [0, 0, 24], sizes = [4, 8, 8], strides = [1, 1, 1]} : vector<4x8x32xf32> to vector<4x8x8xf32>
    %99 = arith.truncf %98 : vector<4x8x8xf32> to vector<4x8x8xbf16>
    %100 = vector.extract_strided_slice %32 {offsets = [0, 0, 24], sizes = [4, 8, 8], strides = [1, 1, 1]} : vector<4x8x32xf32> to vector<4x8x8xf32>
    %101 = arith.truncf %100 : vector<4x8x8xf32> to vector<4x8x8xbf16>
    "tpu.trace_start"() <{level = 10 : i32, message = "nqd,nkd->nqk"}> : () -> ()
    %cst_32 = arith.constant dense<0.000000e+00> : vector<4x8x8xf32>
    %102 = tpu.matmul %97, %99, %cst_32 {dimension_numbers = #tpu.dot_dimension_numbers<[2], [2], [1], [1], [0, 0, 0, 1, 1, 1], [0], [0]>} : vector<4x8x8xbf16>, vector<4x8x8xbf16>, vector<4x8x8xf32> -> vector<4x8x8xf32>
    "tpu.trace_stop"() : () -> ()
    %cst_33 = arith.constant 0.353553385 : f32
    %103 = vector.broadcast %cst_33 : f32 to vector<4x8x8xf32>
    %104 = arith.mulf %102, %103 : vector<4x8x8xf32>
    %cst_34 = arith.constant dense<0xFF800000> : vector<4x8xf32>
    %105 = vector.multi_reduction <maximumf>, %104, %cst_34 [2] : vector<4x8x8xf32> to vector<4x8xf32>
    %106 = vector.shape_cast %105 : vector<4x8xf32> to vector<4x8x1xf32>
    %107 = vector.broadcast %106 : vector<4x8x1xf32> to vector<4x8x8xf32>
    %108 = arith.subf %104, %107 : vector<4x8x8xf32>
    %109 = math.exp %108 : vector<4x8x8xf32>
    %cst_35 = arith.constant dense<0.000000e+00> : vector<4x8xf32>
    %110 = vector.multi_reduction <add>, %109, %cst_35 [2] : vector<4x8x8xf32> to vector<4x8xf32>
    %111 = vector.shape_cast %110 : vector<4x8xf32> to vector<4x8x1xf32>
    %112 = tpu.reciprocal %111 {approx = true} : vector<4x8x1xf32> -> vector<4x8x1xf32>
    %113 = vector.broadcast %112 : vector<4x8x1xf32> to vector<4x8x8xf32>
    %114 = arith.mulf %109, %113 : vector<4x8x8xf32>
    %115 = arith.truncf %114 : vector<4x8x8xf32> to vector<4x8x8xbf16>
    "tpu.trace_start"() <{level = 10 : i32, message = "nqk,nkd->nqd"}> : () -> ()
    %cst_36 = arith.constant dense<0.000000e+00> : vector<4x8x8xf32>
    %116 = tpu.matmul %115, %101, %cst_36 {dimension_numbers = #tpu.dot_dimension_numbers<[2], [1], [1], [2], [0, 0, 0, 1, 1, 2], [0], [0]>} : vector<4x8x8xbf16>, vector<4x8x8xbf16>, vector<4x8x8xf32> -> vector<4x8x8xf32>
    "tpu.trace_stop"() : () -> ()
    %117 = tpu.concatenate %53, %74, %95, %116 in 2 : vector<4x8x8xf32>, vector<4x8x8xf32>, vector<4x8x8xf32>, vector<4x8x8xf32> -> vector<4x8x32xf32>
    %118 = vector.shape_cast %117 : vector<4x8x32xf32> to vector<32x32xf32>
    %119 = arith.truncf %118 : vector<32x32xf32> to vector<32x32xbf16>
    %c0_37 = arith.constant 0 : index
    %c0_38 = arith.constant 0 : index
    %c0_39 = arith.constant 0 : index
    %120 = vector.load %arg3[%c0_37, %c0_38, %c0_39] : memref<2x32x32xbf16, #tpu.memory_space<vmem>>, vector<1x32x32xbf16>
    %121 = vector.shape_cast %120 : vector<1x32x32xbf16> to vector<32x32xbf16>
    %cst_40 = arith.constant dense<0.000000e+00> : vector<32x32xf32>
    %122 = tpu.matmul %119, %121, %cst_40 {dimension_numbers = #tpu.dot_dimension_numbers<[1], [0], [0], [1], [0, 0, 1, 1], [], []>} : vector<32x32xbf16>, vector<32x32xbf16>, vector<32x32xf32> -> vector<32x32xf32>
    %123 = vector.broadcast %13 : vector<1x32xf32> to vector<32x32xf32>
    %124 = arith.addf %122, %123 : vector<32x32xf32>
    %125 = arith.addf %10, %124 : vector<32x32xf32>
    %cst_41 = arith.constant dense<0.000000e+00> : vector<32xf32>
    %126 = vector.multi_reduction <add>, %125, %cst_41 [1] : vector<32x32xf32> to vector<32xf32>
    %127 = vector.shape_cast %126 : vector<32xf32> to vector<32x1xf32>
    %cst_42 = arith.constant 3.200000e+01 : f32
    %128 = vector.broadcast %cst_42 : f32 to vector<32x1xf32>
    %129 = arith.divf %127, %128 : vector<32x1xf32>
    %130 = vector.broadcast %129 : vector<32x1xf32> to vector<32x32xf32>
    %131 = arith.subf %125, %130 : vector<32x32xf32>
    %132 = arith.mulf %131, %131 : vector<32x32xf32>
    %cst_43 = arith.constant dense<0.000000e+00> : vector<32xf32>
    %133 = vector.multi_reduction <add>, %132, %cst_43 [1] : vector<32x32xf32> to vector<32xf32>
    %134 = vector.shape_cast %133 : vector<32xf32> to vector<32x1xf32>
    %cst_44 = arith.constant 3.200000e+01 : f32
    %135 = vector.broadcast %cst_44 : f32 to vector<32x1xf32>
    %136 = arith.divf %134, %135 : vector<32x1xf32>
    %137 = vector.broadcast %129 : vector<32x1xf32> to vector<32x32xf32>
    %138 = arith.subf %125, %137 : vector<32x32xf32>
    %cst_45 = arith.constant 9.99999974E-6 : f32
    %139 = vector.broadcast %cst_45 : f32 to vector<32x1xf32>
    %140 = arith.addf %136, %139 : vector<32x1xf32>
    %141 = math.rsqrt %140 : vector<32x1xf32>
    %142 = vector.broadcast %141 : vector<32x1xf32> to vector<32x32xf32>
    %143 = arith.mulf %138, %142 : vector<32x32xf32>
    %144 = vector.broadcast %14 : vector<1x32xf32> to vector<32x32xf32>
    %145 = arith.mulf %143, %144 : vector<32x32xf32>
    %146 = vector.broadcast %15 : vector<1x32xf32> to vector<32x32xf32>
    %147 = arith.addf %145, %146 : vector<32x32xf32>
    %148 = arith.truncf %147 : vector<32x32xf32> to vector<32x32xbf16>
    %c0_46 = arith.constant 0 : index
    %c0_47 = arith.constant 0 : index
    %c0_48 = arith.constant 0 : index
    %149 = vector.load %arg4[%c0_46, %c0_47, %c0_48] : memref<2x32x64xbf16, #tpu.memory_space<vmem>>, vector<1x32x64xbf16>
    %150 = vector.shape_cast %149 : vector<1x32x64xbf16> to vector<32x64xbf16>
    %cst_49 = arith.constant dense<0.000000e+00> : vector<32x64xf32>
    %151 = tpu.matmul %148, %150, %cst_49 {dimension_numbers = #tpu.dot_dimension_numbers<[1], [0], [0], [1], [0, 0, 1, 1], [], []>} : vector<32x32xbf16>, vector<32x64xbf16>, vector<32x64xf32> -> vector<32x64xf32>
    %c0_50 = arith.constant 0 : index
    %c0_51 = arith.constant 0 : index
    %c0_52 = arith.constant 0 : index
    %152 = vector.load %arg7[%c0_50, %c0_51, %c0_52] : memref<2x1x64xf32, #tpu.memory_space<vmem>>, vector<1x1x64xf32>
    %153 = vector.shape_cast %152 : vector<1x1x64xf32> to vector<1x64xf32>
    %154 = vector.broadcast %153 : vector<1x64xf32> to vector<32x64xf32>
    %155 = arith.addf %151, %154 : vector<32x64xf32>
    %cst_53 = arith.constant 0.000000e+00 : f32
    %156 = vector.broadcast %cst_53 : f32 to vector<32x64xf32>
    %157 = arith.maximumf %155, %156 : vector<32x64xf32>
    %158 = arith.truncf %157 : vector<32x64xf32> to vector<32x64xbf16>
    %c0_54 = arith.constant 0 : index
    %c0_55 = arith.constant 0 : index
    %c0_56 = arith.constant 0 : index
    %159 = vector.load %arg5[%c0_54, %c0_55, %c0_56] : memref<2x64x32xbf16, #tpu.memory_space<vmem>>, vector<1x64x32xbf16>
    %160 = vector.shape_cast %159 : vector<1x64x32xbf16> to vector<64x32xbf16>
    %cst_57 = arith.constant dense<0.000000e+00> : vector<32x32xf32>
    %161 = tpu.matmul %158, %160, %cst_57 {dimension_numbers = #tpu.dot_dimension_numbers<[1], [0], [0], [1], [0, 0, 1, 1], [], []>} : vector<32x64xbf16>, vector<64x32xbf16>, vector<32x32xf32> -> vector<32x32xf32>
    %162 = vector.broadcast %16 : vector<1x32xf32> to vector<32x32xf32>
    %163 = arith.addf %161, %162 : vector<32x32xf32>
    %164 = arith.addf %147, %163 : vector<32x32xf32>
    %cst_58 = arith.constant dense<0.000000e+00> : vector<32xf32>
    %165 = vector.multi_reduction <add>, %164, %cst_58 [1] : vector<32x32xf32> to vector<32xf32>
    %166 = vector.shape_cast %165 : vector<32xf32> to vector<32x1xf32>
    %cst_59 = arith.constant 3.200000e+01 : f32
    %167 = vector.broadcast %cst_59 : f32 to vector<32x1xf32>
    %168 = arith.divf %166, %167 : vector<32x1xf32>
    %169 = vector.broadcast %168 : vector<32x1xf32> to vector<32x32xf32>
    %170 = arith.subf %164, %169 : vector<32x32xf32>
    %171 = arith.mulf %170, %170 : vector<32x32xf32>
    %cst_60 = arith.constant dense<0.000000e+00> : vector<32xf32>
    %172 = vector.multi_reduction <add>, %171, %cst_60 [1] : vector<32x32xf32> to vector<32xf32>
    %173 = vector.shape_cast %172 : vector<32xf32> to vector<32x1xf32>
    %cst_61 = arith.constant 3.200000e+01 : f32
    %174 = vector.broadcast %cst_61 : f32 to vector<32x1xf32>
    %175 = arith.divf %173, %174 : vector<32x1xf32>
    %176 = vector.broadcast %168 : vector<32x1xf32> to vector<32x32xf32>
    %177 = arith.subf %164, %176 : vector<32x32xf32>
    %cst_62 = arith.constant 9.99999974E-6 : f32
    %178 = vector.broadcast %cst_62 : f32 to vector<32x1xf32>
    %179 = arith.addf %175, %178 : vector<32x1xf32>
    %180 = math.rsqrt %179 : vector<32x1xf32>
    %181 = vector.broadcast %180 : vector<32x1xf32> to vector<32x32xf32>
    %182 = arith.mulf %177, %181 : vector<32x32xf32>
    %183 = vector.broadcast %17 : vector<1x32xf32> to vector<32x32xf32>
    %184 = arith.mulf %182, %183 : vector<32x32xf32>
    %185 = vector.broadcast %18 : vector<1x32xf32> to vector<32x32xf32>
    %186 = arith.addf %184, %185 : vector<32x32xf32>
    %c1 = arith.constant 1 : index
    %c0_63 = arith.constant 0 : index
    %c0_64 = arith.constant 0 : index
    %187 = vector.load %arg8[%c1, %c0_63, %c0_64] : memref<2x6x32xf32, #tpu.memory_space<vmem>>, vector<1x6x32xf32>
    %188 = vector.shape_cast %187 : vector<1x6x32xf32> to vector<6x32xf32>
    %189 = vector.extract_strided_slice %188 {offsets = [0, 0], sizes = [1, 32], strides = [1, 1]} : vector<6x32xf32> to vector<1x32xf32>
    %190 = vector.extract_strided_slice %188 {offsets = [1, 0], sizes = [1, 32], strides = [1, 1]} : vector<6x32xf32> to vector<1x32xf32>
    %191 = vector.extract_strided_slice %188 {offsets = [2, 0], sizes = [1, 32], strides = [1, 1]} : vector<6x32xf32> to vector<1x32xf32>
    %192 = vector.extract_strided_slice %188 {offsets = [3, 0], sizes = [1, 32], strides = [1, 1]} : vector<6x32xf32> to vector<1x32xf32>
    %193 = vector.extract_strided_slice %188 {offsets = [4, 0], sizes = [1, 32], strides = [1, 1]} : vector<6x32xf32> to vector<1x32xf32>
    %194 = vector.extract_strided_slice %188 {offsets = [5, 0], sizes = [1, 32], strides = [1, 1]} : vector<6x32xf32> to vector<1x32xf32>
    %195 = arith.truncf %186 : vector<32x32xf32> to vector<32x32xbf16>
    %c1_65 = arith.constant 1 : index
    %c0_66 = arith.constant 0 : index
    %c0_67 = arith.constant 0 : index
    %196 = vector.load %arg2[%c1_65, %c0_66, %c0_67] : memref<2x32x96xbf16, #tpu.memory_space<vmem>>, vector<1x32x96xbf16>
    %197 = vector.shape_cast %196 : vector<1x32x96xbf16> to vector<32x96xbf16>
    %cst_68 = arith.constant dense<0.000000e+00> : vector<32x96xf32>
    %198 = tpu.matmul %195, %197, %cst_68 {dimension_numbers = #tpu.dot_dimension_numbers<[1], [0], [0], [1], [0, 0, 1, 1], [], []>} : vector<32x32xbf16>, vector<32x96xbf16>, vector<32x96xf32> -> vector<32x96xf32>
    %c1_69 = arith.constant 1 : index
    %c0_70 = arith.constant 0 : index
    %c0_71 = arith.constant 0 : index
    %199 = vector.load %arg6[%c1_69, %c0_70, %c0_71] : memref<2x1x96xf32, #tpu.memory_space<vmem>>, vector<1x1x96xf32>
    %200 = vector.shape_cast %199 : vector<1x1x96xf32> to vector<1x96xf32>
    %201 = vector.broadcast %200 : vector<1x96xf32> to vector<32x96xf32>
    %202 = arith.addf %198, %201 : vector<32x96xf32>
    %203 = vector.extract_strided_slice %202 {offsets = [0, 0], sizes = [32, 32], strides = [1, 1]} : vector<32x96xf32> to vector<32x32xf32>
    %204 = vector.shape_cast %203 : vector<32x32xf32> to vector<4x8x32xf32>
    %205 = vector.extract_strided_slice %202 {offsets = [0, 32], sizes = [32, 32], strides = [1, 1]} : vector<32x96xf32> to vector<32x32xf32>
    %206 = vector.shape_cast %205 : vector<32x32xf32> to vector<4x8x32xf32>
    %207 = vector.extract_strided_slice %202 {offsets = [0, 64], sizes = [32, 32], strides = [1, 1]} : vector<32x96xf32> to vector<32x32xf32>
    %208 = vector.shape_cast %207 : vector<32x32xf32> to vector<4x8x32xf32>
    %209 = vector.extract_strided_slice %204 {offsets = [0, 0, 0], sizes = [4, 8, 8], strides = [1, 1, 1]} : vector<4x8x32xf32> to vector<4x8x8xf32>
    %210 = arith.truncf %209 : vector<4x8x8xf32> to vector<4x8x8xbf16>
    %211 = vector.extract_strided_slice %206 {offsets = [0, 0, 0], sizes = [4, 8, 8], strides = [1, 1, 1]} : vector<4x8x32xf32> to vector<4x8x8xf32>
    %212 = arith.truncf %211 : vector<4x8x8xf32> to vector<4x8x8xbf16>
    %213 = vector.extract_strided_slice %208 {offsets = [0, 0, 0], sizes = [4, 8, 8], strides = [1, 1, 1]} : vector<4x8x32xf32> to vector<4x8x8xf32>
    %214 = arith.truncf %213 : vector<4x8x8xf32> to vector<4x8x8xbf16>
    "tpu.trace_start"() <{level = 10 : i32, message = "nqd,nkd->nqk"}> : () -> ()
    %cst_72 = arith.constant dense<0.000000e+00> : vector<4x8x8xf32>
    %215 = tpu.matmul %210, %212, %cst_72 {dimension_numbers = #tpu.dot_dimension_numbers<[2], [2], [1], [1], [0, 0, 0, 1, 1, 1], [0], [0]>} : vector<4x8x8xbf16>, vector<4x8x8xbf16>, vector<4x8x8xf32> -> vector<4x8x8xf32>
    "tpu.trace_stop"() : () -> ()
    %cst_73 = arith.constant 0.353553385 : f32
    %216 = vector.broadcast %cst_73 : f32 to vector<4x8x8xf32>
    %217 = arith.mulf %215, %216 : vector<4x8x8xf32>
    %cst_74 = arith.constant dense<0xFF800000> : vector<4x8xf32>
    %218 = vector.multi_reduction <maximumf>, %217, %cst_74 [2] : vector<4x8x8xf32> to vector<4x8xf32>
    %219 = vector.shape_cast %218 : vector<4x8xf32> to vector<4x8x1xf32>
    %220 = vector.broadcast %219 : vector<4x8x1xf32> to vector<4x8x8xf32>
    %221 = arith.subf %217, %220 : vector<4x8x8xf32>
    %222 = math.exp %221 : vector<4x8x8xf32>
    %cst_75 = arith.constant dense<0.000000e+00> : vector<4x8xf32>
    %223 = vector.multi_reduction <add>, %222, %cst_75 [2] : vector<4x8x8xf32> to vector<4x8xf32>
    %224 = vector.shape_cast %223 : vector<4x8xf32> to vector<4x8x1xf32>
    %225 = tpu.reciprocal %224 {approx = true} : vector<4x8x1xf32> -> vector<4x8x1xf32>
    %226 = vector.broadcast %225 : vector<4x8x1xf32> to vector<4x8x8xf32>
    %227 = arith.mulf %222, %226 : vector<4x8x8xf32>
    %228 = arith.truncf %227 : vector<4x8x8xf32> to vector<4x8x8xbf16>
    "tpu.trace_start"() <{level = 10 : i32, message = "nqk,nkd->nqd"}> : () -> ()
    %cst_76 = arith.constant dense<0.000000e+00> : vector<4x8x8xf32>
    %229 = tpu.matmul %228, %214, %cst_76 {dimension_numbers = #tpu.dot_dimension_numbers<[2], [1], [1], [2], [0, 0, 0, 1, 1, 2], [0], [0]>} : vector<4x8x8xbf16>, vector<4x8x8xbf16>, vector<4x8x8xf32> -> vector<4x8x8xf32>
    "tpu.trace_stop"() : () -> ()
    %230 = vector.extract_strided_slice %204 {offsets = [0, 0, 8], sizes = [4, 8, 8], strides = [1, 1, 1]} : vector<4x8x32xf32> to vector<4x8x8xf32>
    %231 = arith.truncf %230 : vector<4x8x8xf32> to vector<4x8x8xbf16>
    %232 = vector.extract_strided_slice %206 {offsets = [0, 0, 8], sizes = [4, 8, 8], strides = [1, 1, 1]} : vector<4x8x32xf32> to vector<4x8x8xf32>
    %233 = arith.truncf %232 : vector<4x8x8xf32> to vector<4x8x8xbf16>
    %234 = vector.extract_strided_slice %208 {offsets = [0, 0, 8], sizes = [4, 8, 8], strides = [1, 1, 1]} : vector<4x8x32xf32> to vector<4x8x8xf32>
    %235 = arith.truncf %234 : vector<4x8x8xf32> to vector<4x8x8xbf16>
    "tpu.trace_start"() <{level = 10 : i32, message = "nqd,nkd->nqk"}> : () -> ()
    %cst_77 = arith.constant dense<0.000000e+00> : vector<4x8x8xf32>
    %236 = tpu.matmul %231, %233, %cst_77 {dimension_numbers = #tpu.dot_dimension_numbers<[2], [2], [1], [1], [0, 0, 0, 1, 1, 1], [0], [0]>} : vector<4x8x8xbf16>, vector<4x8x8xbf16>, vector<4x8x8xf32> -> vector<4x8x8xf32>
    "tpu.trace_stop"() : () -> ()
    %cst_78 = arith.constant 0.353553385 : f32
    %237 = vector.broadcast %cst_78 : f32 to vector<4x8x8xf32>
    %238 = arith.mulf %236, %237 : vector<4x8x8xf32>
    %cst_79 = arith.constant dense<0xFF800000> : vector<4x8xf32>
    %239 = vector.multi_reduction <maximumf>, %238, %cst_79 [2] : vector<4x8x8xf32> to vector<4x8xf32>
    %240 = vector.shape_cast %239 : vector<4x8xf32> to vector<4x8x1xf32>
    %241 = vector.broadcast %240 : vector<4x8x1xf32> to vector<4x8x8xf32>
    %242 = arith.subf %238, %241 : vector<4x8x8xf32>
    %243 = math.exp %242 : vector<4x8x8xf32>
    %cst_80 = arith.constant dense<0.000000e+00> : vector<4x8xf32>
    %244 = vector.multi_reduction <add>, %243, %cst_80 [2] : vector<4x8x8xf32> to vector<4x8xf32>
    %245 = vector.shape_cast %244 : vector<4x8xf32> to vector<4x8x1xf32>
    %246 = tpu.reciprocal %245 {approx = true} : vector<4x8x1xf32> -> vector<4x8x1xf32>
    %247 = vector.broadcast %246 : vector<4x8x1xf32> to vector<4x8x8xf32>
    %248 = arith.mulf %243, %247 : vector<4x8x8xf32>
    %249 = arith.truncf %248 : vector<4x8x8xf32> to vector<4x8x8xbf16>
    "tpu.trace_start"() <{level = 10 : i32, message = "nqk,nkd->nqd"}> : () -> ()
    %cst_81 = arith.constant dense<0.000000e+00> : vector<4x8x8xf32>
    %250 = tpu.matmul %249, %235, %cst_81 {dimension_numbers = #tpu.dot_dimension_numbers<[2], [1], [1], [2], [0, 0, 0, 1, 1, 2], [0], [0]>} : vector<4x8x8xbf16>, vector<4x8x8xbf16>, vector<4x8x8xf32> -> vector<4x8x8xf32>
    "tpu.trace_stop"() : () -> ()
    %251 = vector.extract_strided_slice %204 {offsets = [0, 0, 16], sizes = [4, 8, 8], strides = [1, 1, 1]} : vector<4x8x32xf32> to vector<4x8x8xf32>
    %252 = arith.truncf %251 : vector<4x8x8xf32> to vector<4x8x8xbf16>
    %253 = vector.extract_strided_slice %206 {offsets = [0, 0, 16], sizes = [4, 8, 8], strides = [1, 1, 1]} : vector<4x8x32xf32> to vector<4x8x8xf32>
    %254 = arith.truncf %253 : vector<4x8x8xf32> to vector<4x8x8xbf16>
    %255 = vector.extract_strided_slice %208 {offsets = [0, 0, 16], sizes = [4, 8, 8], strides = [1, 1, 1]} : vector<4x8x32xf32> to vector<4x8x8xf32>
    %256 = arith.truncf %255 : vector<4x8x8xf32> to vector<4x8x8xbf16>
    "tpu.trace_start"() <{level = 10 : i32, message = "nqd,nkd->nqk"}> : () -> ()
    %cst_82 = arith.constant dense<0.000000e+00> : vector<4x8x8xf32>
    %257 = tpu.matmul %252, %254, %cst_82 {dimension_numbers = #tpu.dot_dimension_numbers<[2], [2], [1], [1], [0, 0, 0, 1, 1, 1], [0], [0]>} : vector<4x8x8xbf16>, vector<4x8x8xbf16>, vector<4x8x8xf32> -> vector<4x8x8xf32>
    "tpu.trace_stop"() : () -> ()
    %cst_83 = arith.constant 0.353553385 : f32
    %258 = vector.broadcast %cst_83 : f32 to vector<4x8x8xf32>
    %259 = arith.mulf %257, %258 : vector<4x8x8xf32>
    %cst_84 = arith.constant dense<0xFF800000> : vector<4x8xf32>
    %260 = vector.multi_reduction <maximumf>, %259, %cst_84 [2] : vector<4x8x8xf32> to vector<4x8xf32>
    %261 = vector.shape_cast %260 : vector<4x8xf32> to vector<4x8x1xf32>
    %262 = vector.broadcast %261 : vector<4x8x1xf32> to vector<4x8x8xf32>
    %263 = arith.subf %259, %262 : vector<4x8x8xf32>
    %264 = math.exp %263 : vector<4x8x8xf32>
    %cst_85 = arith.constant dense<0.000000e+00> : vector<4x8xf32>
    %265 = vector.multi_reduction <add>, %264, %cst_85 [2] : vector<4x8x8xf32> to vector<4x8xf32>
    %266 = vector.shape_cast %265 : vector<4x8xf32> to vector<4x8x1xf32>
    %267 = tpu.reciprocal %266 {approx = true} : vector<4x8x1xf32> -> vector<4x8x1xf32>
    %268 = vector.broadcast %267 : vector<4x8x1xf32> to vector<4x8x8xf32>
    %269 = arith.mulf %264, %268 : vector<4x8x8xf32>
    %270 = arith.truncf %269 : vector<4x8x8xf32> to vector<4x8x8xbf16>
    "tpu.trace_start"() <{level = 10 : i32, message = "nqk,nkd->nqd"}> : () -> ()
    %cst_86 = arith.constant dense<0.000000e+00> : vector<4x8x8xf32>
    %271 = tpu.matmul %270, %256, %cst_86 {dimension_numbers = #tpu.dot_dimension_numbers<[2], [1], [1], [2], [0, 0, 0, 1, 1, 2], [0], [0]>} : vector<4x8x8xbf16>, vector<4x8x8xbf16>, vector<4x8x8xf32> -> vector<4x8x8xf32>
    "tpu.trace_stop"() : () -> ()
    %272 = vector.extract_strided_slice %204 {offsets = [0, 0, 24], sizes = [4, 8, 8], strides = [1, 1, 1]} : vector<4x8x32xf32> to vector<4x8x8xf32>
    %273 = arith.truncf %272 : vector<4x8x8xf32> to vector<4x8x8xbf16>
    %274 = vector.extract_strided_slice %206 {offsets = [0, 0, 24], sizes = [4, 8, 8], strides = [1, 1, 1]} : vector<4x8x32xf32> to vector<4x8x8xf32>
    %275 = arith.truncf %274 : vector<4x8x8xf32> to vector<4x8x8xbf16>
    %276 = vector.extract_strided_slice %208 {offsets = [0, 0, 24], sizes = [4, 8, 8], strides = [1, 1, 1]} : vector<4x8x32xf32> to vector<4x8x8xf32>
    %277 = arith.truncf %276 : vector<4x8x8xf32> to vector<4x8x8xbf16>
    "tpu.trace_start"() <{level = 10 : i32, message = "nqd,nkd->nqk"}> : () -> ()
    %cst_87 = arith.constant dense<0.000000e+00> : vector<4x8x8xf32>
    %278 = tpu.matmul %273, %275, %cst_87 {dimension_numbers = #tpu.dot_dimension_numbers<[2], [2], [1], [1], [0, 0, 0, 1, 1, 1], [0], [0]>} : vector<4x8x8xbf16>, vector<4x8x8xbf16>, vector<4x8x8xf32> -> vector<4x8x8xf32>
    "tpu.trace_stop"() : () -> ()
    %cst_88 = arith.constant 0.353553385 : f32
    %279 = vector.broadcast %cst_88 : f32 to vector<4x8x8xf32>
    %280 = arith.mulf %278, %279 : vector<4x8x8xf32>
    %cst_89 = arith.constant dense<0xFF800000> : vector<4x8xf32>
    %281 = vector.multi_reduction <maximumf>, %280, %cst_89 [2] : vector<4x8x8xf32> to vector<4x8xf32>
    %282 = vector.shape_cast %281 : vector<4x8xf32> to vector<4x8x1xf32>
    %283 = vector.broadcast %282 : vector<4x8x1xf32> to vector<4x8x8xf32>
    %284 = arith.subf %280, %283 : vector<4x8x8xf32>
    %285 = math.exp %284 : vector<4x8x8xf32>
    %cst_90 = arith.constant dense<0.000000e+00> : vector<4x8xf32>
    %286 = vector.multi_reduction <add>, %285, %cst_90 [2] : vector<4x8x8xf32> to vector<4x8xf32>
    %287 = vector.shape_cast %286 : vector<4x8xf32> to vector<4x8x1xf32>
    %288 = tpu.reciprocal %287 {approx = true} : vector<4x8x1xf32> -> vector<4x8x1xf32>
    %289 = vector.broadcast %288 : vector<4x8x1xf32> to vector<4x8x8xf32>
    %290 = arith.mulf %285, %289 : vector<4x8x8xf32>
    %291 = arith.truncf %290 : vector<4x8x8xf32> to vector<4x8x8xbf16>
    "tpu.trace_start"() <{level = 10 : i32, message = "nqk,nkd->nqd"}> : () -> ()
    %cst_91 = arith.constant dense<0.000000e+00> : vector<4x8x8xf32>
    %292 = tpu.matmul %291, %277, %cst_91 {dimension_numbers = #tpu.dot_dimension_numbers<[2], [1], [1], [2], [0, 0, 0, 1, 1, 2], [0], [0]>} : vector<4x8x8xbf16>, vector<4x8x8xbf16>, vector<4x8x8xf32> -> vector<4x8x8xf32>
    "tpu.trace_stop"() : () -> ()
    %293 = tpu.concatenate %229, %250, %271, %292 in 2 : vector<4x8x8xf32>, vector<4x8x8xf32>, vector<4x8x8xf32>, vector<4x8x8xf32> -> vector<4x8x32xf32>
    %294 = vector.shape_cast %293 : vector<4x8x32xf32> to vector<32x32xf32>
    %295 = arith.truncf %294 : vector<32x32xf32> to vector<32x32xbf16>
    %c1_92 = arith.constant 1 : index
    %c0_93 = arith.constant 0 : index
    %c0_94 = arith.constant 0 : index
    %296 = vector.load %arg3[%c1_92, %c0_93, %c0_94] : memref<2x32x32xbf16, #tpu.memory_space<vmem>>, vector<1x32x32xbf16>
    %297 = vector.shape_cast %296 : vector<1x32x32xbf16> to vector<32x32xbf16>
    %cst_95 = arith.constant dense<0.000000e+00> : vector<32x32xf32>
    %298 = tpu.matmul %295, %297, %cst_95 {dimension_numbers = #tpu.dot_dimension_numbers<[1], [0], [0], [1], [0, 0, 1, 1], [], []>} : vector<32x32xbf16>, vector<32x32xbf16>, vector<32x32xf32> -> vector<32x32xf32>
    %299 = vector.broadcast %189 : vector<1x32xf32> to vector<32x32xf32>
    %300 = arith.addf %298, %299 : vector<32x32xf32>
    %301 = arith.addf %186, %300 : vector<32x32xf32>
    %cst_96 = arith.constant dense<0.000000e+00> : vector<32xf32>
    %302 = vector.multi_reduction <add>, %301, %cst_96 [1] : vector<32x32xf32> to vector<32xf32>
    %303 = vector.shape_cast %302 : vector<32xf32> to vector<32x1xf32>
    %cst_97 = arith.constant 3.200000e+01 : f32
    %304 = vector.broadcast %cst_97 : f32 to vector<32x1xf32>
    %305 = arith.divf %303, %304 : vector<32x1xf32>
    %306 = vector.broadcast %305 : vector<32x1xf32> to vector<32x32xf32>
    %307 = arith.subf %301, %306 : vector<32x32xf32>
    %308 = arith.mulf %307, %307 : vector<32x32xf32>
    %cst_98 = arith.constant dense<0.000000e+00> : vector<32xf32>
    %309 = vector.multi_reduction <add>, %308, %cst_98 [1] : vector<32x32xf32> to vector<32xf32>
    %310 = vector.shape_cast %309 : vector<32xf32> to vector<32x1xf32>
    %cst_99 = arith.constant 3.200000e+01 : f32
    %311 = vector.broadcast %cst_99 : f32 to vector<32x1xf32>
    %312 = arith.divf %310, %311 : vector<32x1xf32>
    %313 = vector.broadcast %305 : vector<32x1xf32> to vector<32x32xf32>
    %314 = arith.subf %301, %313 : vector<32x32xf32>
    %cst_100 = arith.constant 9.99999974E-6 : f32
    %315 = vector.broadcast %cst_100 : f32 to vector<32x1xf32>
    %316 = arith.addf %312, %315 : vector<32x1xf32>
    %317 = math.rsqrt %316 : vector<32x1xf32>
    %318 = vector.broadcast %317 : vector<32x1xf32> to vector<32x32xf32>
    %319 = arith.mulf %314, %318 : vector<32x32xf32>
    %320 = vector.broadcast %190 : vector<1x32xf32> to vector<32x32xf32>
    %321 = arith.mulf %319, %320 : vector<32x32xf32>
    %322 = vector.broadcast %191 : vector<1x32xf32> to vector<32x32xf32>
    %323 = arith.addf %321, %322 : vector<32x32xf32>
    %324 = arith.truncf %323 : vector<32x32xf32> to vector<32x32xbf16>
    %c1_101 = arith.constant 1 : index
    %c0_102 = arith.constant 0 : index
    %c0_103 = arith.constant 0 : index
    %325 = vector.load %arg4[%c1_101, %c0_102, %c0_103] : memref<2x32x64xbf16, #tpu.memory_space<vmem>>, vector<1x32x64xbf16>
    %326 = vector.shape_cast %325 : vector<1x32x64xbf16> to vector<32x64xbf16>
    %cst_104 = arith.constant dense<0.000000e+00> : vector<32x64xf32>
    %327 = tpu.matmul %324, %326, %cst_104 {dimension_numbers = #tpu.dot_dimension_numbers<[1], [0], [0], [1], [0, 0, 1, 1], [], []>} : vector<32x32xbf16>, vector<32x64xbf16>, vector<32x64xf32> -> vector<32x64xf32>
    %c1_105 = arith.constant 1 : index
    %c0_106 = arith.constant 0 : index
    %c0_107 = arith.constant 0 : index
    %328 = vector.load %arg7[%c1_105, %c0_106, %c0_107] : memref<2x1x64xf32, #tpu.memory_space<vmem>>, vector<1x1x64xf32>
    %329 = vector.shape_cast %328 : vector<1x1x64xf32> to vector<1x64xf32>
    %330 = vector.broadcast %329 : vector<1x64xf32> to vector<32x64xf32>
    %331 = arith.addf %327, %330 : vector<32x64xf32>
    %cst_108 = arith.constant 0.000000e+00 : f32
    %332 = vector.broadcast %cst_108 : f32 to vector<32x64xf32>
    %333 = arith.maximumf %331, %332 : vector<32x64xf32>
    %334 = arith.truncf %333 : vector<32x64xf32> to vector<32x64xbf16>
    %c1_109 = arith.constant 1 : index
    %c0_110 = arith.constant 0 : index
    %c0_111 = arith.constant 0 : index
    %335 = vector.load %arg5[%c1_109, %c0_110, %c0_111] : memref<2x64x32xbf16, #tpu.memory_space<vmem>>, vector<1x64x32xbf16>
    %336 = vector.shape_cast %335 : vector<1x64x32xbf16> to vector<64x32xbf16>
    %cst_112 = arith.constant dense<0.000000e+00> : vector<32x32xf32>
    %337 = tpu.matmul %334, %336, %cst_112 {dimension_numbers = #tpu.dot_dimension_numbers<[1], [0], [0], [1], [0, 0, 1, 1], [], []>} : vector<32x64xbf16>, vector<64x32xbf16>, vector<32x32xf32> -> vector<32x32xf32>
    %338 = vector.broadcast %192 : vector<1x32xf32> to vector<32x32xf32>
    %339 = arith.addf %337, %338 : vector<32x32xf32>
    %340 = arith.addf %323, %339 : vector<32x32xf32>
    %cst_113 = arith.constant dense<0.000000e+00> : vector<32xf32>
    %341 = vector.multi_reduction <add>, %340, %cst_113 [1] : vector<32x32xf32> to vector<32xf32>
    %342 = vector.shape_cast %341 : vector<32xf32> to vector<32x1xf32>
    %cst_114 = arith.constant 3.200000e+01 : f32
    %343 = vector.broadcast %cst_114 : f32 to vector<32x1xf32>
    %344 = arith.divf %342, %343 : vector<32x1xf32>
    %345 = vector.broadcast %344 : vector<32x1xf32> to vector<32x32xf32>
    %346 = arith.subf %340, %345 : vector<32x32xf32>
    %347 = arith.mulf %346, %346 : vector<32x32xf32>
    %cst_115 = arith.constant dense<0.000000e+00> : vector<32xf32>
    %348 = vector.multi_reduction <add>, %347, %cst_115 [1] : vector<32x32xf32> to vector<32xf32>
    %349 = vector.shape_cast %348 : vector<32xf32> to vector<32x1xf32>
    %cst_116 = arith.constant 3.200000e+01 : f32
    %350 = vector.broadcast %cst_116 : f32 to vector<32x1xf32>
    %351 = arith.divf %349, %350 : vector<32x1xf32>
    %352 = vector.broadcast %344 : vector<32x1xf32> to vector<32x32xf32>
    %353 = arith.subf %340, %352 : vector<32x32xf32>
    %cst_117 = arith.constant 9.99999974E-6 : f32
    %354 = vector.broadcast %cst_117 : f32 to vector<32x1xf32>
    %355 = arith.addf %351, %354 : vector<32x1xf32>
    %356 = math.rsqrt %355 : vector<32x1xf32>
    %357 = vector.broadcast %356 : vector<32x1xf32> to vector<32x32xf32>
    %358 = arith.mulf %353, %357 : vector<32x32xf32>
    %359 = vector.broadcast %193 : vector<1x32xf32> to vector<32x32xf32>
    %360 = arith.mulf %358, %359 : vector<32x32xf32>
    %361 = vector.broadcast %194 : vector<1x32xf32> to vector<32x32xf32>
    %362 = arith.addf %360, %361 : vector<32x32xf32>
    %363 = vector.shape_cast %362 : vector<32x32xf32> to vector<4x8x32xf32>
    %cst_118 = arith.constant dense<0xFF800000> : vector<4x32xf32>
    %364 = vector.multi_reduction <maximumf>, %363, %cst_118 [1] : vector<4x8x32xf32> to vector<4x32xf32>
    %365 = vector.extract_strided_slice %364 {offsets = [0, 0], sizes = [2, 32], strides = [1, 1]} : vector<4x32xf32> to vector<2x32xf32>
    %366 = vector.extract_strided_slice %364 {offsets = [2, 0], sizes = [2, 32], strides = [1, 1]} : vector<4x32xf32> to vector<2x32xf32>
    %367 = arith.mulf %365, %366 : vector<2x32xf32>
    %cst_119 = arith.constant dense<0.000000e+00> : vector<2xf32>
    %368 = vector.multi_reduction <add>, %367, %cst_119 [1] : vector<2x32xf32> to vector<2xf32>
    %369 = vector.shape_cast %368 : vector<2xf32> to vector<2x1xf32>
    %370 = arith.mulf %365, %365 : vector<2x32xf32>
    %cst_120 = arith.constant dense<0.000000e+00> : vector<2xf32>
    %371 = vector.multi_reduction <add>, %370, %cst_120 [1] : vector<2x32xf32> to vector<2xf32>
    %372 = vector.shape_cast %371 : vector<2xf32> to vector<2x1xf32>
    %373 = math.sqrt %372 : vector<2x1xf32>
    %cst_121 = arith.constant 9.99999993E-9 : f32
    %374 = vector.broadcast %cst_121 : f32 to vector<2x1xf32>
    %375 = arith.maximumf %373, %374 : vector<2x1xf32>
    %376 = arith.mulf %366, %366 : vector<2x32xf32>
    %cst_122 = arith.constant dense<0.000000e+00> : vector<2xf32>
    %377 = vector.multi_reduction <add>, %376, %cst_122 [1] : vector<2x32xf32> to vector<2xf32>
    %378 = vector.shape_cast %377 : vector<2xf32> to vector<2x1xf32>
    %379 = math.sqrt %378 : vector<2x1xf32>
    %cst_123 = arith.constant 9.99999993E-9 : f32
    %380 = vector.broadcast %cst_123 : f32 to vector<2x1xf32>
    %381 = arith.maximumf %379, %380 : vector<2x1xf32>
    %382 = arith.mulf %375, %381 : vector<2x1xf32>
    %383 = tpu.reciprocal %382 : vector<2x1xf32> -> vector<2x1xf32>
    %384 = arith.mulf %369, %383 : vector<2x1xf32>
    %cst_124 = arith.constant 0.000000e+00 : f32
    %cst_125 = arith.constant 1.000000e+00 : f32
    %385 = vector.broadcast %cst_124 : f32 to vector<2x1xf32>
    %386 = arith.maximumf %385, %384 : vector<2x1xf32>
    %387 = vector.broadcast %cst_125 : f32 to vector<2x1xf32>
    %388 = arith.minimumf %387, %386 : vector<2x1xf32>
    %389 = vector.shape_cast %388 : vector<2x1xf32> to vector<2x1x1xf32>
    %390 = vector.shape_cast %389 : vector<2x1x1xf32> to vector<2x1x1xf32>
    %391 = vector.broadcast %390 : vector<2x1x1xf32> to vector<2x8x128xf32>
    %c0_126 = arith.constant 0 : index
    %c0_127 = arith.constant 0 : index
    %c0_128 = arith.constant 0 : index
    %392 = vector.load %arg9[%c0_126, %c0_127, %c0_128] : memref<2x8x128xf32, #tpu.memory_space<vmem>>, vector<2x8x128xf32>
    tpu.vector_store %arg9[%c0_126, %c0_127, %c0_128], %391 {strides = array<i32>} : memref<2x8x128xf32, #tpu.memory_space<vmem>>, vector<2x8x128xf32>,
    return
  }
}

</mosaic_0001>

<bundles_post_ra>
// kernel: transformer_model_forward.1
= control target key start
LH: loop header
LB: loop body
LE: loop exit
PB: predicated region body
PF: predicated region fallthrough
CT: control target
= control target key end

     0   :  { %vm65_vm0 = vcmask 257024   ;;  %vm481_vm1 = vcmask 1041409   ;;  %vm484_vm2 = vcmask 1042434   ;;  %vm487_vm3 = vcmask 1043459   ;;  %s8950_s15 = smov 96   ;;  %s8951_s16 = smov 64   ;;  %s12692_s2 = inlined_call_operand.vmem [shape: bf16[2,32,96], index: 2, kind: input, shape index: {}]   ;;  %s12693_s0 = inlined_call_operand.vmem [shape: f32[2,2,8,4,32], index: 0, kind: input, shape index: {}]   ;;  %s12694_s1 = inlined_call_operand.vmem [shape: f32[8,32], index: 1, kind: input, shape index: {}]   ;;  %s12695_s6 = inlined_call_operand.vmem [shape: f32[2,1,96], index: 6, kind: input, shape index: {}]   ;;  %s12696_s3 = inlined_call_operand.vmem [shape: bf16[2,32,32], index: 3, kind: input, shape index: {}]   ;;  %s12697_s8 = inlined_call_operand.vmem [shape: f32[2,6,32], index: 8, kind: input, shape index: {}]   ;;  %s12698_s4 = inlined_call_operand.vmem [shape: bf16[2,32,64], index: 4, kind: input, shape index: {}]   ;;  %s12699_s5 = inlined_call_operand.vmem [shape: bf16[2,64,32], index: 5, kind: input, shape index: {}]   ;;  %s12700_s7 = inlined_call_operand.vmem [shape: f32[2,1,64], index: 7, kind: input, shape index: {}]   ;;  %s12701_s9 = inlined_call_operand.vmem [shape: f32[2,8,128], index: 9, kind: output, shape index: {}]  }
   0x1   :  { %v8760_v0 = vld [vmem:[%s12692_s2] sm:$0xff]   ;;  %v8761_v1 = vld [vmem:[%s12692_s2 + $0x8] sm:$0xff]   ;;  %v37_v6 = vld [vmem:[%s12693_s0 + $0x10] sm:$0xf]  ;;  %vm490_vm4 = vcmask 1044484   ;;  %vm493_vm5 = vcmask 1045509  }
   0x2   :  { %8228 = vmatprep.subr.bf16.mxu1 %v8760_v0  ;;  %v33_v2 = vld [vmem:[%s12693_s0] sm:$0xf]  ;;  %v34_v3 = vld [vmem:[%s12693_s0 + $0x4] sm:$0xf]  ;;  %v35_v4 = vld [vmem:[%s12693_s0 + $0x8] sm:$0xf] }
   0x3   :  { %8229 = vmatpush3.bf16.msra.mxu1 %v8760_v0  ;;  %v36_v5 = vld [vmem:[%s12693_s0 + $0xc] sm:$0xf]  ;;  %v38_v7 = vld [vmem:[%s12693_s0 + $0x14] sm:$0xf]  ;;  %v39_v8 = vld [vmem:[%s12693_s0 + $0x18] sm:$0xf] }
   0x4   :  { %8230 = vmatprep.subr.bf16.mxu1 %v8761_v1  ;;  %v40_v9 = vld [vmem:[%s12693_s0 + $0x1c] sm:$0xf]  ;;  %v66_v10 = vsel %vm65_vm0, %v33_v2, 0.0  ;;  %v73_v11 = vsel %vm65_vm0, %v34_v3, 0.0  ;;  %v80_v12 = vsel %vm65_vm0, %v35_v4, 0.0  ;;  %v87_v13 = vsel %vm65_vm0, %v36_v5, 0.0 }
   0x5   :  { %v67_v14 = vrot.slane %v66_v10, 4  ;;  %v74_v15 = vrot.slane %v73_v11, 4  ;;  %v81_v16 = vrot.slane %v80_v12, 4  ;;  %v88_v17 = vrot.slane %v87_v13, 4  ;;  %v41_v42 = vld [vmem:[%s12693_s0 + $0x20] sm:$0xf] }
   0x6   :  { %v94_v18 = vsel %vm65_vm0, %v37_v6, 0.0  ;;  %v101_v19 = vsel %vm65_vm0, %v38_v7, 0.0  ;;  %v108_v20 = vsel %vm65_vm0, %v39_v8, 0.0  ;;  %v115_v21 = vsel %vm65_vm0, %v40_v9, 0.0  ;;  %v42_v47 = vld [vmem:[%s12693_s0 + $0x24] sm:$0xf] }
   0x7   :  { %8231 = vmatpush3.bf16.msra.mxu1 %v8761_v1  ;;  %v68_v22 = vadd.f32 %v67_v14, %v66_v10  ;;  %v75_v23 = vadd.f32 %v74_v15, %v73_v11  ;;  %v82_v24 = vadd.f32 %v81_v16, %v80_v12  ;;  %v89_v25 = vadd.f32 %v88_v17, %v87_v13  ;;  %v43_v52 = vld [vmem:[%s12693_s0 + $0x28] sm:$0xf]  ;;  %v44_v53 = vld [vmem:[%s12693_s0 + $0x2c] sm:$0xf]  ;;  %v45_v58 = vld [vmem:[%s12693_s0 + $0x30] sm:$0xf] }
   0x8   :  { %v95_v26 = vrot.slane %v94_v18, 4  ;;  %v102_v27 = vrot.slane %v101_v19, 4  ;;  %v109_v28 = vrot.slane %v108_v20, 4  ;;  %v116_v29 = vrot.slane %v115_v21, 4  ;;  %v46_v59 = vld [vmem:[%s12693_s0 + $0x34] sm:$0xf] }
   0x9   :  { %v69_v30 = vrot.slane %v68_v22, 2  ;;  %v76_v31 = vrot.slane %v75_v23, 2  ;;  %v83_v32 = vrot.slane %v82_v24, 2  ;;  %v90_v33 = vrot.slane %v89_v25, 2  ;;  %v47_v0 = vld [vmem:[%s12693_s0 + $0x38] sm:$0xf] }
   0xa   :  { %v96_v34 = vadd.f32 %v95_v26, %v94_v18  ;;  %v103_v35 = vadd.f32 %v102_v27, %v101_v19  ;;  %v110_v36 = vadd.f32 %v109_v28, %v108_v20  ;;  %v117_v37 = vadd.f32 %v116_v29, %v115_v21  ;;  %v48_v5 = vld [vmem:[%s12693_s0 + $0x3c] sm:$0xf]  ;;  %s8952_s17 = smov 88   ;;  %s8953_s18 = smov 120  }
   0xb   :  { %v70_v38 = vadd.f32 %v69_v30, %v68_v22  ;;  %v77_v39 = vadd.f32 %v76_v31, %v75_v23  ;;  %v84_v40 = vadd.f32 %v83_v32, %v82_v24  ;;  %v91_v41 = vadd.f32 %v90_v33, %v89_v25  ;;  %s8954_s19 = smov 56   ;;  %s8955_s20 = smov 80  }
   0xc   :  { %v97_v43 = vrot.slane %v96_v34, 2  ;;  %v104_v44 = vrot.slane %v103_v35, 2  ;;  %v111_v45 = vrot.slane %v110_v36, 2  ;;  %v118_v46 = vrot.slane %v117_v37, 2  ;;  %s8956_s21 = smov 112   ;;  %s8957_s22 = smov 48  }
   0xd   :  { %v71_v48 = vrot.slane %v70_v38, 1  ;;  %v78_v49 = vrot.slane %v77_v39, 1  ;;  %v85_v50 = vrot.slane %v84_v40, 1  ;;  %v92_v51 = vrot.slane %v91_v41, 1  ;;  %s8958_s23 = smov 72   ;;  %s8959_s24 = smov 104  }
   0xe   :  { %v98_v54 = vadd.f32 %v97_v43, %v96_v34  ;;  %v105_v55 = vadd.f32 %v104_v44, %v103_v35  ;;  %v112_v56 = vadd.f32 %v111_v45, %v110_v36  ;;  %v119_v57 = vadd.f32 %v118_v46, %v117_v37  ;;  %s8960_s25 = smov 40   ;;  %s8962_s26 = smov 16  }
   0xf   :  { %v9070_v60 = vadd.f32 %v71_v48, %v70_v38  ;;  %v9072_v61 = vadd.f32 %v78_v49, %v77_v39  ;;  %v9074_v62 = vadd.f32 %v85_v50, %v84_v40  ;;  %v9076_v63 = vadd.f32 %v92_v51, %v91_v41  ;;  %s8963_s10 = smov 24  }
  0x10   :  { %v99_v1 = vrot.slane %v98_v54, 1  ;;  %v106_v2 = vrot.slane %v105_v55, 1  ;;  %v113_v3 = vrot.slane %v112_v56, 1  ;;  %v120_v4 = vrot.slane %v119_v57, 1 }
  0x11   :  { %v122_v6 = vsel %vm65_vm0, %v41_v42, 0.0  ;;  %v129_v7 = vsel %vm65_vm0, %v42_v47, 0.0  ;;  %v136_v8 = vsel %vm65_vm0, %v43_v52, 0.0  ;;  %v143_v9 = vsel %vm65_vm0, %v44_v53, 0.0 }
  0x12   :  { %v100_v10 = vadd.f32 %v99_v1, %v98_v54  ;;  %v107_v11 = vadd.f32 %v106_v2, %v105_v55  ;;  %v114_v12 = vadd.f32 %v113_v3, %v112_v56  ;;  %v121_v13 = vadd.f32 %v120_v4, %v119_v57 }
  0x13   :  { %v123_v14 = vrot.slane %v122_v6, 4  ;;  %v130_v15 = vrot.slane %v129_v7, 4  ;;  %v137_v16 = vrot.slane %v136_v8, 4  ;;  %v144_v17 = vrot.slane %v143_v9, 4 }
  0x14   :  { %v150_v18 = vsel %vm65_vm0, %v45_v58, 0.0  ;;  %v157_v19 = vsel %vm65_vm0, %v46_v59, 0.0  ;;  %v164_v20 = vsel %vm65_vm0, %v47_v0, 0.0  ;;  %v171_v21 = vsel %vm65_vm0, %v48_v5, 0.0 }
  0x15   :  { %v124_v22 = vadd.f32 %v123_v14, %v122_v6  ;;  %v131_v23 = vadd.f32 %v130_v15, %v129_v7  ;;  %v138_v24 = vadd.f32 %v137_v16, %v136_v8  ;;  %v145_v25 = vadd.f32 %v144_v17, %v143_v9 }
  0x16   :  { %v151_v26 = vrot.slane %v150_v18, 4  ;;  %v158_v27 = vrot.slane %v157_v19, 4  ;;  %v165_v28 = vrot.slane %v164_v20, 4  ;;  %v172_v29 = vrot.slane %v171_v21, 4 }
  0x17   :  { %v125_v30 = vrot.slane %v124_v22, 2  ;;  %v132_v31 = vrot.slane %v131_v23, 2  ;;  %v139_v32 = vrot.slane %v138_v24, 2  ;;  %v146_v33 = vrot.slane %v145_v25, 2 }
  0x18   :  { %v152_v34 = vadd.f32 %v151_v26, %v150_v18  ;;  %v159_v35 = vadd.f32 %v158_v27, %v157_v19  ;;  %v166_v36 = vadd.f32 %v165_v28, %v164_v20  ;;  %v173_v37 = vadd.f32 %v172_v29, %v171_v21  ;;  %v9099_v18 = vld [vmem:[%s12694_s1] sm:$0xff]  ;;  %s8961_s1 = smov 8  }
  0x19   :  { %v126_v38 = vadd.f32 %v125_v30, %v124_v22  ;;  %v133_v39 = vadd.f32 %v132_v31, %v131_v23  ;;  %v140_v40 = vadd.f32 %v139_v32, %v138_v24  ;;  %v147_v41 = vadd.f32 %v146_v33, %v145_v25 }
  0x1a   :  { %v153_v42 = vrot.slane %v152_v34, 2  ;;  %v160_v43 = vrot.slane %v159_v35, 2  ;;  %v167_v44 = vrot.slane %v166_v36, 2  ;;  %v174_v45 = vrot.slane %v173_v37, 2 }
  0x1b   :  { %v127_v46 = vrot.slane %v126_v38, 1  ;;  %v134_v47 = vrot.slane %v133_v39, 1  ;;  %v141_v48 = vrot.slane %v140_v40, 1  ;;  %v148_v49 = vrot.slane %v147_v41, 1 }
  0x1c   :  { %v154_v50 = vadd.f32 %v153_v42, %v152_v34  ;;  %v161_v51 = vadd.f32 %v160_v43, %v159_v35  ;;  %v168_v52 = vadd.f32 %v167_v44, %v166_v36  ;;  %v175_v53 = vadd.f32 %v174_v45, %v173_v37 }
  0x1d   :  { %v128_v54 = vadd.f32 %v127_v46, %v126_v38  ;;  %v135_v55 = vadd.f32 %v134_v47, %v133_v39  ;;  %v142_v56 = vadd.f32 %v141_v48, %v140_v40  ;;  %v149_v57 = vadd.f32 %v148_v49, %v147_v41 }
  0x1e   :  { %v155_v58 = vrot.slane %v154_v50, 1  ;;  %v162_v59 = vrot.slane %v161_v51, 1  ;;  %v169_v0 = vrot.slane %v168_v52, 1  ;;  %v176_v1 = vrot.slane %v175_v53, 1 }
  0x1f   :  { %v291_v2 = vmul.f32 0.25, %v9070_v60  ;;  %v292_v3 = vmul.f32 0.25, %v9072_v61  ;;  %v293_v4 = vmul.f32 0.25, %v9074_v62  ;;  %v294_v5 = vmul.f32 0.25, %v9076_v63 }
  0x20   :  { %v156_v6 = vadd.f32 %v155_v58, %v154_v50  ;;  %v163_v7 = vadd.f32 %v162_v59, %v161_v51  ;;  %v170_v8 = vadd.f32 %v169_v0, %v168_v52  ;;  %v177_v9 = vadd.f32 %v176_v1, %v175_v53 }
  0x21   :  { %v295_v14 = vmul.f32 0.25, %v100_v10  ;;  %v296_v15 = vmul.f32 0.25, %v107_v11  ;;  %v297_v16 = vmul.f32 0.25, %v114_v12  ;;  %v298_v17 = vmul.f32 0.25, %v121_v13 }
  0x22   :  { %v299_v60 = vmul.f32 0.25, %v128_v54  ;;  %v300_v19 = vmul.f32 0.25, %v135_v55  ;;  %v301_v61 = vmul.f32 0.25, %v142_v56  ;;  %v302_v20 = vmul.f32 0.25, %v149_v57 }
  0x23   :  { %v303_v62 = vmul.f32 0.25, %v156_v6  ;;  %v304_v21 = vmul.f32 0.25, %v163_v7  ;;  %v305_v63 = vmul.f32 0.25, %v170_v8  ;;  %v306_v22 = vmul.f32 0.25, %v177_v9 }
  0x24   :  { %v9102_v23 = vrot.slane %v9099_v18, 1  ;;  %v9105_v10 = vrot.slane %v9099_v18, 2  ;;  %v9108_v11 = vrot.slane %v9099_v18, 3  ;;  %v9111_v12 = vrot.slane %v9099_v18, 4 }
  0x25   :  { %v9114_v13 = vrot.slane %v9099_v18, 5  ;;  %v9117_v24 = vrot.slane %v9099_v18, 6  ;;  %v9120_v25 = vrot.slane %v9099_v18, 7  ;;  %v9123_v26 = vadd.f32 %v9099_v18, %v291_v2 }
  0x26   :  { %v9126_v27 = vadd.f32 %v9102_v23, %v292_v3  ;;  %v9129_v28 = vadd.f32 %v9105_v10, %v293_v4  ;;  %v9132_v29 = vadd.f32 %v9108_v11, %v294_v5  ;;  %v9135_v30 = vadd.f32 %v9111_v12, %v295_v14 }
  0x27   :  { %v9138_v31 = vadd.f32 %v9114_v13, %v296_v15  ;;  %v9141_v32 = vadd.f32 %v9117_v24, %v297_v16  ;;  %v9144_v33 = vadd.f32 %v9120_v25, %v298_v17  ;;  %v9147_v34 = vadd.f32 %v9099_v18, %v299_v60 }
  0x28   :  { %v9150_v35 = vadd.f32 %v9102_v23, %v300_v19  ;;  %v9153_v36 = vadd.f32 %v9105_v10, %v301_v61  ;;  %v9156_v37 = vadd.f32 %v9108_v11, %v302_v20  ;;  %v9159_v38 = vadd.f32 %v9111_v12, %v303_v62 }
  0x29   :  { %v9162_v39 = vadd.f32 %v9114_v13, %v304_v21  ;;  %v9165_v40 = vadd.f32 %v9117_v24, %v305_v63  ;;  %v9168_v41 = vadd.f32 %v9120_v25, %v306_v22  ;;  %v373_v42 = vpack.c.bf16 %v9123_v26, %v9123_v26 }
  0x2a   :  { %v374_v43 = vpack.c.bf16 %v9126_v27, %v9126_v27  ;;  %v375_v44 = vpack.c.bf16 %v9129_v28, %v9129_v28  ;;  %v376_v45 = vpack.c.bf16 %v9132_v29, %v9132_v29  ;;  %v377_v46 = vpack.c.bf16 %v9135_v30, %v9135_v30 }
  0x2b   :  { %12736 = vst [vmem:[#allocation2_spill] sm:$0xff] %v9168_v41  ;;  %v378_v47 = vpack.c.bf16 %v9138_v31, %v9138_v31  ;;  %v379_v48 = vpack.c.bf16 %v9141_v32, %v9141_v32  ;;  %v380_v49 = vpack.c.bf16 %v9144_v33, %v9144_v33  ;;  %v381_v50 = vpack.c.bf16 %v9147_v34, %v9147_v34 }
  0x2c   :  { %v382_v51 = vpack.c.bf16 %v9150_v35, %v9150_v35  ;;  %v383_v52 = vpack.c.bf16 %v9153_v36, %v9153_v36  ;;  %v384_v53 = vpack.c.bf16 %v9156_v37, %v9156_v37  ;;  %v385_v54 = vpack.c.bf16 %v9159_v38, %v9159_v38 }
  0x2d   :  { %v386_v55 = vpack.c.bf16 %v9162_v39, %v9162_v39  ;;  %v387_v56 = vpack.c.bf16 %v9165_v40, %v9165_v40  ;;  %v388_v57 = vpack.c.bf16 %v9168_v41, %v9168_v41  ;;  %v448_v58 = vunpack.c.l.b16 %v373_v42 }
  0x2e   :  { %v449_v59 = vunpack.c.l.b16 %v374_v43  ;;  %v450_v0 = vunpack.c.l.b16 %v375_v44  ;;  %v451_v1 = vunpack.c.l.b16 %v376_v45  ;;  %v452_v2 = vunpack.c.l.b16 %v377_v46  ;;  %v49_v45 = vld [vmem:[%s12693_s0 + $0x40] sm:$0xf] }
  0x2f   :  { %v453_v3 = vunpack.c.l.b16 %v378_v47  ;;  %v454_v4 = vunpack.c.l.b16 %v379_v48  ;;  %v455_v5 = vunpack.c.l.b16 %v380_v49  ;;  %v456_v6 = vunpack.c.l.b16 %v381_v50  ;;  %v50_v50 = vld [vmem:[%s12693_s0 + $0x44] sm:$0xf] }
  0x30   :  { %v457_v7 = vunpack.c.l.b16 %v382_v51  ;;  %v458_v8 = vunpack.c.l.b16 %v383_v52  ;;  %v459_v9 = vunpack.c.l.b16 %v384_v53  ;;  %v460_v14 = vunpack.c.l.b16 %v385_v54 }
  0x31   :  { %v461_v15 = vunpack.c.l.b16 %v386_v55  ;;  %v462_v16 = vunpack.c.l.b16 %v387_v56  ;;  %v463_v17 = vunpack.c.l.b16 %v388_v57  ;;  %v480_v60 = vrot.slane %v449_v59, 7  ;;  %v51_v55 = vld [vmem:[%s12693_s0 + $0x48] sm:$0xf] }
  0x32   :  { %v483_v19 = vrot.slane %v450_v0, 6  ;;  %v486_v61 = vrot.slane %v451_v1, 5  ;;  %v489_v20 = vrot.slane %v452_v2, 4  ;;  %v492_v62 = vrot.slane %v453_v3, 3  ;;  %v53_v2 = vld [vmem:[%s12693_s0 + $0x50] sm:$0xf] }
  0x33   :  { %v482_v21 = vsel %vm481_vm1, %v480_v60, %v448_v58  ;;  %v495_v63 = vrot.slane %v454_v4, 2  ;;  %vm496_vm6 = vcmask 1046534   ;;  %v498_v22 = vrot.slane %v455_v5, 1  ;;  %v52_v58 = vld [vmem:[%s12693_s0 + $0x4c] sm:$0xf] }
  0x34   :  { %v485_v42 = vsel %vm484_vm2, %v483_v19, %v482_v21  ;;  %vm499_vm7 = vcmask 1047559   ;;  %v501_v43 = vrot.slane %v457_v7, 7  ;;  %v503_v44 = vrot.slane %v458_v8, 6  ;;  %v55_v21 = vld [vmem:[%s12693_s0 + $0x58] sm:$0xf] }
  0x35   :  { %v488_v46 = vsel %vm487_vm3, %v486_v61, %v485_v42  ;;  %v505_v47 = vrot.slane %v459_v9, 5  ;;  %v507_v48 = vrot.slane %v460_v14, 4  ;;  %v509_v49 = vrot.slane %v461_v15, 3  ;;  %v54_v14 = vld [vmem:[%s12693_s0 + $0x54] sm:$0xf] }
  0x36   :  { %v491_v51 = vsel %vm490_vm4, %v489_v20, %v488_v46  ;;  %v502_v52 = vsel %vm481_vm1, %v501_v43, %v456_v6  ;;  %v511_v53 = vrot.slane %v462_v16, 2  ;;  %v513_v54 = vrot.slane %v463_v17, 1 }
  0x37   :  { %v494_v56 = vsel %vm493_vm5, %v492_v62, %v491_v51  ;;  %v504_v57 = vsel %vm484_vm2, %v503_v44, %v502_v52  ;;  %vm557_vm8 = vcmask 261120   ;;  %v178_v59 = vsel %vm65_vm0, %v49_v45, 0.0 }
  0x38   :  { %v497_v0 = vsel %vm496_vm6, %v495_v63, %v494_v56  ;;  %v506_v1 = vsel %vm487_vm3, %v505_v47, %v504_v57  ;;  %v179_v3 = vrot.slane %v178_v59, 4  ;;  %v185_v4 = vsel %vm65_vm0, %v50_v50, 0.0  ;;  %v56_v63 = vld [vmem:[%s12693_s0 + $0x5c] sm:$0xf] }
  0x39   :  { %v500_v5 = vsel %vm499_vm7, %v498_v22, %v497_v0  ;;  %v508_v6 = vsel %vm490_vm4, %v507_v48, %v506_v1  ;;  %v186_v7 = vrot.slane %v185_v4, 4  ;;  %v192_v8 = vsel %vm65_vm0, %v51_v55, 0.0  ;;  %v57_v0 = vld [vmem:[%s12693_s0 + $0x60] sm:$0xf] }
  0x3a   :  { %v510_v9 = vsel %vm493_vm5, %v509_v49, %v508_v6  ;;  %v180_v15 = vadd.f32 %v179_v3, %v178_v59  ;;  %v193_v16 = vrot.slane %v192_v8, 4  ;;  %v199_v17 = vsel %vm65_vm0, %v52_v58, 0.0 }
  0x3b   :  { %v512_v60 = vsel %vm496_vm6, %v511_v53, %v510_v9  ;;  %v187_v19 = vadd.f32 %v186_v7, %v185_v4  ;;  %v200_v61 = vrot.slane %v199_v17, 4  ;;  %v206_v20 = vsel %vm65_vm0, %v53_v2, 0.0  ;;  %v59_v9 = vld [vmem:[%s12693_s0 + $0x68] sm:$0xf] }
  0x3c   :  { %v514_v62 = vsel %vm499_vm7, %v513_v54, %v512_v60  ;;  %v181_v22 = vrot.slane %v180_v15, 2  ;;  %v194_v42 = vadd.f32 %v193_v16, %v192_v8  ;;  %v207_v43 = vrot.slane %v206_v20, 4  ;;  %v58_v8 = vld [vmem:[%s12693_s0 + $0x64] sm:$0xf]  ;;  %v60_v60 = vld [vmem:[%s12693_s0 + $0x6c] sm:$0xf] }
  0x3d   :  { %v543_v44 = vpack.c.b16 %v514_v62, %v500_v5  ;;  %v188_v45 = vrot.slane %v187_v19, 2  ;;  %v201_v46 = vadd.f32 %v200_v61, %v199_v17  ;;  %v213_v47 = vsel %vm65_vm0, %v54_v14, 0.0 }
  0x3e   :  { %v182_v48 = vadd.f32 %v181_v22, %v180_v15  ;;  %v195_v49 = vrot.slane %v194_v42, 2  ;;  %v208_v50 = vadd.f32 %v207_v43, %v206_v20  ;;  %v214_v51 = vrot.slane %v213_v47, 4 }
  0x3f   :  { %8232 = vmatprep.mubr.msk.bf16.mxu1 %vm557_vm8, %v543_v44  ;;  %v189_v52 = vadd.f32 %v188_v45, %v187_v19  ;;  %v202_v53 = vrot.slane %v201_v46, 2  ;;  %v220_v54 = vsel %vm65_vm0, %v55_v21, 0.0  ;;  %v227_v55 = vsel %vm65_vm0, %v56_v63, 0.0  ;;  %v61_v21 = vld [vmem:[%s12693_s0 + $0x70] sm:$0xf] }
  0x40   :  { %v183_v56 = vrot.slane %v182_v48, 1  ;;  %v196_v57 = vadd.f32 %v195_v49, %v194_v42  ;;  %v209_v58 = vrot.slane %v208_v50, 2  ;;  %v215_v59 = vadd.f32 %v214_v51, %v213_v47 }
  0x41   :  { %v190_v1 = vrot.slane %v189_v52, 1  ;;  %v203_v2 = vadd.f32 %v202_v53, %v201_v46  ;;  %v221_v3 = vrot.slane %v220_v54, 4  ;;  %v228_v4 = vrot.slane %v227_v55, 4 }
  0x42   :  { %v197_v5 = vrot.slane %v196_v57, 1  ;;  %v210_v6 = vadd.f32 %v209_v58, %v208_v50  ;;  %v216_v7 = vrot.slane %v215_v59, 2  ;;  %v9258_v14 = vadd.f32 %v183_v56, %v182_v48  ;;  %v62_v48 = vld [vmem:[%s12693_s0 + $0x74] sm:$0xf] }
  0x43   :  { %v204_v15 = vrot.slane %v203_v2, 1  ;;  %v222_v16 = vadd.f32 %v221_v3, %v220_v54  ;;  %v229_v17 = vadd.f32 %v228_v4, %v227_v55  ;;  %v9263_v19 = vadd.f32 %v190_v1, %v189_v52 }
  0x44   :  { %v211_v61 = vrot.slane %v210_v6, 1  ;;  %v217_v20 = vadd.f32 %v216_v7, %v215_v59  ;;  %v234_v62 = vsel %vm65_vm0, %v57_v0, 0.0  ;;  %v9269_v63 = vadd.f32 %v197_v5, %v196_v57  ;;  %v63_v57 = vld [vmem:[%s12693_s0 + $0x78] sm:$0xf] }
  0x45   :  { %v223_v22 = vrot.slane %v222_v16, 2  ;;  %v230_v42 = vrot.slane %v229_v17, 2  ;;  %v235_v43 = vrot.slane %v234_v62, 4  ;;  %v9271_v44 = vadd.f32 %v204_v15, %v203_v2  ;;  %v64_v2 = vld [vmem:[%s12693_s0 + $0x7c] sm:$0xf] }
  0x46   :  { %v218_v45 = vrot.slane %v217_v20, 1  ;;  %v241_v46 = vsel %vm65_vm0, %v58_v8, 0.0  ;;  %v248_v47 = vsel %vm65_vm0, %v59_v9, 0.0  ;;  %v212_v53 = vadd.f32 %v211_v61, %v210_v6 }
  0x47   :  { %v224_v49 = vadd.f32 %v223_v22, %v222_v16  ;;  %v231_v50 = vadd.f32 %v230_v42, %v229_v17  ;;  %v236_v51 = vadd.f32 %v235_v43, %v234_v62  ;;  %v242_v52 = vrot.slane %v241_v46, 4 }
  0x48   :  { %v249_v54 = vrot.slane %v248_v47, 4  ;;  %v255_v55 = vsel %vm65_vm0, %v60_v60, 0.0  ;;  %v262_v56 = vsel %vm65_vm0, %v61_v21, 0.0  ;;  %v219_v58 = vadd.f32 %v218_v45, %v217_v20 }
  0x49   :  { %v225_v59 = vrot.slane %v224_v49, 1  ;;  %v237_v0 = vrot.slane %v236_v51, 2  ;;  %v243_v1 = vadd.f32 %v242_v52, %v241_v46  ;;  %v256_v4 = vrot.slane %v255_v55, 4 }
  0x4a   :  { %v250_v3 = vadd.f32 %v249_v54, %v248_v47  ;;  %v263_v5 = vrot.slane %v262_v56, 4  ;;  %v269_v6 = vsel %vm65_vm0, %v62_v48, 0.0  ;;  %v232_v8 = vrot.slane %v231_v50, 1 }
  0x4b   :  { %v226_v7 = vadd.f32 %v225_v59, %v224_v49  ;;  %v238_v9 = vadd.f32 %v237_v0, %v236_v51  ;;  %v244_v15 = vrot.slane %v243_v1, 2  ;;  %v257_v17 = vadd.f32 %v256_v4, %v255_v55 }
  0x4c   :  { %v251_v16 = vrot.slane %v250_v3, 2  ;;  %v264_v60 = vadd.f32 %v263_v5, %v262_v56  ;;  %v270_v61 = vrot.slane %v269_v6, 4  ;;  %v276_v21 = vsel %vm65_vm0, %v63_v57, 0.0 }
  0x4d   :  { %v239_v20 = vrot.slane %v238_v9, 1  ;;  %v245_v62 = vadd.f32 %v244_v15, %v243_v1  ;;  %v283_v22 = vsel %vm65_vm0, %v64_v2, 0.0  ;;  %v258_v43 = vrot.slane %v257_v17, 2 }
  0x4e   :  { %v252_v42 = vadd.f32 %v251_v16, %v250_v3  ;;  %v265_v45 = vrot.slane %v264_v60, 2  ;;  %v271_v46 = vadd.f32 %v270_v61, %v269_v6  ;;  %v233_v47 = vadd.f32 %v232_v8, %v231_v50 }
  0x4f   :  { %v246_v48 = vrot.slane %v245_v62, 1  ;;  %v277_v49 = vrot.slane %v276_v21, 4  ;;  %v284_v52 = vrot.slane %v283_v22, 4  ;;  %v259_v54 = vadd.f32 %v258_v43, %v257_v17 }
  0x50   :  { %v253_v51 = vrot.slane %v252_v42, 1  ;;  %v266_v59 = vadd.f32 %v265_v45, %v264_v60  ;;  %v272_v55 = vrot.slane %v271_v46, 2  ;;  %v240_v56 = vadd.f32 %v239_v20, %v238_v9 }
  0x51   :  { %v247_v0 = vadd.f32 %v246_v48, %v245_v62  ;;  %v278_v4 = vadd.f32 %v277_v49, %v276_v21  ;;  %v285_v1 = vadd.f32 %v284_v52, %v283_v22  ;;  %v260_v5 = vrot.slane %v259_v54, 1 }
  0x52   :  { %v267_v57 = vrot.slane %v266_v59, 1  ;;  %v273_v15 = vadd.f32 %v272_v55, %v271_v46  ;;  %v307_v2 = vmul.f32 0.25, %v9258_v14  ;;  %v254_v3 = vadd.f32 %v253_v51, %v252_v42 }
  0x53   :  { %v279_v16 = vrot.slane %v278_v4, 2  ;;  %v286_v6 = vrot.slane %v285_v1, 2  ;;  %v308_v50 = vmul.f32 0.25, %v9263_v19  ;;  %v261_v8 = vadd.f32 %v260_v5, %v259_v54 }
  0x54   :  { %v268_v61 = vadd.f32 %v267_v57, %v266_v59  ;;  %v274_v41 = vrot.slane %v273_v15, 1  ;;  %v309_v17 = vmul.f32 0.25, %v9269_v63  ;;  %v310_v20 = vmul.f32 0.25, %v9271_v44 }
  0x55   :  { %v280_v60 = vadd.f32 %v279_v16, %v278_v4  ;;  %v287_v9 = vadd.f32 %v286_v6, %v285_v1  ;;  %v311_v62 = vmul.f32 0.25, %v212_v53  ;;  %v312_v22 = vmul.f32 0.25, %v219_v58 }
  0x56   :  { %v275_v21 = vadd.f32 %v274_v41, %v273_v15  ;;  %v313_v43 = vmul.f32 0.25, %v226_v7  ;;  %v314_v45 = vmul.f32 0.25, %v233_v47  ;;  %v315_v46 = vmul.f32 0.25, %v240_v56 }
  0x57   :  { %v281_v14 = vrot.slane %v280_v60, 1  ;;  %v288_v42 = vrot.slane %v287_v9, 1  ;;  %v316_v48 = vmul.f32 0.25, %v247_v0  ;;  %v317_v49 = vmul.f32 0.25, %v254_v3 }
  0x58   :  { %v318_v19 = vmul.f32 0.25, %v261_v8  ;;  %v319_v52 = vmul.f32 0.25, %v268_v61  ;;  %v320_v51 = vmul.f32 0.25, %v275_v21  ;;  %v9294_v63 = vadd.f32 %v9099_v18, %v307_v2 }
  0x59   :  { %v282_v54 = vadd.f32 %v281_v14, %v280_v60  ;;  %v289_v59 = vadd.f32 %v288_v42, %v287_v9  ;;  %v9297_v44 = vadd.f32 %v9102_v23, %v308_v50  ;;  %v9300_v41 = vadd.f32 %v9105_v10, %v309_v17 }
  0x5a   :  { %v9303_v53 = vadd.f32 %v9108_v11, %v310_v20  ;;  %v9306_v58 = vadd.f32 %v9111_v12, %v311_v62  ;;  %v9309_v7 = vadd.f32 %v9114_v13, %v312_v22  ;;  %v9312_v56 = vadd.f32 %v9117_v24, %v313_v43 }
  0x5b   :  { %v321_v47 = vmul.f32 0.25, %v282_v54  ;;  %v322_v55 = vmul.f32 0.25, %v289_v59  ;;  %v9315_v0 = vadd.f32 %v9120_v25, %v314_v45  ;;  %v9318_v4 = vadd.f32 %v9102_v23, %v316_v48 }
  0x5c   :  { %v9321_v1 = vadd.f32 %v9105_v10, %v317_v49  ;;  %v9324_v5 = vadd.f32 %v9108_v11, %v318_v19  ;;  %v9327_v57 = vadd.f32 %v9111_v12, %v319_v52  ;;  %v9330_v15 = vadd.f32 %v9099_v18, %v315_v46 }
  0x5d   :  { %v9333_v2 = vadd.f32 %v9114_v13, %v320_v51  ;;  %v9336_v3 = vadd.f32 %v9117_v24, %v321_v47  ;;  %v9339_v23 = vadd.f32 %v9120_v25, %v322_v55  ;;  %v390_v10 = vpack.c.bf16 %v9297_v44, %v9297_v44 }
  0x5e   :  { %v391_v11 = vpack.c.bf16 %v9300_v41, %v9300_v41  ;;  %v392_v12 = vpack.c.bf16 %v9303_v53, %v9303_v53  ;;  %v393_v18 = vpack.c.bf16 %v9306_v58, %v9306_v58  ;;  %v389_v13 = vpack.c.bf16 %v9294_v63, %v9294_v63 }
  0x5f   :  { %12737 = vst [vmem:[#allocation3_spill] sm:$0xff] %v9333_v2  ;;  %12738 = vst [vmem:[#allocation4_spill] sm:$0xff] %v9336_v3  ;;  %v394_v24 = vpack.c.bf16 %v9309_v7, %v9309_v7  ;;  %v395_v25 = vpack.c.bf16 %v9312_v56, %v9312_v56  ;;  %v396_v16 = vpack.c.bf16 %v9315_v0, %v9315_v0  ;;  %v465_v62 = vunpack.c.l.b16 %v390_v10 }
  0x60   :  { %12739 = vst [vmem:[#allocation5_spill] sm:$0xff] %v9339_v23  ;;  %v398_v6 = vpack.c.bf16 %v9318_v4, %v9318_v4  ;;  %v399_v50 = vpack.c.bf16 %v9321_v1, %v9321_v1  ;;  %v400_v8 = vpack.c.bf16 %v9324_v5, %v9324_v5  ;;  %v401_v61 = vpack.c.bf16 %v9327_v57, %v9327_v57 }
  0x61   :  { %v397_v17 = vpack.c.bf16 %v9330_v15, %v9330_v15  ;;  %v402_v60 = vpack.c.bf16 %v9333_v2, %v9333_v2  ;;  %v403_v9 = vpack.c.bf16 %v9336_v3, %v9336_v3  ;;  %v404_v20 = vpack.c.bf16 %v9339_v23, %v9339_v23 }
  0x62   :  { %v466_v21 = vunpack.c.l.b16 %v391_v11  ;;  %v467_v22 = vunpack.c.l.b16 %v392_v12  ;;  %v468_v43 = vunpack.c.l.b16 %v393_v18  ;;  %v464_v45 = vunpack.c.l.b16 %v389_v13 }
  0x63   :  { %v469_v14 = vunpack.c.l.b16 %v394_v24  ;;  %v470_v42 = vunpack.c.l.b16 %v395_v25  ;;  %v471_v46 = vunpack.c.l.b16 %v396_v16  ;;  %v473_v48 = vunpack.c.l.b16 %v398_v6 }
  0x64   :  { %v474_v49 = vunpack.c.l.b16 %v399_v50  ;;  %v475_v19 = vunpack.c.l.b16 %v400_v8  ;;  %v476_v52 = vunpack.c.l.b16 %v401_v61  ;;  %v472_v51 = vunpack.c.l.b16 %v397_v17 }
  0x65   :  { %v477_v54 = vunpack.c.l.b16 %v402_v60  ;;  %v478_v59 = vunpack.c.l.b16 %v403_v9  ;;  %v515_v47 = vrot.slane %v465_v62, 7  ;;  %v479_v55 = vunpack.c.l.b16 %v404_v20 }
  0x66   :  { %v517_v3 = vrot.slane %v466_v21, 6  ;;  %v519_v2 = vrot.slane %v467_v22, 5  ;;  %v521_v23 = vrot.slane %v468_v43, 4  ;;  %v523_v11 = vrot.slane %v469_v14, 3 }
  0x67   :  { %v516_v10 = vsel %vm481_vm1, %v515_v47, %v464_v45  ;;  %v525_v12 = vrot.slane %v470_v42, 2  ;;  %v529_v18 = vrot.slane %v473_v48, 7  ;;  %v531_v24 = vrot.slane %v474_v49, 6 }
  0x68   :  { %v518_v13 = vsel %vm484_vm2, %v517_v3, %v516_v10  ;;  %v533_v25 = vrot.slane %v475_v19, 5  ;;  %v535_v16 = vrot.slane %v476_v52, 4  ;;  %v527_v50 = vrot.slane %v471_v46, 1  ;;  %v7937_v46 = vld [vmem:[%s12695_s6] ss:$0 sm:$0xff] }
  0x69   :  { %v520_v6 = vsel %vm487_vm3, %v519_v2, %v518_v13  ;;  %v530_v8 = vsel %vm481_vm1, %v529_v18, %v472_v51  ;;  %v537_v61 = vrot.slane %v477_v54, 3  ;;  %v539_v9 = vrot.slane %v478_v59, 2 }
  0x6a   :  { %v522_v17 = vsel %vm490_vm4, %v521_v23, %v520_v6  ;;  %v532_v60 = vsel %vm484_vm2, %v531_v24, %v530_v8  ;;  %v541_v21 = vrot.slane %v479_v55, 1  ;;  %v12707_v42 = vmov 0.0  }
  0x6b   :  { %v524_v20 = vsel %vm493_vm5, %v523_v11, %v522_v17  ;;  %v534_v62 = vsel %vm487_vm3, %v533_v25, %v532_v60  ;;  %8236 = vmatprep.subr.bf16.mxu1 %v12707_v42  ;;  %8242 = vmatprep.subr.bf16.mxu0 %v12707_v42  ;;  %vm8949_vm9 = vmmov 0   ;;  %vm620_vm10 = vcmask 64512  }
  0x6c   :  { %v526_v3 = vsel %vm496_vm6, %v525_v12, %v524_v20  ;;  %v536_v22 = vsel %vm490_vm4, %v535_v16, %v534_v62  ;;  %8244 = vmatprep.mubr.msk.bf16.mxu0 %vm8949_vm9, %v12707_v42  ;;  %vm871_vm11 = vcmask 1043456   ;;  %vm2443_vm12 = vcmask 130048  }
  0x6d   :  { %v528_v2 = vsel %vm499_vm7, %v527_v50, %v526_v3  ;;  %v538_v43 = vsel %vm493_vm5, %v537_v61, %v536_v22  ;;  %vm2448_vm13 = vcmask 195584   ;;  %vm3421_vm14 = vcmask 523264  }
  0x6e   :  { %v540_v45 = vsel %vm496_vm6, %v539_v9, %v538_v43  ;;  %vm7807_vm15 = vcmask 253952   ;;  %vm7875_vm0 = vcmask 254976  }
  0x6f   :  { %v542_v23 = vsel %vm499_vm7, %v541_v21, %v540_v45 }
  0x70   :  { %v544_v14 = vpack.c.b16 %v542_v23, %v528_v2 }
  0x72   :  { %8233 = vmatmul.mubr.msk.bf16.vlgmr.msra.gmra.mrb[0].mxu1 %vm557_vm8, %v544_v14 }
  0x73   :  { %8238 = vmatprep.mubr.msk.bf16.mxu1 %vm8949_vm9, %v12707_v42 }
 0x145   :  { %v8234_v48 = vpop.f32.mrb[0].mxu1 }
 0x146   :  { %v607_v49 = vadd.f32 %v8234_v48, %v7937_v46  ;;  %v598_v19 = vpop.f32.mrb[1].mxu1 }
 0x147   :  { %v599_v52 = vadd.f32 %v7937_v46, %v598_v19  ;;  %v8235_v51 = vpop.f32.mrb[2].mxu1 }
 0x148   :  { %v9397_v54 = vpack.c.bf16 %v607_v49, %v607_v49  ;;  %v610_v59 = vadd.f32 %v8235_v51, %v7937_v46  ;;  %v601_v47 = vpop.f32.mrb[3].mxu1 }
 0x149   :  { %v9399_v55 = vpack.c.bf16 %v599_v52, %v599_v52  ;;  %v602_v10 = vadd.f32 %v7937_v46, %v601_v47 }
 0x14a   :  { %717 = vrot.lane.b32.xlu1 %v9397_v54, %s8950_s15  ;;  %v9405_v11 = vpack.c.bf16 %v610_v59, %v610_v59 }
 0x14b   :  { %618 = vrot.lane.b32.xlu0 %v9399_v55, %s8950_s15  ;;  %v9407_v12 = vpack.c.bf16 %v602_v10, %v602_v10 }
 0x14e   :  { %766 = vrot.lane.b32.xlu1 %v9405_v11, %s8950_s15 }
 0x14f   :  { %668 = vrot.lane.b32.xlu0 %v9407_v12, %s8950_s15 }
 0x1bc   :  { %v718_v24 = vpop.permute.xlu1 %717 }
 0x1bd   :  { %v619_v18 = vpop.permute.xlu0 %618  ;;  %v723_v6 = vsel %vm620_vm10, %v718_v24, 0 }
 0x1be   :  { %v625_v13 = vsel %vm620_vm10, %v619_v18, 0 }
 0x1bf   :  { %8237 = vmatpush3.bf16.xpose.msra.mxu1 %v625_v13 }
 0x1c0   :  { %8248 = vmatprep.subr.bf16.mxu1 %v12707_v42  ;;  %v767_v50 = vpop.permute.xlu1 %766 }
 0x1c1   :  { %v669_v25 = vpop.permute.xlu0 %668  ;;  %v772_v8 = vsel %vm620_vm10, %v767_v50, 0 }
 0x1c2   :  { %v674_v16 = vsel %vm620_vm10, %v669_v25, 0 }
 0x1c3   :  { %8243 = vmatpush3.bf16.xpose.msra.mxu0 %v674_v16 }
 0x1c4   :  { %8254 = vmatprep.subr.bf16.mxu0 %v12707_v42 }
 0x1c6   :  { %8239 = vmatmul.mubr.msk.bf16.vlgmr.msra.gmra.mrb[4].mxu1 %vm620_vm10, %v9399_v55 }
 0x1c7   :  { %8249 = vmatpush3.bf16.xpose.msra.mxu1 %v723_v6  ;;  %8250 = vmatprep.mubr.msk.bf16.mxu1 %vm8949_vm9, %v12707_v42 }
 0x1c8   :  { %8260 = vmatprep.subr.bf16.mxu1 %v12707_v42 }
 0x1ca   :  { %8245 = vmatmul.mubr.msk.bf16.vlgmr.msra.gmra.mrb[0].mxu0 %vm620_vm10, %v9407_v12 }
 0x1cb   :  { %8255 = vmatpush3.bf16.xpose.msra.mxu0 %v772_v8  ;;  %8256 = vmatprep.mubr.msk.bf16.mxu0 %vm8949_vm9, %v12707_v42 }
 0x1cc   :  { %8266 = vmatprep.subr.bf16.mxu0 %v12707_v42 }
 0x1ce   :  { %8251 = vmatmul.mubr.msk.bf16.vlgmr.msra.gmra.mrb[8].mxu1 %vm620_vm10, %v9397_v54 }
 0x1cf   :  { %8262 = vmatprep.mubr.msk.bf16.mxu1 %vm8949_vm9, %v12707_v42 }
 0x1d2   :  { %8257 = vmatmul.mubr.msk.bf16.vlgmr.msra.gmra.mrb[4].mxu0 %vm620_vm10, %v9405_v11 }
 0x1d3   :  { %8268 = vmatprep.mubr.msk.bf16.mxu0 %vm8949_vm9, %v12707_v42 }
 0x299   :  { %v661_v61 = vpop.f32.mrb[4].mxu1 }
 0x29a   :  { %v814_v17 = vmul.f32 0.35355338, %v661_v61  ;;  %v8240_v60 = vpop.f32.mrb[5].mxu1 }
 0x29b   :  { %v664_v9 = vpop.f32.mrb[6].mxu1 }
 0x29c   :  { %v8241_v20 = vpop.f32.mrb[7].mxu1  ;;  %v818_v62 = vsel %vm620_vm10, %v814_v17, -inf }
 0x29d   :  { %819 = vmax.xlane.f32.xlu0 %v818_v62  ;;  %v710_v21 = vpop.f32.mrb[0].mxu0 }
 0x29e   :  { %v815_v3 = vmul.f32 0.35355338, %v710_v21  ;;  %v8246_v22 = vpop.f32.mrb[1].mxu0 }
 0x29f   :  { %v713_v2 = vpop.f32.mrb[2].mxu0 }
 0x2a0   :  { %v8247_v43 = vpop.f32.mrb[3].mxu0  ;;  %v821_v45 = vsel %vm620_vm10, %v815_v3, -inf }
 0x2a1   :  { %v759_v23 = vpop.f32.mrb[8].mxu1  ;;  %822 = vmax.xlane.f32.xlu1 %v821_v45 }
 0x2a2   :  { %v816_v14 = vmul.f32 0.35355338, %v759_v23  ;;  %v8252_v46 = vpop.f32.mrb[9].mxu1 }
 0x2a3   :  { %v762_v48 = vpop.f32.mrb[10].mxu1 }
 0x2a4   :  { %v8253_v49 = vpop.f32.mrb[11].mxu1  ;;  %v824_v19 = vsel %vm620_vm10, %v816_v14, -inf }
 0x2a5   :  { %825 = vmax.xlane.f32.xlu0 %v824_v19  ;;  %v808_v52 = vpop.f32.mrb[4].mxu0 }
 0x2a6   :  { %v817_v51 = vmul.f32 0.35355338, %v808_v52  ;;  %v8258_v59 = vpop.f32.mrb[5].mxu0 }
 0x2a7   :  { %v811_v47 = vpop.f32.mrb[6].mxu0 }
 0x2a8   :  { %v8259_v10 = vpop.f32.mrb[7].mxu0  ;;  %v827_v18 = vsel %vm620_vm10, %v817_v51, -inf }
 0x2a9   :  { %828 = vmax.xlane.f32.xlu0 %v827_v18 }
 0x2b2   :  { %866 = vrot.lane.b32.xlu1 %v9399_v55, %s8951_s16 }
 0x32a   :  { %v820_v13 = vpop.xlane.xlu0 %819 }
 0x32b   :  { %v830_v24 = vsub.f32 %v814_v17, %v820_v13 }
 0x32d   :  { %v834_v25 = vmul.f32 1.442695, %v830_v24 }
 0x32e   :  { %v823_v16 = vpop.xlane.xlu1 %822 }
 0x32f   :  { %8780 = vpow2.f32 %v834_v25  ;;  %v831_v6 = vsub.f32 %v815_v3, %v823_v16 }
 0x331   :  { %v836_v50 = vmul.f32 1.442695, %v831_v6 }
 0x332   :  { %v867_v8 = vpop.permute.xlu1 %866  ;;  %v826_v62 = vpop.xlane.xlu0 %825 }
 0x333   :  { %8782 = vpow2.f32 %v836_v50  ;;  %v873_v61 = vsel %vm871_vm11, %v867_v8, 0  ;;  %v832_v3 = vsub.f32 %v816_v14, %v826_v62 }
 0x334   :  { %8261 = vmatpush3.bf16.msra.mxu1 %v873_v61 }
 0x335   :  { %8272 = vmatprep.subr.bf16.mxu1 %v12707_v42  ;;  %v838_v2 = vmul.f32 1.442695, %v832_v3 }
 0x336   :  { %v829_v21 = vpop.xlane.xlu0 %828 }
 0x337   :  { %v833_v22 = vsub.f32 %v817_v51, %v829_v21  ;;  %8784 = vpow2.f32 %v838_v2 }
 0x339   :  { %v8781_v60 = vpop.eup %8780  ;;  %v840_v43 = vmul.f32 1.442695, %v833_v22 }
 0x33a   :  { %v842_v9 = vsel %vm620_vm10, %v8781_v60, 0.0 }
 0x33b   :  { %843 = vadd.xlane.f32.xlu1 %v842_v9  ;;  %8786 = vpow2.f32 %v840_v43 }
 0x33d   :  { %v8783_v20 = vpop.eup %8782 }
 0x33e   :  { %v845_v17 = vsel %vm620_vm10, %v8783_v20, 0.0 }
 0x33f   :  { %846 = vadd.xlane.f32.xlu0 %v845_v17 }
 0x341   :  { %v8785_v45 = vpop.eup %8784 }
 0x342   :  { %v848_v46 = vsel %vm620_vm10, %v8785_v45, 0.0 }
 0x345   :  { %v8787_v23 = vpop.eup %8786 }
 0x346   :  { %v851_v48 = vsel %vm620_vm10, %v8787_v23, 0.0 }
 0x34c   :  { %963 = vrot.lane.b32.xlu1 %v9397_v54, %s8951_s16 }
 0x350   :  { %1011 = vrot.lane.b32.xlu1 %v9405_v11, %s8951_s16 }
 0x355   :  { %915 = vrot.lane.b32.xlu0 %v9407_v12, %s8951_s16 }
 0x374   :  { %849 = vadd.xlane.f32.xlu1 %v848_v46  ;;  %852 = vadd.xlane.f32.xlu0 %v851_v48 }
 0x385   :  { %1111 = vrot.lane.b32.xlu1 %v9407_v12, %s8952_s17 }
 0x389   :  { %1109 = vrot.lane.b32.xlu1 %v9407_v12, %s8953_s18 }
 0x38a   :  { %1061 = vrot.lane.b32.xlu0 %v9399_v55, %s8952_s17 }
 0x38d   :  { %1211 = vrot.lane.b32.xlu1 %v9405_v11, %s8952_s17 }
 0x38e   :  { %1059 = vrot.lane.b32.xlu0 %v9399_v55, %s8953_s18 }
 0x391   :  { %1209 = vrot.lane.b32.xlu1 %v9405_v11, %s8953_s18 }
 0x392   :  { %1161 = vrot.lane.b32.xlu0 %v9397_v54, %s8952_s17 }
 0x396   :  { %1159 = vrot.lane.b32.xlu0 %v9397_v54, %s8953_s18 }
 0x3c8   :  { %v844_v14 = vpop.xlane.xlu1 %843 }
 0x3c9   :  { %8788 = vrcp.f32 %v844_v14 }
 0x3cc   :  { %v847_v49 = vpop.xlane.xlu0 %846  ;;  %v964_v59 = vpop.permute.xlu1 %963 }
 0x3cd   :  { %8790 = vrcp.f32 %v847_v49  ;;  %v969_v13 = vsel %vm871_vm11, %v964_v59, 0 }
 0x3d0   :  { %v916_v19 = vpop.permute.xlu0 %915  ;;  %v1012_v25 = vpop.permute.xlu1 %1011 }
 0x3d1   :  { %v921_v52 = vsel %vm871_vm11, %v916_v19, 0  ;;  %v1017_v6 = vsel %vm871_vm11, %v1012_v25, 0 }
 0x3d2   :  { %8267 = vmatpush3.bf16.msra.mxu0 %v921_v52 }
 0x3d3   :  { %v8789_v51 = vpop.eup %8788  ;;  %8278 = vmatprep.subr.bf16.mxu0 %v12707_v42 }
 0x3d4   :  { %v858_v47 = vmul.f32 %v8789_v51, %v8781_v60 }
 0x3d6   :  { %v862_v10 = vpack.c.bf16 %v858_v47, %v858_v47 }
 0x3d7   :  { %v8791_v18 = vpop.eup %8790 }
 0x3d8   :  { %8263 = vmatmul.mubr.msk.bf16.vlgmr.msra.gmra.mrb[12].mxu1 %vm620_vm10, %v862_v10  ;;  %v859_v24 = vmul.f32 %v8791_v18, %v8783_v20 }
 0x3d9   :  { %8273 = vmatpush3.bf16.msra.mxu1 %v969_v13  ;;  %8274 = vmatprep.mubr.msk.bf16.mxu1 %vm8949_vm9, %v12707_v42 }
 0x3da   :  { %v863_v16 = vpack.c.bf16 %v859_v24, %v859_v24  ;;  %8284 = vmatprep.subr.bf16.mxu1 %v12707_v42 }
 0x3dc   :  { %8269 = vmatmul.mubr.msk.bf16.vlgmr.msra.gmra.mrb[8].mxu0 %vm620_vm10, %v863_v16 }
 0x3dd   :  { %8279 = vmatpush3.bf16.msra.mxu0 %v1017_v6  ;;  %8280 = vmatprep.mubr.msk.bf16.mxu0 %vm8949_vm9, %v12707_v42 }
 0x3de   :  { %8290 = vmatprep.subr.bf16.mxu0 %v12707_v42 }
 0x401   :  { %v850_v50 = vpop.xlane.xlu1 %849  ;;  %v853_v8 = vpop.xlane.xlu0 %852 }
 0x402   :  { %8792 = vrcp.f32 %v850_v50 }
 0x403   :  { %8794 = vrcp.f32 %v853_v8 }
 0x405   :  { %v1062_v61 = vpop.permute.xlu0 %1061  ;;  %v1112_v60 = vpop.permute.xlu1 %1111 }
 0x406   :  { %v1067_v2 = vsel %vm620_vm10, %v1062_v61, 0  ;;  %v1117_v46 = vsel %vm620_vm10, %v1112_v60, 0 }
 0x409   :  { %v1060_v3 = vpop.permute.xlu0 %1059  ;;  %v1110_v43 = vpop.permute.xlu1 %1109 }
 0x40c   :  { %v8793_v9 = vpop.eup %8792 }
 0x40d   :  { %v8795_v20 = vpop.eup %8794  ;;  %v860_v17 = vmul.f32 %v8793_v9, %v8785_v45  ;;  %v1162_v45 = vpop.permute.xlu0 %1161 }
 0x40e   :  { %v861_v62 = vmul.f32 %v8795_v20, %v8787_v23  ;;  %v1212_v23 = vpop.permute.xlu1 %1211  ;;  %v1167_v48 = vsel %vm620_vm10, %v1162_v45, 0 }
 0x40f   :  { %v864_v21 = vpack.c.bf16 %v860_v17, %v860_v17  ;;  %v1217_v14 = vsel %vm620_vm10, %v1212_v23, 0 }
 0x410   :  { %v865_v22 = vpack.c.bf16 %v861_v62, %v861_v62 }
 0x411   :  { %8275 = vmatmul.mubr.msk.bf16.vlgmr.msra.gmra.mrb[16].mxu1 %vm620_vm10, %v864_v21  ;;  %v1160_v49 = vpop.permute.xlu0 %1159 }
 0x412   :  { %8281 = vmatmul.mubr.msk.bf16.vlgmr.msra.gmra.mrb[12].mxu0 %vm620_vm10, %v865_v22  ;;  %8285 = vmatpush3.bf16.xpose.msra.mxu1 %v1067_v2  ;;  %v1210_v19 = vpop.permute.xlu1 %1209 }
 0x413   :  { %8291 = vmatpush3.bf16.xpose.msra.mxu0 %v1117_v46  ;;  %8286 = vmatprep.mubr.msk.bf16.mxu1 %vm8949_vm9, %v12707_v42 }
 0x414   :  { %8292 = vmatprep.mubr.msk.bf16.mxu0 %vm8949_vm9, %v12707_v42  ;;  %8296 = vmatprep.subr.bf16.mxu1 %v12707_v42 }
 0x415   :  { %8302 = vmatprep.subr.bf16.mxu0 %v12707_v42 }
 0x419   :  { %8287 = vmatmul.mubr.msk.bf16.vlgmr.msra.gmra.mrb[20].mxu1 %vm620_vm10, %v1060_v3 }
 0x41a   :  { %8293 = vmatmul.mubr.msk.bf16.vlgmr.msra.gmra.mrb[16].mxu0 %vm620_vm10, %v1110_v43  ;;  %8297 = vmatpush3.bf16.xpose.msra.mxu1 %v1167_v48 }
 0x41b   :  { %8303 = vmatpush3.bf16.xpose.msra.mxu0 %v1217_v14  ;;  %8298 = vmatprep.mubr.msk.bf16.mxu1 %vm8949_vm9, %v12707_v42 }
 0x41c   :  { %8304 = vmatprep.mubr.msk.bf16.mxu0 %vm8949_vm9, %v12707_v42  ;;  %8308 = vmatprep.subr.bf16.mxu1 %v12707_v42 }
 0x41d   :  { %8314 = vmatprep.subr.bf16.mxu0 %v12707_v42 }
 0x421   :  { %8299 = vmatmul.mubr.msk.bf16.vlgmr.msra.gmra.mrb[24].mxu1 %vm620_vm10, %v1160_v49 }
 0x422   :  { %8305 = vmatmul.mubr.msk.bf16.vlgmr.msra.gmra.mrb[20].mxu0 %vm620_vm10, %v1210_v19  ;;  %8310 = vmatprep.mubr.msk.bf16.mxu1 %vm8949_vm9, %v12707_v42 }
 0x423   :  { %8316 = vmatprep.mubr.msk.bf16.mxu0 %vm8949_vm9, %v12707_v42 }
 0x4ab   :  { %v9509_v52 = vpop.f32.mrb[12].mxu1 }
 0x4ac   :  { %v8264_v51 = vpop.f32.mrb[13].mxu1 }
 0x4ad   :  { %v912_v59 = vpop.f32.mrb[14].mxu1 }
 0x4ae   :  { %v8265_v47 = vpop.f32.mrb[15].mxu1 }
 0x4af   :  { %v9511_v10 = vpop.f32.mrb[8].mxu0 }
 0x4b0   :  { %v8270_v18 = vpop.f32.mrb[9].mxu0 }
 0x4b1   :  { %v960_v13 = vpop.f32.mrb[10].mxu0 }
 0x4b2   :  { %v8271_v24 = vpop.f32.mrb[11].mxu0 }
 0x4e4   :  { %v9513_v25 = vpop.f32.mrb[16].mxu1 }
 0x4e5   :  { %v9515_v16 = vpop.f32.mrb[12].mxu0  ;;  %v8276_v6 = vpop.f32.mrb[17].mxu1 }
 0x4e6   :  { %v8282_v50 = vpop.f32.mrb[13].mxu0  ;;  %v1008_v8 = vpop.f32.mrb[18].mxu1 }
 0x4e7   :  { %v1056_v61 = vpop.f32.mrb[14].mxu0  ;;  %v8277_v60 = vpop.f32.mrb[19].mxu1 }
 0x4e8   :  { %v8283_v9 = vpop.f32.mrb[15].mxu0 }
 0x4ec   :  { %v1103_v20 = vpop.f32.mrb[20].mxu1 }
 0x4ed   :  { %v1259_v17 = vmul.f32 0.35355338, %v1103_v20  ;;  %v1153_v62 = vpop.f32.mrb[16].mxu0  ;;  %v8288_v21 = vpop.f32.mrb[21].mxu1 }
 0x4ee   :  { %v1260_v3 = vmul.f32 0.35355338, %v1153_v62  ;;  %v8294_v22 = vpop.f32.mrb[17].mxu0  ;;  %v1106_v2 = vpop.f32.mrb[22].mxu1 }
 0x4ef   :  { %v1156_v43 = vpop.f32.mrb[18].mxu0  ;;  %v8289_v46 = vpop.f32.mrb[23].mxu1  ;;  %v1263_v45 = vsel %vm620_vm10, %v1259_v17, -inf }
 0x4f0   :  { %v8295_v23 = vpop.f32.mrb[19].mxu0  ;;  %v1266_v48 = vsel %vm620_vm10, %v1260_v3, -inf  ;;  %1264 = vmax.xlane.f32.xlu0 %v1263_v45 }
 0x4f1   :  { %1267 = vmax.xlane.f32.xlu1 %v1266_v48 }
 0x4f4   :  { %v1203_v14 = vpop.f32.mrb[24].mxu1 }
 0x4f5   :  { %v1261_v49 = vmul.f32 0.35355338, %v1203_v14  ;;  %v1253_v19 = vpop.f32.mrb[20].mxu0  ;;  %v8300_v51 = vpop.f32.mrb[25].mxu1 }
 0x4f6   :  { %v8306_v59 = vpop.f32.mrb[21].mxu0  ;;  %v1206_v47 = vpop.f32.mrb[26].mxu1  ;;  %v1262_v18 = vmul.f32 0.35355338, %v1253_v19 }
 0x4f7   :  { %v1256_v13 = vpop.f32.mrb[22].mxu0  ;;  %v8301_v24 = vpop.f32.mrb[27].mxu1  ;;  %v1269_v6 = vsel %vm620_vm10, %v1261_v49, -inf }
 0x4f8   :  { %v8307_v50 = vpop.f32.mrb[23].mxu0  ;;  %1270 = vmax.xlane.f32.xlu0 %v1269_v6  ;;  %v1272_v8 = vsel %vm620_vm10, %v1262_v18, -inf }
 0x4fc   :  { %1273 = vmax.xlane.f32.xlu0 %v1272_v8 }
 0x502   :  { %1311 = vrot.lane.b32.xlu1 %v9399_v55, %s8954_s19 }
 0x57d   :  { %v1265_v61 = vpop.xlane.xlu0 %1264 }
 0x57e   :  { %v1268_v60 = vpop.xlane.xlu1 %1267  ;;  %v1275_v9 = vsub.f32 %v1259_v17, %v1265_v61 }
 0x57f   :  { %v1276_v20 = vsub.f32 %v1260_v3, %v1268_v60 }
 0x580   :  { %v1279_v62 = vmul.f32 1.442695, %v1275_v9 }
 0x581   :  { %v1281_v21 = vmul.f32 1.442695, %v1276_v20 }
 0x582   :  { %8796 = vpow2.f32 %v1279_v62  ;;  %v1312_v22 = vpop.permute.xlu1 %1311 }
 0x583   :  { %8798 = vpow2.f32 %v1281_v21  ;;  %v1317_v2 = vsel %vm871_vm11, %v1312_v22, 0 }
 0x584   :  { %8309 = vmatpush3.bf16.msra.mxu1 %v1317_v2 }
 0x585   :  { %8320 = vmatprep.subr.bf16.mxu1 %v12707_v42  ;;  %v1271_v17 = vpop.xlane.xlu0 %1270 }
 0x586   :  { %v1277_v14 = vsub.f32 %v1261_v49, %v1271_v17 }
 0x588   :  { %v1283_v51 = vmul.f32 1.442695, %v1277_v14 }
 0x589   :  { %v1274_v3 = vpop.xlane.xlu0 %1273 }
 0x58a   :  { %v1278_v48 = vsub.f32 %v1262_v18, %v1274_v3 }
 0x58c   :  { %v8797_v43 = vpop.eup %8796  ;;  %v1285_v19 = vmul.f32 1.442695, %v1278_v48 }
 0x58d   :  { %v8799_v46 = vpop.eup %8798  ;;  %v1287_v45 = vsel %vm620_vm10, %v8797_v43, 0.0 }
 0x58e   :  { %v1290_v23 = vsel %vm620_vm10, %v8799_v46, 0.0  ;;  %1288 = vadd.xlane.f32.xlu1 %v1287_v45  ;;  %8800 = vpow2.f32 %v1285_v19 }
 0x58f   :  { %1291 = vadd.xlane.f32.xlu0 %v1290_v23  ;;  %8802 = vpow2.f32 %v1283_v51 }
 0x598   :  { %v8801_v59 = vpop.eup %8800 }
 0x599   :  { %v8803_v47 = vpop.eup %8802  ;;  %v1296_v13 = vsel %vm620_vm10, %v8801_v59, 0.0 }
 0x59a   :  { %v1293_v24 = vsel %vm620_vm10, %v8803_v47, 0.0 }
 0x59f   :  { %1407 = vrot.lane.b32.xlu1 %v9397_v54, %s8954_s19 }
 0x5a3   :  { %1455 = vrot.lane.b32.xlu1 %v9405_v11, %s8954_s19 }
 0x5a5   :  { %1359 = vrot.lane.b32.xlu0 %v9407_v12, %s8954_s19 }
 0x5c4   :  { %1297 = vadd.xlane.f32.xlu0 %v1296_v13 }
 0x5c7   :  { %1294 = vadd.xlane.f32.xlu1 %v1293_v24 }
 0x5d8   :  { %1555 = vrot.lane.b32.xlu1 %v9407_v12, %s8955_s20 }
 0x5da   :  { %1505 = vrot.lane.b32.xlu0 %v9399_v55, %s8955_s20 }
 0x5dc   :  { %1553 = vrot.lane.b32.xlu1 %v9407_v12, %s8956_s21 }
 0x5de   :  { %1503 = vrot.lane.b32.xlu0 %v9399_v55, %s8956_s21 }
 0x5e0   :  { %1655 = vrot.lane.b32.xlu1 %v9405_v11, %s8955_s20 }
 0x5e2   :  { %1605 = vrot.lane.b32.xlu0 %v9397_v54, %s8955_s20 }
 0x5e4   :  { %1653 = vrot.lane.b32.xlu1 %v9405_v11, %s8956_s21 }
 0x5e6   :  { %1603 = vrot.lane.b32.xlu0 %v9397_v54, %s8956_s21 }
 0x61b   :  { %v1289_v49 = vpop.xlane.xlu1 %1288 }
 0x61c   :  { %8804 = vrcp.f32 %v1289_v49  ;;  %v1292_v18 = vpop.xlane.xlu0 %1291 }
 0x61d   :  { %8806 = vrcp.f32 %v1292_v18 }
 0x61f   :  { %v1408_v8 = vpop.permute.xlu1 %1407 }
 0x620   :  { %v1360_v6 = vpop.permute.xlu0 %1359  ;;  %v1413_v2 = vsel %vm871_vm11, %v1408_v8, 0 }
 0x621   :  { %v1365_v50 = vsel %vm871_vm11, %v1360_v6, 0 }
 0x622   :  { %8315 = vmatpush3.bf16.msra.mxu0 %v1365_v50 }
 0x623   :  { %8326 = vmatprep.subr.bf16.mxu0 %v12707_v42  ;;  %v1456_v62 = vpop.permute.xlu1 %1455 }
 0x624   :  { %v1461_v45 = vsel %vm871_vm11, %v1456_v62, 0 }
 0x626   :  { %v8805_v61 = vpop.eup %8804 }
 0x627   :  { %v8807_v60 = vpop.eup %8806  ;;  %v1303_v9 = vmul.f32 %v8805_v61, %v8797_v43 }
 0x628   :  { %v1304_v20 = vmul.f32 %v8807_v60, %v8799_v46 }
 0x629   :  { %v1307_v21 = vpack.c.bf16 %v1303_v9, %v1303_v9 }
 0x62a   :  { %v1308_v22 = vpack.c.bf16 %v1304_v20, %v1304_v20 }
 0x62b   :  { %8311 = vmatmul.mubr.msk.bf16.vlgmr.msra.gmra.mrb[28].mxu1 %vm620_vm10, %v1307_v21 }
 0x62c   :  { %8317 = vmatmul.mubr.msk.bf16.vlgmr.msra.gmra.mrb[24].mxu0 %vm620_vm10, %v1308_v22  ;;  %8321 = vmatpush3.bf16.msra.mxu1 %v1413_v2 }
 0x62d   :  { %8327 = vmatpush3.bf16.msra.mxu0 %v1461_v45  ;;  %8328 = vmatprep.mubr.msk.bf16.mxu0 %vm8949_vm9, %v12707_v42 }
 0x62e   :  { %8338 = vmatprep.subr.bf16.mxu0 %v12707_v42  ;;  %8322 = vmatprep.mubr.msk.bf16.mxu1 %vm8949_vm9, %v12707_v42 }
 0x62f   :  { %8332 = vmatprep.subr.bf16.mxu1 %v12707_v42 }
 0x651   :  { %v1298_v43 = vpop.xlane.xlu0 %1297 }
 0x652   :  { %8808 = vrcp.f32 %v1298_v43 }
 0x654   :  { %v1295_v46 = vpop.xlane.xlu1 %1294 }
 0x655   :  { %8810 = vrcp.f32 %v1295_v46  ;;  %v1506_v3 = vpop.permute.xlu0 %1505 }
 0x656   :  { %v1511_v6 = vsel %vm620_vm10, %v1506_v3, 0 }
 0x658   :  { %v1556_v23 = vpop.permute.xlu1 %1555 }
 0x659   :  { %v1561_v24 = vsel %vm620_vm10, %v1556_v23, 0  ;;  %v1504_v18 = vpop.permute.xlu0 %1503 }
 0x65c   :  { %v8809_v17 = vpop.eup %8808  ;;  %v1554_v51 = vpop.permute.xlu1 %1553 }
 0x65d   :  { %v1306_v48 = vmul.f32 %v8809_v17, %v8801_v59 }
 0x65f   :  { %v8811_v14 = vpop.eup %8810  ;;  %v1310_v19 = vpack.c.bf16 %v1306_v48, %v1306_v48 }
 0x660   :  { %v1305_v13 = vmul.f32 %v8811_v14, %v8803_v47  ;;  %v1656_v59 = vpop.permute.xlu1 %1655  ;;  %v1606_v47 = vpop.permute.xlu0 %1605 }
 0x661   :  { %8329 = vmatmul.mubr.msk.bf16.vlgmr.msra.gmra.mrb[28].mxu0 %vm620_vm10, %v1310_v19  ;;  %v1661_v50 = vsel %vm620_vm10, %v1656_v59, 0  ;;  %v1611_v8 = vsel %vm620_vm10, %v1606_v47, 0 }
 0x662   :  { %8339 = vmatpush3.bf16.xpose.msra.mxu0 %v1561_v24  ;;  %v1309_v49 = vpack.c.bf16 %v1305_v13, %v1305_v13  ;;  %8340 = vmatprep.mubr.msk.bf16.mxu0 %vm8949_vm9, %v12707_v42 }
 0x663   :  { %8350 = vmatprep.subr.bf16.mxu0 %v12707_v42 }
 0x664   :  { %8323 = vmatmul.mubr.msk.bf16.vlgmr.msra.gmra.mrb[32].mxu1 %vm620_vm10, %v1309_v49  ;;  %v1654_v61 = vpop.permute.xlu1 %1653  ;;  %v1604_v60 = vpop.permute.xlu0 %1603 }
 0x665   :  { %8333 = vmatpush3.bf16.xpose.msra.mxu1 %v1511_v6  ;;  %8334 = vmatprep.mubr.msk.bf16.mxu1 %vm8949_vm9, %v12707_v42 }
 0x666   :  { %8344 = vmatprep.subr.bf16.mxu1 %v12707_v42 }
 0x669   :  { %8341 = vmatmul.mubr.msk.bf16.vlgmr.msra.gmra.mrb[32].mxu0 %vm620_vm10, %v1554_v51 }
 0x66a   :  { %8351 = vmatpush3.bf16.xpose.msra.mxu0 %v1661_v50  ;;  %8352 = vmatprep.mubr.msk.bf16.mxu0 %vm8949_vm9, %v12707_v42 }
 0x66b   :  { %8362 = vmatprep.subr.bf16.mxu0 %v12707_v42 }
 0x66c   :  { %8335 = vmatmul.mubr.msk.bf16.vlgmr.msra.gmra.mrb[36].mxu1 %vm620_vm10, %v1504_v18 }
 0x66d   :  { %8345 = vmatpush3.bf16.xpose.msra.mxu1 %v1611_v8  ;;  %8346 = vmatprep.mubr.msk.bf16.mxu1 %vm8949_vm9, %v12707_v42 }
 0x66e   :  { %8356 = vmatprep.subr.bf16.mxu1 %v12707_v42 }
 0x671   :  { %8353 = vmatmul.mubr.msk.bf16.vlgmr.msra.gmra.mrb[36].mxu0 %vm620_vm10, %v1654_v61 }
 0x672   :  { %8364 = vmatprep.mubr.msk.bf16.mxu0 %vm8949_vm9, %v12707_v42 }
 0x674   :  { %8347 = vmatmul.mubr.msk.bf16.vlgmr.msra.gmra.mrb[40].mxu1 %vm620_vm10, %v1604_v60 }
 0x675   :  { %8358 = vmatprep.mubr.msk.bf16.mxu1 %vm8949_vm9, %v12707_v42 }
 0x6fe   :  { %v9589_v9 = vpop.f32.mrb[28].mxu1 }
 0x6ff   :  { %v9591_v20 = vpop.f32.mrb[24].mxu0  ;;  %v8312_v62 = vpop.f32.mrb[29].mxu1 }
 0x700   :  { %v8318_v22 = vpop.f32.mrb[25].mxu0  ;;  %v1356_v2 = vpop.f32.mrb[30].mxu1 }
 0x701   :  { %v1404_v45 = vpop.f32.mrb[26].mxu0  ;;  %v8313_v43 = vpop.f32.mrb[31].mxu1 }
 0x702   :  { %v8319_v46 = vpop.f32.mrb[27].mxu0 }
 0x734   :  { %v9595_v23 = vpop.f32.mrb[28].mxu0 }
 0x735   :  { %v8330_v17 = vpop.f32.mrb[29].mxu0 }
 0x736   :  { %v1500_v3 = vpop.f32.mrb[30].mxu0 }
 0x737   :  { %v8331_v48 = vpop.f32.mrb[31].mxu0  ;;  %v9597_v14 = vpop.f32.mrb[32].mxu1 }
 0x738   :  { %v8705_v19 = vpack.i.bf16 %v9595_v23, %v9597_v14  ;;  %v8324_v51 = vpop.f32.mrb[33].mxu1 }
 0x739   :  { %v1452_v13 = vpop.f32.mrb[34].mxu1 }
 0x73a   :  { %v8325_v24 = vpop.f32.mrb[35].mxu1 }
 0x73c   :  { %v1597_v49 = vpop.f32.mrb[32].mxu0 }
 0x73d   :  { %v1704_v18 = vmul.f32 0.35355338, %v1597_v49  ;;  %v8342_v6 = vpop.f32.mrb[33].mxu0 }
 0x73e   :  { %v1600_v59 = vpop.f32.mrb[34].mxu0 }
 0x73f   :  { %v8343_v47 = vpop.f32.mrb[35].mxu0  ;;  %v1710_v50 = vsel %vm620_vm10, %v1704_v18, -inf  ;;  %v1547_v8 = vpop.f32.mrb[36].mxu1 }
 0x740   :  { %1711 = vmax.xlane.f32.xlu1 %v1710_v50  ;;  %v1703_v61 = vmul.f32 0.35355338, %v1547_v8  ;;  %v8336_v60 = vpop.f32.mrb[37].mxu1 }
 0x741   :  { %v1550_v62 = vpop.f32.mrb[38].mxu1 }
 0x742   :  { %v8337_v22 = vpop.f32.mrb[39].mxu1  ;;  %v1707_v2 = vsel %vm620_vm10, %v1703_v61, -inf }
 0x743   :  { %1708 = vmax.xlane.f32.xlu0 %v1707_v2 }
 0x744   :  { %v1697_v45 = vpop.f32.mrb[36].mxu0 }
 0x745   :  { %v8354_v43 = vpop.f32.mrb[37].mxu0  ;;  %v1706_v24 = vmul.f32 0.35355338, %v1697_v45 }
 0x746   :  { %v1700_v46 = vpop.f32.mrb[38].mxu0 }
 0x747   :  { %v8355_v17 = vpop.f32.mrb[39].mxu0  ;;  %v1647_v3 = vpop.f32.mrb[40].mxu1  ;;  %v1716_v59 = vsel %vm620_vm10, %v1706_v24, -inf }
 0x748   :  { %v1705_v48 = vmul.f32 0.35355338, %v1647_v3  ;;  %v8348_v51 = vpop.f32.mrb[41].mxu1 }
 0x749   :  { %v1650_v13 = vpop.f32.mrb[42].mxu1 }
 0x74a   :  { %v8349_v49 = vpop.f32.mrb[43].mxu1  ;;  %v1713_v6 = vsel %vm620_vm10, %v1705_v48, -inf }
 0x74b   :  { %1714 = vmax.xlane.f32.xlu0 %v1713_v6 }
 0x74f   :  { %1717 = vmax.xlane.f32.xlu0 %v1716_v59 }
 0x751   :  { %1755 = vrot.lane.b32.xlu1 %v9399_v55, %s8957_s22 }
 0x7cd   :  { %v1712_v47 = vpop.xlane.xlu1 %1711 }
 0x7ce   :  { %v1720_v50 = vsub.f32 %v1704_v18, %v1712_v47 }
 0x7d0   :  { %v1725_v8 = vmul.f32 1.442695, %v1720_v50  ;;  %v1709_v60 = vpop.xlane.xlu0 %1708 }
 0x7d1   :  { %v1756_v62 = vpop.permute.xlu1 %1755  ;;  %v1719_v22 = vsub.f32 %v1703_v61, %v1709_v60 }
 0x7d2   :  { %8812 = vpow2.f32 %v1725_v8  ;;  %v1761_v2 = vsel %vm871_vm11, %v1756_v62, 0 }
 0x7d3   :  { %v1723_v45 = vmul.f32 1.442695, %v1719_v22  ;;  %8357 = vmatpush3.bf16.msra.mxu1 %v1761_v2 }
 0x7d4   :  { %8368 = vmatprep.subr.bf16.mxu1 %v12707_v42 }
 0x7d5   :  { %8814 = vpow2.f32 %v1723_v45 }
 0x7d8   :  { %v1715_v18 = vpop.xlane.xlu0 %1714 }
 0x7d9   :  { %v1721_v49 = vsub.f32 %v1705_v48, %v1715_v18 }
 0x7db   :  { %v1727_v6 = vmul.f32 1.442695, %v1721_v49 }
 0x7dc   :  { %v8813_v43 = vpop.eup %8812  ;;  %v1718_v61 = vpop.xlane.xlu0 %1717 }
 0x7dd   :  { %v1734_v46 = vsel %vm620_vm10, %v8813_v43, 0.0  ;;  %v1722_v51 = vsub.f32 %v1706_v24, %v1718_v61 }
 0x7de   :  { %1735 = vadd.xlane.f32.xlu0 %v1734_v46 }
 0x7df   :  { %v8815_v17 = vpop.eup %8814  ;;  %v1729_v13 = vmul.f32 1.442695, %v1722_v51 }
 0x7e0   :  { %v1731_v3 = vsel %vm620_vm10, %v8815_v17, 0.0 }
 0x7e1   :  { %1732 = vadd.xlane.f32.xlu1 %v1731_v3  ;;  %8816 = vpow2.f32 %v1729_v13 }
 0x7e2   :  { %8818 = vpow2.f32 %v1727_v6 }
 0x7eb   :  { %v8817_v59 = vpop.eup %8816 }
 0x7ec   :  { %v1740_v47 = vsel %vm620_vm10, %v8817_v59, 0.0  ;;  %v8819_v50 = vpop.eup %8818 }
 0x7ed   :  { %v1737_v8 = vsel %vm620_vm10, %v8819_v50, 0.0 }
 0x7f2   :  { %1851 = vrot.lane.b32.xlu1 %v9397_v54, %s8957_s22 }
 0x7f4   :  { %1803 = vrot.lane.b32.xlu0 %v9407_v12, %s8957_s22 }
 0x7f6   :  { %1899 = vrot.lane.b32.xlu1 %v9405_v11, %s8957_s22 }
 0x813   :  { %1741 = vadd.xlane.f32.xlu0 %v1740_v47 }
 0x81a   :  { %1738 = vadd.xlane.f32.xlu1 %v1737_v8 }
 0x829   :  { %1949 = vrot.lane.b32.xlu0 %v9399_v55, %s8958_s23 }
 0x82b   :  { %1999 = vrot.lane.b32.xlu1 %v9407_v12, %s8958_s23 }
 0x82d   :  { %1947 = vrot.lane.b32.xlu0 %v9399_v55, %s8959_s24 }
 0x82f   :  { %1997 = vrot.lane.b32.xlu1 %v9407_v12, %s8959_s24 }
 0x831   :  { %2049 = vrot.lane.b32.xlu0 %v9397_v54, %s8958_s23 }
 0x833   :  { %2099 = vrot.lane.b32.xlu1 %v9405_v11, %s8958_s23 }
 0x835   :  { %2047 = vrot.lane.b32.xlu0 %v9397_v54, %s8959_s24 }
 0x837   :  { %2097 = vrot.lane.b32.xlu1 %v9405_v11, %s8959_s24 }
 0x86b   :  { %v1736_v48 = vpop.xlane.xlu0 %1735 }
 0x86c   :  { %8820 = vrcp.f32 %v1736_v48 }
 0x86e   :  { %v1733_v24 = vpop.xlane.xlu1 %1732 }
 0x86f   :  { %8822 = vrcp.f32 %v1733_v24  ;;  %v1804_v60 = vpop.permute.xlu0 %1803 }
 0x870   :  { %v1809_v62 = vsel %vm871_vm11, %v1804_v60, 0 }
 0x871   :  { %8363 = vmatpush3.bf16.msra.mxu0 %v1809_v62 }
 0x872   :  { %v1852_v22 = vpop.permute.xlu1 %1851  ;;  %8374 = vmatprep.subr.bf16.mxu0 %v12707_v42 }
 0x873   :  { %v1857_v49 = vsel %vm871_vm11, %v1852_v22, 0 }
 0x876   :  { %v8821_v2 = vpop.eup %8820  ;;  %v1900_v46 = vpop.permute.xlu1 %1899 }
 0x877   :  { %v1748_v45 = vmul.f32 %v8821_v2, %v8813_v43  ;;  %v1905_v51 = vsel %vm871_vm11, %v1900_v46, 0 }
 0x879   :  { %v8823_v3 = vpop.eup %8822  ;;  %v1752_v18 = vpack.c.bf16 %v1748_v45, %v1748_v45 }
 0x87a   :  { %v1747_v61 = vmul.f32 %v8823_v3, %v8815_v17 }
 0x87b   :  { %8365 = vmatmul.mubr.msk.bf16.vlgmr.msra.gmra.mrb[40].mxu0 %vm620_vm10, %v1752_v18 }
 0x87c   :  { %8375 = vmatpush3.bf16.msra.mxu0 %v1905_v51  ;;  %v1751_v13 = vpack.c.bf16 %v1747_v61, %v1747_v61  ;;  %8376 = vmatprep.mubr.msk.bf16.mxu0 %vm8949_vm9, %v12707_v42 }
 0x87d   :  { %8386 = vmatprep.subr.bf16.mxu0 %v12707_v42 }
 0x87e   :  { %8359 = vmatmul.mubr.msk.bf16.vlgmr.msra.gmra.mrb[44].mxu1 %vm620_vm10, %v1751_v13 }
 0x87f   :  { %8369 = vmatpush3.bf16.msra.mxu1 %v1857_v49  ;;  %8370 = vmatprep.mubr.msk.bf16.mxu1 %vm8949_vm9, %v12707_v42 }
 0x880   :  { %8380 = vmatprep.subr.bf16.mxu1 %v12707_v42 }
 0x8a0   :  { %v1742_v43 = vpop.xlane.xlu0 %1741 }
 0x8a1   :  { %8824 = vrcp.f32 %v1742_v43 }
 0x8a4   :  { %v1950_v60 = vpop.permute.xlu0 %1949 }
 0x8a7   :  { %v1739_v17 = vpop.xlane.xlu1 %1738 }
 0x8a8   :  { %8826 = vrcp.f32 %v1739_v17  ;;  %v1948_v3 = vpop.permute.xlu0 %1947 }
 0x8ab   :  { %v8825_v6 = vpop.eup %8824  ;;  %v2000_v47 = vpop.permute.xlu1 %1999 }
 0x8ac   :  { %v1750_v8 = vmul.f32 %v8825_v6, %v8817_v59  ;;  %v2005_v62 = vsel %vm620_vm10, %v2000_v47, 0  ;;  %v1955_v59 = vsel %vm620_vm10, %v1950_v60, 0 }
 0x8ae   :  { %v1754_v48 = vpack.c.bf16 %v1750_v8, %v1750_v8 }
 0x8af   :  { %v1998_v24 = vpop.permute.xlu1 %1997 }
 0x8b0   :  { %8377 = vmatmul.mubr.msk.bf16.vlgmr.msra.gmra.mrb[44].mxu0 %vm620_vm10, %v1754_v48 }
 0x8b1   :  { %8387 = vmatpush3.bf16.xpose.msra.mxu0 %v2005_v62  ;;  %8388 = vmatprep.mubr.msk.bf16.mxu0 %vm8949_vm9, %v12707_v42 }
 0x8b2   :  { %v8827_v22 = vpop.eup %8826  ;;  %8398 = vmatprep.subr.bf16.mxu0 %v12707_v42 }
 0x8b3   :  { %v1749_v2 = vmul.f32 %v8827_v22, %v8819_v50  ;;  %v2100_v45 = vpop.permute.xlu1 %2099  ;;  %v2050_v50 = vpop.permute.xlu0 %2049 }
 0x8b4   :  { %v2105_v18 = vsel %vm620_vm10, %v2100_v45, 0  ;;  %v2055_v61 = vsel %vm620_vm10, %v2050_v50, 0 }
 0x8b5   :  { %v1753_v46 = vpack.c.bf16 %v1749_v2, %v1749_v2 }
 0x8b7   :  { %8371 = vmatmul.mubr.msk.bf16.vlgmr.msra.gmra.mrb[48].mxu1 %vm620_vm10, %v1753_v46  ;;  %v2098_v51 = vpop.permute.xlu1 %2097  ;;  %v2048_v13 = vpop.permute.xlu0 %2047 }
 0x8b8   :  { %8381 = vmatpush3.bf16.xpose.msra.mxu1 %v1955_v59  ;;  %8389 = vmatmul.mubr.msk.bf16.vlgmr.msra.gmra.mrb[48].mxu0 %vm620_vm10, %v1998_v24 }
 0x8b9   :  { %8399 = vmatpush3.bf16.xpose.msra.mxu0 %v2105_v18  ;;  %8382 = vmatprep.mubr.msk.bf16.mxu1 %vm8949_vm9, %v12707_v42 }
 0x8ba   :  { %8392 = vmatprep.subr.bf16.mxu1 %v12707_v42  ;;  %8400 = vmatprep.mubr.msk.bf16.mxu0 %vm8949_vm9, %v12707_v42 }
 0x8bb   :  { %8410 = vmatprep.subr.bf16.mxu0 %v12707_v42 }
 0x8bf   :  { %8383 = vmatmul.mubr.msk.bf16.vlgmr.msra.gmra.mrb[52].mxu1 %vm620_vm10, %v1948_v3 }
 0x8c0   :  { %8393 = vmatpush3.bf16.xpose.msra.mxu1 %v2055_v61  ;;  %8401 = vmatmul.mubr.msk.bf16.vlgmr.msra.gmra.mrb[52].mxu0 %vm620_vm10, %v2098_v51 }
 0x8c1   :  { %8394 = vmatprep.mubr.msk.bf16.mxu1 %vm8949_vm9, %v12707_v42  ;;  %8404 = vmatprep.subr.bf16.mxu1 %v12707_v42 }
 0x8c2   :  { %8412 = vmatprep.mubr.msk.bf16.mxu0 %vm8949_vm9, %v12707_v42 }
 0x8c7   :  { %8395 = vmatmul.mubr.msk.bf16.vlgmr.msra.gmra.mrb[56].mxu1 %vm620_vm10, %v2048_v13 }
 0x8c8   :  { %8406 = vmatprep.mubr.msk.bf16.mxu1 %vm8949_vm9, %v12707_v42 }
 0x94e   :  { %v9673_v49 = vpop.f32.mrb[40].mxu0 }
 0x94f   :  { %v8366_v43 = vpop.f32.mrb[41].mxu0 }
 0x950   :  { %v1848_v17 = vpop.f32.mrb[42].mxu0 }
 0x951   :  { %v8367_v6 = vpop.f32.mrb[43].mxu0  ;;  %v9675_v47 = vpop.f32.mrb[44].mxu1 }
 0x952   :  { %v8360_v48 = vpop.f32.mrb[45].mxu1 }
 0x953   :  { %v1800_v24 = vpop.f32.mrb[46].mxu1 }
 0x954   :  { %v8361_v60 = vpop.f32.mrb[47].mxu1 }
 0x983   :  { %v9679_v62 = vpop.f32.mrb[44].mxu0 }
 0x984   :  { %v8378_v22 = vpop.f32.mrb[45].mxu0 }
 0x985   :  { %v1944_v2 = vpop.f32.mrb[46].mxu0 }
 0x986   :  { %v8379_v45 = vpop.f32.mrb[47].mxu0 }
 0x98a   :  { %v9681_v46 = vpop.f32.mrb[48].mxu1 }
 0x98b   :  { %v2041_v59 = vpop.f32.mrb[48].mxu0  ;;  %v8372_v18 = vpop.f32.mrb[49].mxu1 }
 0x98c   :  { %v2148_v50 = vmul.f32 0.35355338, %v2041_v59  ;;  %v8390_v61 = vpop.f32.mrb[49].mxu0  ;;  %v1896_v51 = vpop.f32.mrb[50].mxu1 }
 0x98d   :  { %v2044_v13 = vpop.f32.mrb[50].mxu0  ;;  %v8373_v43 = vpop.f32.mrb[51].mxu1 }
 0x98e   :  { %v8391_v17 = vpop.f32.mrb[51].mxu0  ;;  %v2154_v6 = vsel %vm620_vm10, %v2148_v50, -inf }
 0x98f   :  { %2155 = vmax.xlane.f32.xlu1 %v2154_v6 }
 0x992   :  { %v1991_v48 = vpop.f32.mrb[52].mxu1 }
 0x993   :  { %v2147_v24 = vmul.f32 0.35355338, %v1991_v48  ;;  %v2141_v60 = vpop.f32.mrb[52].mxu0  ;;  %v8384_v22 = vpop.f32.mrb[53].mxu1 }
 0x994   :  { %v8402_v2 = vpop.f32.mrb[53].mxu0  ;;  %v1994_v45 = vpop.f32.mrb[54].mxu1  ;;  %v2150_v43 = vmul.f32 0.35355338, %v2141_v60 }
 0x995   :  { %v2144_v8 = vpop.f32.mrb[54].mxu0  ;;  %v8385_v21 = vpop.f32.mrb[55].mxu1  ;;  %v2151_v3 = vsel %vm620_vm10, %v2147_v24, -inf }
 0x996   :  { %v8403_v18 = vpop.f32.mrb[55].mxu0  ;;  %2152 = vmax.xlane.f32.xlu0 %v2151_v3  ;;  %v2160_v8 = vsel %vm620_vm10, %v2150_v43, -inf }
 0x99a   :  { %v2091_v59 = vpop.f32.mrb[56].mxu1 }
 0x99b   :  { %v2149_v61 = vmul.f32 0.35355338, %v2091_v59  ;;  %v8396_v51 = vpop.f32.mrb[57].mxu1 }
 0x99c   :  { %v2094_v13 = vpop.f32.mrb[58].mxu1 }
 0x99d   :  { %v8397_v17 = vpop.f32.mrb[59].mxu1  ;;  %v2157_v6 = vsel %vm620_vm10, %v2149_v61, -inf }
 0x99e   :  { %2158 = vmax.xlane.f32.xlu0 %v2157_v6 }
 0x9a0   :  { %2199 = vrot.lane.b32.xlu1 %v9399_v55, %s8960_s25 }
 0x9a2   :  { %2161 = vmax.xlane.f32.xlu0 %v2160_v8 }
 0xa1c   :  { %v2156_v21 = vpop.xlane.xlu1 %2155 }
 0xa1d   :  { %v2164_v48 = vsub.f32 %v2148_v50, %v2156_v21 }
 0xa1f   :  { %v2169_v22 = vmul.f32 1.442695, %v2164_v48 }
 0xa20   :  { %v2200_v3 = vpop.permute.xlu1 %2199 }
 0xa21   :  { %8828 = vpow2.f32 %v2169_v22  ;;  %v2205_v2 = vsel %vm871_vm11, %v2200_v3, 0 }
 0xa22   :  { %8405 = vmatpush3.bf16.msra.mxu1 %v2205_v2 }
 0xa23   :  { %v2153_v60 = vpop.xlane.xlu0 %2152  ;;  %8416 = vmatprep.subr.bf16.mxu1 %v12707_v42 }
 0xa24   :  { %v2163_v45 = vsub.f32 %v2147_v24, %v2153_v60 }
 0xa26   :  { %v2167_v18 = vmul.f32 1.442695, %v2163_v45 }
 0xa28   :  { %8830 = vpow2.f32 %v2167_v18 }
 0xa2b   :  { %v8829_v59 = vpop.eup %8828  ;;  %v2159_v51 = vpop.xlane.xlu0 %2158 }
 0xa2c   :  { %v2165_v55 = vsub.f32 %v2149_v61, %v2159_v51  ;;  %v2178_v13 = vsel %vm620_vm10, %v8829_v59, 0.0 }
 0xa2d   :  { %2179 = vadd.xlane.f32.xlu0 %v2178_v13 }
 0xa2e   :  { %v2171_v17 = vmul.f32 1.442695, %v2165_v55 }
 0xa2f   :  { %v2162_v50 = vpop.xlane.xlu0 %2161 }
 0xa30   :  { %8832 = vpow2.f32 %v2171_v17  ;;  %v2166_v6 = vsub.f32 %v2150_v43, %v2162_v50  ;;  %v12740_v43 = vpack.i.bf16 %v9679_v62, %v9681_v46 }
 0xa32   :  { %v8831_v8 = vpop.eup %8830  ;;  %v2173_v21 = vmul.f32 1.442695, %v2166_v6 }
 0xa33   :  { %v2175_v48 = vsel %vm620_vm10, %v8831_v8, 0.0 }
 0xa34   :  { %8834 = vpow2.f32 %v2173_v21  ;;  %2176 = vadd.xlane.f32.xlu1 %v2175_v48  ;;  %v8762_v21 = vld [vmem:[%s12696_s3] sm:$0xff]  }
 0xa3a   :  { %v8833_v22 = vpop.eup %8832 }
 0xa3b   :  { %v2181_v24 = vsel %vm620_vm10, %v8833_v22, 0.0 }
 0xa3c   :  { %2182 = vadd.xlane.f32.xlu1 %v2181_v24 }
 0xa3e   :  { %v8835_v3 = vpop.eup %8834 }
 0xa3f   :  { %v2184_v61 = vsel %vm620_vm10, %v8835_v3, 0.0 }
 0xa40   :  { %2185 = vadd.xlane.f32.xlu0 %v2184_v61 }
 0xa4d   :  { %2295 = vrot.lane.b32.xlu1 %v9397_v54, %s8960_s25  ;;  %v12741_v54 = vpack.i.bf16 %v9591_v20, %v9589_v9 }
 0xa51   :  { %2343 = vrot.lane.b32.xlu1 %v9405_v11, %s8960_s25  ;;  %v12742_v11 = vpack.i.bf16 %v9673_v49, %v9675_v47 }
 0xa55   :  { %8706 = vrot.lane.b32.xlu1 %v8705_v19, %s8961_s1 }
 0xa56   :  { %2247 = vrot.lane.b32.xlu0 %v9407_v12, %s8960_s25 }
 0xa59   :  { %8716 = vrot.lane.b32.xlu1 %v12740_v43, %s8962_s26  ;;  %v8763_v43 = vld [vmem:[%s12696_s3 + $0x8] sm:$0xff]  }
 0xa5a   :  { %8701 = vrot.lane.b32.xlu0 %v12741_v54, %s8961_s1 }
 0xa5e   :  { %8711 = vrot.lane.b32.xlu0 %v12742_v11, %s8962_s26 }
 0xaba   :  { %v2180_v23 = vpop.xlane.xlu0 %2179 }
 0xac1   :  { %v2177_v14 = vpop.xlane.xlu1 %2176 }
 0xac2   :  { %8836 = vrcp.f32 %v2177_v14 }
 0xac3   :  { %8838 = vrcp.f32 %v2180_v23 }
 0xac9   :  { %v2183_v12 = vpop.xlane.xlu1 %2182 }
 0xaca   :  { %8840 = vrcp.f32 %v2183_v12 }
 0xacc   :  { %v8837_v19 = vpop.eup %8836 }
 0xacd   :  { %v8839_v2 = vpop.eup %8838  ;;  %v2296_v62 = vpop.permute.xlu1 %2295  ;;  %v2191_v60 = vmul.f32 %v8837_v19, %v8831_v8 }
 0xace   :  { %v2186_v46 = vpop.xlane.xlu0 %2185  ;;  %v2192_v9 = vmul.f32 %v8839_v2, %v8829_v59  ;;  %v2301_v20 = vsel %vm871_vm11, %v2296_v62, 0 }
 0xacf   :  { %8842 = vrcp.f32 %v2186_v46  ;;  %v2195_v45 = vpack.c.bf16 %v2191_v60, %v2191_v60 }
 0xad0   :  { %v2196_v55 = vpack.c.bf16 %v2192_v9, %v2192_v9 }
 0xad1   :  { %8407 = vmatmul.mubr.msk.bf16.vlgmr.msra.gmra.mrb[60].mxu1 %vm620_vm10, %v2195_v45  ;;  %v2344_v18 = vpop.permute.xlu1 %2343 }
 0xad2   :  { %v2248_v49 = vpop.permute.xlu0 %2247  ;;  %8417 = vmatpush3.bf16.msra.mxu1 %v2301_v20  ;;  %8418 = vmatprep.mubr.msk.bf16.mxu1 %vm8949_vm9, %v12707_v42  ;;  %v2349_v59 = vsel %vm871_vm11, %v2344_v18, 0 }
 0xad3   :  { %v2253_v47 = vsel %vm871_vm11, %v2248_v49, 0  ;;  %8428 = vmatprep.subr.bf16.mxu1 %v8762_v21 }
 0xad4   :  { %8411 = vmatpush3.bf16.msra.mxu0 %v2253_v47  ;;  %v8841_v51 = vpop.eup %8840 }
 0xad5   :  { %8422 = vmatprep.subr.bf16.mxu0 %v12707_v42  ;;  %v2193_v13 = vmul.f32 %v8841_v51, %v8833_v22  ;;  %v8707_v18 = vpop.permute.xlu1 %8706 }
 0xad6   :  { %v8702_v49 = vpop.permute.xlu0 %8701 }
 0xad7   :  { %8413 = vmatmul.mubr.msk.bf16.vlgmr.msra.gmra.mrb[56].mxu0 %vm620_vm10, %v2196_v55  ;;  %v2197_v17 = vpack.c.bf16 %v2193_v13, %v2193_v13  ;;  %v8704_v51 = vunpack.i.h.bf16 %v8702_v49  ;;  %v8703_v55 = vunpack.i.l.bf16 %v8702_v49 }
 0xad8   :  { %8423 = vmatpush3.bf16.msra.mxu0 %v2349_v59  ;;  %8424 = vmatprep.mubr.msk.bf16.mxu0 %vm8949_vm9, %v12707_v42 }
 0xad9   :  { %v8843_v50 = vpop.eup %8842  ;;  %8419 = vmatmul.mubr.msk.bf16.vlgmr.msra.gmra.mrb[64].mxu1 %vm620_vm10, %v2197_v17 }
 0xada   :  { %v2194_v6 = vmul.f32 %v8843_v50, %v8835_v3  ;;  %8429 = vmatpush3.bf16.msra.mxu1 %v8762_v21  ;;  %v8712_v47 = vpop.permute.xlu0 %8711  ;;  %v2440_v50 = vsel %vm620_vm10, %v9511_v10, %v8704_v51 }
 0xadb   :  { %8430 = vmatprep.subr.bf16.mxu1 %v8763_v43  ;;  %v8714_v13 = vunpack.i.h.bf16 %v8712_v47  ;;  %v8713_v59 = vunpack.i.l.bf16 %v8712_v47 }
 0xadc   :  { %v2198_v8 = vpack.c.bf16 %v2194_v6, %v2194_v6  ;;  %v2439_v6 = vsel %vm620_vm10, %v9509_v52, %v8703_v55 }
 0xade   :  { %8431 = vmatpush3.bf16.msra.mxu1 %v8763_v43 }
 0xadf   :  { %8425 = vmatmul.mubr.msk.bf16.vlgmr.msra.gmra.mrb[60].mxu0 %vm620_vm10, %v2198_v8 }
 0xba4   :  { %v2241_v48 = vpop.f32.mrb[60].mxu1 }
 0xba5   :  { %v8408_v22 = vpop.f32.mrb[61].mxu1 }
 0xba6   :  { %v2244_v24 = vpop.f32.mrb[62].mxu1  ;;  %v2445_v22 = vsel %vm2443_vm12, %v2440_v50, %v8714_v13 }
 0xba7   :  { %v8409_v61 = vpop.f32.mrb[63].mxu1  ;;  %v8717_v24 = vpop.permute.xlu1 %8716 }
 0xbaa   :  { %v2289_v54 = vpop.f32.mrb[56].mxu0 }
 0xbab   :  { %v8720_v11 = vpack.i.bf16 %v2289_v54, %v2241_v48  ;;  %v8414_v3 = vpop.f32.mrb[57].mxu0  ;;  %v2444_v48 = vsel %vm2443_vm12, %v2439_v6, %v8713_v59 }
 0xbac   :  { %v2292_v23 = vpop.f32.mrb[58].mxu0  ;;  %v2337_v14 = vpop.f32.mrb[64].mxu1  ;;  %v8708_v3 = vunpack.i.l.bf16 %v8707_v18 }
 0xbad   :  { %8721 = vrot.lane.b32.xlu0 %v8720_v11, %s8963_s10  ;;  %v8415_v12 = vpop.f32.mrb[59].mxu0  ;;  %v8420_v19 = vpop.f32.mrb[65].mxu1  ;;  %v8709_v11 = vunpack.i.h.bf16 %v8707_v18  ;;  %v8719_v23 = vunpack.i.h.bf16 %v8717_v24 }
 0xbae   :  { %v2340_v2 = vpop.f32.mrb[66].mxu1  ;;  %v2441_v12 = vsel %vm620_vm10, %v9513_v25, %v8708_v3  ;;  %v9765_v25 = vld [vmem:[%s12697_s8] sm:$0x3f] }
 0xbaf   :  { %v8421_v62 = vpop.f32.mrb[67].mxu1  ;;  %v2442_v52 = vsel %vm620_vm10, %v9515_v16, %v8709_v11 }
 0xbb2   :  { %v2385_v46 = vpop.f32.mrb[60].mxu0 }
 0xbb3   :  { %v8725_v60 = vpack.i.bf16 %v2385_v46, %v2337_v14  ;;  %v8426_v45 = vpop.f32.mrb[61].mxu0  ;;  %v8718_v14 = vunpack.i.l.bf16 %v8717_v24  ;;  %v2447_v46 = vsel %vm2443_vm12, %v2442_v52, %v8719_v23 }
 0xbb4   :  { %v2388_v9 = vpop.f32.mrb[62].mxu0 }
 0xbb5   :  { %8726 = vrot.lane.b32.xlu1 %v8725_v60, %s8963_s10  ;;  %v8427_v20 = vpop.f32.mrb[63].mxu0  ;;  %v2446_v62 = vsel %vm2443_vm12, %v2441_v12, %v8718_v14 }
 0xbb6   :  { %v2459_v20 = vlaneseq }
 0xbb8   :  { %v9757_v49 = vshrl.u32 %v2459_v20, 7 }
 0xbba   :  { %12743 = vst [vmem:[#allocation6_spill] sm:$0xff] %v9757_v49  ;;  %v9760_v16 = vsub.s32 0, %v9757_v49 }
 0xbbc   :  { %12744 = vst [vmem:[#allocation7_spill] sm:$0xff] %v9760_v16  ;;  %v2462_v47 = vrot.slane %v9765_v25, %v9760_v16 }
 0xc1f   :  { %v8722_v17 = vpop.permute.xlu0 %8721 }
 0xc20   :  { %v8724_v8 = vunpack.i.h.bf16 %v8722_v17  ;;  %v8723_v21 = vunpack.i.l.bf16 %v8722_v17 }
 0xc22   :  { %v2449_v61 = vsel %vm2448_vm13, %v2444_v48, %v8723_v21  ;;  %v2450_v43 = vsel %vm2448_vm13, %v2445_v22, %v8724_v8 }
 0xc23   :  { %v2453_v54 = vpack.c.bf16 %v2450_v43, %v2449_v61 }
 0xc25   :  { %8432 = vmatprep.mubr.msk.bf16.mxu1 %vm557_vm8, %v2453_v54 }
 0xc27   :  { %v8727_v10 = vpop.permute.xlu1 %8726 }
 0xc28   :  { %v8729_v19 = vunpack.i.h.bf16 %v8727_v10  ;;  %v8728_v2 = vunpack.i.l.bf16 %v8727_v10 }
 0xc2a   :  { %v2452_v60 = vsel %vm2448_vm13, %v2447_v46, %v8729_v19  ;;  %v2451_v45 = vsel %vm2448_vm13, %v2446_v62, %v8728_v2 }
 0xc2b   :  { %v2454_v9 = vpack.c.bf16 %v2452_v60, %v2451_v45 }
 0xc2d   :  { %8433 = vmatmul.mubr.msk.bf16.vlgmr.msra.gmra.mrb[68].mxu1 %vm557_vm8, %v2454_v9 }
 0xd00   :  { %v8434_v18 = vpop.f32.mrb[68].mxu1 }
 0xd01   :  { %v9769_v51 = vadd.f32 %v8434_v18, %v2462_v47  ;;  %v2515_v55 = vpop.f32.mrb[69].mxu1 }
 0xd02   :  { %v2516_v13 = vadd.f32 %v2515_v55, %v2462_v47  ;;  %v8435_v59 = vpop.f32.mrb[70].mxu1 }
 0xd03   :  { %v9771_v17 = vadd.f32 %v8435_v59, %v2462_v47  ;;  %v2518_v50 = vpop.f32.mrb[71].mxu1  ;;  %v2548_v6 = vrot.slane %v9769_v51, 1  ;;  %v2549_v8 = vrot.slane %v9769_v51, 2  ;;  %v2550_v10 = vrot.slane %v9769_v51, 3 }
 0xd04   :  { %v2519_v21 = vadd.f32 %v2518_v50, %v2462_v47  ;;  %v2534_v48 = vrot.slane %v2516_v13, 1  ;;  %v2535_v22 = vrot.slane %v2516_v13, 2  ;;  %v2536_v24 = vrot.slane %v2516_v13, 3 }
 0xd05   :  { %v2537_v61 = vrot.slane %v2516_v13, 4  ;;  %v2538_v43 = vrot.slane %v2516_v13, 5  ;;  %v2539_v54 = vrot.slane %v2516_v13, 6  ;;  %v2540_v11 = vrot.slane %v2516_v13, 7 }
 0xd06   :  { %v9776_v3 = vadd.f32 %v2534_v48, %v9126_v27  ;;  %v9779_v23 = vadd.f32 %v2535_v22, %v9129_v28  ;;  %v9782_v14 = vadd.f32 %v2536_v24, %v9132_v29  ;;  %v9786_v52 = vadd.f32 %v2516_v13, %v9123_v26 }
 0xd07   :  { %v9789_v12 = vadd.f32 %v2537_v61, %v9135_v30  ;;  %v9792_v19 = vadd.f32 %v2538_v43, %v9138_v31  ;;  %v9795_v27 = vadd.f32 %v2539_v54, %v9141_v32  ;;  %v9798_v28 = vadd.f32 %v2540_v11, %v9144_v33 }
 0xd08   :  { %v2658_v29 = vrot.slane %v9776_v3, 7  ;;  %v2660_v2 = vrot.slane %v9779_v23, 6  ;;  %v2541_v62 = vrot.slane %v2519_v21, 1  ;;  %v2662_v26 = vrot.slane %v9782_v14, 5 }
 0xd09   :  { %v2664_v46 = vrot.slane %v9789_v12, 4  ;;  %v2666_v30 = vrot.slane %v9792_v19, 3  ;;  %v2668_v31 = vrot.slane %v9795_v27, 2  ;;  %v2542_v60 = vrot.slane %v2519_v21, 2 }
 0xd0a   :  { %v2659_v32 = vsel %vm481_vm1, %v2658_v29, %v9786_v52  ;;  %v2543_v45 = vrot.slane %v2519_v21, 3  ;;  %v2544_v33 = vrot.slane %v2519_v21, 4  ;;  %v2545_v20 = vrot.slane %v2519_v21, 5 }
 0xd0b   :  { %v2661_v9 = vsel %vm484_vm2, %v2660_v2, %v2659_v32  ;;  %v2546_v47 = vrot.slane %v2519_v21, 6  ;;  %v2547_v18 = vrot.slane %v2519_v21, 7  ;;  %v2670_v13 = vrot.slane %v9798_v28, 1 }
 0xd0c   :  { %v2663_v55 = vsel %vm487_vm3, %v2662_v26, %v2661_v9  ;;  %v9812_v59 = vadd.f32 %v2541_v62, %v9150_v35  ;;  %v9815_v50 = vadd.f32 %v2542_v60, %v9153_v36  ;;  %v9819_v22 = vadd.f32 %v2543_v45, %v9156_v37  ;;  %v12745_v37 = vld [vmem:[#allocation2_spill] sm:$0xff] }
 0xd0d   :  { %v2665_v48 = vsel %vm490_vm4, %v2664_v46, %v2663_v55  ;;  %v9822_v24 = vadd.f32 %v2544_v33, %v9159_v38  ;;  %v9825_v61 = vadd.f32 %v2545_v20, %v9162_v39  ;;  %v9829_v54 = vadd.f32 %v2519_v21, %v9147_v34 }
 0xd0e   :  { %v2667_v43 = vsel %vm493_vm5, %v2666_v30, %v2665_v48  ;;  %v9832_v35 = vadd.f32 %v2546_v47, %v9165_v40  ;;  %v2672_v36 = vrot.slane %v9812_v59, 7  ;;  %v9837_v29 = vadd.f32 %v2547_v18, %v12745_v37 }
 0xd0f   :  { %v2669_v11 = vsel %vm496_vm6, %v2668_v31, %v2667_v43  ;;  %v2674_v38 = vrot.slane %v9815_v50, 6  ;;  %v2676_v39 = vrot.slane %v9819_v22, 5  ;;  %v2678_v21 = vrot.slane %v9822_v24, 4 }
 0xd10   :  { %v2671_v2 = vsel %vm499_vm7, %v2670_v13, %v2669_v11  ;;  %v2673_v34 = vsel %vm481_vm1, %v2672_v36, %v9829_v54  ;;  %v2680_v40 = vrot.slane %v9825_v61, 3  ;;  %v2682_v46 = vrot.slane %v9832_v35, 2 }
 0xd11   :  { %v2718_v62 = vsel %vm557_vm8, %v2671_v2, 0.0  ;;  %v2675_v26 = vsel %vm484_vm2, %v2674_v38, %v2673_v34  ;;  %v2551_v30 = vrot.slane %v9769_v51, 4  ;;  %v2552_v32 = vrot.slane %v9769_v51, 5 }
 0xd12   :  { %2719 = vadd.xlane.f32.xlu0 %v2718_v62  ;;  %v2677_v31 = vsel %vm487_vm3, %v2676_v39, %v2675_v26  ;;  %v2553_v60 = vrot.slane %v9769_v51, 6  ;;  %v2554_v45 = vrot.slane %v9769_v51, 7  ;;  %v2684_v9 = vrot.slane %v9837_v29, 1 }
 0xd13   :  { %v2679_v33 = vsel %vm490_vm4, %v2678_v21, %v2677_v31  ;;  %v9859_v20 = vadd.f32 %v2548_v6, %v9297_v44  ;;  %v9864_v47 = vadd.f32 %v2549_v8, %v9300_v41  ;;  %v9868_v55 = vadd.f32 %v2550_v10, %v9303_v53 }
 0xd14   :  { %v2681_v18 = vsel %vm493_vm5, %v2680_v40, %v2679_v33  ;;  %v9871_v13 = vadd.f32 %v2551_v30, %v9306_v58  ;;  %v9874_v48 = vadd.f32 %v2552_v32, %v9309_v7  ;;  %v9879_v44 = vadd.f32 %v9769_v51, %v9294_v63 }
 0xd15   :  { %v2683_v43 = vsel %vm496_vm6, %v2682_v46, %v2681_v18  ;;  %v9882_v41 = vadd.f32 %v2553_v60, %v9312_v56  ;;  %v2686_v6 = vrot.slane %v9859_v20, 7  ;;  %v9887_v8 = vadd.f32 %v2554_v45, %v9315_v0  ;;  %v12746_v18 = vld [vmem:[#allocation3_spill] sm:$0xff] }
 0xd16   :  { %v2685_v53 = vsel %vm499_vm7, %v2684_v9, %v2683_v43  ;;  %v2688_v58 = vrot.slane %v9864_v47, 6  ;;  %v2690_v7 = vrot.slane %v9868_v55, 5  ;;  %v2692_v51 = vrot.slane %v9871_v13, 4 }
 0xd17   :  { %v2721_v10 = vsel %vm557_vm8, %v2685_v53, 0.0  ;;  %v2687_v63 = vsel %vm481_vm1, %v2686_v6, %v9879_v44  ;;  %v2694_v56 = vrot.slane %v9874_v48, 3  ;;  %v2696_v11 = vrot.slane %v9882_v41, 2  ;;  %v12747_v6 = vld [vmem:[#allocation4_spill] sm:$0xff] }
 0xd18   :  { %2722 = vadd.xlane.f32.xlu1 %v2721_v10  ;;  %v2689_v36 = vsel %vm484_vm2, %v2688_v58, %v2687_v63  ;;  %v2555_v0 = vrot.slane %v9771_v17, 1  ;;  %v2556_v37 = vrot.slane %v9771_v17, 2  ;;  %v2557_v39 = vrot.slane %v9771_v17, 3 }
 0xd19   :  { %v2691_v38 = vsel %vm487_vm3, %v2690_v7, %v2689_v36  ;;  %v2558_v2 = vrot.slane %v9771_v17, 4  ;;  %v2559_v34 = vrot.slane %v9771_v17, 5  ;;  %v2698_v40 = vrot.slane %v9887_v8, 1 }
 0xd1a   :  { %v2693_v21 = vsel %vm490_vm4, %v2692_v51, %v2691_v38  ;;  %v2560_v62 = vrot.slane %v9771_v17, 6  ;;  %v2561_v26 = vrot.slane %v9771_v17, 7  ;;  %v9910_v30 = vadd.f32 %v2555_v0, %v9318_v4 }
 0xd1b   :  { %v2695_v46 = vsel %vm493_vm5, %v2694_v56, %v2693_v21  ;;  %v9913_v31 = vadd.f32 %v2556_v37, %v9321_v1  ;;  %v9916_v32 = vadd.f32 %v2557_v39, %v9324_v5  ;;  %v9921_v45 = vadd.f32 %v9771_v17, %v9330_v15  ;;  %v12748_v15 = vld [vmem:[#allocation5_spill] sm:$0xff] }
 0xd1c   :  { %v2697_v60 = vsel %vm496_vm6, %v2696_v11, %v2695_v46  ;;  %v9924_v33 = vadd.f32 %v2558_v2, %v9327_v57  ;;  %v9928_v4 = vadd.f32 %v2559_v34, %v12746_v18  ;;  %v2700_v1 = vrot.slane %v9910_v30, 7 }
 0xd1d   :  { %v2699_v9 = vsel %vm499_vm7, %v2698_v40, %v2697_v60  ;;  %v2702_v43 = vrot.slane %v9913_v31, 6  ;;  %v9934_v53 = vadd.f32 %v2560_v62, %v12747_v6  ;;  %v9937_v17 = vadd.f32 %v2561_v26, %v12748_v15 }
 0xd1e   :  { %v2724_v5 = vsel %vm557_vm8, %v2699_v9, 0.0  ;;  %v2701_v57 = vsel %vm481_vm1, %v2700_v1, %v9921_v45  ;;  %v2704_v58 = vrot.slane %v9916_v32, 5  ;;  %v2706_v10 = vrot.slane %v9924_v33, 4 }
 0xd1f   :  { %2725 = vadd.xlane.f32.xlu0 %v2724_v5  ;;  %v2703_v7 = vsel %vm484_vm2, %v2702_v43, %v2701_v57  ;;  %v2708_v51 = vrot.slane %v9928_v4, 3  ;;  %v2710_v36 = vrot.slane %v9934_v53, 2  ;;  %v2712_v0 = vrot.slane %v9937_v17, 1 }
 0xd20   :  { %v2705_v63 = vsel %vm487_vm3, %v2704_v58, %v2703_v7 }
 0xd21   :  { %v2707_v56 = vsel %vm490_vm4, %v2706_v10, %v2705_v63 }
 0xd22   :  { %v2709_v11 = vsel %vm493_vm5, %v2708_v51, %v2707_v56 }
 0xd23   :  { %v2711_v37 = vsel %vm496_vm6, %v2710_v36, %v2709_v11 }
 0xd24   :  { %v2713_v38 = vsel %vm499_vm7, %v2712_v0, %v2711_v37 }
 0xd25   :  { %v2727_v39 = vsel %vm557_vm8, %v2713_v38, 0.0 }
 0xd26   :  { %2728 = vadd.xlane.f32.xlu0 %v2727_v39 }
 0xd9f   :  { %v2720_v2 = vpop.xlane.xlu0 %2719 }
 0xda0   :  { %v2731_v34 = vmul.f32 0.03125, %v2720_v2 }
 0xda2   :  { %v2739_v21 = vrot.slane %v2731_v34, 1  ;;  %v2740_v40 = vrot.slane %v2731_v34, 2  ;;  %v2741_v62 = vrot.slane %v2731_v34, 3  ;;  %v2742_v26 = vrot.slane %v2731_v34, 4 }
 0xda3   :  { %v2743_v46 = vrot.slane %v2731_v34, 5  ;;  %v2744_v60 = vrot.slane %v2731_v34, 6  ;;  %v2745_v9 = vrot.slane %v2731_v34, 7  ;;  %v9954_v18 = vsub.f32 %v9786_v52, %v2731_v34 }
 0xda4   :  { %v9957_v1 = vsub.f32 %v9776_v3, %v2739_v21  ;;  %v9960_v43 = vsub.f32 %v9779_v23, %v2740_v40  ;;  %v9963_v5 = vsub.f32 %v9782_v14, %v2741_v62  ;;  %v9966_v6 = vsub.f32 %v9789_v12, %v2742_v26 }
 0xda5   :  { %v2723_v15 = vpop.xlane.xlu1 %2722  ;;  %v9969_v57 = vsub.f32 %v9792_v19, %v2743_v46  ;;  %v9972_v58 = vsub.f32 %v9795_v27, %v2744_v60  ;;  %v9975_v52 = vsub.f32 %v9798_v28, %v2745_v9  ;;  %v2831_v3 = vmul.f32 %v9954_v18, %v9954_v18 }
 0xda6   :  { %v2732_v23 = vmul.f32 0.03125, %v2723_v15  ;;  %v2832_v14 = vmul.f32 %v9957_v1, %v9957_v1  ;;  %v2833_v12 = vmul.f32 %v9960_v43, %v9960_v43  ;;  %v2834_v19 = vmul.f32 %v9963_v5, %v9963_v5 }
 0xda7   :  { %v2835_v27 = vmul.f32 %v9966_v6, %v9966_v6  ;;  %v2836_v28 = vmul.f32 %v9969_v57, %v9969_v57  ;;  %v2837_v7 = vmul.f32 %v9972_v58, %v9972_v58  ;;  %v2838_v10 = vmul.f32 %v9975_v52, %v9975_v52 }
 0xda8   :  { %v2895_v63 = vrot.slane %v2832_v14, 7  ;;  %v2897_v51 = vrot.slane %v2833_v12, 6  ;;  %v2899_v56 = vrot.slane %v2834_v19, 5  ;;  %v2746_v36 = vrot.slane %v2732_v23, 1 }
 0xda9   :  { %v2901_v11 = vrot.slane %v2835_v27, 4  ;;  %v2903_v0 = vrot.slane %v2836_v28, 3  ;;  %v2905_v37 = vrot.slane %v2837_v7, 2  ;;  %v2907_v38 = vrot.slane %v2838_v10, 1 }
 0xdaa   :  { %v2896_v39 = vsel %vm481_vm1, %v2895_v63, %v2831_v3  ;;  %v2747_v2 = vrot.slane %v2732_v23, 2  ;;  %v2748_v34 = vrot.slane %v2732_v23, 3  ;;  %v2749_v21 = vrot.slane %v2732_v23, 4 }
 0xdab   :  { %v2898_v40 = vsel %vm484_vm2, %v2897_v51, %v2896_v39  ;;  %v2750_v62 = vrot.slane %v2732_v23, 5  ;;  %v2751_v26 = vrot.slane %v2732_v23, 6  ;;  %v2752_v46 = vrot.slane %v2732_v23, 7 }
 0xdac   :  { %v2726_v60 = vpop.xlane.xlu0 %2725  ;;  %v2900_v9 = vsel %vm487_vm3, %v2899_v56, %v2898_v40  ;;  %v9997_v15 = vsub.f32 %v9829_v54, %v2732_v23  ;;  %v10000_v14 = vsub.f32 %v9812_v59, %v2746_v36  ;;  %v10003_v12 = vsub.f32 %v9815_v50, %v2747_v2 }
 0xdad   :  { %v2733_v3 = vmul.f32 0.03125, %v2726_v60  ;;  %v2902_v19 = vsel %vm490_vm4, %v2901_v11, %v2900_v9  ;;  %v10007_v27 = vsub.f32 %v9819_v22, %v2748_v34  ;;  %v10010_v28 = vsub.f32 %v9822_v24, %v2749_v21 }
 0xdae   :  { %v2904_v7 = vsel %vm493_vm5, %v2903_v0, %v2902_v19  ;;  %v10014_v54 = vsub.f32 %v9825_v61, %v2750_v62  ;;  %v10017_v59 = vsub.f32 %v9832_v35, %v2751_v26  ;;  %v10020_v50 = vsub.f32 %v9837_v29, %v2752_v46 }
 0xdaf   :  { %v2906_v23 = vsel %vm496_vm6, %v2905_v37, %v2904_v7  ;;  %v2839_v22 = vmul.f32 %v9997_v15, %v9997_v15  ;;  %v2840_v24 = vmul.f32 %v10000_v14, %v10000_v14  ;;  %v2841_v10 = vmul.f32 %v10003_v12, %v10003_v12 }
 0xdb0   :  { %v2908_v61 = vsel %vm499_vm7, %v2907_v38, %v2906_v23  ;;  %v2842_v35 = vmul.f32 %v10007_v27, %v10007_v27  ;;  %v2843_v29 = vmul.f32 %v10010_v28, %v10010_v28  ;;  %v2844_v63 = vmul.f32 %v10014_v54, %v10014_v54 }
 0xdb1   :  { %v2955_v51 = vsel %vm557_vm8, %v2908_v61, 0.0  ;;  %v2845_v56 = vmul.f32 %v10017_v59, %v10017_v59  ;;  %v2846_v36 = vmul.f32 %v10020_v50, %v10020_v50  ;;  %v2909_v11 = vrot.slane %v2840_v24, 7 }
 0xdb2   :  { %2956 = vadd.xlane.f32.xlu1 %v2955_v51  ;;  %v2911_v0 = vrot.slane %v2841_v10, 6  ;;  %v2913_v37 = vrot.slane %v2842_v35, 5  ;;  %v2915_v38 = vrot.slane %v2843_v29, 4  ;;  %v2917_v39 = vrot.slane %v2844_v63, 3 }
 0xdb3   :  { %v2910_v2 = vsel %vm481_vm1, %v2909_v11, %v2839_v22  ;;  %v2919_v34 = vrot.slane %v2845_v56, 2  ;;  %v2921_v21 = vrot.slane %v2846_v36, 1  ;;  %v2753_v40 = vrot.slane %v2733_v3, 1  ;;  %v2729_v62 = vpop.xlane.xlu0 %2728 }
 0xdb4   :  { %v2912_v26 = vsel %vm484_vm2, %v2911_v0, %v2910_v2  ;;  %v2754_v46 = vrot.slane %v2733_v3, 2  ;;  %v2755_v60 = vrot.slane %v2733_v3, 3  ;;  %v2756_v9 = vrot.slane %v2733_v3, 4 }
 0xdb5   :  { %v2734_v19 = vmul.f32 0.03125, %v2729_v62  ;;  %v2914_v7 = vsel %vm487_vm3, %v2913_v37, %v2912_v26  ;;  %v2757_v23 = vrot.slane %v2733_v3, 5  ;;  %v2758_v24 = vrot.slane %v2733_v3, 6 }
 0xdb6   :  { %v2916_v10 = vsel %vm490_vm4, %v2915_v38, %v2914_v7  ;;  %v2759_v61 = vrot.slane %v2733_v3, 7  ;;  %v10046_v35 = vsub.f32 %v9879_v44, %v2733_v3  ;;  %v10049_v22 = vsub.f32 %v9859_v20, %v2753_v40 }
 0xdb7   :  { %v2918_v29 = vsel %vm493_vm5, %v2917_v39, %v2916_v10  ;;  %v10053_v63 = vsub.f32 %v9864_v47, %v2754_v46  ;;  %v10056_v51 = vsub.f32 %v9868_v55, %v2755_v60  ;;  %v10059_v56 = vsub.f32 %v9871_v13, %v2756_v9 }
 0xdb8   :  { %v2920_v36 = vsel %vm496_vm6, %v2919_v34, %v2918_v29  ;;  %v10063_v11 = vsub.f32 %v9874_v48, %v2757_v23  ;;  %v10066_v44 = vsub.f32 %v9882_v41, %v2758_v24  ;;  %v10069_v20 = vsub.f32 %v9887_v8, %v2759_v61 }
 0xdb9   :  { %v2922_v47 = vsel %vm499_vm7, %v2921_v21, %v2920_v36  ;;  %v2847_v55 = vmul.f32 %v10046_v35, %v10046_v35  ;;  %v2848_v13 = vmul.f32 %v10049_v22, %v10049_v22  ;;  %v2849_v3 = vmul.f32 %v10053_v63, %v10053_v63 }
 0xdba   :  { %v2958_v48 = vsel %vm557_vm8, %v2922_v47, 0.0  ;;  %v2850_v41 = vmul.f32 %v10056_v51, %v10056_v51  ;;  %v2851_v8 = vmul.f32 %v10059_v56, %v10059_v56  ;;  %v2852_v0 = vmul.f32 %v10063_v11, %v10063_v11 }
 0xdbb   :  { %2959 = vadd.xlane.f32.xlu0 %v2958_v48  ;;  %v2853_v37 = vmul.f32 %v10066_v44, %v10066_v44  ;;  %v2854_v38 = vmul.f32 %v10069_v20, %v10069_v20  ;;  %v2923_v39 = vrot.slane %v2848_v13, 7  ;;  %v2925_v2 = vrot.slane %v2849_v3, 6 }
 0xdbc   :  { %v2927_v34 = vrot.slane %v2850_v41, 5  ;;  %v2929_v21 = vrot.slane %v2851_v8, 4  ;;  %v2760_v40 = vrot.slane %v2734_v19, 1  ;;  %v2931_v26 = vrot.slane %v2852_v0, 3 }
 0xdbd   :  { %v2924_v62 = vsel %vm481_vm1, %v2923_v39, %v2847_v55  ;;  %v2933_v46 = vrot.slane %v2853_v37, 2  ;;  %v2761_v60 = vrot.slane %v2734_v19, 2  ;;  %v2762_v7 = vrot.slane %v2734_v19, 3 }
 0xdbe   :  { %v2926_v9 = vsel %vm484_vm2, %v2925_v2, %v2924_v62  ;;  %v2763_v23 = vrot.slane %v2734_v19, 4  ;;  %v2764_v24 = vrot.slane %v2734_v19, 5  ;;  %v2935_v61 = vrot.slane %v2854_v38, 1 }
 0xdbf   :  { %v2928_v10 = vsel %vm487_vm3, %v2927_v34, %v2926_v9  ;;  %v2765_v29 = vrot.slane %v2734_v19, 6  ;;  %v2766_v36 = vrot.slane %v2734_v19, 7  ;;  %v10094_v13 = vsub.f32 %v9910_v30, %v2760_v40 }
 0xdc0   :  { %v2930_v47 = vsel %vm490_vm4, %v2929_v21, %v2928_v10  ;;  %v10097_v55 = vsub.f32 %v9913_v31, %v2761_v60  ;;  %v10100_v3 = vsub.f32 %v9916_v32, %v2762_v7  ;;  %v10104_v41 = vsub.f32 %v9921_v45, %v2734_v19 }
 0xdc1   :  { %v2932_v48 = vsel %vm493_vm5, %v2931_v26, %v2930_v47  ;;  %v10107_v8 = vsub.f32 %v9924_v33, %v2763_v23  ;;  %v10110_v0 = vsub.f32 %v9928_v4, %v2764_v24  ;;  %v10114_v37 = vsub.f32 %v9934_v53, %v2765_v29  ;;  %v8764_v47 = vld [vmem:[%s12698_s4] sm:$0xff]  }
 0xdc2   :  { %v2934_v30 = vsel %vm496_vm6, %v2933_v46, %v2932_v48  ;;  %v2856_v31 = vmul.f32 %v10094_v13, %v10094_v13  ;;  %v10120_v38 = vsub.f32 %v9937_v17, %v2766_v36  ;;  %v2857_v45 = vmul.f32 %v10097_v55, %v10097_v55  ;;  %8436 = vmatprep.subr.bf16.mxu0 %v8764_v47  ;;  %v8765_v48 = vld [vmem:[%s12698_s4 + $0x8] sm:$0xff]  }
 0xdc3   :  { %v2936_v32 = vsel %vm499_vm7, %v2935_v61, %v2934_v30  ;;  %v2858_v33 = vmul.f32 %v10100_v3, %v10100_v3  ;;  %v2859_v53 = vmul.f32 %v10107_v8, %v10107_v8  ;;  %v2855_v19 = vmul.f32 %v10104_v41, %v10104_v41  ;;  %8437 = vmatpush3.bf16.msra.mxu0 %v8764_v47  ;;  %v8766_v30 = vld [vmem:[%s12699_s5] sm:$0xff]  }
 0xdc4   :  { %v2961_v4 = vsel %vm557_vm8, %v2936_v32, 0.0  ;;  %v2860_v39 = vmul.f32 %v10110_v0, %v10110_v0  ;;  %v2937_v17 = vrot.slane %v2856_v31, 7  ;;  %v2939_v2 = vrot.slane %v2857_v45, 6  ;;  %8438 = vmatprep.subr.bf16.mxu0 %v8765_v48  ;;  %v8767_v31 = vld [vmem:[%s12699_s5 + $0x8] sm:$0xff]   ;;  %8444 = vmatprep.subr.bf16.mxu1 %v8766_v30 }
 0xdc5   :  { %2962 = vadd.xlane.f32.xlu1 %v2961_v4  ;;  %v2861_v34 = vmul.f32 %v10114_v37, %v10114_v37  ;;  %v2862_v21 = vmul.f32 %v10120_v38, %v10120_v38  ;;  %v2941_v62 = vrot.slane %v2858_v33, 5  ;;  %v2943_v46 = vrot.slane %v2859_v53, 4  ;;  %8445 = vmatpush3.bf16.msra.mxu1 %v8766_v30 }
 0xdc6   :  { %v2938_v40 = vsel %vm481_vm1, %v2937_v17, %v2855_v19  ;;  %v2945_v9 = vrot.slane %v2860_v39, 3  ;;  %8446 = vmatprep.subr.bf16.mxu1 %v8767_v31  ;;  %v10158_v19 = vsub.s32 1, %v9757_v49  ;;  %v12706_v39 = vsub.s32 2, %v9757_v49 }
 0xdc7   :  { %v2940_v26 = vsel %vm484_vm2, %v2939_v2, %v2938_v40  ;;  %v2947_v23 = vrot.slane %v2861_v34, 2  ;;  %v2949_v10 = vrot.slane %v2862_v21, 1  ;;  %8439 = vmatpush3.bf16.msra.mxu0 %v8765_v48 }
 0xdc8   :  { %v2942_v60 = vsel %vm487_vm3, %v2941_v62, %v2940_v26  ;;  %12749 = vst [vmem:[#allocation2_spill] sm:$0xff] %v10158_v19  ;;  %v10163_v34 = vrot.slane %v9765_v25, %v10158_v19  ;;  %v10168_v21 = vrot.slane %v9765_v25, %v12706_v39 }
 0xdc9   :  { %v2944_v7 = vsel %vm490_vm4, %v2943_v46, %v2942_v60  ;;  %8447 = vmatpush3.bf16.msra.mxu1 %v8767_v31 }
 0xdca   :  { %v2946_v24 = vsel %vm493_vm5, %v2945_v9, %v2944_v7 }
 0xdcb   :  { %v2948_v61 = vsel %vm496_vm6, %v2947_v23, %v2946_v24 }
 0xdcc   :  { %v2950_v29 = vsel %vm499_vm7, %v2949_v10, %v2948_v61 }
 0xdcd   :  { %v2964_v36 = vsel %vm557_vm8, %v2950_v29, 0.0 }
 0xdce   :  { %2965 = vadd.xlane.f32.xlu0 %v2964_v36 }
 0xe3f   :  { %v2957_v32 = vpop.xlane.xlu1 %2956 }
 0xe40   :  { %v2967_v45 = vmul.f32 0.03125, %v2957_v32 }
 0xe42   :  { %v2971_v33 = vadd.f32 1e-05, %v2967_v45 }
 0xe44   :  { %8844 = vrsqrt.f32 %v2971_v33 }
 0xe48   :  { %v2960_v4 = vpop.xlane.xlu0 %2959 }
 0xe49   :  { %v2968_v53 = vmul.f32 0.03125, %v2960_v4 }
 0xe4b   :  { %v2972_v17 = vadd.f32 1e-05, %v2968_v53 }
 0xe4d   :  { %8846 = vrsqrt.f32 %v2972_v17 }
 0xe4e   :  { %v8845_v2 = vpop.eup %8844 }
 0xe4f   :  { %v2983_v40 = vrot.slane %v8845_v2, 1  ;;  %v2984_v62 = vrot.slane %v8845_v2, 2  ;;  %v2985_v26 = vrot.slane %v8845_v2, 3  ;;  %v2986_v46 = vrot.slane %v8845_v2, 4 }
 0xe50   :  { %v2987_v60 = vrot.slane %v8845_v2, 5  ;;  %v2988_v9 = vrot.slane %v8845_v2, 6  ;;  %v2989_v7 = vrot.slane %v8845_v2, 7  ;;  %v3043_v23 = vmul.f32 %v8845_v2, %v9954_v18 }
 0xe51   :  { %v3044_v24 = vmul.f32 %v2983_v40, %v9957_v1  ;;  %v3045_v10 = vmul.f32 %v2984_v62, %v9960_v43  ;;  %v3046_v61 = vmul.f32 %v2985_v26, %v9963_v5  ;;  %v3047_v29 = vmul.f32 %v2986_v46, %v9966_v6 }
 0xe52   :  { %v2963_v36 = vpop.xlane.xlu1 %2962  ;;  %v3048_v25 = vmul.f32 %v2987_v60, %v9969_v57  ;;  %v3049_v47 = vmul.f32 %v2988_v9, %v9972_v58  ;;  %v3050_v48 = vmul.f32 %v2989_v7, %v9975_v52  ;;  %v3079_v30 = vmul.f32 %v10163_v34, %v3043_v23 }
 0xe53   :  { %v2969_v31 = vmul.f32 0.03125, %v2963_v36  ;;  %v3080_v18 = vmul.f32 %v10163_v34, %v3044_v24  ;;  %v3081_v1 = vmul.f32 %v10163_v34, %v3045_v10  ;;  %v3082_v43 = vmul.f32 %v10163_v34, %v3046_v61 }
 0xe54   :  { %v3083_v5 = vmul.f32 %v10163_v34, %v3047_v29  ;;  %v3084_v6 = vmul.f32 %v10163_v34, %v3048_v25  ;;  %v3085_v32 = vmul.f32 %v10163_v34, %v3049_v47  ;;  %v3086_v58 = vmul.f32 %v10163_v34, %v3050_v48 }
 0xe55   :  { %v2973_v57 = vadd.f32 1e-05, %v2969_v31  ;;  %v10187_v52 = vadd.f32 %v10168_v21, %v3079_v30  ;;  %v10190_v45 = vadd.f32 %v10168_v21, %v3080_v18  ;;  %v10193_v4 = vadd.f32 %v10168_v21, %v3081_v1 }
 0xe56   :  { %v10196_v53 = vadd.f32 %v10168_v21, %v3082_v43  ;;  %v10199_v17 = vadd.f32 %v10168_v21, %v3083_v5  ;;  %v10202_v2 = vadd.f32 %v10168_v21, %v3084_v6  ;;  %v10230_v5 = vadd.f32 %v10168_v21, %v3086_v58 }
 0xe57   :  { %v8847_v33 = vpop.eup %8846  ;;  %8848 = vrsqrt.f32 %v2973_v57 }
 0xe58   :  { %v2990_v40 = vrot.slane %v8847_v33, 1  ;;  %v2991_v62 = vrot.slane %v8847_v33, 2  ;;  %v2992_v26 = vrot.slane %v8847_v33, 3  ;;  %v2993_v46 = vrot.slane %v8847_v33, 4 }
 0xe59   :  { %v2994_v60 = vrot.slane %v8847_v33, 5  ;;  %v2995_v9 = vrot.slane %v8847_v33, 6  ;;  %v2996_v7 = vrot.slane %v8847_v33, 7  ;;  %v3051_v23 = vmul.f32 %v8847_v33, %v9997_v15 }
 0xe5a   :  { %v3052_v24 = vmul.f32 %v2990_v40, %v10000_v14  ;;  %v3053_v10 = vmul.f32 %v2991_v62, %v10003_v12  ;;  %v3054_v61 = vmul.f32 %v2992_v26, %v10007_v27  ;;  %v3055_v29 = vmul.f32 %v2993_v46, %v10010_v28 }
 0xe5b   :  { %v3056_v36 = vmul.f32 %v2994_v60, %v10014_v54  ;;  %v3057_v25 = vmul.f32 %v2995_v9, %v10017_v59  ;;  %v3058_v47 = vmul.f32 %v2996_v7, %v10020_v50  ;;  %v3087_v48 = vmul.f32 %v10163_v34, %v3051_v23  ;;  %v2966_v30 = vpop.xlane.xlu0 %2965 }
 0xe5c   :  { %v3088_v31 = vmul.f32 %v10163_v34, %v3052_v24  ;;  %v3089_v15 = vmul.f32 %v10163_v34, %v3053_v10  ;;  %v3090_v14 = vmul.f32 %v10163_v34, %v3054_v61  ;;  %v3091_v12 = vmul.f32 %v10163_v34, %v3055_v29 }
 0xe5d   :  { %v2970_v27 = vmul.f32 0.03125, %v2966_v30  ;;  %v3092_v28 = vmul.f32 %v10163_v34, %v3056_v36  ;;  %v3093_v54 = vmul.f32 %v10163_v34, %v3057_v25  ;;  %v3094_v59 = vmul.f32 %v10163_v34, %v3058_v47 }
 0xe5e   :  { %v10221_v50 = vadd.f32 %v10168_v21, %v3085_v32  ;;  %v10224_v18 = vadd.f32 %v10168_v21, %v3088_v31  ;;  %v10227_v1 = vadd.f32 %v10168_v21, %v3089_v15  ;;  %v10233_v6 = vadd.f32 %v10168_v21, %v3090_v14 }
 0xe5f   :  { %v2974_v43 = vadd.f32 1e-05, %v2970_v27  ;;  %v3147_v33 = vpack.c.bf16 %v10187_v52, %v10187_v52  ;;  %v10238_v57 = vadd.f32 %v10168_v21, %v3087_v48  ;;  %v10241_v32 = vadd.f32 %v10168_v21, %v3091_v12 }
 0xe60   :  { %12750 = vst [vmem:[#allocation3_spill] sm:$0xff] %v10233_v6  ;;  %v3148_v40 = vpack.c.bf16 %v10190_v45, %v10190_v45  ;;  %v3149_v62 = vpack.c.bf16 %v10193_v4, %v10193_v4  ;;  %v10248_v58 = vadd.f32 %v10168_v21, %v3092_v28  ;;  %v10251_v26 = vadd.f32 %v10168_v21, %v3093_v54 }
 0xe61   :  { %12751 = vst [vmem:[#allocation4_spill] sm:$0xff] %v10238_v57  ;;  %12752 = vst [vmem:[#allocation5_spill] sm:$0xff] %v10241_v32  ;;  %v10254_v46 = vadd.f32 %v10168_v21, %v3094_v59  ;;  %v3150_v60 = vpack.c.bf16 %v10196_v53, %v10196_v53  ;;  %8850 = vrsqrt.f32 %v2974_v43  ;;  %v3151_v9 = vpack.c.bf16 %v10199_v17, %v10199_v17 }
 0xe62   :  { %12753 = vst [vmem:[#allocation8_spill] sm:$0xff] %v10248_v58  ;;  %12754 = vst [vmem:[#allocation9_spill] sm:$0xff] %v10251_v26  ;;  %v3156_v7 = vpack.c.bf16 %v10224_v18, %v10224_v18  ;;  %v3157_v23 = vpack.c.bf16 %v10227_v1, %v10227_v1  ;;  %v3152_v24 = vpack.c.bf16 %v10202_v2, %v10202_v2  ;;  %v3223_v47 = vunpack.c.l.b16 %v3148_v40  ;;  %v8849_v40 = vpop.eup %8848 }
 0xe63   :  { %12755 = vst [vmem:[#allocation10_spill] sm:$0xff] %v10254_v46  ;;  %v3153_v10 = vpack.c.bf16 %v10221_v50, %v10221_v50  ;;  %v3154_v61 = vpack.c.bf16 %v10230_v5, %v10230_v5  ;;  %v3158_v29 = vpack.c.bf16 %v10233_v6, %v10233_v6  ;;  %v3155_v36 = vpack.c.bf16 %v10238_v57, %v10238_v57 }
 0xe64   :  { %v3159_v25 = vpack.c.bf16 %v10241_v32, %v10241_v32  ;;  %v3224_v48 = vunpack.c.l.b16 %v3149_v62  ;;  %v3160_v30 = vpack.c.bf16 %v10248_v58, %v10248_v58  ;;  %v3161_v31 = vpack.c.bf16 %v10251_v26, %v10251_v26 }
 0xe65   :  { %v3162_v15 = vpack.c.bf16 %v10254_v46, %v10254_v46  ;;  %v3222_v14 = vunpack.c.l.b16 %v3147_v33  ;;  %v3225_v12 = vunpack.c.l.b16 %v3150_v60  ;;  %v3226_v27 = vunpack.c.l.b16 %v3151_v9 }
 0xe66   :  { %v3231_v28 = vunpack.c.l.b16 %v3156_v7  ;;  %v3232_v54 = vunpack.c.l.b16 %v3157_v23  ;;  %v3227_v59 = vunpack.c.l.b16 %v3152_v24  ;;  %v3228_v43 = vunpack.c.l.b16 %v3153_v10 }
 0xe67   :  { %v3229_v39 = vunpack.c.l.b16 %v3154_v61  ;;  %v3233_v42 = vunpack.c.l.b16 %v3158_v29  ;;  %v3230_v62 = vunpack.c.l.b16 %v3155_v36  ;;  %v3234_v19 = vunpack.c.l.b16 %v3159_v25 }
 0xe68   :  { %v3254_v16 = vrot.slane %v3223_v47, 7  ;;  %v3256_v57 = vrot.slane %v3224_v48, 6  ;;  %v3235_v58 = vunpack.c.l.b16 %v3160_v30  ;;  %v3236_v32 = vunpack.c.l.b16 %v3161_v31 }
 0xe69   :  { %v3237_v26 = vunpack.c.l.b16 %v3162_v15  ;;  %v3268_v6 = vrot.slane %v3231_v28, 7  ;;  %v3258_v33 = vrot.slane %v3225_v12, 5  ;;  %v3260_v60 = vrot.slane %v3226_v27, 4 }
 0xe6a   :  { %v3255_v46 = vsel %vm481_vm1, %v3254_v16, %v3222_v14  ;;  %v3270_v9 = vrot.slane %v3232_v54, 6  ;;  %v3262_v23 = vrot.slane %v3227_v59, 3  ;;  %v3272_v10 = vrot.slane %v3233_v42, 5 }
 0xe6b   :  { %v3257_v7 = vsel %vm484_vm2, %v3256_v57, %v3255_v46  ;;  %v3269_v24 = vsel %vm481_vm1, %v3268_v6, %v3230_v62  ;;  %v8851_v61 = vpop.eup %8850  ;;  %v3264_v36 = vrot.slane %v3228_v43, 2  ;;  %v3274_v47 = vrot.slane %v3234_v19, 4 }
 0xe6c   :  { %v3259_v29 = vsel %vm487_vm3, %v3258_v33, %v3257_v7  ;;  %v3271_v25 = vsel %vm484_vm2, %v3270_v9, %v3269_v24  ;;  %v3266_v30 = vrot.slane %v3229_v39, 1  ;;  %v3276_v31 = vrot.slane %v3235_v58, 3 }
 0xe6d   :  { %v3261_v48 = vsel %vm490_vm4, %v3260_v60, %v3259_v29  ;;  %v3273_v16 = vsel %vm487_vm3, %v3272_v10, %v3271_v25  ;;  %v3278_v46 = vrot.slane %v3236_v32, 2  ;;  %v3280_v6 = vrot.slane %v3237_v26, 1 }
 0xe6e   :  { %v3263_v15 = vsel %vm493_vm5, %v3262_v23, %v3261_v48  ;;  %v3275_v57 = vsel %vm490_vm4, %v3274_v47, %v3273_v16  ;;  %v2997_v12 = vrot.slane %v8849_v40, 1  ;;  %v2998_v27 = vrot.slane %v8849_v40, 2 }
 0xe6f   :  { %v3265_v42 = vsel %vm496_vm6, %v3264_v36, %v3263_v15  ;;  %v3277_v14 = vsel %vm493_vm5, %v3276_v31, %v3275_v57  ;;  %v2999_v28 = vrot.slane %v8849_v40, 3  ;;  %v3000_v54 = vrot.slane %v8849_v40, 4 }
 0xe70   :  { %v3279_v19 = vsel %vm496_vm6, %v3278_v46, %v3277_v14  ;;  %v3001_v39 = vrot.slane %v8849_v40, 5  ;;  %v3267_v59 = vsel %vm499_vm7, %v3266_v30, %v3265_v42  ;;  %v3004_v43 = vrot.slane %v8851_v61, 1 }
 0xe71   :  { %v3281_v58 = vsel %vm499_vm7, %v3280_v6, %v3279_v19  ;;  %v3005_v62 = vrot.slane %v8851_v61, 2  ;;  %v3002_v32 = vrot.slane %v8849_v40, 6  ;;  %v3003_v26 = vrot.slane %v8849_v40, 7 }
 0xe72   :  { %v3310_v33 = vpack.c.b16 %v3281_v58, %v3267_v59  ;;  %v3006_v60 = vrot.slane %v8851_v61, 3  ;;  %v3007_v9 = vrot.slane %v8851_v61, 4  ;;  %v3008_v7 = vrot.slane %v8851_v61, 5 }
 0xe73   :  { %v3060_v23 = vmul.f32 %v2997_v12, %v10049_v22  ;;  %v3061_v24 = vmul.f32 %v2998_v27, %v10053_v63  ;;  %v3009_v10 = vrot.slane %v8851_v61, 6  ;;  %v3010_v29 = vrot.slane %v8851_v61, 7 }
 0xe74   :  { %8440 = vmatprep.mubr.msk.bf16.mxu0 %vm557_vm8, %v3310_v33  ;;  %v3059_v36 = vmul.f32 %v8849_v40, %v10046_v35  ;;  %v3062_v25 = vmul.f32 %v2999_v28, %v10056_v51  ;;  %v3063_v47 = vmul.f32 %v3000_v54, %v10059_v56  ;;  %v3064_v48 = vmul.f32 %v3001_v39, %v10063_v11 }
 0xe75   :  { %v3068_v30 = vmul.f32 %v3004_v43, %v10094_v13  ;;  %v3069_v16 = vmul.f32 %v3005_v62, %v10097_v55  ;;  %v3065_v22 = vmul.f32 %v3002_v32, %v10066_v44  ;;  %v3066_v63 = vmul.f32 %v3003_v26, %v10069_v20 }
 0xe76   :  { %v3067_v31 = vmul.f32 %v8851_v61, %v10104_v41  ;;  %v3070_v15 = vmul.f32 %v3006_v60, %v10100_v3  ;;  %v3071_v35 = vmul.f32 %v3007_v9, %v10107_v8  ;;  %v3072_v51 = vmul.f32 %v3008_v7, %v10110_v0 }
 0xe77   :  { %v3096_v56 = vmul.f32 %v10163_v34, %v3060_v23  ;;  %v3097_v11 = vmul.f32 %v10163_v34, %v3061_v24  ;;  %v3073_v13 = vmul.f32 %v3009_v10, %v10114_v37  ;;  %v3074_v55 = vmul.f32 %v3010_v29, %v10120_v38 }
 0xe78   :  { %v3095_v44 = vmul.f32 %v10163_v34, %v3059_v36  ;;  %v3098_v20 = vmul.f32 %v10163_v34, %v3062_v25  ;;  %v3099_v41 = vmul.f32 %v10163_v34, %v3063_v47  ;;  %v3100_v3 = vmul.f32 %v10163_v34, %v3064_v48 }
 0xe79   :  { %v3104_v8 = vmul.f32 %v10163_v34, %v3068_v30  ;;  %v3105_v0 = vmul.f32 %v10163_v34, %v3069_v16  ;;  %v3101_v40 = vmul.f32 %v10163_v34, %v3065_v22  ;;  %v3102_v61 = vmul.f32 %v10163_v34, %v3066_v63 }
 0xe7a   :  { %v3103_v37 = vmul.f32 %v10163_v34, %v3067_v31  ;;  %v3106_v38 = vmul.f32 %v10163_v34, %v3070_v15  ;;  %v3107_v57 = vmul.f32 %v10163_v34, %v3071_v35  ;;  %v3108_v46 = vmul.f32 %v10163_v34, %v3072_v51 }
 0xe7b   :  { %v10328_v6 = vadd.f32 %v10168_v21, %v3096_v56  ;;  %v10331_v42 = vadd.f32 %v10168_v21, %v3097_v11  ;;  %v3109_v14 = vmul.f32 %v10163_v34, %v3073_v13  ;;  %v3110_v12 = vmul.f32 %v10163_v34, %v3074_v55 }
 0xe7c   :  { %v10336_v27 = vadd.f32 %v10168_v21, %v3095_v44  ;;  %v10339_v19 = vadd.f32 %v10168_v21, %v3098_v20  ;;  %v10342_v28 = vadd.f32 %v10168_v21, %v3099_v41  ;;  %v10345_v54 = vadd.f32 %v10168_v21, %v3100_v3 }
 0xe7d   :  { %v10348_v39 = vadd.f32 %v10168_v21, %v3104_v8  ;;  %v10351_v59 = vadd.f32 %v10168_v21, %v3105_v0  ;;  %v10354_v34 = vadd.f32 %v10168_v21, %v3101_v40  ;;  %v10357_v58 = vadd.f32 %v10168_v21, %v3102_v61 }
 0xe7e   :  { %v10360_v43 = vadd.f32 %v10168_v21, %v3103_v37  ;;  %v10363_v62 = vadd.f32 %v10168_v21, %v3106_v38  ;;  %v10366_v33 = vadd.f32 %v10168_v21, %v3107_v57  ;;  %v10369_v32 = vadd.f32 %v10168_v21, %v3108_v46 }
 0xe7f   :  { %v3164_v26 = vpack.c.bf16 %v10328_v6, %v10328_v6  ;;  %v3165_v60 = vpack.c.bf16 %v10331_v42, %v10331_v42  ;;  %v10376_v9 = vadd.f32 %v10168_v21, %v3109_v14  ;;  %v10379_v7 = vadd.f32 %v10168_v21, %v3110_v12 }
 0xe80   :  { %v3163_v23 = vpack.c.bf16 %v10336_v27, %v10336_v27  ;;  %v3166_v24 = vpack.c.bf16 %v10339_v19, %v10339_v19  ;;  %v3167_v10 = vpack.c.bf16 %v10342_v28, %v10342_v28  ;;  %v3168_v29 = vpack.c.bf16 %v10345_v54, %v10345_v54 }
 0xe81   :  { %v3172_v36 = vpack.c.bf16 %v10348_v39, %v10348_v39  ;;  %v3173_v25 = vpack.c.bf16 %v10351_v59, %v10351_v59  ;;  %v3169_v21 = vpack.c.bf16 %v10354_v34, %v10354_v34  ;;  %v3170_v47 = vpack.c.bf16 %v10357_v58, %v10357_v58 }
 0xe82   :  { %v3171_v48 = vpack.c.bf16 %v10360_v43, %v10360_v43  ;;  %v3174_v30 = vpack.c.bf16 %v10363_v62, %v10363_v62  ;;  %v3175_v16 = vpack.c.bf16 %v10366_v33, %v10366_v33  ;;  %v3176_v22 = vpack.c.bf16 %v10369_v32, %v10369_v32 }
 0xe83   :  { %v3239_v63 = vunpack.c.l.b16 %v3164_v26  ;;  %v3240_v31 = vunpack.c.l.b16 %v3165_v60  ;;  %v3177_v15 = vpack.c.bf16 %v10376_v9, %v10376_v9  ;;  %v3178_v35 = vpack.c.bf16 %v10379_v7, %v10379_v7 }
 0xe84   :  { %v3238_v51 = vunpack.c.l.b16 %v3163_v23  ;;  %v3241_v56 = vunpack.c.l.b16 %v3166_v24  ;;  %v3242_v11 = vunpack.c.l.b16 %v3167_v10  ;;  %v3243_v13 = vunpack.c.l.b16 %v3168_v29 }
 0xe85   :  { %v3247_v55 = vunpack.c.l.b16 %v3172_v36  ;;  %v3248_v44 = vunpack.c.l.b16 %v3173_v25  ;;  %v3244_v20 = vunpack.c.l.b16 %v3169_v21  ;;  %v3245_v41 = vunpack.c.l.b16 %v3170_v47 }
 0xe86   :  { %v3249_v3 = vunpack.c.l.b16 %v3174_v30  ;;  %v3282_v8 = vrot.slane %v3239_v63, 7  ;;  %v3246_v0 = vunpack.c.l.b16 %v3171_v48  ;;  %v3250_v40 = vunpack.c.l.b16 %v3175_v16 }
 0xe87   :  { %v3251_v61 = vunpack.c.l.b16 %v3176_v22  ;;  %v3284_v37 = vrot.slane %v3240_v31, 6  ;;  %v3252_v38 = vunpack.c.l.b16 %v3177_v15  ;;  %v3286_v46 = vrot.slane %v3241_v56, 5 }
 0xe88   :  { %v3283_v57 = vsel %vm481_vm1, %v3282_v8, %v3238_v51  ;;  %v3296_v14 = vrot.slane %v3247_v55, 7  ;;  %v3253_v12 = vunpack.c.l.b16 %v3178_v35  ;;  %v3288_v60 = vrot.slane %v3242_v11, 4  ;;  %v7978_v8 = vld [vmem:[%s12700_s7] ss:$0 sm:$0xff] }
 0xe89   :  { %v3285_v26 = vsel %vm484_vm2, %v3284_v37, %v3283_v57  ;;  %v3298_v23 = vrot.slane %v3248_v44, 6  ;;  %v3290_v10 = vrot.slane %v3243_v13, 3  ;;  %v3300_v36 = vrot.slane %v3249_v3, 5 }
 0xe8a   :  { %v3287_v24 = vsel %vm487_vm3, %v3286_v46, %v3285_v26  ;;  %v3297_v29 = vsel %vm481_vm1, %v3296_v14, %v3246_v0  ;;  %v3292_v21 = vrot.slane %v3244_v20, 2  ;;  %v3302_v48 = vrot.slane %v3250_v40, 4  ;;  %v8768_v20 = vld [vmem:[%s12699_s5 + $0x10] sm:$0xff]  }
 0xe8b   :  { %v3289_v25 = vsel %vm490_vm4, %v3288_v60, %v3287_v24  ;;  %v3299_v47 = vsel %vm484_vm2, %v3298_v23, %v3297_v29  ;;  %v3304_v22 = vrot.slane %v3251_v61, 3  ;;  %v3306_v15 = vrot.slane %v3252_v38, 2  ;;  %8448 = vmatprep.subr.bf16.mxu1 %v8768_v20 }
 0xe8c   :  { %v3291_v30 = vsel %vm493_vm5, %v3290_v10, %v3289_v25  ;;  %v3301_v16 = vsel %vm487_vm3, %v3300_v36, %v3299_v47  ;;  %v3294_v35 = vrot.slane %v3245_v41, 1  ;;  %v3308_v56 = vrot.slane %v3253_v12, 1  ;;  %8449 = vmatpush3.bf16.msra.mxu1 %v8768_v20  ;;  %v8769_v41 = vld [vmem:[%s12699_s5 + $0x18] sm:$0xff]   ;;  %v10442_v36 = vld [vmem:[%s12697_s8] sm:$0x3f] }
 0xe8d   :  { %v3293_v63 = vsel %vm496_vm6, %v3292_v21, %v3291_v30  ;;  %v3303_v31 = vsel %vm490_vm4, %v3302_v48, %v3301_v16  ;;  %8450 = vmatprep.subr.bf16.mxu1 %v8769_v41  ;;  %v12756_v3 = vmov 0.0   ;;  %v12721_v29 = vsub.s32 3, %v9757_v49 }
 0xe8e   :  { %v3305_v51 = vsel %vm493_vm5, %v3304_v22, %v3303_v31  ;;  %v3295_v13 = vsel %vm499_vm7, %v3294_v35, %v3293_v63 }
 0xe8f   :  { %v3307_v11 = vsel %vm496_vm6, %v3306_v15, %v3305_v51  ;;  %v3396_v25 = vrot.slane %v10442_v36, %v12721_v29 }
 0xe90   :  { %v3309_v55 = vsel %vm499_vm7, %v3308_v56, %v3307_v11  ;;  %8451 = vmatpush3.bf16.msra.mxu1 %v8769_v41 }
 0xe91   :  { %v3311_v44 = vpack.c.b16 %v3309_v55, %v3295_v13  ;;  %8470 = vmatprep.subr.bf16.mxu1 %v12756_v3 }
 0xe93   :  { %8441 = vmatmul.mubr.msk.bf16.vlgmr.msra.gmra.mrb[64].mxu0 %vm557_vm8, %v3311_v44 }
 0xf66   :  { %v8442_v0 = vpop.f32.mrb[64].mxu0 }
 0xf67   :  { %v3373_v40 = vadd.f32 %v8442_v0, %v7978_v8  ;;  %v3364_v61 = vpop.f32.mrb[65].mxu0 }
 0xf68   :  { %v3365_v37 = vadd.f32 %v7978_v8, %v3364_v61  ;;  %v8443_v38 = vpop.f32.mrb[66].mxu0 }
 0xf69   :  { %v3376_v57 = vadd.f32 %v8443_v38, %v7978_v8  ;;  %v3367_v46 = vpop.f32.mrb[67].mxu0  ;;  %v3381_v12 = vmax.f32 %v3373_v40, 0.0 }
 0xf6a   :  { %v3368_v14 = vadd.f32 %v7978_v8, %v3367_v46  ;;  %v3379_v60 = vmax.f32 %v3365_v37, 0.0 }
 0xf6b   :  { %v3382_v26 = vmax.f32 %v3376_v57, 0.0 }
 0xf6c   :  { %v3380_v23 = vmax.f32 %v3368_v14, 0.0 }
 0xf6d   :  { %v3384_v24 = vpack.c.bf16 %v3382_v26, %v3381_v12 }
 0xf6e   :  { %v3383_v10 = vpack.c.bf16 %v3380_v23, %v3379_v60 }
 0xf70   :  { %8452 = vmatprep.mubr.msk.bf16.mxu1 %vm3421_vm14, %v3383_v10 }
 0xf71   :  { %8453 = vmatmul.mubr.msk.bf16.vlgmr.msra.gmra.mrb[72].mxu1 %vm3421_vm14, %v3384_v24 }
 0xf72   :  { %8472 = vmatprep.mubr.msk.bf16.mxu1 %vm8949_vm9, %v12756_v3 }
0x1044   :  { %v8454_v21 = vpop.f32.mrb[72].mxu1 }
0x1045   :  { %v10447_v47 = vadd.f32 %v8454_v21, %v3396_v25  ;;  %v3462_v48 = vpop.f32.mrb[73].mxu1 }
0x1046   :  { %v3463_v30 = vadd.f32 %v3462_v48, %v3396_v25  ;;  %v8455_v16 = vpop.f32.mrb[74].mxu1 }
0x1047   :  { %v10449_v22 = vadd.f32 %v8455_v16, %v3396_v25  ;;  %v3465_v63 = vpop.f32.mrb[75].mxu1  ;;  %v3495_v31 = vrot.slane %v10447_v47, 1  ;;  %v3496_v15 = vrot.slane %v10447_v47, 2  ;;  %v3497_v40 = vrot.slane %v10447_v47, 3 }
0x1048   :  { %v3466_v35 = vadd.f32 %v3465_v63, %v3396_v25  ;;  %v3481_v51 = vrot.slane %v3463_v30, 1  ;;  %v3482_v56 = vrot.slane %v3463_v30, 2  ;;  %v3483_v11 = vrot.slane %v3463_v30, 3  ;;  %v12757_v63 = vld [vmem:[#allocation3_spill] sm:$0xff] }
0x1049   :  { %v3484_v13 = vrot.slane %v3463_v30, 4  ;;  %v3485_v55 = vrot.slane %v3463_v30, 5  ;;  %v3486_v44 = vrot.slane %v3463_v30, 6  ;;  %v3487_v20 = vrot.slane %v3463_v30, 7 }
0x104a   :  { %v10454_v41 = vadd.f32 %v3481_v51, %v10190_v45  ;;  %v10457_v8 = vadd.f32 %v3482_v56, %v10193_v4  ;;  %v10460_v0 = vadd.f32 %v3483_v11, %v10196_v53  ;;  %v10464_v61 = vadd.f32 %v3463_v30, %v10187_v52  ;;  %v12758_v56 = vld [vmem:[#allocation5_spill] sm:$0xff] }
0x104b   :  { %v10467_v37 = vadd.f32 %v3484_v13, %v10199_v17  ;;  %v10470_v38 = vadd.f32 %v3485_v55, %v10202_v2  ;;  %v10473_v45 = vadd.f32 %v3486_v44, %v10221_v50  ;;  %v10476_v4 = vadd.f32 %v3487_v20, %v10230_v5  ;;  %v12759_v13 = vld [vmem:[#allocation8_spill] sm:$0xff] }
0x104c   :  { %v3605_v53 = vrot.slane %v10454_v41, 7  ;;  %v3607_v57 = vrot.slane %v10457_v8, 6  ;;  %v3488_v46 = vrot.slane %v3466_v35, 1  ;;  %v3609_v52 = vrot.slane %v10460_v0, 5  ;;  %v12760_v20 = vld [vmem:[#allocation4_spill] sm:$0xff] }
0x104d   :  { %v3611_v14 = vrot.slane %v10467_v37, 4  ;;  %v3613_v17 = vrot.slane %v10470_v38, 3  ;;  %v3615_v2 = vrot.slane %v10473_v45, 2  ;;  %v3489_v12 = vrot.slane %v3466_v35, 2 }
0x104e   :  { %v3606_v50 = vsel %vm481_vm1, %v3605_v53, %v10464_v61  ;;  %v3490_v26 = vrot.slane %v3466_v35, 3  ;;  %v3491_v5 = vrot.slane %v3466_v35, 4  ;;  %v3492_v23 = vrot.slane %v3466_v35, 5 }
0x104f   :  { %v3608_v60 = vsel %vm484_vm2, %v3607_v57, %v3606_v50  ;;  %v3493_v24 = vrot.slane %v3466_v35, 6  ;;  %v3494_v10 = vrot.slane %v3466_v35, 7  ;;  %v3617_v21 = vrot.slane %v10476_v4, 1 }
0x1050   :  { %v3610_v25 = vsel %vm487_vm3, %v3609_v52, %v3608_v60  ;;  %v10490_v48 = vadd.f32 %v3488_v46, %v10224_v18  ;;  %v10493_v30 = vadd.f32 %v3489_v12, %v10227_v1  ;;  %v10497_v51 = vadd.f32 %v3490_v26, %v12757_v63  ;;  %v12761_v18 = vld [vmem:[#allocation9_spill] sm:$0xff]  ;;  %v12762_v52 = vld [vmem:[#allocation10_spill] sm:$0xff] }
0x1051   :  { %v3612_v16 = vsel %vm490_vm4, %v3611_v14, %v3610_v25  ;;  %v10500_v11 = vadd.f32 %v3491_v5, %v12758_v56  ;;  %v10503_v55 = vadd.f32 %v3492_v23, %v12759_v13  ;;  %v10507_v53 = vadd.f32 %v3466_v35, %v12760_v20 }
0x1052   :  { %v3614_v44 = vsel %vm493_vm5, %v3613_v17, %v3612_v16  ;;  %v10510_v57 = vadd.f32 %v3493_v24, %v12761_v18  ;;  %v3619_v1 = vrot.slane %v10490_v48, 7  ;;  %v10515_v14 = vadd.f32 %v3494_v10, %v12762_v52 }
0x1053   :  { %v3616_v46 = vsel %vm496_vm6, %v3615_v2, %v3614_v44  ;;  %v3621_v50 = vrot.slane %v10493_v30, 6  ;;  %v3623_v12 = vrot.slane %v10497_v51, 5  ;;  %v3625_v17 = vrot.slane %v10500_v11, 4 }
0x1054   :  { %v3618_v26 = vsel %vm499_vm7, %v3617_v21, %v3616_v46  ;;  %v3620_v35 = vsel %vm481_vm1, %v3619_v1, %v10507_v53  ;;  %v3627_v5 = vrot.slane %v10503_v55, 3  ;;  %v3629_v23 = vrot.slane %v10510_v57, 2 }
0x1055   :  { %v3665_v60 = vsel %vm557_vm8, %v3618_v26, 0.0  ;;  %v3622_v2 = vsel %vm484_vm2, %v3621_v50, %v3620_v35  ;;  %v3498_v24 = vrot.slane %v10447_v47, 4  ;;  %v3499_v25 = vrot.slane %v10447_v47, 5 }
0x1056   :  { %3666 = vadd.xlane.f32.xlu1 %v3665_v60  ;;  %v3624_v10 = vsel %vm487_vm3, %v3623_v12, %v3622_v2  ;;  %v3500_v21 = vrot.slane %v10447_v47, 6  ;;  %v3501_v16 = vrot.slane %v10447_v47, 7  ;;  %v3631_v56 = vrot.slane %v10515_v14, 1 }
0x1057   :  { %v3626_v63 = vsel %vm490_vm4, %v3625_v17, %v3624_v10  ;;  %v10537_v13 = vadd.f32 %v3495_v31, %v10328_v6  ;;  %v10542_v44 = vadd.f32 %v3496_v15, %v10331_v42  ;;  %v10546_v18 = vadd.f32 %v3497_v40, %v10339_v19 }
0x1058   :  { %v3628_v20 = vsel %vm493_vm5, %v3627_v5, %v3626_v63  ;;  %v10549_v1 = vadd.f32 %v3498_v24, %v10342_v28  ;;  %v10552_v46 = vadd.f32 %v3499_v25, %v10345_v54  ;;  %v10557_v6 = vadd.f32 %v10447_v47, %v10336_v27 }
0x1059   :  { %v3630_v52 = vsel %vm496_vm6, %v3629_v23, %v3628_v20  ;;  %v10560_v42 = vadd.f32 %v3500_v21, %v10354_v34  ;;  %v3633_v31 = vrot.slane %v10537_v13, 7  ;;  %v10565_v15 = vadd.f32 %v3501_v16, %v10357_v58 }
0x105a   :  { %v3632_v19 = vsel %vm499_vm7, %v3631_v56, %v3630_v52  ;;  %v3635_v28 = vrot.slane %v10542_v44, 6  ;;  %v3637_v54 = vrot.slane %v10546_v18, 5  ;;  %v3639_v47 = vrot.slane %v10549_v1, 4 }
0x105b   :  { %v3668_v40 = vsel %vm557_vm8, %v3632_v19, 0.0  ;;  %v3634_v27 = vsel %vm481_vm1, %v3633_v31, %v10557_v6  ;;  %v3641_v34 = vrot.slane %v10552_v46, 3  ;;  %v3643_v12 = vrot.slane %v10560_v42, 2 }
0x105c   :  { %3669 = vadd.xlane.f32.xlu0 %v3668_v40  ;;  %v3636_v50 = vsel %vm484_vm2, %v3635_v28, %v3634_v27  ;;  %v3502_v58 = vrot.slane %v10449_v22, 1  ;;  %v3503_v26 = vrot.slane %v10449_v22, 2  ;;  %v3504_v17 = vrot.slane %v10449_v22, 3 }
0x105d   :  { %v3638_v35 = vsel %vm487_vm3, %v3637_v54, %v3636_v50  ;;  %v3505_v5 = vrot.slane %v10449_v22, 4  ;;  %v3506_v60 = vrot.slane %v10449_v22, 5  ;;  %v3645_v23 = vrot.slane %v10565_v15, 1 }
0x105e   :  { %v3640_v2 = vsel %vm490_vm4, %v3639_v47, %v3638_v35  ;;  %v3507_v24 = vrot.slane %v10449_v22, 6  ;;  %v3508_v10 = vrot.slane %v10449_v22, 7  ;;  %v10588_v21 = vadd.f32 %v3502_v58, %v10348_v39 }
0x105f   :  { %v3642_v25 = vsel %vm493_vm5, %v3641_v34, %v3640_v2  ;;  %v10591_v16 = vadd.f32 %v3503_v26, %v10351_v59  ;;  %v10594_v63 = vadd.f32 %v3504_v17, %v10363_v62  ;;  %v10599_v20 = vadd.f32 %v10449_v22, %v10360_v43 }
0x1060   :  { %v3644_v56 = vsel %vm496_vm6, %v3643_v12, %v3642_v25  ;;  %v10602_v52 = vadd.f32 %v3505_v5, %v10366_v33  ;;  %v10606_v39 = vadd.f32 %v3506_v60, %v10369_v32  ;;  %v3647_v59 = vrot.slane %v10588_v21, 7 }
0x1061   :  { %v3646_v31 = vsel %vm499_vm7, %v3645_v23, %v3644_v56  ;;  %v3649_v19 = vrot.slane %v10591_v16, 6  ;;  %v10612_v28 = vadd.f32 %v3507_v24, %v10376_v9  ;;  %v10615_v43 = vadd.f32 %v3508_v10, %v10379_v7 }
0x1062   :  { %v3671_v62 = vsel %vm557_vm8, %v3646_v31, 0.0  ;;  %v3648_v33 = vsel %vm481_vm1, %v3647_v59, %v10599_v20  ;;  %v3651_v22 = vrot.slane %v10594_v63, 5  ;;  %v3653_v54 = vrot.slane %v10602_v52, 4 }
0x1063   :  { %3672 = vadd.xlane.f32.xlu1 %v3671_v62  ;;  %v3650_v32 = vsel %vm484_vm2, %v3649_v19, %v3648_v33  ;;  %v3655_v27 = vrot.slane %v10606_v39, 3  ;;  %v3657_v47 = vrot.slane %v10612_v28, 2  ;;  %v3659_v34 = vrot.slane %v10615_v43, 1 }
0x1064   :  { %v3652_v40 = vsel %vm487_vm3, %v3651_v22, %v3650_v32 }
0x1065   :  { %v3654_v9 = vsel %vm490_vm4, %v3653_v54, %v3652_v40 }
0x1066   :  { %v3656_v7 = vsel %vm493_vm5, %v3655_v27, %v3654_v9 }
0x1067   :  { %v3658_v50 = vsel %vm496_vm6, %v3657_v47, %v3656_v7 }
0x1068   :  { %v3660_v12 = vsel %vm499_vm7, %v3659_v34, %v3658_v50 }
0x1069   :  { %v3674_v58 = vsel %vm557_vm8, %v3660_v12, 0.0 }
0x106a   :  { %3675 = vadd.xlane.f32.xlu0 %v3674_v58 }
0x10e3   :  { %v3667_v26 = vpop.xlane.xlu1 %3666 }
0x10e4   :  { %v3677_v35 = vmul.f32 0.03125, %v3667_v26 }
0x10e6   :  { %v3685_v17 = vrot.slane %v3677_v35, 1  ;;  %v3686_v5 = vrot.slane %v3677_v35, 2  ;;  %v3687_v60 = vrot.slane %v3677_v35, 3  ;;  %v3688_v2 = vrot.slane %v3677_v35, 4 }
0x10e7   :  { %v3689_v23 = vrot.slane %v3677_v35, 5  ;;  %v3690_v24 = vrot.slane %v3677_v35, 6  ;;  %v3691_v10 = vrot.slane %v3677_v35, 7  ;;  %v10632_v25 = vsub.f32 %v10464_v61, %v3677_v35 }
0x10e8   :  { %v10635_v56 = vsub.f32 %v10454_v41, %v3685_v17  ;;  %v10638_v31 = vsub.f32 %v10457_v8, %v3686_v5  ;;  %v10641_v59 = vsub.f32 %v10460_v0, %v3687_v60  ;;  %v10644_v19 = vsub.f32 %v10467_v37, %v3688_v2 }
0x10e9   :  { %v3670_v62 = vpop.xlane.xlu0 %3669  ;;  %v10647_v33 = vsub.f32 %v10470_v38, %v3689_v23  ;;  %v10650_v22 = vsub.f32 %v10473_v45, %v3690_v24  ;;  %v10653_v61 = vsub.f32 %v10476_v4, %v3691_v10  ;;  %v3777_v41 = vmul.f32 %v10632_v25, %v10632_v25 }
0x10ea   :  { %v3678_v8 = vmul.f32 0.03125, %v3670_v62  ;;  %v3778_v0 = vmul.f32 %v10635_v56, %v10635_v56  ;;  %v3779_v37 = vmul.f32 %v10638_v31, %v10638_v31  ;;  %v3780_v38 = vmul.f32 %v10641_v59, %v10641_v59 }
0x10eb   :  { %v3781_v45 = vmul.f32 %v10644_v19, %v10644_v19  ;;  %v3782_v4 = vmul.f32 %v10647_v33, %v10647_v33  ;;  %v3783_v32 = vmul.f32 %v10650_v22, %v10650_v22  ;;  %v3784_v54 = vmul.f32 %v10653_v61, %v10653_v61 }
0x10ec   :  { %v3841_v40 = vrot.slane %v3778_v0, 7  ;;  %v3843_v27 = vrot.slane %v3779_v37, 6  ;;  %v3845_v9 = vrot.slane %v3780_v38, 5  ;;  %v3692_v47 = vrot.slane %v3678_v8, 1 }
0x10ed   :  { %v3847_v7 = vrot.slane %v3781_v45, 4  ;;  %v3849_v34 = vrot.slane %v3782_v4, 3  ;;  %v3851_v50 = vrot.slane %v3783_v32, 2  ;;  %v3853_v12 = vrot.slane %v3784_v54, 1 }
0x10ee   :  { %v3842_v58 = vsel %vm481_vm1, %v3841_v40, %v3777_v41  ;;  %v3693_v26 = vrot.slane %v3678_v8, 2  ;;  %v3694_v35 = vrot.slane %v3678_v8, 3  ;;  %v3695_v17 = vrot.slane %v3678_v8, 4 }
0x10ef   :  { %v3844_v5 = vsel %vm484_vm2, %v3843_v27, %v3842_v58  ;;  %v3696_v60 = vrot.slane %v3678_v8, 5  ;;  %v3697_v2 = vrot.slane %v3678_v8, 6  ;;  %v3698_v23 = vrot.slane %v3678_v8, 7 }
0x10f0   :  { %v3673_v24 = vpop.xlane.xlu1 %3672  ;;  %v3846_v10 = vsel %vm487_vm3, %v3845_v9, %v3844_v5  ;;  %v10675_v62 = vsub.f32 %v10507_v53, %v3678_v8  ;;  %v10678_v0 = vsub.f32 %v10490_v48, %v3692_v47  ;;  %v10681_v37 = vsub.f32 %v10493_v30, %v3693_v26 }
0x10f1   :  { %v3679_v41 = vmul.f32 0.03125, %v3673_v24  ;;  %v3848_v38 = vsel %vm490_vm4, %v3847_v7, %v3846_v10  ;;  %v10685_v45 = vsub.f32 %v10497_v51, %v3694_v35  ;;  %v10688_v4 = vsub.f32 %v10500_v11, %v3695_v17 }
0x10f2   :  { %v3850_v32 = vsel %vm493_vm5, %v3849_v34, %v3848_v38  ;;  %v10692_v53 = vsub.f32 %v10503_v55, %v3696_v60  ;;  %v10695_v48 = vsub.f32 %v10510_v57, %v3697_v2  ;;  %v10698_v30 = vsub.f32 %v10515_v14, %v3698_v23 }
0x10f3   :  { %v3852_v8 = vsel %vm496_vm6, %v3851_v50, %v3850_v32  ;;  %v3785_v51 = vmul.f32 %v10675_v62, %v10675_v62  ;;  %v3786_v11 = vmul.f32 %v10678_v0, %v10678_v0  ;;  %v3787_v54 = vmul.f32 %v10681_v37, %v10681_v37 }
0x10f4   :  { %v3854_v55 = vsel %vm499_vm7, %v3853_v12, %v3852_v8  ;;  %v3788_v57 = vmul.f32 %v10685_v45, %v10685_v45  ;;  %v3789_v14 = vmul.f32 %v10688_v4, %v10688_v4  ;;  %v3790_v40 = vmul.f32 %v10692_v53, %v10692_v53 }
0x10f5   :  { %v3901_v27 = vsel %vm557_vm8, %v3854_v55, 0.0  ;;  %v3791_v9 = vmul.f32 %v10695_v48, %v10695_v48  ;;  %v3792_v47 = vmul.f32 %v10698_v30, %v10698_v30  ;;  %v3855_v7 = vrot.slane %v3786_v11, 7 }
0x10f6   :  { %3902 = vadd.xlane.f32.xlu1 %v3901_v27  ;;  %v3857_v34 = vrot.slane %v3787_v54, 6  ;;  %v3859_v50 = vrot.slane %v3788_v57, 5  ;;  %v3861_v12 = vrot.slane %v3789_v14, 4  ;;  %v3863_v58 = vrot.slane %v3790_v40, 3 }
0x10f7   :  { %v3856_v26 = vsel %vm481_vm1, %v3855_v7, %v3785_v51  ;;  %v3865_v35 = vrot.slane %v3791_v9, 2  ;;  %v3867_v17 = vrot.slane %v3792_v47, 1  ;;  %v3699_v5 = vrot.slane %v3679_v41, 1  ;;  %v3676_v60 = vpop.xlane.xlu0 %3675 }
0x10f8   :  { %v3858_v2 = vsel %vm484_vm2, %v3857_v34, %v3856_v26  ;;  %v3700_v23 = vrot.slane %v3679_v41, 2  ;;  %v3701_v24 = vrot.slane %v3679_v41, 3  ;;  %v3702_v10 = vrot.slane %v3679_v41, 4 }
0x10f9   :  { %v3680_v38 = vmul.f32 0.03125, %v3676_v60  ;;  %v3860_v32 = vsel %vm487_vm3, %v3859_v50, %v3858_v2  ;;  %v3703_v8 = vrot.slane %v3679_v41, 5  ;;  %v3704_v11 = vrot.slane %v3679_v41, 6 }
0x10fa   :  { %v3862_v54 = vsel %vm490_vm4, %v3861_v12, %v3860_v32  ;;  %v3705_v55 = vrot.slane %v3679_v41, 7  ;;  %v10724_v57 = vsub.f32 %v10557_v6, %v3679_v41  ;;  %v10727_v51 = vsub.f32 %v10537_v13, %v3699_v5 }
0x10fb   :  { %v3864_v14 = vsel %vm493_vm5, %v3863_v58, %v3862_v54  ;;  %v10731_v40 = vsub.f32 %v10542_v44, %v3700_v23  ;;  %v10734_v27 = vsub.f32 %v10546_v18, %v3701_v24  ;;  %v10737_v9 = vsub.f32 %v10549_v1, %v3702_v10 }
0x10fc   :  { %v3866_v47 = vsel %vm496_vm6, %v3865_v35, %v3864_v14  ;;  %v10741_v7 = vsub.f32 %v10552_v46, %v3703_v8  ;;  %v10744_v6 = vsub.f32 %v10560_v42, %v3704_v11  ;;  %v10747_v13 = vsub.f32 %v10565_v15, %v3705_v55 }
0x10fd   :  { %v3868_v44 = vsel %vm499_vm7, %v3867_v17, %v3866_v47  ;;  %v3793_v18 = vmul.f32 %v10724_v57, %v10724_v57  ;;  %v3794_v1 = vmul.f32 %v10727_v51, %v10727_v51  ;;  %v3795_v41 = vmul.f32 %v10731_v40, %v10731_v40 }
0x10fe   :  { %v3904_v46 = vsel %vm557_vm8, %v3868_v44, 0.0  ;;  %v3796_v42 = vmul.f32 %v10734_v27, %v10734_v27  ;;  %v3797_v15 = vmul.f32 %v10737_v9, %v10737_v9  ;;  %v3798_v34 = vmul.f32 %v10741_v7, %v10741_v7 }
0x10ff   :  { %3905 = vadd.xlane.f32.xlu0 %v3904_v46  ;;  %v3799_v50 = vmul.f32 %v10744_v6, %v10744_v6  ;;  %v3800_v12 = vmul.f32 %v10747_v13, %v10747_v13  ;;  %v3869_v58 = vrot.slane %v3794_v1, 7  ;;  %v3871_v26 = vrot.slane %v3795_v41, 6 }
0x1100   :  { %v3873_v35 = vrot.slane %v3796_v42, 5  ;;  %v3875_v17 = vrot.slane %v3797_v15, 4  ;;  %v3706_v5 = vrot.slane %v3680_v38, 1  ;;  %v3877_v2 = vrot.slane %v3798_v34, 3 }
0x1101   :  { %v3870_v60 = vsel %vm481_vm1, %v3869_v58, %v3793_v18  ;;  %v3879_v23 = vrot.slane %v3799_v50, 2  ;;  %v3707_v24 = vrot.slane %v3680_v38, 2  ;;  %v3708_v32 = vrot.slane %v3680_v38, 3 }
0x1102   :  { %v3872_v10 = vsel %vm484_vm2, %v3871_v26, %v3870_v60  ;;  %v3709_v8 = vrot.slane %v3680_v38, 4  ;;  %v3710_v11 = vrot.slane %v3680_v38, 5  ;;  %v3881_v55 = vrot.slane %v3800_v12, 1 }
0x1103   :  { %v3874_v54 = vsel %vm487_vm3, %v3873_v35, %v3872_v10  ;;  %v3711_v14 = vrot.slane %v3680_v38, 6  ;;  %v3712_v47 = vrot.slane %v3680_v38, 7  ;;  %v10772_v1 = vsub.f32 %v10588_v21, %v3706_v5 }
0x1104   :  { %v3876_v44 = vsel %vm490_vm4, %v3875_v17, %v3874_v54  ;;  %v10775_v18 = vsub.f32 %v10591_v16, %v3707_v24  ;;  %v10778_v41 = vsub.f32 %v10594_v63, %v3708_v32  ;;  %v10782_v42 = vsub.f32 %v10599_v20, %v3680_v38 }
0x1105   :  { %v3878_v46 = vsel %vm493_vm5, %v3877_v2, %v3876_v44  ;;  %v10785_v15 = vsub.f32 %v10602_v52, %v3709_v8  ;;  %v10788_v34 = vsub.f32 %v10606_v39, %v3710_v11  ;;  %v10792_v50 = vsub.f32 %v10612_v28, %v3711_v14  ;;  %v8770_v44 = vld [vmem:[%s12692_s2 + $0x10] sm:$0xff]  }
0x1106   :  { %v3880_v21 = vsel %vm496_vm6, %v3879_v23, %v3878_v46  ;;  %v3802_v16 = vmul.f32 %v10772_v1, %v10772_v1  ;;  %v10798_v12 = vsub.f32 %v10615_v43, %v3712_v47  ;;  %v3803_v20 = vmul.f32 %v10775_v18, %v10775_v18  ;;  %v8771_v46 = vld [vmem:[%s12692_s2 + $0x18] sm:$0xff]   ;;  %8456 = vmatprep.subr.bf16.mxu0 %v8770_v44 }
0x1107   :  { %v3882_v63 = vsel %vm499_vm7, %v3881_v55, %v3880_v21  ;;  %v3804_v52 = vmul.f32 %v10778_v41, %v10778_v41  ;;  %v3805_v28 = vmul.f32 %v10785_v15, %v10785_v15  ;;  %v3801_v38 = vmul.f32 %v10782_v42, %v10782_v42  ;;  %8457 = vmatpush3.bf16.msra.mxu0 %v8770_v44 }
0x1108   :  { %v3907_v39 = vsel %vm557_vm8, %v3882_v63, 0.0  ;;  %v3806_v58 = vmul.f32 %v10788_v34, %v10788_v34  ;;  %v3883_v43 = vrot.slane %v3802_v16, 7  ;;  %v3885_v26 = vrot.slane %v3803_v20, 6  ;;  %8458 = vmatprep.subr.bf16.mxu0 %v8771_v46 }
0x1109   :  { %3908 = vadd.xlane.f32.xlu1 %v3907_v39  ;;  %v3807_v35 = vmul.f32 %v10792_v50, %v10792_v50  ;;  %v3808_v17 = vmul.f32 %v10798_v12, %v10798_v12  ;;  %v3887_v60 = vrot.slane %v3804_v52, 5  ;;  %v3889_v23 = vrot.slane %v3805_v28, 4 }
0x110a   :  { %v3884_v5 = vsel %vm481_vm1, %v3883_v43, %v3801_v38  ;;  %v3891_v10 = vrot.slane %v3806_v58, 3  ;;  %v12720_v39 = vsub.s32 4, %v9757_v49  ;;  %v12719_v28 = vsub.s32 5, %v9757_v49 }
0x110b   :  { %v3886_v2 = vsel %vm484_vm2, %v3885_v26, %v3884_v5  ;;  %v3893_v8 = vrot.slane %v3807_v35, 2  ;;  %v3895_v54 = vrot.slane %v3808_v17, 1  ;;  %8459 = vmatpush3.bf16.msra.mxu0 %v8771_v46 }
0x110c   :  { %v3888_v24 = vsel %vm487_vm3, %v3887_v60, %v3886_v2  ;;  %8464 = vmatprep.subr.bf16.mxu0 %v12756_v3  ;;  %v10835_v43 = vrot.slane %v10442_v36, %v12720_v39  ;;  %v10840_v26 = vrot.slane %v10442_v36, %v12719_v28 }
0x110d   :  { %v3890_v32 = vsel %vm490_vm4, %v3889_v23, %v3888_v24 }
0x110e   :  { %v3892_v11 = vsel %vm493_vm5, %v3891_v10, %v3890_v32 }
0x110f   :  { %v3894_v55 = vsel %vm496_vm6, %v3893_v8, %v3892_v11 }
0x1110   :  { %v3896_v14 = vsel %vm499_vm7, %v3895_v54, %v3894_v55 }
0x1111   :  { %v3910_v47 = vsel %vm557_vm8, %v3896_v14, 0.0 }
0x1112   :  { %3911 = vadd.xlane.f32.xlu0 %v3910_v47 }
0x1183   :  { %v3903_v21 = vpop.xlane.xlu1 %3902 }
0x1184   :  { %v3913_v16 = vmul.f32 0.03125, %v3903_v21 }
0x1186   :  { %v3917_v63 = vadd.f32 1e-05, %v3913_v16 }
0x1188   :  { %8852 = vrsqrt.f32 %v3917_v63 }
0x118c   :  { %v3906_v20 = vpop.xlane.xlu0 %3905 }
0x118d   :  { %v3914_v52 = vmul.f32 0.03125, %v3906_v20 }
0x118f   :  { %v3918_v38 = vadd.f32 1e-05, %v3914_v52 }
0x1191   :  { %8854 = vrsqrt.f32 %v3918_v38 }
0x1192   :  { %v8853_v58 = vpop.eup %8852 }
0x1193   :  { %v3929_v35 = vrot.slane %v8853_v58, 1  ;;  %v3930_v17 = vrot.slane %v8853_v58, 2  ;;  %v3931_v5 = vrot.slane %v8853_v58, 3  ;;  %v3932_v60 = vrot.slane %v8853_v58, 4 }
0x1194   :  { %v3933_v2 = vrot.slane %v8853_v58, 5  ;;  %v3934_v23 = vrot.slane %v8853_v58, 6  ;;  %v3935_v24 = vrot.slane %v8853_v58, 7  ;;  %v3989_v10 = vmul.f32 %v8853_v58, %v10632_v25 }
0x1195   :  { %v3990_v32 = vmul.f32 %v3929_v35, %v10635_v56  ;;  %v3991_v8 = vmul.f32 %v3930_v17, %v10638_v31  ;;  %v3992_v11 = vmul.f32 %v3931_v5, %v10641_v59  ;;  %v3993_v54 = vmul.f32 %v3932_v60, %v10644_v19 }
0x1196   :  { %v3909_v55 = vpop.xlane.xlu1 %3908  ;;  %v3994_v36 = vmul.f32 %v3933_v2, %v10647_v33  ;;  %v3995_v14 = vmul.f32 %v3934_v23, %v10650_v22  ;;  %v3996_v47 = vmul.f32 %v3935_v24, %v10653_v61  ;;  %v4025_v44 = vmul.f32 %v10835_v43, %v3989_v10 }
0x1197   :  { %v3915_v46 = vmul.f32 0.03125, %v3909_v55  ;;  %v4026_v25 = vmul.f32 %v10835_v43, %v3990_v32  ;;  %v4027_v56 = vmul.f32 %v10835_v43, %v3991_v8  ;;  %v4028_v31 = vmul.f32 %v10835_v43, %v3992_v11 }
0x1198   :  { %v4029_v59 = vmul.f32 %v10835_v43, %v3993_v54  ;;  %v4030_v19 = vmul.f32 %v10835_v43, %v3994_v36  ;;  %v4031_v21 = vmul.f32 %v10835_v43, %v3995_v14  ;;  %v4032_v22 = vmul.f32 %v10835_v43, %v3996_v47 }
0x1199   :  { %v3919_v33 = vadd.f32 1e-05, %v3915_v46  ;;  %v10859_v61 = vadd.f32 %v10840_v26, %v4025_v44  ;;  %v10862_v16 = vadd.f32 %v10840_v26, %v4026_v25  ;;  %v10865_v20 = vadd.f32 %v10840_v26, %v4027_v56 }
0x119a   :  { %v10868_v52 = vadd.f32 %v10840_v26, %v4028_v31  ;;  %v10871_v38 = vadd.f32 %v10840_v26, %v4029_v59  ;;  %v10874_v58 = vadd.f32 %v10840_v26, %v4030_v19  ;;  %v10902_v59 = vadd.f32 %v10840_v26, %v4032_v22 }
0x119b   :  { %v8855_v63 = vpop.eup %8854  ;;  %8856 = vrsqrt.f32 %v3919_v33 }
0x119c   :  { %v3936_v35 = vrot.slane %v8855_v63, 1  ;;  %v3937_v17 = vrot.slane %v8855_v63, 2  ;;  %v3938_v5 = vrot.slane %v8855_v63, 3  ;;  %v3939_v60 = vrot.slane %v8855_v63, 4 }
0x119d   :  { %v3940_v2 = vrot.slane %v8855_v63, 5  ;;  %v3941_v23 = vrot.slane %v8855_v63, 6  ;;  %v3942_v24 = vrot.slane %v8855_v63, 7  ;;  %v3997_v10 = vmul.f32 %v8855_v63, %v10675_v62 }
0x119e   :  { %v3998_v32 = vmul.f32 %v3936_v35, %v10678_v0  ;;  %v3999_v8 = vmul.f32 %v3937_v17, %v10681_v37  ;;  %v4000_v11 = vmul.f32 %v3938_v5, %v10685_v45  ;;  %v4001_v54 = vmul.f32 %v3939_v60, %v10688_v4 }
0x119f   :  { %v4002_v55 = vmul.f32 %v3940_v2, %v10692_v53  ;;  %v4003_v36 = vmul.f32 %v3941_v23, %v10695_v48  ;;  %v4004_v14 = vmul.f32 %v3942_v24, %v10698_v30  ;;  %v4033_v47 = vmul.f32 %v10835_v43, %v3997_v10  ;;  %v3912_v44 = vpop.xlane.xlu0 %3911 }
0x11a0   :  { %v4034_v46 = vmul.f32 %v10835_v43, %v3998_v32  ;;  %v4035_v62 = vmul.f32 %v10835_v43, %v3999_v8  ;;  %v4036_v0 = vmul.f32 %v10835_v43, %v4000_v11  ;;  %v4037_v37 = vmul.f32 %v10835_v43, %v4001_v54 }
0x11a1   :  { %v3916_v45 = vmul.f32 0.03125, %v3912_v44  ;;  %v4038_v4 = vmul.f32 %v10835_v43, %v4002_v55  ;;  %v4039_v53 = vmul.f32 %v10835_v43, %v4003_v36  ;;  %v4040_v48 = vmul.f32 %v10835_v43, %v4004_v14 }
0x11a2   :  { %v10893_v30 = vadd.f32 %v10840_v26, %v4031_v21  ;;  %v10896_v25 = vadd.f32 %v10840_v26, %v4034_v46  ;;  %v10899_v56 = vadd.f32 %v10840_v26, %v4035_v62  ;;  %v10905_v19 = vadd.f32 %v10840_v26, %v4036_v0 }
0x11a3   :  { %v3920_v31 = vadd.f32 1e-05, %v3916_v45  ;;  %v4095_v63 = vpack.c.bf16 %v10859_v61, %v10859_v61  ;;  %v10910_v33 = vadd.f32 %v10840_v26, %v4033_v47  ;;  %v10913_v21 = vadd.f32 %v10840_v26, %v4037_v37 }
0x11a4   :  { %12763 = vst [vmem:[#allocation3_spill] sm:$0xff] %v10905_v19  ;;  %v4096_v35 = vpack.c.bf16 %v10862_v16, %v10862_v16  ;;  %v4097_v17 = vpack.c.bf16 %v10865_v20, %v10865_v20  ;;  %v10920_v22 = vadd.f32 %v10840_v26, %v4038_v4  ;;  %v10923_v5 = vadd.f32 %v10840_v26, %v4039_v53 }
0x11a5   :  { %12764 = vst [vmem:[#allocation5_spill] sm:$0xff] %v10910_v33  ;;  %12765 = vst [vmem:[#allocation8_spill] sm:$0xff] %v10913_v21  ;;  %v10926_v60 = vadd.f32 %v10840_v26, %v4040_v48  ;;  %v4098_v2 = vpack.c.bf16 %v10868_v52, %v10868_v52  ;;  %8858 = vrsqrt.f32 %v3920_v31  ;;  %v4099_v23 = vpack.c.bf16 %v10871_v38, %v10871_v38 }
0x11a6   :  { %12766 = vst [vmem:[#allocation4_spill] sm:$0xff] %v10920_v22  ;;  %12767 = vst [vmem:[#allocation9_spill] sm:$0xff] %v10923_v5  ;;  %v4104_v24 = vpack.c.bf16 %v10896_v25, %v10896_v25  ;;  %v4105_v10 = vpack.c.bf16 %v10899_v56, %v10899_v56  ;;  %v4100_v32 = vpack.c.bf16 %v10874_v58, %v10874_v58  ;;  %v4173_v14 = vunpack.c.l.b16 %v4096_v35  ;;  %v8857_v35 = vpop.eup %8856 }
0x11a7   :  { %12768 = vst [vmem:[#allocation10_spill] sm:$0xff] %v10926_v60  ;;  %v4101_v8 = vpack.c.bf16 %v10893_v30, %v10893_v30  ;;  %v4102_v11 = vpack.c.bf16 %v10902_v59, %v10902_v59  ;;  %v4106_v54 = vpack.c.bf16 %v10905_v19, %v10905_v19  ;;  %v4103_v55 = vpack.c.bf16 %v10910_v33, %v10910_v33 }
0x11a8   :  { %v4107_v36 = vpack.c.bf16 %v10913_v21, %v10913_v21  ;;  %v4174_v47 = vunpack.c.l.b16 %v4097_v17  ;;  %v4108_v44 = vpack.c.bf16 %v10920_v22, %v10920_v22  ;;  %v4109_v46 = vpack.c.bf16 %v10923_v5, %v10923_v5 }
0x11a9   :  { %v4110_v62 = vpack.c.bf16 %v10926_v60, %v10926_v60  ;;  %v4172_v0 = vunpack.c.l.b16 %v4095_v63  ;;  %v4175_v37 = vunpack.c.l.b16 %v4098_v2  ;;  %v4176_v45 = vunpack.c.l.b16 %v4099_v23 }
0x11aa   :  { %v4181_v4 = vunpack.c.l.b16 %v4104_v24  ;;  %v4182_v53 = vunpack.c.l.b16 %v4105_v10  ;;  %v4177_v48 = vunpack.c.l.b16 %v4100_v32  ;;  %v4178_v31 = vunpack.c.l.b16 %v4101_v8 }
0x11ab   :  { %v4179_v28 = vunpack.c.l.b16 %v4102_v11  ;;  %v4183_v39 = vunpack.c.l.b16 %v4106_v54  ;;  %v4180_v17 = vunpack.c.l.b16 %v4103_v55  ;;  %v4184_v29 = vunpack.c.l.b16 %v4107_v36 }
0x11ac   :  { %v4204_v49 = vrot.slane %v4173_v14, 7  ;;  %v4206_v33 = vrot.slane %v4174_v47, 6  ;;  %v4185_v22 = vunpack.c.l.b16 %v4108_v44  ;;  %v4186_v21 = vunpack.c.l.b16 %v4109_v46 }
0x11ad   :  { %v4187_v5 = vunpack.c.l.b16 %v4110_v62  ;;  %v4218_v19 = vrot.slane %v4181_v4, 7  ;;  %v4208_v63 = vrot.slane %v4175_v37, 5  ;;  %v4210_v2 = vrot.slane %v4176_v45, 4 }
0x11ae   :  { %v4205_v60 = vsel %vm481_vm1, %v4204_v49, %v4172_v0  ;;  %v4220_v23 = vrot.slane %v4182_v53, 6  ;;  %v4212_v10 = vrot.slane %v4177_v48, 3  ;;  %v4222_v8 = vrot.slane %v4183_v39, 5 }
0x11af   :  { %v4207_v24 = vsel %vm484_vm2, %v4206_v33, %v4205_v60  ;;  %v4219_v32 = vsel %vm481_vm1, %v4218_v19, %v4180_v17  ;;  %v8859_v11 = vpop.eup %8858  ;;  %v4214_v55 = vrot.slane %v4178_v31, 2  ;;  %v4224_v14 = vrot.slane %v4184_v29, 4 }
0x11b0   :  { %v4209_v54 = vsel %vm487_vm3, %v4208_v63, %v4207_v24  ;;  %v4221_v36 = vsel %vm484_vm2, %v4220_v23, %v4219_v32  ;;  %v4216_v44 = vrot.slane %v4179_v28, 1  ;;  %v4226_v46 = vrot.slane %v4185_v22, 3 }
0x11b1   :  { %v4211_v47 = vsel %vm490_vm4, %v4210_v2, %v4209_v54  ;;  %v4223_v49 = vsel %vm487_vm3, %v4222_v8, %v4221_v36  ;;  %v4228_v60 = vrot.slane %v4186_v21, 2  ;;  %v4230_v19 = vrot.slane %v4187_v5, 1 }
0x11b2   :  { %v4213_v62 = vsel %vm493_vm5, %v4212_v10, %v4211_v47  ;;  %v4225_v33 = vsel %vm490_vm4, %v4224_v14, %v4223_v49  ;;  %v3943_v37 = vrot.slane %v8857_v35, 1  ;;  %v3944_v45 = vrot.slane %v8857_v35, 2 }
0x11b3   :  { %v4215_v39 = vsel %vm496_vm6, %v4214_v55, %v4213_v62  ;;  %v4227_v0 = vsel %vm493_vm5, %v4226_v46, %v4225_v33  ;;  %v3945_v4 = vrot.slane %v8857_v35, 3  ;;  %v3946_v53 = vrot.slane %v8857_v35, 4 }
0x11b4   :  { %v4229_v29 = vsel %vm496_vm6, %v4228_v60, %v4227_v0  ;;  %v3947_v28 = vrot.slane %v8857_v35, 5  ;;  %v4217_v48 = vsel %vm499_vm7, %v4216_v44, %v4215_v39  ;;  %v3950_v31 = vrot.slane %v8859_v11, 1 }
0x11b5   :  { %v4231_v22 = vsel %vm499_vm7, %v4230_v19, %v4229_v29  ;;  %v3951_v17 = vrot.slane %v8859_v11, 2  ;;  %v3948_v21 = vrot.slane %v8857_v35, 6  ;;  %v3949_v5 = vrot.slane %v8857_v35, 7 }
0x11b6   :  { %v4260_v63 = vpack.c.b16 %v4231_v22, %v4217_v48  ;;  %v3952_v2 = vrot.slane %v8859_v11, 3  ;;  %v3953_v23 = vrot.slane %v8859_v11, 4  ;;  %v3954_v24 = vrot.slane %v8859_v11, 5 }
0x11b7   :  { %v4006_v10 = vmul.f32 %v3943_v37, %v10727_v51  ;;  %v4007_v32 = vmul.f32 %v3944_v45, %v10731_v40  ;;  %v3955_v8 = vrot.slane %v8859_v11, 6  ;;  %v3956_v54 = vrot.slane %v8859_v11, 7 }
0x11b8   :  { %8460 = vmatprep.mubr.msk.bf16.mxu0 %vm557_vm8, %v4260_v63  ;;  %v4005_v55 = vmul.f32 %v8857_v35, %v10724_v57  ;;  %v4008_v36 = vmul.f32 %v3945_v4, %v10734_v27  ;;  %v4009_v14 = vmul.f32 %v3946_v53, %v10737_v9  ;;  %v4010_v47 = vmul.f32 %v3947_v28, %v10741_v7 }
0x11b9   :  { %v4014_v44 = vmul.f32 %v3950_v31, %v10772_v1  ;;  %v4015_v49 = vmul.f32 %v3951_v17, %v10775_v18  ;;  %v4011_v51 = vmul.f32 %v3948_v21, %v10744_v6  ;;  %v4012_v40 = vmul.f32 %v3949_v5, %v10747_v13 }
0x11ba   :  { %v4013_v46 = vmul.f32 %v8859_v11, %v10782_v42  ;;  %v4016_v62 = vmul.f32 %v3952_v2, %v10778_v41  ;;  %v4017_v57 = vmul.f32 %v3953_v23, %v10785_v15  ;;  %v4018_v27 = vmul.f32 %v3954_v24, %v10788_v34 }
0x11bb   :  { %v4042_v9 = vmul.f32 %v10835_v43, %v4006_v10  ;;  %v4043_v7 = vmul.f32 %v10835_v43, %v4007_v32  ;;  %v4019_v1 = vmul.f32 %v3955_v8, %v10792_v50  ;;  %v4020_v18 = vmul.f32 %v3956_v54, %v10798_v12 }
0x11bc   :  { %v4041_v6 = vmul.f32 %v10835_v43, %v4005_v55  ;;  %v4044_v13 = vmul.f32 %v10835_v43, %v4008_v36  ;;  %v4045_v42 = vmul.f32 %v10835_v43, %v4009_v14  ;;  %v4046_v41 = vmul.f32 %v10835_v43, %v4010_v47 }
0x11bd   :  { %v4050_v15 = vmul.f32 %v10835_v43, %v4014_v44  ;;  %v4051_v34 = vmul.f32 %v10835_v43, %v4015_v49  ;;  %v4047_v35 = vmul.f32 %v10835_v43, %v4011_v51  ;;  %v4048_v11 = vmul.f32 %v10835_v43, %v4012_v40 }
0x11be   :  { %v4049_v50 = vmul.f32 %v10835_v43, %v4013_v46  ;;  %v4052_v12 = vmul.f32 %v10835_v43, %v4016_v62  ;;  %v4053_v33 = vmul.f32 %v10835_v43, %v4017_v57  ;;  %v4054_v60 = vmul.f32 %v10835_v43, %v4018_v27 }
0x11bf   :  { %v11000_v19 = vadd.f32 %v10840_v26, %v4042_v9  ;;  %v11003_v39 = vadd.f32 %v10840_v26, %v4043_v7  ;;  %v4055_v0 = vmul.f32 %v10835_v43, %v4019_v1  ;;  %v4056_v37 = vmul.f32 %v10835_v43, %v4020_v18 }
0x11c0   :  { %v11008_v45 = vadd.f32 %v10840_v26, %v4041_v6  ;;  %v11011_v29 = vadd.f32 %v10840_v26, %v4044_v13  ;;  %v11014_v4 = vadd.f32 %v10840_v26, %v4045_v42  ;;  %v11017_v53 = vadd.f32 %v10840_v26, %v4046_v41 }
0x11c1   :  { %v11020_v28 = vadd.f32 %v10840_v26, %v4050_v15  ;;  %v11023_v48 = vadd.f32 %v10840_v26, %v4051_v34  ;;  %v11026_v43 = vadd.f32 %v10840_v26, %v4047_v35  ;;  %v11029_v22 = vadd.f32 %v10840_v26, %v4048_v11 }
0x11c2   :  { %v11032_v31 = vadd.f32 %v10840_v26, %v4049_v50  ;;  %v11035_v17 = vadd.f32 %v10840_v26, %v4052_v12  ;;  %v11038_v63 = vadd.f32 %v10840_v26, %v4053_v33  ;;  %v11041_v21 = vadd.f32 %v10840_v26, %v4054_v60 }
0x11c3   :  { %v4112_v5 = vpack.c.bf16 %v11000_v19, %v11000_v19  ;;  %v4113_v2 = vpack.c.bf16 %v11003_v39, %v11003_v39  ;;  %v11048_v23 = vadd.f32 %v10840_v26, %v4055_v0  ;;  %v11051_v24 = vadd.f32 %v10840_v26, %v4056_v37 }
0x11c4   :  { %v4111_v10 = vpack.c.bf16 %v11008_v45, %v11008_v45  ;;  %v4114_v32 = vpack.c.bf16 %v11011_v29, %v11011_v29  ;;  %v4115_v8 = vpack.c.bf16 %v11014_v4, %v11014_v4  ;;  %v4116_v54 = vpack.c.bf16 %v11017_v53, %v11017_v53 }
0x11c5   :  { %v4120_v55 = vpack.c.bf16 %v11020_v28, %v11020_v28  ;;  %v4121_v36 = vpack.c.bf16 %v11023_v48, %v11023_v48  ;;  %v4117_v26 = vpack.c.bf16 %v11026_v43, %v11026_v43  ;;  %v4118_v14 = vpack.c.bf16 %v11029_v22, %v11029_v22 }
0x11c6   :  { %v4119_v47 = vpack.c.bf16 %v11032_v31, %v11032_v31  ;;  %v4122_v44 = vpack.c.bf16 %v11035_v17, %v11035_v17  ;;  %v4123_v49 = vpack.c.bf16 %v11038_v63, %v11038_v63  ;;  %v4124_v51 = vpack.c.bf16 %v11041_v21, %v11041_v21 }
0x11c7   :  { %v4189_v40 = vunpack.c.l.b16 %v4112_v5  ;;  %v4190_v46 = vunpack.c.l.b16 %v4113_v2  ;;  %v4125_v62 = vpack.c.bf16 %v11048_v23, %v11048_v23  ;;  %v4126_v57 = vpack.c.bf16 %v11051_v24, %v11051_v24 }
0x11c8   :  { %v4188_v27 = vunpack.c.l.b16 %v4111_v10  ;;  %v4191_v9 = vunpack.c.l.b16 %v4114_v32  ;;  %v4192_v7 = vunpack.c.l.b16 %v4115_v8  ;;  %v4193_v1 = vunpack.c.l.b16 %v4116_v54 }
0x11c9   :  { %v4197_v18 = vunpack.c.l.b16 %v4120_v55  ;;  %v4198_v6 = vunpack.c.l.b16 %v4121_v36  ;;  %v4194_v13 = vunpack.c.l.b16 %v4117_v26  ;;  %v4195_v42 = vunpack.c.l.b16 %v4118_v14 }
0x11ca   :  { %v4199_v41 = vunpack.c.l.b16 %v4122_v44  ;;  %v4232_v15 = vrot.slane %v4189_v40, 7  ;;  %v4196_v34 = vunpack.c.l.b16 %v4119_v47  ;;  %v4200_v35 = vunpack.c.l.b16 %v4123_v49 }
0x11cb   :  { %v4201_v11 = vunpack.c.l.b16 %v4124_v51  ;;  %v4234_v50 = vrot.slane %v4190_v46, 6  ;;  %v4202_v12 = vunpack.c.l.b16 %v4125_v62  ;;  %v4236_v60 = vrot.slane %v4191_v9, 5 }
0x11cc   :  { %v4233_v33 = vsel %vm481_vm1, %v4232_v15, %v4188_v27  ;;  %v4246_v0 = vrot.slane %v4197_v18, 7  ;;  %v4203_v37 = vunpack.c.l.b16 %v4126_v57  ;;  %v4238_v2 = vrot.slane %v4192_v7, 4 }
0x11cd   :  { %v4235_v5 = vsel %vm484_vm2, %v4234_v50, %v4233_v33  ;;  %v4248_v10 = vrot.slane %v4198_v6, 6  ;;  %v4240_v8 = vrot.slane %v4193_v1, 3  ;;  %v4250_v55 = vrot.slane %v4199_v41, 5 }
0x11ce   :  { %v4237_v32 = vsel %vm487_vm3, %v4236_v60, %v4235_v5  ;;  %v4247_v54 = vsel %vm481_vm1, %v4246_v0, %v4196_v34  ;;  %v4242_v26 = vrot.slane %v4194_v13, 2  ;;  %v4252_v47 = vrot.slane %v4200_v35, 4  ;;  %v7995_v13 = vld [vmem:[%s12695_s6 + $0x1] ss:$0 sm:$0xff] }
0x11cf   :  { %v4239_v36 = vsel %vm490_vm4, %v4238_v2, %v4237_v32  ;;  %v4249_v14 = vsel %vm484_vm2, %v4248_v10, %v4247_v54  ;;  %v4254_v51 = vrot.slane %v4201_v11, 3  ;;  %v4256_v62 = vrot.slane %v4202_v12, 2 }
0x11d0   :  { %v4241_v44 = vsel %vm493_vm5, %v4240_v8, %v4239_v36  ;;  %v4251_v49 = vsel %vm487_vm3, %v4250_v55, %v4249_v14  ;;  %v4244_v57 = vrot.slane %v4195_v42, 1  ;;  %v4258_v9 = vrot.slane %v4203_v37, 1 }
0x11d1   :  { %v4243_v40 = vsel %vm496_vm6, %v4242_v26, %v4241_v44  ;;  %v4253_v46 = vsel %vm490_vm4, %v4252_v47, %v4251_v49 }
0x11d2   :  { %v4255_v27 = vsel %vm493_vm5, %v4254_v51, %v4253_v46  ;;  %v4245_v1 = vsel %vm499_vm7, %v4244_v57, %v4243_v40 }
0x11d3   :  { %v4257_v7 = vsel %vm496_vm6, %v4256_v62, %v4255_v27 }
0x11d4   :  { %v4259_v18 = vsel %vm499_vm7, %v4258_v9, %v4257_v7 }
0x11d5   :  { %v4261_v6 = vpack.c.b16 %v4259_v18, %v4245_v1 }
0x11d7   :  { %8461 = vmatmul.mubr.msk.bf16.vlgmr.msra.gmra.mrb[68].mxu0 %vm557_vm8, %v4261_v6 }
0x11d8   :  { %8466 = vmatprep.mubr.msk.bf16.mxu0 %vm8949_vm9, %v12756_v3 }
0x12aa   :  { %v8462_v42 = vpop.f32.mrb[68].mxu0 }
0x12ab   :  { %v4314_v41 = vpop.f32.mrb[69].mxu0  ;;  %v4323_v11 = vadd.f32 %v8462_v42, %v7995_v13 }
0x12ac   :  { %v4315_v15 = vadd.f32 %v7995_v13, %v4314_v41  ;;  %v8463_v34 = vpop.f32.mrb[70].mxu0 }
0x12ad   :  { %v4317_v35 = vpop.f32.mrb[71].mxu0  ;;  %v11107_v60 = vpack.c.bf16 %v4323_v11, %v4323_v11  ;;  %v4326_v0 = vadd.f32 %v8463_v34, %v7995_v13 }
0x12ae   :  { %v11101_v50 = vpack.c.bf16 %v4315_v15, %v4315_v15  ;;  %v4318_v12 = vadd.f32 %v7995_v13, %v4317_v35 }
0x12af   :  { %v11113_v37 = vpack.c.bf16 %v4326_v0, %v4326_v0 }
0x12b0   :  { %v11103_v33 = vpack.c.bf16 %v4318_v12, %v4318_v12  ;;  %4334 = vrot.lane.b32.xlu1 %v11101_v50, %s8950_s15 }
0x12b2   :  { %4383 = vrot.lane.b32.xlu0 %v11103_v33, %s8950_s15 }
0x12b4   :  { %4432 = vrot.lane.b32.xlu1 %v11107_v60, %s8950_s15 }
0x12b8   :  { %4481 = vrot.lane.b32.xlu1 %v11113_v37, %s8950_s15 }
0x1322   :  { %v4335_v5 = vpop.permute.xlu1 %4334 }
0x1323   :  { %v4340_v2 = vsel %vm620_vm10, %v4335_v5, 0 }
0x1324   :  { %v4384_v10 = vpop.permute.xlu0 %4383  ;;  %8465 = vmatpush3.bf16.xpose.msra.mxu0 %v4340_v2 }
0x1325   :  { %v4389_v32 = vsel %vm620_vm10, %v4384_v10, 0  ;;  %8476 = vmatprep.subr.bf16.mxu0 %v12756_v3 }
0x1326   :  { %8471 = vmatpush3.bf16.xpose.msra.mxu1 %v4389_v32  ;;  %v4433_v8 = vpop.permute.xlu1 %4432 }
0x1327   :  { %8482 = vmatprep.subr.bf16.mxu1 %v12756_v3  ;;  %v4438_v55 = vsel %vm620_vm10, %v4433_v8, 0 }
0x132a   :  { %v4482_v54 = vpop.permute.xlu1 %4481 }
0x132b   :  { %8467 = vmatmul.mubr.msk.bf16.vlgmr.msra.gmra.mrb[72].mxu0 %vm620_vm10, %v11101_v50  ;;  %v4487_v36 = vsel %vm620_vm10, %v4482_v54, 0 }
0x132c   :  { %8477 = vmatpush3.bf16.xpose.msra.mxu0 %v4438_v55  ;;  %8478 = vmatprep.mubr.msk.bf16.mxu0 %vm8949_vm9, %v12756_v3 }
0x132d   :  { %8473 = vmatmul.mubr.msk.bf16.vlgmr.msra.gmra.mrb[76].mxu1 %vm620_vm10, %v11103_v33  ;;  %8488 = vmatprep.subr.bf16.mxu0 %v12756_v3 }
0x132e   :  { %8483 = vmatpush3.bf16.xpose.msra.mxu1 %v4487_v36  ;;  %8484 = vmatprep.mubr.msk.bf16.mxu1 %vm8949_vm9, %v12756_v3 }
0x132f   :  { %8494 = vmatprep.subr.bf16.mxu1 %v12756_v3 }
0x1333   :  { %8479 = vmatmul.mubr.msk.bf16.vlgmr.msra.gmra.mrb[76].mxu0 %vm620_vm10, %v11107_v60 }
0x1334   :  { %8490 = vmatprep.mubr.msk.bf16.mxu0 %vm8949_vm9, %v12756_v3 }
0x1335   :  { %8485 = vmatmul.mubr.msk.bf16.vlgmr.msra.gmra.mrb[80].mxu1 %vm620_vm10, %v11113_v37 }
0x1336   :  { %8496 = vmatprep.mubr.msk.bf16.mxu1 %vm8949_vm9, %v12756_v3 }
0x13fe   :  { %v4376_v26 = vpop.f32.mrb[72].mxu0 }
0x13ff   :  { %v4529_v14 = vmul.f32 0.35355338, %v4376_v26  ;;  %v8468_v47 = vpop.f32.mrb[73].mxu0 }
0x1400   :  { %v4379_v44 = vpop.f32.mrb[74].mxu0  ;;  %v4425_v49 = vpop.f32.mrb[76].mxu1 }
0x1401   :  { %v4530_v51 = vmul.f32 0.35355338, %v4425_v49  ;;  %v8469_v40 = vpop.f32.mrb[75].mxu0  ;;  %v8474_v46 = vpop.f32.mrb[77].mxu1  ;;  %v4533_v62 = vsel %vm620_vm10, %v4529_v14, -inf }
0x1402   :  { %v4428_v57 = vpop.f32.mrb[78].mxu1  ;;  %4534 = vmax.xlane.f32.xlu0 %v4533_v62 }
0x1403   :  { %v8475_v27 = vpop.f32.mrb[79].mxu1  ;;  %v4536_v9 = vsel %vm620_vm10, %v4530_v51, -inf }
0x1404   :  { %4537 = vmax.xlane.f32.xlu1 %v4536_v9 }
0x1406   :  { %v4474_v7 = vpop.f32.mrb[76].mxu0 }
0x1407   :  { %v4531_v1 = vmul.f32 0.35355338, %v4474_v7  ;;  %v8480_v18 = vpop.f32.mrb[77].mxu0 }
0x1408   :  { %v4477_v6 = vpop.f32.mrb[78].mxu0  ;;  %v4523_v13 = vpop.f32.mrb[80].mxu1 }
0x1409   :  { %v4532_v42 = vmul.f32 0.35355338, %v4523_v13  ;;  %v8481_v41 = vpop.f32.mrb[79].mxu0  ;;  %v8486_v15 = vpop.f32.mrb[81].mxu1  ;;  %v4539_v34 = vsel %vm620_vm10, %v4531_v1, -inf }
0x140a   :  { %4540 = vmax.xlane.f32.xlu0 %v4539_v34  ;;  %v4526_v35 = vpop.f32.mrb[82].mxu1 }
0x140b   :  { %v8487_v11 = vpop.f32.mrb[83].mxu1  ;;  %v4542_v12 = vsel %vm620_vm10, %v4532_v42, -inf }
0x140e   :  { %4543 = vmax.xlane.f32.xlu0 %v4542_v12 }
0x1415   :  { %4581 = vrot.lane.b32.xlu1 %v11101_v50, %s8951_s16 }
0x148f   :  { %v4535_v0 = vpop.xlane.xlu0 %4534 }
0x1490   :  { %v4545_v5 = vsub.f32 %v4529_v14, %v4535_v0 }
0x1491   :  { %v4538_v2 = vpop.xlane.xlu1 %4537 }
0x1492   :  { %v4549_v10 = vmul.f32 1.442695, %v4545_v5  ;;  %v4546_v32 = vsub.f32 %v4530_v51, %v4538_v2 }
0x1494   :  { %8860 = vpow2.f32 %v4549_v10  ;;  %v4551_v8 = vmul.f32 1.442695, %v4546_v32 }
0x1495   :  { %v4582_v54 = vpop.permute.xlu1 %4581 }
0x1496   :  { %8862 = vpow2.f32 %v4551_v8  ;;  %v4587_v55 = vsel %vm871_vm11, %v4582_v54, 0 }
0x1497   :  { %8489 = vmatpush3.bf16.msra.mxu0 %v4587_v55  ;;  %v4541_v14 = vpop.xlane.xlu0 %4540 }
0x1498   :  { %8500 = vmatprep.subr.bf16.mxu0 %v12756_v3  ;;  %v4547_v40 = vsub.f32 %v4531_v1, %v4541_v14 }
0x149a   :  { %v4553_v62 = vmul.f32 1.442695, %v4547_v40 }
0x149b   :  { %v4544_v49 = vpop.xlane.xlu0 %4543 }
0x149c   :  { %v4548_v51 = vsub.f32 %v4532_v42, %v4544_v49 }
0x149e   :  { %v8861_v36 = vpop.eup %8860  ;;  %v4555_v46 = vmul.f32 1.442695, %v4548_v51 }
0x149f   :  { %v4557_v26 = vsel %vm620_vm10, %v8861_v36, 0.0 }
0x14a0   :  { %v8863_v47 = vpop.eup %8862  ;;  %4558 = vadd.xlane.f32.xlu1 %v4557_v26  ;;  %8864 = vpow2.f32 %v4555_v46 }
0x14a1   :  { %v4560_v44 = vsel %vm620_vm10, %v8863_v47, 0.0  ;;  %8866 = vpow2.f32 %v4553_v62 }
0x14a2   :  { %4561 = vadd.xlane.f32.xlu0 %v4560_v44 }
0x14aa   :  { %v8865_v57 = vpop.eup %8864 }
0x14ab   :  { %v8867_v27 = vpop.eup %8866  ;;  %v4566_v9 = vsel %vm620_vm10, %v8865_v57, 0.0 }
0x14ac   :  { %v4563_v7 = vsel %vm620_vm10, %v8867_v27, 0.0 }
0x14b1   :  { %4677 = vrot.lane.b32.xlu1 %v11107_v60, %s8951_s16 }
0x14b5   :  { %4725 = vrot.lane.b32.xlu1 %v11113_v37, %s8951_s16 }
0x14b8   :  { %4629 = vrot.lane.b32.xlu0 %v11103_v33, %s8951_s16 }
0x14d7   :  { %4567 = vadd.xlane.f32.xlu0 %v4566_v9 }
0x14d9   :  { %4564 = vadd.xlane.f32.xlu1 %v4563_v7 }
0x14ea   :  { %4825 = vrot.lane.b32.xlu1 %v11103_v33, %s8952_s17 }
0x14ed   :  { %4775 = vrot.lane.b32.xlu0 %v11101_v50, %s8952_s17 }
0x14ee   :  { %4823 = vrot.lane.b32.xlu1 %v11103_v33, %s8953_s18 }
0x14f1   :  { %4773 = vrot.lane.b32.xlu0 %v11101_v50, %s8953_s18 }
0x14f2   :  { %4925 = vrot.lane.b32.xlu1 %v11113_v37, %s8952_s17 }
0x14f5   :  { %4875 = vrot.lane.b32.xlu0 %v11107_v60, %s8952_s17 }
0x14f6   :  { %4923 = vrot.lane.b32.xlu1 %v11113_v37, %s8953_s18 }
0x14f9   :  { %4873 = vrot.lane.b32.xlu0 %v11107_v60, %s8953_s18 }
0x152d   :  { %v4559_v1 = vpop.xlane.xlu1 %4558 }
0x152e   :  { %8868 = vrcp.f32 %v4559_v1 }
0x152f   :  { %v4562_v18 = vpop.xlane.xlu0 %4561 }
0x1530   :  { %8870 = vrcp.f32 %v4562_v18 }
0x1531   :  { %v4678_v42 = vpop.permute.xlu1 %4677 }
0x1532   :  { %v4683_v0 = vsel %vm871_vm11, %v4678_v42, 0 }
0x1533   :  { %v4630_v6 = vpop.permute.xlu0 %4629 }
0x1534   :  { %v4635_v13 = vsel %vm871_vm11, %v4630_v6, 0 }
0x1535   :  { %8495 = vmatpush3.bf16.msra.mxu1 %v4635_v13  ;;  %v4726_v12 = vpop.permute.xlu1 %4725 }
0x1536   :  { %8506 = vmatprep.subr.bf16.mxu1 %v12756_v3  ;;  %v4731_v2 = vsel %vm871_vm11, %v4726_v12, 0 }
0x1538   :  { %v8869_v41 = vpop.eup %8868 }
0x1539   :  { %v4573_v15 = vmul.f32 %v8869_v41, %v8861_v36 }
0x153a   :  { %v8871_v34 = vpop.eup %8870 }
0x153b   :  { %v4574_v35 = vmul.f32 %v8871_v34, %v8863_v47  ;;  %v4577_v11 = vpack.c.bf16 %v4573_v15, %v4573_v15 }
0x153d   :  { %8491 = vmatmul.mubr.msk.bf16.vlgmr.msra.gmra.mrb[80].mxu0 %vm620_vm10, %v4577_v11  ;;  %v4578_v5 = vpack.c.bf16 %v4574_v35, %v4574_v35 }
0x153e   :  { %8501 = vmatpush3.bf16.msra.mxu0 %v4683_v0  ;;  %8502 = vmatprep.mubr.msk.bf16.mxu0 %vm8949_vm9, %v12756_v3 }
0x153f   :  { %8497 = vmatmul.mubr.msk.bf16.vlgmr.msra.gmra.mrb[84].mxu1 %vm620_vm10, %v4578_v5  ;;  %8512 = vmatprep.subr.bf16.mxu0 %v12756_v3 }
0x1540   :  { %8507 = vmatpush3.bf16.msra.mxu1 %v4731_v2  ;;  %8508 = vmatprep.mubr.msk.bf16.mxu1 %vm8949_vm9, %v12756_v3 }
0x1541   :  { %8518 = vmatprep.subr.bf16.mxu1 %v12756_v3 }
0x1564   :  { %v4568_v10 = vpop.xlane.xlu0 %4567 }
0x1565   :  { %8872 = vrcp.f32 %v4568_v10 }
0x1566   :  { %v4565_v32 = vpop.xlane.xlu1 %4564 }
0x1567   :  { %8874 = vrcp.f32 %v4565_v32 }
0x1568   :  { %v4776_v55 = vpop.permute.xlu0 %4775 }
0x1569   :  { %v4781_v46 = vsel %vm620_vm10, %v4776_v55, 0 }
0x156a   :  { %v4826_v8 = vpop.permute.xlu1 %4825 }
0x156b   :  { %v4831_v49 = vsel %vm620_vm10, %v4826_v8, 0 }
0x156c   :  { %v4774_v40 = vpop.permute.xlu0 %4773 }
0x156e   :  { %v4824_v14 = vpop.permute.xlu1 %4823 }
0x156f   :  { %v8873_v54 = vpop.eup %8872 }
0x1570   :  { %v4576_v36 = vmul.f32 %v8873_v54, %v8865_v57  ;;  %v4876_v57 = vpop.permute.xlu0 %4875 }
0x1571   :  { %v8875_v26 = vpop.eup %8874  ;;  %v4881_v9 = vsel %vm620_vm10, %v4876_v57, 0 }
0x1572   :  { %v4575_v47 = vmul.f32 %v8875_v26, %v8867_v27  ;;  %v4580_v44 = vpack.c.bf16 %v4576_v36, %v4576_v36  ;;  %v4926_v62 = vpop.permute.xlu1 %4925 }
0x1573   :  { %v4931_v27 = vsel %vm620_vm10, %v4926_v62, 0 }
0x1574   :  { %8509 = vmatmul.mubr.msk.bf16.vlgmr.msra.gmra.mrb[88].mxu1 %vm620_vm10, %v4580_v44  ;;  %v4579_v51 = vpack.c.bf16 %v4575_v47, %v4575_v47  ;;  %v4874_v1 = vpop.permute.xlu0 %4873 }
0x1575   :  { %8519 = vmatpush3.bf16.xpose.msra.mxu1 %v4831_v49  ;;  %8520 = vmatprep.mubr.msk.bf16.mxu1 %vm8949_vm9, %v12756_v3 }
0x1576   :  { %8503 = vmatmul.mubr.msk.bf16.vlgmr.msra.gmra.mrb[84].mxu0 %vm620_vm10, %v4579_v51  ;;  %8530 = vmatprep.subr.bf16.mxu1 %v12756_v3  ;;  %v4924_v7 = vpop.permute.xlu1 %4923 }
0x1577   :  { %8513 = vmatpush3.bf16.xpose.msra.mxu0 %v4781_v46  ;;  %8514 = vmatprep.mubr.msk.bf16.mxu0 %vm8949_vm9, %v12756_v3 }
0x1578   :  { %8524 = vmatprep.subr.bf16.mxu0 %v12756_v3 }
0x157c   :  { %8521 = vmatmul.mubr.msk.bf16.vlgmr.msra.gmra.mrb[92].mxu1 %vm620_vm10, %v4824_v14 }
0x157d   :  { %8531 = vmatpush3.bf16.xpose.msra.mxu1 %v4931_v27  ;;  %8532 = vmatprep.mubr.msk.bf16.mxu1 %vm8949_vm9, %v12756_v3 }
0x157e   :  { %8515 = vmatmul.mubr.msk.bf16.vlgmr.msra.gmra.mrb[88].mxu0 %vm620_vm10, %v4774_v40  ;;  %8542 = vmatprep.subr.bf16.mxu1 %v12756_v3 }
0x157f   :  { %8525 = vmatpush3.bf16.xpose.msra.mxu0 %v4881_v9  ;;  %8526 = vmatprep.mubr.msk.bf16.mxu0 %vm8949_vm9, %v12756_v3 }
0x1580   :  { %8536 = vmatprep.subr.bf16.mxu0 %v12756_v3 }
0x1584   :  { %8533 = vmatmul.mubr.msk.bf16.vlgmr.msra.gmra.mrb[96].mxu1 %vm620_vm10, %v4924_v7 }
0x1585   :  { %8544 = vmatprep.mubr.msk.bf16.mxu1 %vm8949_vm9, %v12756_v3 }
0x1586   :  { %8527 = vmatmul.mubr.msk.bf16.vlgmr.msra.gmra.mrb[92].mxu0 %vm620_vm10, %v4874_v1 }
0x1587   :  { %8538 = vmatprep.mubr.msk.bf16.mxu0 %vm8949_vm9, %v12756_v3 }
0x1610   :  { %v11213_v18 = vpop.f32.mrb[80].mxu0 }
0x1611   :  { %v8492_v6 = vpop.f32.mrb[81].mxu0 }
0x1612   :  { %v4626_v13 = vpop.f32.mrb[82].mxu0  ;;  %v11215_v42 = vpop.f32.mrb[84].mxu1 }
0x1613   :  { %v8493_v41 = vpop.f32.mrb[83].mxu0  ;;  %v8498_v15 = vpop.f32.mrb[85].mxu1 }
0x1614   :  { %v4674_v34 = vpop.f32.mrb[86].mxu1 }
0x1615   :  { %v8499_v35 = vpop.f32.mrb[87].mxu1 }
0x1647   :  { %v11217_v11 = vpop.f32.mrb[88].mxu1 }
0x1648   :  { %v8510_v12 = vpop.f32.mrb[89].mxu1 }
0x1649   :  { %v11219_v0 = vpop.f32.mrb[84].mxu0  ;;  %v4770_v5 = vpop.f32.mrb[90].mxu1 }
0x164a   :  { %v8504_v2 = vpop.f32.mrb[85].mxu0  ;;  %v8511_v10 = vpop.f32.mrb[91].mxu1 }
0x164b   :  { %v4722_v32 = vpop.f32.mrb[86].mxu0 }
0x164c   :  { %v8505_v8 = vpop.f32.mrb[87].mxu0 }
0x164f   :  { %v4867_v54 = vpop.f32.mrb[92].mxu1 }
0x1650   :  { %v4974_v55 = vmul.f32 0.35355338, %v4867_v54  ;;  %v8522_v36 = vpop.f32.mrb[93].mxu1 }
0x1651   :  { %v4817_v26 = vpop.f32.mrb[88].mxu0  ;;  %v4870_v47 = vpop.f32.mrb[94].mxu1 }
0x1652   :  { %v4973_v44 = vmul.f32 0.35355338, %v4817_v26  ;;  %v8516_v14 = vpop.f32.mrb[89].mxu0  ;;  %v8523_v49 = vpop.f32.mrb[95].mxu1  ;;  %v4980_v51 = vsel %vm620_vm10, %v4974_v55, -inf }
0x1653   :  { %v4820_v40 = vpop.f32.mrb[90].mxu0  ;;  %4981 = vmax.xlane.f32.xlu1 %v4980_v51 }
0x1654   :  { %v8517_v46 = vpop.f32.mrb[91].mxu0  ;;  %v4977_v62 = vsel %vm620_vm10, %v4973_v44, -inf }
0x1655   :  { %4978 = vmax.xlane.f32.xlu0 %v4977_v62 }
0x1657   :  { %v4967_v57 = vpop.f32.mrb[96].mxu1 }
0x1658   :  { %v8534_v27 = vpop.f32.mrb[97].mxu1  ;;  %v4976_v15 = vmul.f32 0.35355338, %v4967_v57 }
0x1659   :  { %v4917_v9 = vpop.f32.mrb[92].mxu0  ;;  %v4970_v7 = vpop.f32.mrb[98].mxu1 }
0x165a   :  { %v4975_v1 = vmul.f32 0.35355338, %v4917_v9  ;;  %v8528_v6 = vpop.f32.mrb[93].mxu0  ;;  %v8535_v13 = vpop.f32.mrb[99].mxu1  ;;  %v4986_v12 = vsel %vm620_vm10, %v4976_v15, -inf }
0x165b   :  { %v4920_v41 = vpop.f32.mrb[94].mxu0 }
0x165c   :  { %v8529_v34 = vpop.f32.mrb[95].mxu0  ;;  %v4983_v35 = vsel %vm620_vm10, %v4975_v1, -inf }
0x165d   :  { %4984 = vmax.xlane.f32.xlu0 %v4983_v35 }
0x1661   :  { %4987 = vmax.xlane.f32.xlu0 %v4986_v12 }
0x1664   :  { %5025 = vrot.lane.b32.xlu1 %v11101_v50, %s8954_s19 }
0x16e0   :  { %v4982_v5 = vpop.xlane.xlu1 %4981 }
0x16e1   :  { %v4990_v2 = vsub.f32 %v4974_v55, %v4982_v5 }
0x16e2   :  { %v4979_v10 = vpop.xlane.xlu0 %4978 }
0x16e3   :  { %v4995_v32 = vmul.f32 1.442695, %v4990_v2  ;;  %v4989_v8 = vsub.f32 %v4973_v44, %v4979_v10 }
0x16e4   :  { %v5026_v54 = vpop.permute.xlu1 %5025 }
0x16e5   :  { %8876 = vpow2.f32 %v4995_v32  ;;  %v4993_v36 = vmul.f32 1.442695, %v4989_v8  ;;  %v5031_v26 = vsel %vm871_vm11, %v5026_v54, 0 }
0x16e6   :  { %8537 = vmatpush3.bf16.msra.mxu0 %v5031_v26 }
0x16e7   :  { %8878 = vpow2.f32 %v4993_v36  ;;  %8548 = vmatprep.subr.bf16.mxu0 %v12756_v3 }
0x16ea   :  { %v4985_v55 = vpop.xlane.xlu0 %4984 }
0x16eb   :  { %v4991_v62 = vsub.f32 %v4975_v1, %v4985_v55 }
0x16ed   :  { %v4997_v57 = vmul.f32 1.442695, %v4991_v62 }
0x16ee   :  { %v4988_v44 = vpop.xlane.xlu0 %4987 }
0x16ef   :  { %v8877_v47 = vpop.eup %8876  ;;  %v4992_v40 = vsub.f32 %v4976_v15, %v4988_v44 }
0x16f0   :  { %v5004_v14 = vsel %vm620_vm10, %v8877_v47, 0.0 }
0x16f1   :  { %v8879_v49 = vpop.eup %8878  ;;  %5005 = vadd.xlane.f32.xlu0 %v5004_v14  ;;  %v4999_v46 = vmul.f32 1.442695, %v4992_v40 }
0x16f2   :  { %v5001_v51 = vsel %vm620_vm10, %v8879_v49, 0.0 }
0x16f3   :  { %5002 = vadd.xlane.f32.xlu1 %v5001_v51  ;;  %8880 = vpow2.f32 %v4999_v46 }
0x16f4   :  { %8882 = vpow2.f32 %v4997_v57 }
0x16fd   :  { %v8881_v27 = vpop.eup %8880 }
0x16fe   :  { %v5010_v9 = vsel %vm620_vm10, %v8881_v27, 0.0  ;;  %v8883_v7 = vpop.eup %8882 }
0x16ff   :  { %v5007_v6 = vsel %vm620_vm10, %v8883_v7, 0.0 }
0x1704   :  { %5121 = vrot.lane.b32.xlu1 %v11107_v60, %s8954_s19 }
0x1707   :  { %5073 = vrot.lane.b32.xlu0 %v11103_v33, %s8954_s19 }
0x1708   :  { %5169 = vrot.lane.b32.xlu1 %v11113_v37, %s8954_s19 }
0x1726   :  { %5011 = vadd.xlane.f32.xlu0 %v5010_v9 }
0x172c   :  { %5008 = vadd.xlane.f32.xlu1 %v5007_v6 }
0x173c   :  { %5219 = vrot.lane.b32.xlu0 %v11101_v50, %s8955_s20 }
0x173d   :  { %5269 = vrot.lane.b32.xlu1 %v11103_v33, %s8955_s20 }
0x1740   :  { %5217 = vrot.lane.b32.xlu0 %v11101_v50, %s8956_s21 }
0x1741   :  { %5267 = vrot.lane.b32.xlu1 %v11103_v33, %s8956_s21 }
0x1744   :  { %5319 = vrot.lane.b32.xlu0 %v11107_v60, %s8955_s20 }
0x1745   :  { %5369 = vrot.lane.b32.xlu1 %v11113_v37, %s8955_s20 }
0x1748   :  { %5317 = vrot.lane.b32.xlu0 %v11107_v60, %s8956_s21 }
0x1749   :  { %5367 = vrot.lane.b32.xlu1 %v11113_v37, %s8956_s21 }
0x177e   :  { %v5006_v1 = vpop.xlane.xlu0 %5005 }
0x177f   :  { %8884 = vrcp.f32 %v5006_v1 }
0x1780   :  { %v5003_v13 = vpop.xlane.xlu1 %5002 }
0x1781   :  { %8886 = vrcp.f32 %v5003_v13 }
0x1782   :  { %v5074_v41 = vpop.permute.xlu0 %5073 }
0x1783   :  { %v5079_v15 = vsel %vm871_vm11, %v5074_v41, 0 }
0x1784   :  { %8543 = vmatpush3.bf16.msra.mxu1 %v5079_v15  ;;  %v5122_v34 = vpop.permute.xlu1 %5121 }
0x1785   :  { %8554 = vmatprep.subr.bf16.mxu1 %v12756_v3  ;;  %v5127_v36 = vsel %vm871_vm11, %v5122_v34, 0 }
0x1788   :  { %v5170_v2 = vpop.permute.xlu1 %5169 }
0x1789   :  { %v8885_v35 = vpop.eup %8884  ;;  %v5175_v8 = vsel %vm871_vm11, %v5170_v2, 0 }
0x178a   :  { %v5018_v12 = vmul.f32 %v8885_v35, %v8877_v47 }
0x178b   :  { %v8887_v5 = vpop.eup %8886 }
0x178c   :  { %v5017_v10 = vmul.f32 %v8887_v5, %v8879_v49  ;;  %v5022_v32 = vpack.c.bf16 %v5018_v12, %v5018_v12 }
0x178e   :  { %8545 = vmatmul.mubr.msk.bf16.vlgmr.msra.gmra.mrb[100].mxu1 %vm620_vm10, %v5022_v32  ;;  %v5021_v54 = vpack.c.bf16 %v5017_v10, %v5017_v10 }
0x178f   :  { %8555 = vmatpush3.bf16.msra.mxu1 %v5175_v8  ;;  %8556 = vmatprep.mubr.msk.bf16.mxu1 %vm8949_vm9, %v12756_v3 }
0x1790   :  { %8539 = vmatmul.mubr.msk.bf16.vlgmr.msra.gmra.mrb[96].mxu0 %vm620_vm10, %v5021_v54  ;;  %8566 = vmatprep.subr.bf16.mxu1 %v12756_v3 }
0x1791   :  { %8549 = vmatpush3.bf16.msra.mxu0 %v5127_v36  ;;  %8550 = vmatprep.mubr.msk.bf16.mxu0 %vm8949_vm9, %v12756_v3 }
0x1792   :  { %8560 = vmatprep.subr.bf16.mxu0 %v12756_v3 }
0x17b3   :  { %v5012_v26 = vpop.xlane.xlu0 %5011 }
0x17b4   :  { %8888 = vrcp.f32 %v5012_v26 }
0x17b7   :  { %v5220_v44 = vpop.permute.xlu0 %5219 }
0x17b9   :  { %v5009_v47 = vpop.xlane.xlu1 %5008 }
0x17ba   :  { %8890 = vrcp.f32 %v5009_v47 }
0x17bb   :  { %v5218_v6 = vpop.permute.xlu0 %5217 }
0x17bd   :  { %v5270_v14 = vpop.permute.xlu1 %5269 }
0x17be   :  { %v8889_v49 = vpop.eup %8888  ;;  %v5275_v46 = vsel %vm620_vm10, %v5270_v14, 0 }
0x17bf   :  { %v5020_v51 = vmul.f32 %v8889_v49, %v8881_v27  ;;  %v5225_v27 = vsel %vm620_vm10, %v5220_v44, 0 }
0x17c1   :  { %v5024_v55 = vpack.c.bf16 %v5020_v51, %v5020_v51  ;;  %v5268_v40 = vpop.permute.xlu1 %5267 }
0x17c3   :  { %8557 = vmatmul.mubr.msk.bf16.vlgmr.msra.gmra.mrb[104].mxu1 %vm620_vm10, %v5024_v55 }
0x17c4   :  { %v8891_v62 = vpop.eup %8890  ;;  %8567 = vmatpush3.bf16.xpose.msra.mxu1 %v5275_v46  ;;  %8568 = vmatprep.mubr.msk.bf16.mxu1 %vm8949_vm9, %v12756_v3 }
0x17c5   :  { %v5019_v57 = vmul.f32 %v8891_v62, %v8883_v7  ;;  %8578 = vmatprep.subr.bf16.mxu1 %v12756_v3  ;;  %v5370_v1 = vpop.permute.xlu1 %5369  ;;  %v5320_v7 = vpop.permute.xlu0 %5319 }
0x17c6   :  { %v5375_v13 = vsel %vm620_vm10, %v5370_v1, 0  ;;  %v5325_v41 = vsel %vm620_vm10, %v5320_v7, 0 }
0x17c7   :  { %v5023_v9 = vpack.c.bf16 %v5019_v57, %v5019_v57 }
0x17c9   :  { %8551 = vmatmul.mubr.msk.bf16.vlgmr.msra.gmra.mrb[100].mxu0 %vm620_vm10, %v5023_v9  ;;  %v5368_v15 = vpop.permute.xlu1 %5367  ;;  %v5318_v34 = vpop.permute.xlu0 %5317 }
0x17ca   :  { %8561 = vmatpush3.bf16.xpose.msra.mxu0 %v5225_v27  ;;  %8562 = vmatprep.mubr.msk.bf16.mxu0 %vm8949_vm9, %v12756_v3 }
0x17cb   :  { %8569 = vmatmul.mubr.msk.bf16.vlgmr.msra.gmra.mrb[108].mxu1 %vm620_vm10, %v5268_v40  ;;  %8572 = vmatprep.subr.bf16.mxu0 %v12756_v3 }
0x17cc   :  { %8579 = vmatpush3.bf16.xpose.msra.mxu1 %v5375_v13  ;;  %8580 = vmatprep.mubr.msk.bf16.mxu1 %vm8949_vm9, %v12756_v3 }
0x17cd   :  { %8590 = vmatprep.subr.bf16.mxu1 %v12756_v3 }
0x17d1   :  { %8563 = vmatmul.mubr.msk.bf16.vlgmr.msra.gmra.mrb[104].mxu0 %vm620_vm10, %v5218_v6 }
0x17d2   :  { %8573 = vmatpush3.bf16.xpose.msra.mxu0 %v5325_v41  ;;  %8574 = vmatprep.mubr.msk.bf16.mxu0 %vm8949_vm9, %v12756_v3 }
0x17d3   :  { %8581 = vmatmul.mubr.msk.bf16.vlgmr.msra.gmra.mrb[112].mxu1 %vm620_vm10, %v5368_v15  ;;  %8584 = vmatprep.subr.bf16.mxu0 %v12756_v3 }
0x17d4   :  { %8592 = vmatprep.mubr.msk.bf16.mxu1 %vm8949_vm9, %v12756_v3 }
0x17d9   :  { %8575 = vmatmul.mubr.msk.bf16.vlgmr.msra.gmra.mrb[108].mxu0 %vm620_vm10, %v5318_v34 }
0x17da   :  { %8586 = vmatprep.mubr.msk.bf16.mxu0 %vm8949_vm9, %v12756_v3 }
0x1861   :  { %v11293_v35 = vpop.f32.mrb[100].mxu1 }
0x1862   :  { %v8546_v12 = vpop.f32.mrb[101].mxu1 }
0x1863   :  { %v11295_v5 = vpop.f32.mrb[96].mxu0  ;;  %v5118_v2 = vpop.f32.mrb[102].mxu1 }
0x1864   :  { %v8540_v32 = vpop.f32.mrb[97].mxu0  ;;  %v8547_v8 = vpop.f32.mrb[103].mxu1 }
0x1865   :  { %v5070_v54 = vpop.f32.mrb[98].mxu0 }
0x1866   :  { %v8541_v36 = vpop.f32.mrb[99].mxu0 }
0x1896   :  { %v11299_v26 = vpop.f32.mrb[104].mxu1 }
0x1897   :  { %v8558_v47 = vpop.f32.mrb[105].mxu1 }
0x1898   :  { %v5214_v14 = vpop.f32.mrb[106].mxu1 }
0x1899   :  { %v8559_v49 = vpop.f32.mrb[107].mxu1 }
0x189c   :  { %v11301_v51 = vpop.f32.mrb[100].mxu0 }
0x189d   :  { %v8735_v55 = vpack.i.bf16 %v11299_v26, %v11301_v51  ;;  %v8552_v44 = vpop.f32.mrb[101].mxu0 }
0x189e   :  { %v5166_v40 = vpop.f32.mrb[102].mxu0  ;;  %v5311_v46 = vpop.f32.mrb[108].mxu1 }
0x189f   :  { %v5418_v62 = vmul.f32 0.35355338, %v5311_v46  ;;  %v8553_v57 = vpop.f32.mrb[103].mxu0  ;;  %v8570_v9 = vpop.f32.mrb[109].mxu1 }
0x18a0   :  { %v5314_v6 = vpop.f32.mrb[110].mxu1 }
0x18a1   :  { %v8571_v1 = vpop.f32.mrb[111].mxu1  ;;  %v5424_v27 = vsel %vm620_vm10, %v5418_v62, -inf }
0x18a2   :  { %5425 = vmax.xlane.f32.xlu1 %v5424_v27 }
0x18a4   :  { %v5261_v13 = vpop.f32.mrb[104].mxu0 }
0x18a5   :  { %v5417_v7 = vmul.f32 0.35355338, %v5261_v13  ;;  %v8564_v41 = vpop.f32.mrb[105].mxu0 }
0x18a6   :  { %v5264_v15 = vpop.f32.mrb[106].mxu0  ;;  %v5411_v34 = vpop.f32.mrb[112].mxu1 }
0x18a7   :  { %v8565_v12 = vpop.f32.mrb[107].mxu0  ;;  %v8582_v2 = vpop.f32.mrb[113].mxu1  ;;  %v5421_v32 = vsel %vm620_vm10, %v5417_v7, -inf  ;;  %v5420_v44 = vmul.f32 0.35355338, %v5411_v34 }
0x18a8   :  { %5422 = vmax.xlane.f32.xlu0 %v5421_v32  ;;  %v5414_v8 = vpop.f32.mrb[114].mxu1 }
0x18a9   :  { %v8583_v54 = vpop.f32.mrb[115].mxu1  ;;  %v5430_v57 = vsel %vm620_vm10, %v5420_v44, -inf }
0x18ac   :  { %v5361_v36 = vpop.f32.mrb[108].mxu0 }
0x18ad   :  { %v5419_v47 = vmul.f32 0.35355338, %v5361_v36  ;;  %v8576_v14 = vpop.f32.mrb[109].mxu0 }
0x18ae   :  { %v5364_v49 = vpop.f32.mrb[110].mxu0 }
0x18af   :  { %v8577_v40 = vpop.f32.mrb[111].mxu0  ;;  %v5427_v46 = vsel %vm620_vm10, %v5419_v47, -inf }
0x18b0   :  { %5428 = vmax.xlane.f32.xlu0 %v5427_v46 }
0x18b3   :  { %5469 = vrot.lane.b32.xlu1 %v11101_v50, %s8957_s22 }
0x18b4   :  { %5431 = vmax.xlane.f32.xlu0 %v5430_v57 }
0x192f   :  { %v5426_v9 = vpop.xlane.xlu1 %5425 }
0x1930   :  { %v5434_v6 = vsub.f32 %v5418_v62, %v5426_v9 }
0x1932   :  { %v5439_v1 = vmul.f32 1.442695, %v5434_v6 }
0x1933   :  { %v5470_v27 = vpop.permute.xlu1 %5469 }
0x1934   :  { %8892 = vpow2.f32 %v5439_v1  ;;  %v5475_v13 = vsel %vm871_vm11, %v5470_v27, 0 }
0x1935   :  { %v5423_v41 = vpop.xlane.xlu0 %5422  ;;  %8585 = vmatpush3.bf16.msra.mxu0 %v5475_v13 }
0x1936   :  { %v5433_v15 = vsub.f32 %v5417_v7, %v5423_v41  ;;  %8596 = vmatprep.subr.bf16.mxu0 %v12756_v3 }
0x1938   :  { %v5437_v34 = vmul.f32 1.442695, %v5433_v15 }
0x193a   :  { %8894 = vpow2.f32 %v5437_v34 }
0x193d   :  { %v5429_v62 = vpop.xlane.xlu0 %5428 }
0x193e   :  { %v8893_v12 = vpop.eup %8892  ;;  %v5435_v14 = vsub.f32 %v5419_v47, %v5429_v62 }
0x193f   :  { %v5448_v2 = vsel %vm620_vm10, %v8893_v12, 0.0 }
0x1940   :  { %5449 = vadd.xlane.f32.xlu0 %v5448_v2  ;;  %v5441_v49 = vmul.f32 1.442695, %v5435_v14 }
0x1941   :  { %v5432_v7 = vpop.xlane.xlu0 %5431 }
0x1942   :  { %v5436_v54 = vsub.f32 %v5420_v44, %v5432_v7 }
0x1944   :  { %v8895_v32 = vpop.eup %8894  ;;  %v5443_v36 = vmul.f32 1.442695, %v5436_v54 }
0x1945   :  { %v5445_v8 = vsel %vm620_vm10, %v8895_v32, 0.0 }
0x1946   :  { %5446 = vadd.xlane.f32.xlu1 %v5445_v8  ;;  %8896 = vpow2.f32 %v5443_v36 }
0x1947   :  { %8898 = vpow2.f32 %v5441_v49 }
0x1950   :  { %v8897_v40 = vpop.eup %8896 }
0x1951   :  { %v5454_v46 = vsel %vm620_vm10, %v8897_v40, 0.0  ;;  %v8899_v57 = vpop.eup %8898 }
0x1952   :  { %v5451_v9 = vsel %vm620_vm10, %v8899_v57, 0.0 }
0x1956   :  { %5517 = vrot.lane.b32.xlu0 %v11103_v33, %s8957_s22 }
0x1957   :  { %5565 = vrot.lane.b32.xlu1 %v11107_v60, %s8957_s22 }
0x195b   :  { %5613 = vrot.lane.b32.xlu1 %v11113_v37, %s8957_s22 }
0x1975   :  { %5455 = vadd.xlane.f32.xlu0 %v5454_v46 }
0x197f   :  { %5452 = vadd.xlane.f32.xlu1 %v5451_v9 }
0x198b   :  { %5663 = vrot.lane.b32.xlu0 %v11101_v50, %s8958_s23 }
0x198f   :  { %5661 = vrot.lane.b32.xlu0 %v11101_v50, %s8959_s24 }
0x1990   :  { %5713 = vrot.lane.b32.xlu1 %v11103_v33, %s8958_s23 }
0x1993   :  { %5763 = vrot.lane.b32.xlu0 %v11107_v60, %s8958_s23 }
0x1994   :  { %5711 = vrot.lane.b32.xlu1 %v11103_v33, %s8959_s24 }
0x1997   :  { %5761 = vrot.lane.b32.xlu0 %v11107_v60, %s8959_s24 }
0x1998   :  { %5813 = vrot.lane.b32.xlu1 %v11113_v37, %s8958_s23 }
0x199c   :  { %5811 = vrot.lane.b32.xlu1 %v11113_v37, %s8959_s24 }
0x19cd   :  { %v5450_v47 = vpop.xlane.xlu0 %5449 }
0x19ce   :  { %8900 = vrcp.f32 %v5450_v47 }
0x19d1   :  { %v5518_v44 = vpop.permute.xlu0 %5517 }
0x19d2   :  { %v5523_v6 = vsel %vm871_vm11, %v5518_v44, 0 }
0x19d3   :  { %8591 = vmatpush3.bf16.msra.mxu1 %v5523_v6  ;;  %v5447_v1 = vpop.xlane.xlu1 %5446 }
0x19d4   :  { %8902 = vrcp.f32 %v5447_v1  ;;  %8602 = vmatprep.subr.bf16.mxu1 %v12756_v3 }
0x19d7   :  { %v5566_v27 = vpop.permute.xlu1 %5565 }
0x19d8   :  { %v8901_v13 = vpop.eup %8900  ;;  %v5571_v54 = vsel %vm871_vm11, %v5566_v27, 0 }
0x19d9   :  { %v5462_v41 = vmul.f32 %v8901_v13, %v8893_v12 }
0x19db   :  { %v5614_v15 = vpop.permute.xlu1 %5613  ;;  %v5466_v34 = vpack.c.bf16 %v5462_v41, %v5462_v41 }
0x19dc   :  { %v5619_v2 = vsel %vm871_vm11, %v5614_v15, 0 }
0x19dd   :  { %8593 = vmatmul.mubr.msk.bf16.vlgmr.msra.gmra.mrb[116].mxu1 %vm620_vm10, %v5466_v34 }
0x19de   :  { %v8903_v8 = vpop.eup %8902  ;;  %8603 = vmatpush3.bf16.msra.mxu1 %v5619_v2  ;;  %8604 = vmatprep.mubr.msk.bf16.mxu1 %vm8949_vm9, %v12756_v3 }
0x19df   :  { %v5461_v62 = vmul.f32 %v8903_v8, %v8895_v32  ;;  %8614 = vmatprep.subr.bf16.mxu1 %v12756_v3 }
0x19e1   :  { %v5465_v7 = vpack.c.bf16 %v5461_v62, %v5461_v62 }
0x19e3   :  { %8587 = vmatmul.mubr.msk.bf16.vlgmr.msra.gmra.mrb[112].mxu0 %vm620_vm10, %v5465_v7 }
0x19e4   :  { %8597 = vmatpush3.bf16.msra.mxu0 %v5571_v54  ;;  %8598 = vmatprep.mubr.msk.bf16.mxu0 %vm8949_vm9, %v12756_v3 }
0x19e5   :  { %8608 = vmatprep.subr.bf16.mxu0 %v12756_v3 }
0x1a02   :  { %v5456_v12 = vpop.xlane.xlu0 %5455 }
0x1a03   :  { %8904 = vrcp.f32 %v5456_v12 }
0x1a06   :  { %v5664_v44 = vpop.permute.xlu0 %5663 }
0x1a07   :  { %v5669_v15 = vsel %vm620_vm10, %v5664_v44, 0 }
0x1a0a   :  { %v5662_v41 = vpop.permute.xlu0 %5661 }
0x1a0c   :  { %v5453_v36 = vpop.xlane.xlu1 %5452 }
0x1a0d   :  { %v8905_v14 = vpop.eup %8904  ;;  %8906 = vrcp.f32 %v5453_v36 }
0x1a0e   :  { %v5464_v49 = vmul.f32 %v8905_v14, %v8897_v40 }
0x1a10   :  { %v5714_v32 = vpop.permute.xlu1 %5713  ;;  %v5468_v46 = vpack.c.bf16 %v5464_v49, %v5464_v49 }
0x1a11   :  { %v5719_v9 = vsel %vm620_vm10, %v5714_v32, 0 }
0x1a12   :  { %8605 = vmatmul.mubr.msk.bf16.vlgmr.msra.gmra.mrb[120].mxu1 %vm620_vm10, %v5468_v46 }
0x1a13   :  { %8615 = vmatpush3.bf16.xpose.msra.mxu1 %v5719_v9  ;;  %8616 = vmatprep.mubr.msk.bf16.mxu1 %vm8949_vm9, %v12756_v3 }
0x1a14   :  { %v5712_v47 = vpop.permute.xlu1 %5711  ;;  %8626 = vmatprep.subr.bf16.mxu1 %v12756_v3 }
0x1a17   :  { %v8907_v6 = vpop.eup %8906 }
0x1a18   :  { %v5463_v1 = vmul.f32 %v8907_v6, %v8899_v57  ;;  %v5814_v27 = vpop.permute.xlu1 %5813  ;;  %v5764_v57 = vpop.permute.xlu0 %5763 }
0x1a19   :  { %v5819_v13 = vsel %vm620_vm10, %v5814_v27, 0  ;;  %v5769_v2 = vsel %vm620_vm10, %v5764_v57, 0 }
0x1a1a   :  { %8617 = vmatmul.mubr.msk.bf16.vlgmr.msra.gmra.mrb[124].mxu1 %vm620_vm10, %v5712_v47  ;;  %v5467_v40 = vpack.c.bf16 %v5463_v1, %v5463_v1 }
0x1a1b   :  { %8627 = vmatpush3.bf16.xpose.msra.mxu1 %v5819_v13  ;;  %8628 = vmatprep.mubr.msk.bf16.mxu1 %vm8949_vm9, %v12756_v3 }
0x1a1c   :  { %8599 = vmatmul.mubr.msk.bf16.vlgmr.msra.gmra.mrb[116].mxu0 %vm620_vm10, %v5467_v40  ;;  %8638 = vmatprep.subr.bf16.mxu1 %v12756_v3  ;;  %v5812_v34 = vpop.permute.xlu1 %5811  ;;  %v5762_v8 = vpop.permute.xlu0 %5761 }
0x1a1d   :  { %8609 = vmatpush3.bf16.xpose.msra.mxu0 %v5669_v15  ;;  %8610 = vmatprep.mubr.msk.bf16.mxu0 %vm8949_vm9, %v12756_v3 }
0x1a1e   :  { %8620 = vmatprep.subr.bf16.mxu0 %v12756_v3 }
0x1a22   :  { %8629 = vmatmul.mubr.msk.bf16.vlgmr.msra.gmra.mrb[128].mxu1 %vm620_vm10, %v5812_v34 }
0x1a23   :  { %8640 = vmatprep.mubr.msk.bf16.mxu1 %vm8949_vm9, %v12756_v3 }
0x1a24   :  { %8611 = vmatmul.mubr.msk.bf16.vlgmr.msra.gmra.mrb[120].mxu0 %vm620_vm10, %v5662_v41 }
0x1a25   :  { %8621 = vmatpush3.bf16.xpose.msra.mxu0 %v5769_v2  ;;  %8622 = vmatprep.mubr.msk.bf16.mxu0 %vm8949_vm9, %v12756_v3 }
0x1a26   :  { %8632 = vmatprep.subr.bf16.mxu0 %v12756_v3 }
0x1a2c   :  { %8623 = vmatmul.mubr.msk.bf16.vlgmr.msra.gmra.mrb[124].mxu0 %vm620_vm10, %v5762_v8 }
0x1a2d   :  { %8634 = vmatprep.mubr.msk.bf16.mxu0 %vm8949_vm9, %v12756_v3 }
0x1ab0   :  { %v11377_v62 = vpop.f32.mrb[116].mxu1 }
0x1ab1   :  { %v8594_v7 = vpop.f32.mrb[117].mxu1 }
0x1ab2   :  { %v5562_v54 = vpop.f32.mrb[118].mxu1 }
0x1ab3   :  { %v8595_v12 = vpop.f32.mrb[119].mxu1 }
0x1ab6   :  { %v11379_v36 = vpop.f32.mrb[112].mxu0 }
0x1ab7   :  { %v8588_v49 = vpop.f32.mrb[113].mxu0 }
0x1ab8   :  { %v5514_v32 = vpop.f32.mrb[114].mxu0 }
0x1ab9   :  { %v8589_v46 = vpop.f32.mrb[115].mxu0 }
0x1ae5   :  { %v11383_v9 = vpop.f32.mrb[120].mxu1 }
0x1ae6   :  { %v8606_v47 = vpop.f32.mrb[121].mxu1 }
0x1ae7   :  { %v5658_v44 = vpop.f32.mrb[122].mxu1 }
0x1ae8   :  { %v8607_v6 = vpop.f32.mrb[123].mxu1 }
0x1aed   :  { %v5755_v1 = vpop.f32.mrb[124].mxu1 }
0x1aee   :  { %v5862_v27 = vmul.f32 0.35355338, %v5755_v1  ;;  %v8618_v13 = vpop.f32.mrb[125].mxu1 }
0x1aef   :  { %v11385_v40 = vpop.f32.mrb[116].mxu0  ;;  %v5758_v41 = vpop.f32.mrb[126].mxu1 }
0x1af0   :  { %v8745_v15 = vpack.i.bf16 %v11383_v9, %v11385_v40  ;;  %v8600_v57 = vpop.f32.mrb[117].mxu0  ;;  %v8619_v34 = vpop.f32.mrb[127].mxu1  ;;  %v5868_v2 = vsel %vm620_vm10, %v5862_v27, -inf }
0x1af1   :  { %v5610_v8 = vpop.f32.mrb[118].mxu0  ;;  %5869 = vmax.xlane.f32.xlu1 %v5868_v2 }
0x1af2   :  { %v8601_v7 = vpop.f32.mrb[119].mxu0 }
0x1af5   :  { %v5855_v54 = vpop.f32.mrb[128].mxu1 }
0x1af6   :  { %v8630_v12 = vpop.f32.mrb[129].mxu1  ;;  %v5864_v10 = vmul.f32 0.35355338, %v5855_v54 }
0x1af7   :  { %v5705_v49 = vpop.f32.mrb[120].mxu0  ;;  %v5858_v32 = vpop.f32.mrb[130].mxu1 }
0x1af8   :  { %v5861_v46 = vmul.f32 0.35355338, %v5705_v49  ;;  %v8612_v47 = vpop.f32.mrb[121].mxu0  ;;  %v8631_v44 = vpop.f32.mrb[131].mxu1  ;;  %v5874_v7 = vsel %vm620_vm10, %v5864_v10, -inf }
0x1af9   :  { %v5708_v6 = vpop.f32.mrb[122].mxu0 }
0x1afa   :  { %v8613_v1 = vpop.f32.mrb[123].mxu0  ;;  %v5865_v13 = vsel %vm620_vm10, %v5861_v46, -inf }
0x1afb   :  { %5866 = vmax.xlane.f32.xlu0 %v5865_v13 }
0x1aff   :  { %v5805_v41 = vpop.f32.mrb[124].mxu0 }
0x1b00   :  { %v5863_v57 = vmul.f32 0.35355338, %v5805_v41  ;;  %v8624_v34 = vpop.f32.mrb[125].mxu0 }
0x1b01   :  { %v5808_v14 = vpop.f32.mrb[126].mxu0 }
0x1b02   :  { %v8625_v8 = vpop.f32.mrb[127].mxu0  ;;  %5913 = vrot.lane.b32.xlu1 %v11101_v50, %s8960_s25  ;;  %v5871_v2 = vsel %vm620_vm10, %v5863_v57, -inf }
0x1b03   :  { %5872 = vmax.xlane.f32.xlu0 %v5871_v2 }
0x1b07   :  { %5875 = vmax.xlane.f32.xlu0 %v5874_v7 }
0x1b7e   :  { %v5870_v12 = vpop.xlane.xlu1 %5869 }
0x1b7f   :  { %v5878_v49 = vsub.f32 %v5862_v27, %v5870_v12 }
0x1b81   :  { %v5883_v32 = vmul.f32 1.442695, %v5878_v49 }
0x1b82   :  { %v5914_v47 = vpop.permute.xlu1 %5913 }
0x1b83   :  { %8908 = vpow2.f32 %v5883_v32  ;;  %v5919_v44 = vsel %vm871_vm11, %v5914_v47, 0 }
0x1b84   :  { %8633 = vmatpush3.bf16.msra.mxu0 %v5919_v44 }
0x1b85   :  { %8644 = vmatprep.subr.bf16.mxu0 %v12756_v3 }
0x1b88   :  { %v5867_v14 = vpop.xlane.xlu0 %5866 }
0x1b89   :  { %v5877_v54 = vsub.f32 %v5861_v46, %v5867_v14 }
0x1b8b   :  { %v5881_v6 = vmul.f32 1.442695, %v5877_v54 }
0x1b8d   :  { %v8909_v50 = vpop.eup %8908  ;;  %8910 = vpow2.f32 %v5881_v6 }
0x1b8e   :  { %v5892_v1 = vsel %vm620_vm10, %v8909_v50, 0.0 }
0x1b8f   :  { %5893 = vadd.xlane.f32.xlu0 %v5892_v1 }
0x1b90   :  { %v5873_v13 = vpop.xlane.xlu0 %5872 }
0x1b91   :  { %v5879_v41 = vsub.f32 %v5863_v57, %v5873_v13 }
0x1b93   :  { %v5885_v34 = vmul.f32 1.442695, %v5879_v41 }
0x1b94   :  { %v5876_v27 = vpop.xlane.xlu0 %5875 }
0x1b95   :  { %8912 = vpow2.f32 %v5885_v34  ;;  %v5880_v8 = vsub.f32 %v5864_v10, %v5876_v27  ;;  %v8772_v27 = vld [vmem:[%s12696_s3 + $0x10] sm:$0xff]  }
0x1b97   :  { %v8911_v2 = vpop.eup %8910  ;;  %v5887_v7 = vmul.f32 1.442695, %v5880_v8 }
0x1b98   :  { %v5889_v12 = vsel %vm620_vm10, %v8911_v2, 0.0 }
0x1b99   :  { %8914 = vpow2.f32 %v5887_v7  ;;  %5890 = vadd.xlane.f32.xlu1 %v5889_v12 }
0x1b9f   :  { %v8913_v49 = vpop.eup %8912 }
0x1ba0   :  { %v5895_v46 = vsel %vm620_vm10, %v8913_v49, 0.0 }
0x1ba1   :  { %5896 = vadd.xlane.f32.xlu1 %v5895_v46 }
0x1ba3   :  { %v8915_v32 = vpop.eup %8914 }
0x1ba4   :  { %v5898_v47 = vsel %vm620_vm10, %v8915_v32, 0.0 }
0x1ba5   :  { %5899 = vadd.xlane.f32.xlu0 %v5898_v47 }
0x1bb2   :  { %6009 = vrot.lane.b32.xlu1 %v11107_v60, %s8960_s25  ;;  %v12769_v60 = vpack.i.bf16 %v11293_v35, %v11295_v5 }
0x1bb6   :  { %6057 = vrot.lane.b32.xlu1 %v11113_v37, %s8960_s25  ;;  %v12770_v37 = vpack.i.bf16 %v11377_v62, %v11379_v36 }
0x1bba   :  { %8736 = vrot.lane.b32.xlu1 %v8735_v55, %s8961_s1 }
0x1bbb   :  { %5961 = vrot.lane.b32.xlu0 %v11103_v33, %s8960_s25 }
0x1bbe   :  { %8746 = vrot.lane.b32.xlu1 %v8745_v15, %s8962_s26 }
0x1bbf   :  { %8731 = vrot.lane.b32.xlu0 %v12769_v60, %s8961_s1 }
0x1bc3   :  { %8741 = vrot.lane.b32.xlu0 %v12770_v37, %s8962_s26 }
0x1c1c   :  { %v5894_v10 = vpop.xlane.xlu0 %5893 }
0x1c26   :  { %v5891_v26 = vpop.xlane.xlu1 %5890 }
0x1c27   :  { %8916 = vrcp.f32 %v5891_v26 }
0x1c28   :  { %8918 = vrcp.f32 %v5894_v10 }
0x1c2e   :  { %v5897_v33 = vpop.xlane.xlu1 %5896 }
0x1c2f   :  { %8920 = vrcp.f32 %v5897_v33 }
0x1c31   :  { %v8917_v51 = vpop.eup %8916 }
0x1c32   :  { %v8919_v55 = vpop.eup %8918  ;;  %v5905_v9 = vmul.f32 %v8917_v51, %v8911_v2  ;;  %v5900_v40 = vpop.xlane.xlu0 %5899 }
0x1c33   :  { %v6010_v15 = vpop.permute.xlu1 %6009  ;;  %8922 = vrcp.f32 %v5900_v40  ;;  %v5906_v35 = vmul.f32 %v8919_v55, %v8909_v50 }
0x1c34   :  { %v5909_v57 = vpack.c.bf16 %v5905_v9, %v5905_v9  ;;  %v6015_v5 = vsel %vm871_vm11, %v6010_v15, 0 }
0x1c35   :  { %v5910_v54 = vpack.c.bf16 %v5906_v35, %v5906_v35 }
0x1c36   :  { %v5962_v44 = vpop.permute.xlu0 %5961  ;;  %8635 = vmatmul.mubr.msk.bf16.vlgmr.msra.gmra.mrb[128].mxu0 %vm620_vm10, %v5909_v57 }
0x1c37   :  { %v5967_v62 = vsel %vm871_vm11, %v5962_v44, 0  ;;  %8645 = vmatpush3.bf16.msra.mxu0 %v6015_v5  ;;  %8646 = vmatprep.mubr.msk.bf16.mxu0 %vm8949_vm9, %v12756_v3  ;;  %v6058_v36 = vpop.permute.xlu1 %6057 }
0x1c38   :  { %8639 = vmatpush3.bf16.msra.mxu1 %v5967_v62  ;;  %v6063_v50 = vsel %vm871_vm11, %v6058_v36, 0  ;;  %8656 = vmatprep.subr.bf16.mxu0 %v8772_v27 }
0x1c39   :  { %v8921_v14 = vpop.eup %8920  ;;  %8650 = vmatprep.subr.bf16.mxu1 %v12756_v3 }
0x1c3a   :  { %v5907_v6 = vmul.f32 %v8921_v14, %v8913_v49  ;;  %v8732_v57 = vpop.permute.xlu0 %8731 }
0x1c3b   :  { %8641 = vmatmul.mubr.msk.bf16.vlgmr.msra.gmra.mrb[132].mxu1 %vm620_vm10, %v5910_v54  ;;  %v8734_v5 = vunpack.i.h.bf16 %v8732_v57  ;;  %v8733_v44 = vunpack.i.l.bf16 %v8732_v57  ;;  %v8737_v62 = vpop.permute.xlu1 %8736 }
0x1c3c   :  { %8651 = vmatpush3.bf16.msra.mxu1 %v6063_v50  ;;  %v5911_v1 = vpack.c.bf16 %v5907_v6, %v5907_v6  ;;  %8652 = vmatprep.mubr.msk.bf16.mxu1 %vm8949_vm9, %v12756_v3  ;;  %v8773_v3 = vld [vmem:[%s12696_s3 + $0x18] sm:$0xff]  }
0x1c3d   :  { %v8923_v13 = vpop.eup %8922  ;;  %v6154_v6 = vsel %vm620_vm10, %v11215_v42, %v8734_v5  ;;  %v6153_v50 = vsel %vm620_vm10, %v11213_v18, %v8733_v44 }
0x1c3e   :  { %v5908_v41 = vmul.f32 %v8923_v13, %v8915_v32  ;;  %8647 = vmatmul.mubr.msk.bf16.vlgmr.msra.gmra.mrb[132].mxu0 %vm620_vm10, %v5911_v1  ;;  %v8742_v35 = vpop.permute.xlu0 %8741 }
0x1c3f   :  { %8657 = vmatpush3.bf16.msra.mxu0 %v8772_v27  ;;  %v8744_v36 = vunpack.i.h.bf16 %v8742_v35  ;;  %v8743_v14 = vunpack.i.l.bf16 %v8742_v35  ;;  %v8747_v27 = vpop.permute.xlu1 %8746 }
0x1c40   :  { %v5912_v34 = vpack.c.bf16 %v5908_v41, %v5908_v41  ;;  %8658 = vmatprep.subr.bf16.mxu0 %v8773_v3 }
0x1c41   :  { %v6157_v41 = vsel %vm2443_vm12, %v6153_v50, %v8743_v14 }
0x1c43   :  { %8653 = vmatmul.mubr.msk.bf16.vlgmr.msra.gmra.mrb[136].mxu1 %vm620_vm10, %v5912_v34  ;;  %8659 = vmatpush3.bf16.msra.mxu0 %v8773_v3  ;;  %v6158_v34 = vsel %vm2443_vm12, %v6154_v6, %v8744_v36  ;;  %v8749_v3 = vunpack.i.h.bf16 %v8747_v27 }
0x1d09   :  { %v5955_v8 = vpop.f32.mrb[128].mxu0 }
0x1d0a   :  { %v8636_v2 = vpop.f32.mrb[129].mxu0 }
0x1d0b   :  { %v5958_v7 = vpop.f32.mrb[130].mxu0 }
0x1d0c   :  { %v8637_v12 = vpop.f32.mrb[131].mxu0 }
0x1d0d   :  { %v8739_v12 = vunpack.i.h.bf16 %v8737_v62 }
0x1d0e   :  { %v6003_v49 = vpop.f32.mrb[132].mxu1 }
0x1d0f   :  { %v8750_v46 = vpack.i.bf16 %v6003_v49, %v5955_v8  ;;  %v8642_v32 = vpop.f32.mrb[133].mxu1  ;;  %v8738_v49 = vunpack.i.l.bf16 %v8737_v62  ;;  %v6156_v18 = vsel %vm620_vm10, %v11217_v11, %v8739_v12  ;;  %v11464_v11 = vld [vmem:[%s12697_s8 + $0x8] sm:$0x3f] }
0x1d10   :  { %v6006_v47 = vpop.f32.mrb[134].mxu1 }
0x1d11   :  { %v8643_v60 = vpop.f32.mrb[135].mxu1  ;;  %8751 = vrot.lane.b32.xlu0 %v8750_v46, %s8963_s10  ;;  %v6051_v37 = vpop.f32.mrb[132].mxu0  ;;  %v8748_v46 = vunpack.i.l.bf16 %v8747_v27  ;;  %v6155_v32 = vsel %vm620_vm10, %v11219_v0, %v8738_v49 }
0x1d12   :  { %v8648_v10 = vpop.f32.mrb[133].mxu0 }
0x1d13   :  { %v6054_v26 = vpop.f32.mrb[134].mxu0  ;;  %v6160_v10 = vsel %vm2443_vm12, %v6156_v18, %v8749_v3 }
0x1d14   :  { %v8649_v33 = vpop.f32.mrb[135].mxu0 }
0x1d16   :  { %v6099_v51 = vpop.f32.mrb[136].mxu1 }
0x1d17   :  { %v8755_v55 = vpack.i.bf16 %v6099_v51, %v6051_v37  ;;  %v8654_v9 = vpop.f32.mrb[137].mxu1  ;;  %v6159_v37 = vsel %vm2443_vm12, %v6155_v32, %v8748_v46 }
0x1d18   :  { %v6102_v40 = vpop.f32.mrb[138].mxu1 }
0x1d19   :  { %8756 = vrot.lane.b32.xlu1 %v8755_v55, %s8963_s10  ;;  %v8655_v15 = vpop.f32.mrb[139].mxu1  ;;  %v12771_v55 = vld [vmem:[#allocation7_spill] sm:$0xff] }
0x1d1a   :  { %v6175_v0 = vrot.slane %v11464_v11, %v12771_v55 }
0x1d83   :  { %v8752_v54 = vpop.permute.xlu0 %8751 }
0x1d84   :  { %v8754_v1 = vunpack.i.h.bf16 %v8752_v54  ;;  %v8753_v13 = vunpack.i.l.bf16 %v8752_v54 }
0x1d86   :  { %v6162_v8 = vsel %vm2448_vm13, %v6158_v34, %v8754_v1  ;;  %v6161_v2 = vsel %vm2448_vm13, %v6157_v41, %v8753_v13 }
0x1d87   :  { %v6165_v7 = vpack.c.bf16 %v6162_v8, %v6161_v2 }
0x1d89   :  { %8660 = vmatprep.mubr.msk.bf16.mxu0 %vm557_vm8, %v6165_v7 }
0x1d8b   :  { %v8757_v42 = vpop.permute.xlu1 %8756 }
0x1d8c   :  { %v8759_v47 = vunpack.i.h.bf16 %v8757_v42  ;;  %v8758_v60 = vunpack.i.l.bf16 %v8757_v42 }
0x1d8e   :  { %v6163_v26 = vsel %vm2448_vm13, %v6159_v37, %v8758_v60  ;;  %v6164_v33 = vsel %vm2448_vm13, %v6160_v10, %v8759_v47 }
0x1d8f   :  { %v6166_v51 = vpack.c.bf16 %v6164_v33, %v6163_v26 }
0x1d91   :  { %8661 = vmatmul.mubr.msk.bf16.vlgmr.msra.gmra.mrb[136].mxu0 %vm557_vm8, %v6166_v51 }
0x1e64   :  { %v8662_v9 = vpop.f32.mrb[136].mxu0 }
0x1e65   :  { %v11468_v40 = vadd.f32 %v8662_v9, %v6175_v0  ;;  %v6228_v15 = vpop.f32.mrb[137].mxu0 }
0x1e66   :  { %v6229_v57 = vadd.f32 %v6228_v15, %v6175_v0  ;;  %v8663_v35 = vpop.f32.mrb[138].mxu0 }
0x1e67   :  { %v11470_v5 = vadd.f32 %v8663_v35, %v6175_v0  ;;  %v6231_v44 = vpop.f32.mrb[139].mxu0  ;;  %v6261_v62 = vrot.slane %v11468_v40, 1  ;;  %v6262_v36 = vrot.slane %v11468_v40, 2  ;;  %v6263_v7 = vrot.slane %v11468_v40, 3 }
0x1e68   :  { %v6232_v14 = vadd.f32 %v6231_v44, %v6175_v0  ;;  %v6247_v54 = vrot.slane %v6229_v57, 1  ;;  %v6248_v6 = vrot.slane %v6229_v57, 2  ;;  %v6249_v50 = vrot.slane %v6229_v57, 3  ;;  %v12773_v44 = vld [vmem:[#allocation8_spill] sm:$0xff] }
0x1e69   :  { %v6250_v1 = vrot.slane %v6229_v57, 4  ;;  %v6251_v13 = vrot.slane %v6229_v57, 5  ;;  %v6252_v41 = vrot.slane %v6229_v57, 6  ;;  %v6253_v34 = vrot.slane %v6229_v57, 7 }
0x1e6a   :  { %v11475_v27 = vadd.f32 %v6247_v54, %v10862_v16  ;;  %v11478_v8 = vadd.f32 %v6248_v6, %v10865_v20  ;;  %v11481_v2 = vadd.f32 %v6249_v50, %v10868_v52  ;;  %v11485_v12 = vadd.f32 %v6229_v57, %v10859_v61  ;;  %v12772_v57 = vld [vmem:[#allocation3_spill] sm:$0xff]  ;;  %v12774_v6 = vld [vmem:[#allocation4_spill] sm:$0xff] }
0x1e6b   :  { %v11488_v49 = vadd.f32 %v6250_v1, %v10871_v38  ;;  %v11491_v3 = vadd.f32 %v6251_v13, %v10874_v58  ;;  %v11494_v16 = vadd.f32 %v6252_v41, %v10893_v30  ;;  %v11497_v20 = vadd.f32 %v6253_v34, %v10902_v59  ;;  %v12775_v13 = vld [vmem:[#allocation5_spill] sm:$0xff] }
0x1e6c   :  { %v6371_v52 = vrot.slane %v11475_v27, 7  ;;  %v6373_v46 = vrot.slane %v11478_v8, 6  ;;  %v6254_v42 = vrot.slane %v6232_v14, 1  ;;  %v6375_v61 = vrot.slane %v11481_v2, 5 }
0x1e6d   :  { %v6377_v18 = vrot.slane %v11488_v49, 4  ;;  %v6379_v38 = vrot.slane %v11491_v3, 3  ;;  %v6381_v58 = vrot.slane %v11494_v16, 2  ;;  %v6255_v32 = vrot.slane %v6232_v14, 2 }
0x1e6e   :  { %v6372_v30 = vsel %vm481_vm1, %v6371_v52, %v11485_v12  ;;  %v6256_v47 = vrot.slane %v6232_v14, 3  ;;  %v6257_v59 = vrot.slane %v6232_v14, 4  ;;  %v6258_v37 = vrot.slane %v6232_v14, 5 }
0x1e6f   :  { %v6374_v60 = vsel %vm484_vm2, %v6373_v46, %v6372_v30  ;;  %v6259_v10 = vrot.slane %v6232_v14, 6  ;;  %v6260_v26 = vrot.slane %v6232_v14, 7  ;;  %v6383_v51 = vrot.slane %v11497_v20, 1  ;;  %v12777_v46 = vld [vmem:[#allocation10_spill] sm:$0xff] }
0x1e70   :  { %v6376_v33 = vsel %vm487_vm3, %v6375_v61, %v6374_v60  ;;  %v11511_v0 = vadd.f32 %v6254_v42, %v10896_v25  ;;  %v11514_v9 = vadd.f32 %v6255_v32, %v10899_v56  ;;  %v11518_v35 = vadd.f32 %v6256_v47, %v12772_v57  ;;  %v12776_v25 = vld [vmem:[#allocation9_spill] sm:$0xff] }
0x1e71   :  { %v6378_v15 = vsel %vm490_vm4, %v6377_v18, %v6376_v33  ;;  %v11521_v54 = vadd.f32 %v6257_v59, %v12773_v44  ;;  %v11524_v50 = vadd.f32 %v6258_v37, %v12774_v6  ;;  %v11528_v41 = vadd.f32 %v6232_v14, %v12775_v13 }
0x1e72   :  { %v6380_v1 = vsel %vm493_vm5, %v6379_v38, %v6378_v15  ;;  %v11531_v34 = vadd.f32 %v6259_v10, %v12776_v25  ;;  %v6385_v56 = vrot.slane %v11511_v0, 7  ;;  %v11536_v42 = vadd.f32 %v6260_v26, %v12777_v46 }
0x1e73   :  { %v6382_v52 = vsel %vm496_vm6, %v6381_v58, %v6380_v1  ;;  %v6387_v61 = vrot.slane %v11514_v9, 6  ;;  %v6389_v18 = vrot.slane %v11518_v35, 5  ;;  %v6391_v38 = vrot.slane %v11521_v54, 4 }
0x1e74   :  { %v6384_v30 = vsel %vm499_vm7, %v6383_v51, %v6382_v52  ;;  %v6386_v14 = vsel %vm481_vm1, %v6385_v56, %v11528_v41  ;;  %v6393_v32 = vrot.slane %v11524_v50, 3  ;;  %v6395_v59 = vrot.slane %v11531_v34, 2 }
0x1e75   :  { %v6431_v47 = vsel %vm557_vm8, %v6384_v30, 0.0  ;;  %v6388_v58 = vsel %vm484_vm2, %v6387_v61, %v6386_v14  ;;  %v6264_v60 = vrot.slane %v11468_v40, 4  ;;  %v6265_v10 = vrot.slane %v11468_v40, 5 }
0x1e76   :  { %6432 = vadd.xlane.f32.xlu0 %v6431_v47  ;;  %v6390_v37 = vsel %vm487_vm3, %v6389_v18, %v6388_v58  ;;  %v6266_v26 = vrot.slane %v11468_v40, 6  ;;  %v6267_v33 = vrot.slane %v11468_v40, 7  ;;  %v6397_v15 = vrot.slane %v11536_v42, 1 }
0x1e77   :  { %v6392_v51 = vsel %vm490_vm4, %v6391_v38, %v6390_v37  ;;  %v11558_v57 = vadd.f32 %v6261_v62, %v11000_v19  ;;  %v11563_v44 = vadd.f32 %v6262_v36, %v11003_v39  ;;  %v11567_v1 = vadd.f32 %v6263_v7, %v11011_v29 }
0x1e78   :  { %v6394_v6 = vsel %vm493_vm5, %v6393_v32, %v6392_v51  ;;  %v11570_v13 = vadd.f32 %v6264_v60, %v11014_v4  ;;  %v11573_v25 = vadd.f32 %v6265_v10, %v11017_v53  ;;  %v11578_v19 = vadd.f32 %v11468_v40, %v11008_v45 }
0x1e79   :  { %v6396_v56 = vsel %vm496_vm6, %v6395_v59, %v6394_v6  ;;  %v11581_v39 = vadd.f32 %v6266_v26, %v11026_v43  ;;  %v6399_v62 = vrot.slane %v11558_v57, 7  ;;  %v11586_v36 = vadd.f32 %v6267_v33, %v11029_v22 }
0x1e7a   :  { %v6398_v29 = vsel %vm499_vm7, %v6397_v15, %v6396_v56  ;;  %v6401_v4 = vrot.slane %v11563_v44, 6  ;;  %v6403_v53 = vrot.slane %v11567_v1, 5  ;;  %v6405_v40 = vrot.slane %v11570_v13, 4 }
0x1e7b   :  { %v6434_v7 = vsel %vm557_vm8, %v6398_v29, 0.0  ;;  %v6400_v45 = vsel %vm481_vm1, %v6399_v62, %v11578_v19  ;;  %v6407_v43 = vrot.slane %v11573_v25, 3  ;;  %v6409_v46 = vrot.slane %v11581_v39, 2 }
0x1e7c   :  { %6435 = vadd.xlane.f32.xlu1 %v6434_v7  ;;  %v6402_v52 = vsel %vm484_vm2, %v6401_v4, %v6400_v45  ;;  %v6268_v22 = vrot.slane %v11470_v5, 1  ;;  %v6269_v61 = vrot.slane %v11470_v5, 2  ;;  %v6270_v30 = vrot.slane %v11470_v5, 3 }
0x1e7d   :  { %v6404_v18 = vsel %vm487_vm3, %v6403_v53, %v6402_v52  ;;  %v6271_v14 = vrot.slane %v11470_v5, 4  ;;  %v6272_v38 = vrot.slane %v11470_v5, 5  ;;  %v6411_v47 = vrot.slane %v11586_v36, 1 }
0x1e7e   :  { %v6406_v32 = vsel %vm490_vm4, %v6405_v40, %v6404_v18  ;;  %v6273_v58 = vrot.slane %v11470_v5, 6  ;;  %v6274_v59 = vrot.slane %v11470_v5, 7  ;;  %v11609_v37 = vadd.f32 %v6268_v22, %v11020_v28 }
0x1e7f   :  { %v6408_v60 = vsel %vm493_vm5, %v6407_v43, %v6406_v32  ;;  %v11612_v10 = vadd.f32 %v6269_v61, %v11023_v48  ;;  %v11615_v26 = vadd.f32 %v6270_v30, %v11035_v17  ;;  %v11620_v51 = vadd.f32 %v11470_v5, %v11032_v31 }
0x1e80   :  { %v6410_v33 = vsel %vm496_vm6, %v6409_v46, %v6408_v60  ;;  %v11623_v15 = vadd.f32 %v6271_v14, %v11038_v63  ;;  %v11627_v28 = vadd.f32 %v6272_v38, %v11041_v21  ;;  %v6413_v48 = vrot.slane %v11609_v37, 7 }
0x1e81   :  { %v6412_v6 = vsel %vm499_vm7, %v6411_v47, %v6410_v33  ;;  %v6415_v56 = vrot.slane %v11612_v10, 6  ;;  %v11633_v62 = vadd.f32 %v6273_v58, %v11048_v23  ;;  %v11636_v31 = vadd.f32 %v6274_v59, %v11051_v24 }
0x1e82   :  { %v6437_v17 = vsel %vm557_vm8, %v6412_v6, 0.0  ;;  %v6414_v63 = vsel %vm481_vm1, %v6413_v48, %v11620_v51  ;;  %v6417_v5 = vrot.slane %v11615_v26, 5  ;;  %v6419_v29 = vrot.slane %v11623_v15, 4 }
0x1e83   :  { %6438 = vadd.xlane.f32.xlu0 %v6437_v17  ;;  %v6416_v21 = vsel %vm484_vm2, %v6415_v56, %v6414_v63  ;;  %v6421_v53 = vrot.slane %v11627_v28, 3  ;;  %v6423_v7 = vrot.slane %v11633_v62, 2  ;;  %v6425_v45 = vrot.slane %v11636_v31, 1 }
0x1e84   :  { %v6418_v4 = vsel %vm487_vm3, %v6417_v5, %v6416_v21 }
0x1e85   :  { %v6420_v23 = vsel %vm490_vm4, %v6419_v29, %v6418_v4 }
0x1e86   :  { %v6422_v24 = vsel %vm493_vm5, %v6421_v53, %v6420_v23 }
0x1e87   :  { %v6424_v40 = vsel %vm496_vm6, %v6423_v7, %v6422_v24 }
0x1e88   :  { %v6426_v43 = vsel %vm499_vm7, %v6425_v45, %v6424_v40 }
0x1e89   :  { %v6440_v52 = vsel %vm557_vm8, %v6426_v43, 0.0 }
0x1e8a   :  { %6441 = vadd.xlane.f32.xlu0 %v6440_v52 }
0x1f03   :  { %v6433_v46 = vpop.xlane.xlu0 %6432 }
0x1f04   :  { %v6443_v22 = vmul.f32 0.03125, %v6433_v46 }
0x1f06   :  { %v6451_v61 = vrot.slane %v6443_v22, 1  ;;  %v6452_v18 = vrot.slane %v6443_v22, 2  ;;  %v6453_v30 = vrot.slane %v6443_v22, 3  ;;  %v6454_v14 = vrot.slane %v6443_v22, 4 }
0x1f07   :  { %v6455_v38 = vrot.slane %v6443_v22, 5  ;;  %v6456_v32 = vrot.slane %v6443_v22, 6  ;;  %v6457_v47 = vrot.slane %v6443_v22, 7  ;;  %v11653_v58 = vsub.f32 %v11485_v12, %v6443_v22 }
0x1f08   :  { %v11656_v59 = vsub.f32 %v11475_v27, %v6451_v61  ;;  %v11659_v60 = vsub.f32 %v11478_v8, %v6452_v18  ;;  %v11662_v33 = vsub.f32 %v11481_v2, %v6453_v30  ;;  %v11665_v6 = vsub.f32 %v11488_v49, %v6454_v14 }
0x1f09   :  { %v6436_v48 = vpop.xlane.xlu1 %6435  ;;  %v11668_v56 = vsub.f32 %v11491_v3, %v6455_v38  ;;  %v11671_v17 = vsub.f32 %v11494_v16, %v6456_v32  ;;  %v11674_v12 = vsub.f32 %v11497_v20, %v6457_v47  ;;  %v6543_v27 = vmul.f32 %v11653_v58, %v11653_v58 }
0x1f0a   :  { %v6444_v8 = vmul.f32 0.03125, %v6436_v48  ;;  %v6544_v2 = vmul.f32 %v11656_v59, %v11656_v59  ;;  %v6545_v49 = vmul.f32 %v11659_v60, %v11659_v60  ;;  %v6546_v3 = vmul.f32 %v11662_v33, %v11662_v33 }
0x1f0b   :  { %v6547_v16 = vmul.f32 %v11665_v6, %v11665_v6  ;;  %v6548_v20 = vmul.f32 %v11668_v56, %v11668_v56  ;;  %v6549_v63 = vmul.f32 %v11671_v17, %v11671_v17  ;;  %v6550_v5 = vmul.f32 %v11674_v12, %v11674_v12 }
0x1f0c   :  { %v6607_v21 = vrot.slane %v6544_v2, 7  ;;  %v6609_v29 = vrot.slane %v6545_v49, 6  ;;  %v6611_v4 = vrot.slane %v6546_v3, 5  ;;  %v6458_v53 = vrot.slane %v6444_v8, 1 }
0x1f0d   :  { %v6613_v23 = vrot.slane %v6547_v16, 4  ;;  %v6615_v7 = vrot.slane %v6548_v20, 3  ;;  %v6617_v24 = vrot.slane %v6549_v63, 2  ;;  %v6619_v45 = vrot.slane %v6550_v5, 1 }
0x1f0e   :  { %v6608_v40 = vsel %vm481_vm1, %v6607_v21, %v6543_v27  ;;  %v6459_v43 = vrot.slane %v6444_v8, 2  ;;  %v6460_v52 = vrot.slane %v6444_v8, 3  ;;  %v6461_v46 = vrot.slane %v6444_v8, 4 }
0x1f0f   :  { %v6610_v22 = vsel %vm484_vm2, %v6609_v29, %v6608_v40  ;;  %v6462_v61 = vrot.slane %v6444_v8, 5  ;;  %v6463_v18 = vrot.slane %v6444_v8, 6  ;;  %v6464_v30 = vrot.slane %v6444_v8, 7 }
0x1f10   :  { %v6439_v14 = vpop.xlane.xlu0 %6438  ;;  %v6612_v38 = vsel %vm487_vm3, %v6611_v4, %v6610_v22  ;;  %v11696_v32 = vsub.f32 %v11528_v41, %v6444_v8  ;;  %v11699_v47 = vsub.f32 %v11511_v0, %v6458_v53  ;;  %v11702_v48 = vsub.f32 %v11514_v9, %v6459_v43 }
0x1f11   :  { %v6445_v27 = vmul.f32 0.03125, %v6439_v14  ;;  %v6614_v2 = vsel %vm490_vm4, %v6613_v23, %v6612_v38  ;;  %v11706_v49 = vsub.f32 %v11518_v35, %v6460_v52  ;;  %v11709_v3 = vsub.f32 %v11521_v54, %v6461_v46 }
0x1f12   :  { %v6616_v16 = vsel %vm493_vm5, %v6615_v7, %v6614_v2  ;;  %v11713_v41 = vsub.f32 %v11524_v50, %v6462_v61  ;;  %v11716_v0 = vsub.f32 %v11531_v34, %v6463_v18  ;;  %v11719_v9 = vsub.f32 %v11536_v42, %v6464_v30 }
0x1f13   :  { %v6618_v8 = vsel %vm496_vm6, %v6617_v24, %v6616_v16  ;;  %v6551_v35 = vmul.f32 %v11696_v32, %v11696_v32  ;;  %v6552_v54 = vmul.f32 %v11699_v47, %v11699_v47  ;;  %v6553_v20 = vmul.f32 %v11702_v48, %v11702_v48 }
0x1f14   :  { %v6620_v50 = vsel %vm499_vm7, %v6619_v45, %v6618_v8  ;;  %v6554_v34 = vmul.f32 %v11706_v49, %v11706_v49  ;;  %v6555_v42 = vmul.f32 %v11709_v3, %v11709_v3  ;;  %v6556_v63 = vmul.f32 %v11713_v41, %v11713_v41 }
0x1f15   :  { %v6667_v5 = vsel %vm557_vm8, %v6620_v50, 0.0  ;;  %v6557_v21 = vmul.f32 %v11716_v0, %v11716_v0  ;;  %v6558_v29 = vmul.f32 %v11719_v9, %v11719_v9  ;;  %v6621_v4 = vrot.slane %v6552_v54, 7 }
0x1f16   :  { %6668 = vadd.xlane.f32.xlu1 %v6667_v5  ;;  %v6623_v53 = vrot.slane %v6553_v20, 6  ;;  %v6625_v23 = vrot.slane %v6554_v34, 5  ;;  %v6627_v7 = vrot.slane %v6555_v42, 4  ;;  %v6629_v24 = vrot.slane %v6556_v63, 3 }
0x1f17   :  { %v6622_v45 = vsel %vm481_vm1, %v6621_v4, %v6551_v35  ;;  %v6631_v40 = vrot.slane %v6557_v21, 2  ;;  %v6633_v43 = vrot.slane %v6558_v29, 1  ;;  %v6465_v52 = vrot.slane %v6445_v27, 1  ;;  %v6442_v46 = vpop.xlane.xlu0 %6441 }
0x1f18   :  { %v6624_v22 = vsel %vm484_vm2, %v6623_v53, %v6622_v45  ;;  %v6466_v61 = vrot.slane %v6445_v27, 2  ;;  %v6467_v18 = vrot.slane %v6445_v27, 3  ;;  %v6468_v30 = vrot.slane %v6445_v27, 4 }
0x1f19   :  { %v6446_v14 = vmul.f32 0.03125, %v6442_v46  ;;  %v6626_v38 = vsel %vm487_vm3, %v6625_v23, %v6624_v22  ;;  %v6469_v2 = vrot.slane %v6445_v27, 5  ;;  %v6470_v16 = vrot.slane %v6445_v27, 6 }
0x1f1a   :  { %v6628_v8 = vsel %vm490_vm4, %v6627_v7, %v6626_v38  ;;  %v6471_v54 = vrot.slane %v6445_v27, 7  ;;  %v11745_v20 = vsub.f32 %v11578_v19, %v6445_v27  ;;  %v11748_v35 = vsub.f32 %v11558_v57, %v6465_v52 }
0x1f1b   :  { %v6630_v50 = vsel %vm493_vm5, %v6629_v24, %v6628_v8  ;;  %v11752_v34 = vsub.f32 %v11563_v44, %v6466_v61  ;;  %v11755_v42 = vsub.f32 %v11567_v1, %v6467_v18  ;;  %v11758_v63 = vsub.f32 %v11570_v13, %v6468_v30 }
0x1f1c   :  { %v6632_v5 = vsel %vm496_vm6, %v6631_v40, %v6630_v50  ;;  %v11762_v21 = vsub.f32 %v11573_v25, %v6469_v2  ;;  %v11765_v19 = vsub.f32 %v11581_v39, %v6470_v16  ;;  %v11768_v57 = vsub.f32 %v11586_v36, %v6471_v54 }
0x1f1d   :  { %v6634_v44 = vsel %vm499_vm7, %v6633_v43, %v6632_v5  ;;  %v6559_v1 = vmul.f32 %v11745_v20, %v11745_v20  ;;  %v6560_v13 = vmul.f32 %v11748_v35, %v11748_v35  ;;  %v6561_v27 = vmul.f32 %v11752_v34, %v11752_v34 }
0x1f1e   :  { %v6670_v25 = vsel %vm557_vm8, %v6634_v44, 0.0  ;;  %v6562_v39 = vmul.f32 %v11755_v42, %v11755_v42  ;;  %v6563_v36 = vmul.f32 %v11758_v63, %v11758_v63  ;;  %v6564_v29 = vmul.f32 %v11762_v21, %v11762_v21 }
0x1f1f   :  { %6671 = vadd.xlane.f32.xlu0 %v6670_v25  ;;  %v6565_v4 = vmul.f32 %v11765_v19, %v11765_v19  ;;  %v6566_v53 = vmul.f32 %v11768_v57, %v11768_v57  ;;  %v6635_v23 = vrot.slane %v6560_v13, 7  ;;  %v6637_v7 = vrot.slane %v6561_v27, 6 }
0x1f20   :  { %v6639_v24 = vrot.slane %v6562_v39, 5  ;;  %v6641_v45 = vrot.slane %v6563_v36, 4  ;;  %v6472_v40 = vrot.slane %v6446_v14, 1  ;;  %v6643_v52 = vrot.slane %v6564_v29, 3 }
0x1f21   :  { %v6636_v43 = vsel %vm481_vm1, %v6635_v23, %v6559_v1  ;;  %v6645_v46 = vrot.slane %v6565_v4, 2  ;;  %v6473_v22 = vrot.slane %v6446_v14, 2  ;;  %v6474_v18 = vrot.slane %v6446_v14, 3 }
0x1f22   :  { %v6638_v61 = vsel %vm484_vm2, %v6637_v7, %v6636_v43  ;;  %v6475_v30 = vrot.slane %v6446_v14, 4  ;;  %v6476_v38 = vrot.slane %v6446_v14, 5  ;;  %v6647_v16 = vrot.slane %v6566_v53, 1 }
0x1f23   :  { %v6640_v2 = vsel %vm487_vm3, %v6639_v24, %v6638_v61  ;;  %v6477_v8 = vrot.slane %v6446_v14, 6  ;;  %v6478_v54 = vrot.slane %v6446_v14, 7  ;;  %v11793_v5 = vsub.f32 %v11609_v37, %v6472_v40 }
0x1f24   :  { %v6642_v50 = vsel %vm490_vm4, %v6641_v45, %v6640_v2  ;;  %v11796_v44 = vsub.f32 %v11612_v10, %v6473_v22  ;;  %v11799_v1 = vsub.f32 %v11615_v26, %v6474_v18  ;;  %v11803_v27 = vsub.f32 %v11620_v51, %v6446_v14 }
0x1f25   :  { %v6644_v13 = vsel %vm493_vm5, %v6643_v52, %v6642_v50  ;;  %v11806_v25 = vsub.f32 %v11623_v15, %v6475_v30  ;;  %v11809_v39 = vsub.f32 %v11627_v28, %v6476_v38  ;;  %v11813_v36 = vsub.f32 %v11633_v62, %v6477_v8  ;;  %v8774_v8 = vld [vmem:[%s12698_s4 + $0x10] sm:$0xff]   ;;  %v8776_v50 = vld [vmem:[%s12699_s5 + $0x20] sm:$0xff]  }
0x1f26   :  { %v6646_v37 = vsel %vm496_vm6, %v6645_v46, %v6644_v13  ;;  %v6568_v10 = vmul.f32 %v11793_v5, %v11793_v5  ;;  %v11819_v29 = vsub.f32 %v11636_v31, %v6478_v54  ;;  %v6569_v51 = vmul.f32 %v11796_v44, %v11796_v44  ;;  %8664 = vmatprep.subr.bf16.mxu1 %v8774_v8  ;;  %v8775_v54 = vld [vmem:[%s12698_s4 + $0x18] sm:$0xff]   ;;  %v8777_v13 = vld [vmem:[%s12699_s5 + $0x28] sm:$0xff]  }
0x1f27   :  { %v6648_v26 = vsel %vm499_vm7, %v6647_v16, %v6646_v37  ;;  %v6570_v15 = vmul.f32 %v11799_v1, %v11799_v1  ;;  %v6571_v62 = vmul.f32 %v11806_v25, %v11806_v25  ;;  %v6567_v14 = vmul.f32 %v11803_v27, %v11803_v27  ;;  %8665 = vmatpush3.bf16.msra.mxu1 %v8774_v8 }
0x1f28   :  { %v6673_v28 = vsel %vm557_vm8, %v6648_v26, 0.0  ;;  %v6572_v4 = vmul.f32 %v11809_v39, %v11809_v39  ;;  %v6649_v31 = vrot.slane %v6568_v10, 7  ;;  %v6651_v53 = vrot.slane %v6569_v51, 6  ;;  %8666 = vmatprep.subr.bf16.mxu1 %v8775_v54  ;;  %8672 = vmatprep.subr.bf16.mxu0 %v8776_v50 }
0x1f29   :  { %6674 = vadd.xlane.f32.xlu1 %v6673_v28  ;;  %v6573_v23 = vmul.f32 %v11813_v36, %v11813_v36  ;;  %v6574_v7 = vmul.f32 %v11819_v29, %v11819_v29  ;;  %v6653_v45 = vrot.slane %v6570_v15, 5  ;;  %v6655_v43 = vrot.slane %v6571_v62, 4  ;;  %8673 = vmatpush3.bf16.msra.mxu0 %v8776_v50 }
0x1f2a   :  { %v6650_v24 = vsel %vm481_vm1, %v6649_v31, %v6567_v14  ;;  %v6657_v46 = vrot.slane %v6572_v4, 3  ;;  %8674 = vmatprep.subr.bf16.mxu0 %v8777_v13  ;;  %v12778_v14 = vld [vmem:[#allocation2_spill] sm:$0xff] }
0x1f2b   :  { %v6652_v40 = vsel %vm484_vm2, %v6651_v53, %v6650_v24  ;;  %v6659_v61 = vrot.slane %v6573_v23, 2  ;;  %v6661_v30 = vrot.slane %v6574_v7, 1  ;;  %8667 = vmatpush3.bf16.msra.mxu1 %v8775_v54  ;;  %v11858_v4 = vrot.slane %v11464_v11, %v12778_v14  ;;  %v12779_v31 = vld [vmem:[#allocation6_spill] sm:$0xff] }
0x1f2c   :  { %v6654_v52 = vsel %vm487_vm3, %v6653_v45, %v6652_v40  ;;  %v12780_v53 = vsub.s32 2, %v12779_v31 }
0x1f2d   :  { %v6656_v22 = vsel %vm490_vm4, %v6655_v43, %v6654_v52  ;;  %8675 = vmatpush3.bf16.msra.mxu0 %v8777_v13 }
0x1f2e   :  { %v6658_v18 = vsel %vm493_vm5, %v6657_v46, %v6656_v22  ;;  %v11863_v23 = vrot.slane %v11464_v11, %v12780_v53 }
0x1f2f   :  { %v6660_v38 = vsel %vm496_vm6, %v6659_v61, %v6658_v18 }
0x1f30   :  { %v6662_v2 = vsel %vm499_vm7, %v6661_v30, %v6660_v38 }
0x1f31   :  { %v6676_v16 = vsel %vm557_vm8, %v6662_v2, 0.0 }
0x1f32   :  { %6677 = vadd.xlane.f32.xlu0 %v6676_v16 }
0x1fa3   :  { %v6669_v37 = vpop.xlane.xlu1 %6668 }
0x1fa4   :  { %v6679_v10 = vmul.f32 0.03125, %v6669_v37 }
0x1fa6   :  { %v6683_v26 = vadd.f32 1e-05, %v6679_v10 }
0x1fa8   :  { %8924 = vrsqrt.f32 %v6683_v26 }
0x1fac   :  { %v6672_v51 = vpop.xlane.xlu0 %6671 }
0x1fad   :  { %v6680_v15 = vmul.f32 0.03125, %v6672_v51 }
0x1faf   :  { %v6684_v28 = vadd.f32 1e-05, %v6680_v15 }
0x1fb1   :  { %8926 = vrsqrt.f32 %v6684_v28 }
0x1fb2   :  { %v8925_v62 = vpop.eup %8924 }
0x1fb3   :  { %v6695_v7 = vrot.slane %v8925_v62, 1  ;;  %v6696_v24 = vrot.slane %v8925_v62, 2  ;;  %v6697_v45 = vrot.slane %v8925_v62, 3  ;;  %v6698_v40 = vrot.slane %v8925_v62, 4 }
0x1fb4   :  { %v6699_v43 = vrot.slane %v8925_v62, 5  ;;  %v6700_v52 = vrot.slane %v8925_v62, 6  ;;  %v6701_v46 = vrot.slane %v8925_v62, 7  ;;  %v6755_v22 = vmul.f32 %v8925_v62, %v11653_v58 }
0x1fb5   :  { %v6756_v61 = vmul.f32 %v6695_v7, %v11656_v59  ;;  %v6757_v18 = vmul.f32 %v6696_v24, %v11659_v60  ;;  %v6758_v30 = vmul.f32 %v6697_v45, %v11662_v33  ;;  %v6759_v38 = vmul.f32 %v6698_v40, %v11665_v6 }
0x1fb6   :  { %v6675_v2 = vpop.xlane.xlu1 %6674  ;;  %v6760_v11 = vmul.f32 %v6699_v43, %v11668_v56  ;;  %v6761_v16 = vmul.f32 %v6700_v52, %v11671_v17  ;;  %v6762_v8 = vmul.f32 %v6701_v46, %v11674_v12  ;;  %v6791_v54 = vmul.f32 %v11858_v4, %v6755_v22 }
0x1fb7   :  { %v6681_v50 = vmul.f32 0.03125, %v6675_v2  ;;  %v6792_v58 = vmul.f32 %v11858_v4, %v6756_v61  ;;  %v6793_v59 = vmul.f32 %v11858_v4, %v6757_v18  ;;  %v6794_v60 = vmul.f32 %v11858_v4, %v6758_v30 }
0x1fb8   :  { %v6795_v33 = vmul.f32 %v11858_v4, %v6759_v38  ;;  %v6796_v6 = vmul.f32 %v11858_v4, %v6760_v11  ;;  %v6797_v13 = vmul.f32 %v11858_v4, %v6761_v16  ;;  %v6798_v17 = vmul.f32 %v11858_v4, %v6762_v8 }
0x1fb9   :  { %v6685_v56 = vadd.f32 1e-05, %v6681_v50  ;;  %v11882_v12 = vadd.f32 %v11863_v23, %v6791_v54  ;;  %v11885_v37 = vadd.f32 %v11863_v23, %v6792_v58  ;;  %v11888_v26 = vadd.f32 %v11863_v23, %v6793_v59 }
0x1fba   :  { %v11891_v51 = vadd.f32 %v11863_v23, %v6794_v60  ;;  %v11894_v15 = vadd.f32 %v11863_v23, %v6795_v33  ;;  %v11897_v28 = vadd.f32 %v11863_v23, %v6796_v6  ;;  %v11925_v59 = vadd.f32 %v11863_v23, %v6798_v17 }
0x1fbb   :  { %12781 = vst [vmem:[#allocation3_spill] sm:$0xff] %v11882_v12  ;;  %v8927_v10 = vpop.eup %8926  ;;  %8928 = vrsqrt.f32 %v6685_v56  ;;  %v6859_v33 = vpack.c.bf16 %v11882_v12, %v11882_v12  ;;  %v6860_v56 = vpack.c.bf16 %v11885_v37, %v11885_v37 }
0x1fbc   :  { %12782 = vst [vmem:[#allocation8_spill] sm:$0xff] %v11891_v51  ;;  %12783 = vst [vmem:[#allocation4_spill] sm:$0xff] %v11894_v15  ;;  %v6702_v62 = vrot.slane %v8927_v10, 1  ;;  %v6703_v53 = vrot.slane %v8927_v10, 2  ;;  %v6704_v7 = vrot.slane %v8927_v10, 3  ;;  %v6705_v24 = vrot.slane %v8927_v10, 4 }
0x1fbd   :  { %12784 = vst [vmem:[#allocation5_spill] sm:$0xff] %v11897_v28  ;;  %v6706_v45 = vrot.slane %v8927_v10, 5  ;;  %v6707_v40 = vrot.slane %v8927_v10, 6  ;;  %v6708_v43 = vrot.slane %v8927_v10, 7  ;;  %v6763_v52 = vmul.f32 %v8927_v10, %v11696_v32  ;;  %12786 = vst [vmem:[#allocation10_spill] sm:$0xff] %v11925_v59 }
0x1fbe   :  { %v6764_v46 = vmul.f32 %v6702_v62, %v11699_v47  ;;  %v6765_v22 = vmul.f32 %v6703_v53, %v11702_v48  ;;  %v6766_v61 = vmul.f32 %v6704_v7, %v11706_v49  ;;  %v6767_v18 = vmul.f32 %v6705_v24, %v11709_v3 }
0x1fbf   :  { %v6768_v30 = vmul.f32 %v6706_v45, %v11713_v41  ;;  %v6769_v38 = vmul.f32 %v6707_v40, %v11716_v0  ;;  %v6770_v2 = vmul.f32 %v6708_v43, %v11719_v9  ;;  %v6799_v11 = vmul.f32 %v11858_v4, %v6763_v52  ;;  %v6678_v16 = vpop.xlane.xlu0 %6677 }
0x1fc0   :  { %v6800_v8 = vmul.f32 %v11858_v4, %v6764_v46  ;;  %v6801_v32 = vmul.f32 %v11858_v4, %v6765_v22  ;;  %v6802_v47 = vmul.f32 %v11858_v4, %v6766_v61  ;;  %v6803_v48 = vmul.f32 %v11858_v4, %v6767_v18 }
0x1fc1   :  { %v6682_v49 = vmul.f32 0.03125, %v6678_v16  ;;  %v6804_v3 = vmul.f32 %v11858_v4, %v6768_v30  ;;  %v6805_v41 = vmul.f32 %v11858_v4, %v6769_v38  ;;  %v6806_v0 = vmul.f32 %v11858_v4, %v6770_v2 }
0x1fc2   :  { %v11916_v9 = vadd.f32 %v11863_v23, %v6797_v13  ;;  %v11919_v54 = vadd.f32 %v11863_v23, %v6800_v8  ;;  %v11922_v50 = vadd.f32 %v11863_v23, %v6801_v32  ;;  %v11928_v60 = vadd.f32 %v11863_v23, %v6802_v47 }
0x1fc3   :  { %v6686_v58 = vadd.f32 1e-05, %v6682_v49  ;;  %v11933_v6 = vadd.f32 %v11863_v23, %v6799_v11  ;;  %v11936_v13 = vadd.f32 %v11863_v23, %v6803_v48  ;;  %v6861_v10 = vpack.c.bf16 %v11888_v26, %v11888_v26 }
0x1fc4   :  { %12785 = vst [vmem:[#allocation9_spill] sm:$0xff] %v11916_v9  ;;  %v11943_v17 = vadd.f32 %v11863_v23, %v6804_v3  ;;  %v11946_v62 = vadd.f32 %v11863_v23, %v6805_v41  ;;  %v11949_v53 = vadd.f32 %v11863_v23, %v6806_v0  ;;  %v6862_v7 = vpack.c.bf16 %v11891_v51, %v11891_v51 }
0x1fc5   :  { %8930 = vrsqrt.f32 %v6686_v58  ;;  %v6863_v24 = vpack.c.bf16 %v11894_v15, %v11894_v15  ;;  %v6868_v45 = vpack.c.bf16 %v11919_v54, %v11919_v54  ;;  %v6869_v40 = vpack.c.bf16 %v11922_v50, %v11922_v50 }
0x1fc6   :  { %v6864_v43 = vpack.c.bf16 %v11897_v28, %v11897_v28  ;;  %v6865_v52 = vpack.c.bf16 %v11916_v9, %v11916_v9  ;;  %v6866_v46 = vpack.c.bf16 %v11925_v59, %v11925_v59  ;;  %v6870_v22 = vpack.c.bf16 %v11928_v60, %v11928_v60 }
0x1fc7   :  { %v6867_v61 = vpack.c.bf16 %v11933_v6, %v11933_v6  ;;  %v6871_v18 = vpack.c.bf16 %v11936_v13, %v11936_v13  ;;  %v6937_v30 = vunpack.c.l.b16 %v6860_v56  ;;  %v6938_v38 = vunpack.c.l.b16 %v6861_v10  ;;  %v8929_v56 = vpop.eup %8928 }
0x1fc8   :  { %v6872_v2 = vpack.c.bf16 %v11943_v17, %v11943_v17  ;;  %v6873_v11 = vpack.c.bf16 %v11946_v62, %v11946_v62  ;;  %v6874_v16 = vpack.c.bf16 %v11949_v53, %v11949_v53  ;;  %v6936_v8 = vunpack.c.l.b16 %v6859_v33 }
0x1fc9   :  { %v6939_v32 = vunpack.c.l.b16 %v6862_v7  ;;  %v6940_v47 = vunpack.c.l.b16 %v6863_v24  ;;  %v6945_v48 = vunpack.c.l.b16 %v6868_v45  ;;  %v6946_v49 = vunpack.c.l.b16 %v6869_v40 }
0x1fca   :  { %v6941_v3 = vunpack.c.l.b16 %v6864_v43  ;;  %v6942_v41 = vunpack.c.l.b16 %v6865_v52  ;;  %v6943_v0 = vunpack.c.l.b16 %v6866_v46  ;;  %v6947_v58 = vunpack.c.l.b16 %v6870_v22 }
0x1fcb   :  { %v6944_v10 = vunpack.c.l.b16 %v6867_v61  ;;  %v6948_v14 = vunpack.c.l.b16 %v6871_v18  ;;  %v6968_v55 = vrot.slane %v6937_v30, 7  ;;  %v6970_v59 = vrot.slane %v6938_v38, 6 }
0x1fcc   :  { %v6949_v9 = vunpack.c.l.b16 %v6872_v2  ;;  %v6950_v28 = vunpack.c.l.b16 %v6873_v11  ;;  %v6951_v15 = vunpack.c.l.b16 %v6874_v16  ;;  %v6982_v12 = vrot.slane %v6945_v48, 7 }
0x1fcd   :  { %v6969_v51 = vsel %vm481_vm1, %v6968_v55, %v6936_v8  ;;  %v6972_v33 = vrot.slane %v6939_v32, 5  ;;  %v6974_v7 = vrot.slane %v6940_v47, 4  ;;  %v6984_v24 = vrot.slane %v6946_v49, 6 }
0x1fce   :  { %v6971_v45 = vsel %vm484_vm2, %v6970_v59, %v6969_v51  ;;  %v6976_v40 = vrot.slane %v6941_v3, 3  ;;  %v6983_v43 = vsel %vm481_vm1, %v6982_v12, %v6944_v10  ;;  %v6986_v52 = vrot.slane %v6947_v58, 5 }
0x1fcf   :  { %v8931_v46 = vpop.eup %8930  ;;  %v6973_v22 = vsel %vm487_vm3, %v6972_v33, %v6971_v45  ;;  %v6978_v61 = vrot.slane %v6942_v41, 2  ;;  %v6985_v18 = vsel %vm484_vm2, %v6984_v24, %v6983_v43  ;;  %v6988_v30 = vrot.slane %v6948_v14, 4 }
0x1fd0   :  { %v6975_v38 = vsel %vm490_vm4, %v6974_v7, %v6973_v22  ;;  %v6980_v2 = vrot.slane %v6943_v0, 1  ;;  %v6987_v55 = vsel %vm487_vm3, %v6986_v52, %v6985_v18  ;;  %v6990_v11 = vrot.slane %v6949_v9, 3 }
0x1fd1   :  { %v6977_v16 = vsel %vm493_vm5, %v6976_v40, %v6975_v38  ;;  %v6989_v51 = vsel %vm490_vm4, %v6988_v30, %v6987_v55  ;;  %v6992_v59 = vrot.slane %v6950_v28, 2  ;;  %v6994_v12 = vrot.slane %v6951_v15, 1 }
0x1fd2   :  { %v6979_v8 = vsel %vm496_vm6, %v6978_v61, %v6977_v16  ;;  %v6991_v32 = vsel %vm493_vm5, %v6990_v11, %v6989_v51  ;;  %v6709_v47 = vrot.slane %v8929_v56, 1  ;;  %v6710_v48 = vrot.slane %v8929_v56, 2 }
0x1fd3   :  { %v6993_v14 = vsel %vm496_vm6, %v6992_v59, %v6991_v32  ;;  %v6711_v49 = vrot.slane %v8929_v56, 3  ;;  %v6712_v3 = vrot.slane %v8929_v56, 4  ;;  %v6713_v41 = vrot.slane %v8929_v56, 5 }
0x1fd4   :  { %v6981_v0 = vsel %vm499_vm7, %v6980_v2, %v6979_v8  ;;  %v6995_v9 = vsel %vm499_vm7, %v6994_v12, %v6993_v14  ;;  %v6716_v58 = vrot.slane %v8931_v46, 1  ;;  %v6717_v10 = vrot.slane %v8931_v46, 2 }
0x1fd5   :  { %v7024_v33 = vpack.c.b16 %v6995_v9, %v6981_v0  ;;  %v6714_v28 = vrot.slane %v8929_v56, 6  ;;  %v6715_v15 = vrot.slane %v8929_v56, 7  ;;  %v6718_v7 = vrot.slane %v8931_v46, 3 }
0x1fd6   :  { %v6719_v24 = vrot.slane %v8931_v46, 4  ;;  %v6720_v45 = vrot.slane %v8931_v46, 5  ;;  %v6772_v40 = vmul.f32 %v6709_v47, %v11748_v35  ;;  %v6773_v43 = vmul.f32 %v6710_v48, %v11752_v34 }
0x1fd7   :  { %8668 = vmatprep.mubr.msk.bf16.mxu1 %vm557_vm8, %v7024_v33  ;;  %v6721_v52 = vrot.slane %v8931_v46, 6  ;;  %v6722_v22 = vrot.slane %v8931_v46, 7  ;;  %v6771_v61 = vmul.f32 %v8929_v56, %v11745_v20  ;;  %v6774_v18 = vmul.f32 %v6711_v49, %v11755_v42 }
0x1fd8   :  { %v6775_v30 = vmul.f32 %v6712_v3, %v11758_v63  ;;  %v6776_v38 = vmul.f32 %v6713_v41, %v11762_v21  ;;  %v6780_v2 = vmul.f32 %v6716_v58, %v11793_v5  ;;  %v6781_v55 = vmul.f32 %v6717_v10, %v11796_v44 }
0x1fd9   :  { %v6777_v35 = vmul.f32 %v6714_v28, %v11765_v19  ;;  %v6778_v34 = vmul.f32 %v6715_v15, %v11768_v57  ;;  %v6779_v11 = vmul.f32 %v8931_v46, %v11803_v27  ;;  %v6782_v16 = vmul.f32 %v6718_v7, %v11799_v1 }
0x1fda   :  { %v6783_v20 = vmul.f32 %v6719_v24, %v11806_v25  ;;  %v6784_v42 = vmul.f32 %v6720_v45, %v11809_v39  ;;  %v6808_v63 = vmul.f32 %v11858_v4, %v6772_v40  ;;  %v6809_v21 = vmul.f32 %v11858_v4, %v6773_v43 }
0x1fdb   :  { %v6785_v5 = vmul.f32 %v6721_v52, %v11813_v36  ;;  %v6786_v44 = vmul.f32 %v6722_v22, %v11819_v29  ;;  %v6807_v19 = vmul.f32 %v11858_v4, %v6771_v61  ;;  %v6810_v57 = vmul.f32 %v11858_v4, %v6774_v18 }
0x1fdc   :  { %v6811_v27 = vmul.f32 %v11858_v4, %v6775_v30  ;;  %v6812_v1 = vmul.f32 %v11858_v4, %v6776_v38  ;;  %v6816_v25 = vmul.f32 %v11858_v4, %v6780_v2  ;;  %v6817_v39 = vmul.f32 %v11858_v4, %v6781_v55 }
0x1fdd   :  { %v6813_v56 = vmul.f32 %v11858_v4, %v6777_v35  ;;  %v6814_v46 = vmul.f32 %v11858_v4, %v6778_v34  ;;  %v6815_v36 = vmul.f32 %v11858_v4, %v6779_v11  ;;  %v6818_v29 = vmul.f32 %v11858_v4, %v6782_v16 }
0x1fde   :  { %v6819_v51 = vmul.f32 %v11858_v4, %v6783_v20  ;;  %v6820_v59 = vmul.f32 %v11858_v4, %v6784_v42  ;;  %v12023_v12 = vadd.f32 %v11863_v23, %v6808_v63  ;;  %v12026_v8 = vadd.f32 %v11863_v23, %v6809_v21 }
0x1fdf   :  { %v6821_v32 = vmul.f32 %v11858_v4, %v6785_v5  ;;  %v6822_v47 = vmul.f32 %v11858_v4, %v6786_v44  ;;  %v12031_v48 = vadd.f32 %v11863_v23, %v6807_v19  ;;  %v12034_v14 = vadd.f32 %v11863_v23, %v6810_v57 }
0x1fe0   :  { %v12037_v49 = vadd.f32 %v11863_v23, %v6811_v27  ;;  %v12040_v3 = vadd.f32 %v11863_v23, %v6812_v1  ;;  %v12043_v41 = vadd.f32 %v11863_v23, %v6816_v25  ;;  %v12046_v0 = vadd.f32 %v11863_v23, %v6817_v39 }
0x1fe1   :  { %v12049_v4 = vadd.f32 %v11863_v23, %v6813_v56  ;;  %v12052_v9 = vadd.f32 %v11863_v23, %v6814_v46  ;;  %v12055_v58 = vadd.f32 %v11863_v23, %v6815_v36  ;;  %v12058_v10 = vadd.f32 %v11863_v23, %v6818_v29 }
0x1fe2   :  { %v12061_v33 = vadd.f32 %v11863_v23, %v6819_v51  ;;  %v12064_v28 = vadd.f32 %v11863_v23, %v6820_v59  ;;  %v6876_v15 = vpack.c.bf16 %v12023_v12, %v12023_v12  ;;  %v6877_v7 = vpack.c.bf16 %v12026_v8, %v12026_v8 }
0x1fe3   :  { %v12071_v24 = vadd.f32 %v11863_v23, %v6821_v32  ;;  %v12074_v45 = vadd.f32 %v11863_v23, %v6822_v47  ;;  %v6875_v40 = vpack.c.bf16 %v12031_v48, %v12031_v48  ;;  %v6878_v43 = vpack.c.bf16 %v12034_v14, %v12034_v14 }
0x1fe4   :  { %v6879_v52 = vpack.c.bf16 %v12037_v49, %v12037_v49  ;;  %v6880_v22 = vpack.c.bf16 %v12040_v3, %v12040_v3  ;;  %v6884_v61 = vpack.c.bf16 %v12043_v41, %v12043_v41  ;;  %v6885_v18 = vpack.c.bf16 %v12046_v0, %v12046_v0 }
0x1fe5   :  { %v6881_v23 = vpack.c.bf16 %v12049_v4, %v12049_v4  ;;  %v6882_v30 = vpack.c.bf16 %v12052_v9, %v12052_v9  ;;  %v6883_v38 = vpack.c.bf16 %v12055_v58, %v12055_v58  ;;  %v6886_v2 = vpack.c.bf16 %v12058_v10, %v12058_v10 }
0x1fe6   :  { %v6887_v55 = vpack.c.bf16 %v12061_v33, %v12061_v33  ;;  %v6888_v35 = vpack.c.bf16 %v12064_v28, %v12064_v28  ;;  %v6953_v34 = vunpack.c.l.b16 %v6876_v15  ;;  %v6954_v11 = vunpack.c.l.b16 %v6877_v7 }
0x1fe7   :  { %v6889_v16 = vpack.c.bf16 %v12071_v24, %v12071_v24  ;;  %v6890_v20 = vpack.c.bf16 %v12074_v45, %v12074_v45  ;;  %v6952_v42 = vunpack.c.l.b16 %v6875_v40  ;;  %v6955_v63 = vunpack.c.l.b16 %v6878_v43 }
0x1fe8   :  { %v6956_v21 = vunpack.c.l.b16 %v6879_v52  ;;  %v6957_v5 = vunpack.c.l.b16 %v6880_v22  ;;  %v6961_v44 = vunpack.c.l.b16 %v6884_v61  ;;  %v6962_v19 = vunpack.c.l.b16 %v6885_v18 }
0x1fe9   :  { %v6958_v57 = vunpack.c.l.b16 %v6881_v23  ;;  %v6959_v27 = vunpack.c.l.b16 %v6882_v30  ;;  %v6963_v1 = vunpack.c.l.b16 %v6886_v2  ;;  %v6996_v25 = vrot.slane %v6953_v34, 7 }
0x1fea   :  { %v6960_v39 = vunpack.c.l.b16 %v6883_v38  ;;  %v6964_v56 = vunpack.c.l.b16 %v6887_v55  ;;  %v6965_v46 = vunpack.c.l.b16 %v6888_v35  ;;  %v6998_v36 = vrot.slane %v6954_v11, 6 }
0x1feb   :  { %v6966_v29 = vunpack.c.l.b16 %v6889_v16  ;;  %v6997_v51 = vsel %vm481_vm1, %v6996_v25, %v6952_v42  ;;  %v7000_v59 = vrot.slane %v6955_v63, 5  ;;  %v7010_v32 = vrot.slane %v6961_v44, 7 }
0x1fec   :  { %v6967_v47 = vunpack.c.l.b16 %v6890_v20  ;;  %v6999_v15 = vsel %vm484_vm2, %v6998_v36, %v6997_v51  ;;  %v7002_v7 = vrot.slane %v6956_v21, 4  ;;  %v7012_v40 = vrot.slane %v6962_v19, 6 }
0x1fed   :  { %v7001_v43 = vsel %vm487_vm3, %v7000_v59, %v6999_v15  ;;  %v7004_v52 = vrot.slane %v6957_v5, 3  ;;  %v7011_v22 = vsel %vm481_vm1, %v7010_v32, %v6960_v39  ;;  %v7014_v61 = vrot.slane %v6963_v1, 5  ;;  %v8045_v1 = vld [vmem:[%s12700_s7 + $0x1] ss:$0 sm:$0xff] }
0x1fee   :  { %v7003_v18 = vsel %vm490_vm4, %v7002_v7, %v7001_v43  ;;  %v7006_v23 = vrot.slane %v6958_v57, 2  ;;  %v7013_v30 = vsel %vm484_vm2, %v7012_v40, %v7011_v22  ;;  %v7016_v38 = vrot.slane %v6964_v56, 4  ;;  %v8778_v57 = vld [vmem:[%s12699_s5 + $0x30] sm:$0xff]  }
0x1fef   :  { %v7005_v2 = vsel %vm493_vm5, %v7004_v52, %v7003_v18  ;;  %v7015_v55 = vsel %vm487_vm3, %v7014_v61, %v7013_v30  ;;  %v7018_v35 = vrot.slane %v6965_v46, 3  ;;  %v7020_v16 = vrot.slane %v6966_v29, 2  ;;  %8676 = vmatprep.subr.bf16.mxu0 %v8778_v57  ;;  %v12133_v52 = vld [vmem:[%s12697_s8 + $0x8] sm:$0x3f] }
0x1ff0   :  { %v7007_v34 = vsel %vm496_vm6, %v7006_v23, %v7005_v2  ;;  %v7017_v11 = vsel %vm490_vm4, %v7016_v38, %v7015_v55  ;;  %v7008_v20 = vrot.slane %v6959_v27, 1  ;;  %v7022_v63 = vrot.slane %v6967_v47, 1  ;;  %8677 = vmatpush3.bf16.msra.mxu0 %v8778_v57  ;;  %v8779_v27 = vld [vmem:[%s12699_s5 + $0x38] sm:$0xff]  }
0x1ff1   :  { %v7019_v42 = vsel %vm493_vm5, %v7018_v35, %v7017_v11  ;;  %8678 = vmatprep.subr.bf16.mxu0 %v8779_v27  ;;  %v12787_v22 = vsub.s32 3, %v12779_v31 }
0x1ff2   :  { %v7021_v21 = vsel %vm496_vm6, %v7020_v16, %v7019_v42  ;;  %v7009_v5 = vsel %vm499_vm7, %v7008_v20, %v7007_v34 }
0x1ff3   :  { %v7023_v44 = vsel %vm499_vm7, %v7022_v63, %v7021_v21  ;;  %v7111_v61 = vrot.slane %v12133_v52, %v12787_v22 }
0x1ff4   :  { %v7025_v19 = vpack.c.b16 %v7023_v44, %v7009_v5  ;;  %8679 = vmatpush3.bf16.msra.mxu0 %v8779_v27 }
0x1ff6   :  { %8669 = vmatmul.mubr.msk.bf16.vlgmr.msra.gmra.mrb[140].mxu1 %vm557_vm8, %v7025_v19 }
0x20c9   :  { %v8670_v25 = vpop.f32.mrb[140].mxu1 }
0x20ca   :  { %v7087_v39 = vadd.f32 %v8670_v25, %v8045_v1  ;;  %v7078_v56 = vpop.f32.mrb[141].mxu1 }
0x20cb   :  { %v7079_v46 = vadd.f32 %v8045_v1, %v7078_v56  ;;  %v8671_v36 = vpop.f32.mrb[142].mxu1 }
0x20cc   :  { %v7090_v29 = vadd.f32 %v8671_v36, %v8045_v1  ;;  %v7081_v51 = vpop.f32.mrb[143].mxu1  ;;  %v7095_v32 = vmax.f32 %v7087_v39, 0.0 }
0x20cd   :  { %v7082_v59 = vadd.f32 %v8045_v1, %v7081_v51  ;;  %v7093_v15 = vmax.f32 %v7079_v46, 0.0 }
0x20ce   :  { %v7096_v47 = vmax.f32 %v7090_v29, 0.0 }
0x20cf   :  { %v7094_v7 = vmax.f32 %v7082_v59, 0.0 }
0x20d0   :  { %v7098_v40 = vpack.c.bf16 %v7096_v47, %v7095_v32 }
0x20d1   :  { %v7097_v43 = vpack.c.bf16 %v7094_v7, %v7093_v15 }
0x20d3   :  { %8680 = vmatprep.mubr.msk.bf16.mxu0 %vm3421_vm14, %v7097_v43 }
0x20d4   :  { %8681 = vmatmul.mubr.msk.bf16.vlgmr.msra.gmra.mrb[140].mxu0 %vm3421_vm14, %v7098_v40 }
0x21a7   :  { %v8682_v18 = vpop.f32.mrb[140].mxu0 }
0x21a8   :  { %v12138_v23 = vadd.f32 %v8682_v18, %v7111_v61  ;;  %v7176_v30 = vpop.f32.mrb[141].mxu0 }
0x21a9   :  { %v8683_v38 = vpop.f32.mrb[142].mxu0  ;;  %v12140_v2 = vadd.f32 %v7176_v30, %v7111_v61 }
0x21aa   :  { %v7188_v55 = vadd.f32 %v8683_v38, %v7111_v61  ;;  %v7179_v35 = vpop.f32.mrb[143].mxu0  ;;  %v7209_v34 = vrot.slane %v12138_v23, 1  ;;  %v7210_v11 = vrot.slane %v12138_v23, 2  ;;  %v7211_v20 = vrot.slane %v12138_v23, 3 }
0x21ab   :  { %v7180_v16 = vadd.f32 %v7179_v35, %v7111_v61  ;;  %v7212_v42 = vrot.slane %v12138_v23, 4  ;;  %v7213_v63 = vrot.slane %v12138_v23, 5 }
0x21ac   :  { %v7216_v21 = vrot.slane %v7188_v55, 1  ;;  %v7217_v5 = vrot.slane %v7188_v55, 2  ;;  %v7218_v44 = vrot.slane %v7188_v55, 3  ;;  %v7219_v19 = vrot.slane %v7188_v55, 4 }
0x21ad   :  { %v7220_v57 = vrot.slane %v7188_v55, 5  ;;  %v7221_v27 = vrot.slane %v7188_v55, 6  ;;  %v7222_v1 = vrot.slane %v7188_v55, 7  ;;  %v12148_v25 = vadd.f32 %v7188_v55, %v12055_v58 }
0x21ae   :  { %v12151_v39 = vadd.f32 %v7216_v21, %v12043_v41  ;;  %v12154_v56 = vadd.f32 %v7217_v5, %v12046_v0  ;;  %v12157_v46 = vadd.f32 %v7218_v44, %v12058_v10  ;;  %v12160_v36 = vadd.f32 %v7219_v19, %v12061_v33 }
0x21af   :  { %v12163_v29 = vadd.f32 %v7220_v57, %v12064_v28  ;;  %v12166_v51 = vadd.f32 %v7221_v27, %v12071_v24  ;;  %v12169_v58 = vadd.f32 %v7222_v1, %v12074_v45  ;;  %v7202_v41 = vrot.slane %v7180_v16, 1 }
0x21b0   :  { %v7361_v59 = vrot.slane %v12151_v39, 7  ;;  %v7363_v0 = vrot.slane %v12154_v56, 6  ;;  %v7365_v10 = vrot.slane %v12157_v46, 5  ;;  %v7367_v32 = vrot.slane %v12160_v36, 4 }
0x21b1   :  { %v7369_v33 = vrot.slane %v12163_v29, 3  ;;  %v7371_v28 = vrot.slane %v12166_v51, 2  ;;  %v7373_v47 = vrot.slane %v12169_v58, 1  ;;  %v7203_v24 = vrot.slane %v7180_v16, 2 }
0x21b2   :  { %v7362_v45 = vsel %vm481_vm1, %v7361_v59, %v12148_v25  ;;  %v7204_v15 = vrot.slane %v7180_v16, 3  ;;  %v7205_v7 = vrot.slane %v7180_v16, 4  ;;  %v7206_v40 = vrot.slane %v7180_v16, 5 }
0x21b3   :  { %v7364_v43 = vsel %vm484_vm2, %v7363_v0, %v7362_v45  ;;  %v7207_v22 = vrot.slane %v7180_v16, 6  ;;  %v7208_v61 = vrot.slane %v7180_v16, 7  ;;  %v12182_v18 = vadd.f32 %v7180_v16, %v11933_v6 }
0x21b4   :  { %v7366_v30 = vsel %vm487_vm3, %v7365_v10, %v7364_v43  ;;  %v12186_v38 = vadd.f32 %v7202_v41, %v11919_v54  ;;  %v12189_v55 = vadd.f32 %v7203_v24, %v11922_v50  ;;  %v12192_v35 = vadd.f32 %v7204_v15, %v11928_v60 }
0x21b5   :  { %v7368_v21 = vsel %vm490_vm4, %v7367_v32, %v7366_v30  ;;  %v12196_v5 = vadd.f32 %v7205_v7, %v11936_v13  ;;  %v12199_v44 = vadd.f32 %v7206_v40, %v11943_v17  ;;  %v12202_v6 = vadd.f32 %v7207_v22, %v11946_v62 }
0x21b6   :  { %v7370_v54 = vsel %vm493_vm5, %v7369_v33, %v7368_v21  ;;  %v12206_v16 = vadd.f32 %v7208_v61, %v11949_v53  ;;  %v7333_v50 = vrot.slane %v12186_v38, 7  ;;  %v7335_v60 = vrot.slane %v12189_v55, 6 }
0x21b7   :  { %v7372_v19 = vsel %vm496_vm6, %v7371_v28, %v7370_v54  ;;  %v7337_v13 = vrot.slane %v12192_v35, 5  ;;  %v7339_v57 = vrot.slane %v12196_v5, 4  ;;  %v7214_v17 = vrot.slane %v12138_v23, 6 }
0x21b8   :  { %v7374_v62 = vsel %vm499_vm7, %v7373_v47, %v7372_v19  ;;  %v7334_v27 = vsel %vm481_vm1, %v7333_v50, %v12182_v18  ;;  %v7341_v53 = vrot.slane %v12199_v44, 3  ;;  %v7343_v1 = vrot.slane %v12202_v6, 2 }
0x21b9   :  { %v7388_v41 = vsel %vm557_vm8, %v7374_v62, 0.0  ;;  %v7336_v59 = vsel %vm484_vm2, %v7335_v60, %v7334_v27  ;;  %v7345_v0 = vrot.slane %v12206_v16, 1  ;;  %v7215_v10 = vrot.slane %v12138_v23, 7  ;;  %v12788_v62 = vld [vmem:[#allocation8_spill] sm:$0xff] }
0x21ba   :  { %7389 = vadd.xlane.f32.xlu0 %v7388_v41  ;;  %v7338_v32 = vsel %vm487_vm3, %v7337_v13, %v7336_v59  ;;  %v12227_v33 = vadd.f32 %v7209_v34, %v12023_v12  ;;  %v12232_v28 = vadd.f32 %v7210_v11, %v12026_v8  ;;  %v12237_v47 = vadd.f32 %v7211_v20, %v12034_v14  ;;  %v12790_v59 = vld [vmem:[#allocation4_spill] sm:$0xff] }
0x21bb   :  { %v7340_v24 = vsel %vm490_vm4, %v7339_v57, %v7338_v32  ;;  %v12243_v45 = vadd.f32 %v7212_v42, %v12037_v49  ;;  %v12248_v12 = vadd.f32 %v7213_v63, %v12040_v3  ;;  %v12251_v8 = vadd.f32 %v7214_v17, %v12049_v4  ;;  %v12791_v32 = vld [vmem:[#allocation5_spill] sm:$0xff] }
0x21bc   :  { %v7342_v34 = vsel %vm493_vm5, %v7341_v53, %v7340_v24  ;;  %v12256_v14 = vadd.f32 %v12138_v23, %v12031_v48  ;;  %v7347_v11 = vrot.slane %v12227_v33, 7  ;;  %v7349_v20 = vrot.slane %v12232_v28, 6 }
0x21bd   :  { %v7344_v49 = vsel %vm496_vm6, %v7343_v1, %v7342_v34  ;;  %v12262_v42 = vadd.f32 %v7215_v10, %v12052_v9  ;;  %v7351_v3 = vrot.slane %v12237_v47, 5  ;;  %v7353_v4 = vrot.slane %v12243_v45, 4  ;;  %v12789_v1 = vld [vmem:[#allocation3_spill] sm:$0xff] }
0x21be   :  { %v7346_v63 = vsel %vm499_vm7, %v7345_v0, %v7344_v49  ;;  %v7348_v15 = vsel %vm481_vm1, %v7347_v11, %v12256_v14  ;;  %v7355_v48 = vrot.slane %v12248_v12, 3  ;;  %v7357_v23 = vrot.slane %v12251_v8, 2  ;;  %v12792_v11 = vld [vmem:[#allocation9_spill] sm:$0xff] }
0x21bf   :  { %v7382_v7 = vsel %vm557_vm8, %v7346_v63, 0.0  ;;  %v7350_v40 = vsel %vm484_vm2, %v7349_v20, %v7348_v15  ;;  %v7195_v9 = vrot.slane %v12140_v2, 1  ;;  %v7196_v43 = vrot.slane %v12140_v2, 2 }
0x21c0   :  { %7383 = vadd.xlane.f32.xlu1 %v7382_v7  ;;  %v7352_v22 = vsel %vm487_vm3, %v7351_v3, %v7350_v40  ;;  %v7197_v61 = vrot.slane %v12140_v2, 3  ;;  %v7198_v30 = vrot.slane %v12140_v2, 4  ;;  %v7199_v21 = vrot.slane %v12140_v2, 5 }
0x21c1   :  { %v7354_v54 = vsel %vm490_vm4, %v7353_v4, %v7352_v22  ;;  %v7359_v50 = vrot.slane %v12262_v42, 1  ;;  %v7200_v60 = vrot.slane %v12140_v2, 6  ;;  %v7201_v19 = vrot.slane %v12140_v2, 7 }
0x21c2   :  { %v7356_v13 = vsel %vm493_vm5, %v7355_v48, %v7354_v54  ;;  %v12285_v57 = vadd.f32 %v7195_v9, %v11885_v37  ;;  %v12288_v17 = vadd.f32 %v7196_v43, %v11888_v26  ;;  %v12291_v27 = vadd.f32 %v7197_v61, %v12788_v62 }
0x21c3   :  { %v7358_v53 = vsel %vm496_vm6, %v7357_v23, %v7356_v13  ;;  %v12296_v41 = vadd.f32 %v12140_v2, %v12789_v1  ;;  %v12299_v0 = vadd.f32 %v7198_v30, %v12790_v59  ;;  %v12303_v37 = vadd.f32 %v7199_v21, %v12791_v32  ;;  %v12793_v2 = vld [vmem:[#allocation10_spill] sm:$0xff] }
0x21c4   :  { %v7360_v10 = vsel %vm499_vm7, %v7359_v50, %v7358_v53  ;;  %v7319_v26 = vrot.slane %v12285_v57, 7  ;;  %v7321_v24 = vrot.slane %v12288_v17, 6  ;;  %v12309_v20 = vadd.f32 %v7200_v60, %v12792_v11 }
0x21c5   :  { %v7385_v34 = vsel %vm557_vm8, %v7360_v10, 0.0  ;;  %v12312_v49 = vadd.f32 %v7201_v19, %v12793_v2  ;;  %v7323_v4 = vrot.slane %v12291_v27, 5  ;;  %v7325_v15 = vrot.slane %v12299_v0, 4 }
0x21c6   :  { %7386 = vadd.xlane.f32.xlu0 %v7385_v34  ;;  %v7320_v3 = vsel %vm481_vm1, %v7319_v26, %v12296_v41  ;;  %v7327_v23 = vrot.slane %v12303_v37, 3  ;;  %v7329_v40 = vrot.slane %v12309_v20, 2 }
0x21c7   :  { %v7322_v63 = vsel %vm484_vm2, %v7321_v24, %v7320_v3  ;;  %v7331_v43 = vrot.slane %v12312_v49, 1 }
0x21c8   :  { %v7324_v48 = vsel %vm487_vm3, %v7323_v4, %v7322_v63 }
0x21c9   :  { %v7326_v7 = vsel %vm490_vm4, %v7325_v15, %v7324_v48 }
0x21ca   :  { %v7328_v9 = vsel %vm493_vm5, %v7327_v23, %v7326_v7 }
0x21cb   :  { %v7330_v22 = vsel %vm496_vm6, %v7329_v40, %v7328_v9 }
0x21cc   :  { %v7332_v61 = vsel %vm499_vm7, %v7331_v43, %v7330_v22 }
0x21cd   :  { %v7379_v30 = vsel %vm557_vm8, %v7332_v61, 0.0 }
0x21ce   :  { %7380 = vadd.xlane.f32.xlu1 %v7379_v30 }
0x2247   :  { %v7390_v21 = vpop.xlane.xlu0 %7389 }
0x2248   :  { %v7394_v54 = vmul.f32 0.03125, %v7390_v21 }
0x224a   :  { %v7420_v50 = vrot.slane %v7394_v54, 1  ;;  %v7421_v60 = vrot.slane %v7394_v54, 2  ;;  %v7422_v19 = vrot.slane %v7394_v54, 3  ;;  %v7423_v13 = vrot.slane %v7394_v54, 4 }
0x224b   :  { %v7424_v62 = vrot.slane %v7394_v54, 5  ;;  %v7425_v53 = vrot.slane %v7394_v54, 6  ;;  %v7426_v1 = vrot.slane %v7394_v54, 7  ;;  %v12329_v59 = vsub.f32 %v12148_v25, %v7394_v54 }
0x224c   :  { %v12332_v10 = vsub.f32 %v12151_v39, %v7420_v50  ;;  %v12335_v32 = vsub.f32 %v12154_v56, %v7421_v60  ;;  %v12338_v26 = vsub.f32 %v12157_v46, %v7422_v19  ;;  %v12341_v24 = vsub.f32 %v12160_v36, %v7423_v13 }
0x224d   :  { %v7384_v34 = vpop.xlane.xlu1 %7383  ;;  %v12344_v11 = vsub.f32 %v12163_v29, %v7424_v62  ;;  %v12347_v2 = vsub.f32 %v12166_v51, %v7425_v53  ;;  %v12350_v25 = vsub.f32 %v12169_v58, %v7426_v1  ;;  %v7515_v39 = vmul.f32 %v12329_v59, %v12329_v59 }
0x224e   :  { %v7392_v56 = vmul.f32 0.03125, %v7384_v34  ;;  %v7516_v46 = vmul.f32 %v12332_v10, %v12332_v10  ;;  %v7517_v36 = vmul.f32 %v12335_v32, %v12335_v32  ;;  %v7518_v29 = vmul.f32 %v12338_v26, %v12338_v26 }
0x224f   :  { %v7519_v51 = vmul.f32 %v12341_v24, %v12341_v24  ;;  %v7520_v58 = vmul.f32 %v12344_v11, %v12344_v11  ;;  %v7521_v3 = vmul.f32 %v12347_v2, %v12347_v2  ;;  %v7522_v4 = vmul.f32 %v12350_v25, %v12350_v25 }
0x2250   :  { %v7597_v63 = vrot.slane %v7516_v46, 7  ;;  %v7599_v15 = vrot.slane %v7517_v36, 6  ;;  %v7601_v48 = vrot.slane %v7518_v29, 5  ;;  %v7406_v23 = vrot.slane %v7392_v56, 1 }
0x2251   :  { %v7603_v7 = vrot.slane %v7519_v51, 4  ;;  %v7605_v40 = vrot.slane %v7520_v58, 3  ;;  %v7607_v9 = vrot.slane %v7521_v3, 2  ;;  %v7609_v43 = vrot.slane %v7522_v4, 1 }
0x2252   :  { %v7598_v22 = vsel %vm481_vm1, %v7597_v63, %v7515_v39  ;;  %v7407_v61 = vrot.slane %v7392_v56, 2  ;;  %v7408_v30 = vrot.slane %v7392_v56, 3  ;;  %v7409_v21 = vrot.slane %v7392_v56, 4 }
0x2253   :  { %v7387_v54 = vpop.xlane.xlu0 %7386  ;;  %v7600_v50 = vsel %vm484_vm2, %v7599_v15, %v7598_v22  ;;  %v7410_v60 = vrot.slane %v7392_v56, 5  ;;  %v7411_v19 = vrot.slane %v7392_v56, 6  ;;  %v7412_v13 = vrot.slane %v7392_v56, 7 }
0x2254   :  { %v7393_v62 = vmul.f32 0.03125, %v7387_v54  ;;  %v7602_v53 = vsel %vm487_vm3, %v7601_v48, %v7600_v50  ;;  %v12372_v1 = vsub.f32 %v12182_v18, %v7392_v56  ;;  %v12375_v34 = vsub.f32 %v12186_v38, %v7406_v23 }
0x2255   :  { %v7604_v39 = vsel %vm490_vm4, %v7603_v7, %v7602_v53  ;;  %v12379_v46 = vsub.f32 %v12189_v55, %v7407_v61  ;;  %v12382_v36 = vsub.f32 %v12192_v35, %v7408_v30  ;;  %v12385_v29 = vsub.f32 %v12196_v5, %v7409_v21 }
0x2256   :  { %v7606_v51 = vsel %vm493_vm5, %v7605_v40, %v7604_v39  ;;  %v12389_v58 = vsub.f32 %v12199_v44, %v7410_v60  ;;  %v12392_v18 = vsub.f32 %v12202_v6, %v7411_v19  ;;  %v12395_v38 = vsub.f32 %v12206_v16, %v7412_v13 }
0x2257   :  { %v7608_v55 = vsel %vm496_vm6, %v7607_v9, %v7606_v51  ;;  %v7499_v35 = vmul.f32 %v12372_v1, %v12372_v1  ;;  %v7500_v5 = vmul.f32 %v12375_v34, %v12375_v34  ;;  %v7501_v56 = vmul.f32 %v12379_v46, %v12379_v46 }
0x2258   :  { %v7610_v44 = vsel %vm499_vm7, %v7609_v43, %v7608_v55  ;;  %v7502_v6 = vmul.f32 %v12382_v36, %v12382_v36  ;;  %v7503_v16 = vmul.f32 %v12385_v29, %v12385_v29  ;;  %v7504_v3 = vmul.f32 %v12389_v58, %v12389_v58 }
0x2259   :  { %v7624_v4 = vsel %vm557_vm8, %v7610_v44, 0.0  ;;  %v7505_v63 = vmul.f32 %v12392_v18, %v12392_v18  ;;  %v7506_v15 = vmul.f32 %v12395_v38, %v12395_v38  ;;  %v7569_v48 = vrot.slane %v7500_v5, 7 }
0x225a   :  { %7625 = vadd.xlane.f32.xlu0 %v7624_v4  ;;  %v7571_v23 = vrot.slane %v7501_v56, 6  ;;  %v7573_v7 = vrot.slane %v7502_v6, 5  ;;  %v7575_v40 = vrot.slane %v7503_v16, 4  ;;  %v7577_v9 = vrot.slane %v7504_v3, 3 }
0x225b   :  { %v7381_v43 = vpop.xlane.xlu1 %7380  ;;  %v7570_v22 = vsel %vm481_vm1, %v7569_v48, %v7499_v35  ;;  %v7579_v61 = vrot.slane %v7505_v63, 2  ;;  %v7581_v30 = vrot.slane %v7506_v15, 1  ;;  %v7413_v21 = vrot.slane %v7393_v62, 1 }
0x225c   :  { %v7391_v54 = vmul.f32 0.03125, %v7381_v43  ;;  %v7572_v50 = vsel %vm484_vm2, %v7571_v23, %v7570_v22  ;;  %v7414_v60 = vrot.slane %v7393_v62, 2  ;;  %v7415_v19 = vrot.slane %v7393_v62, 3 }
0x225d   :  { %v7574_v13 = vsel %vm487_vm3, %v7573_v7, %v7572_v50  ;;  %v7416_v53 = vrot.slane %v7393_v62, 4  ;;  %v7417_v39 = vrot.slane %v7393_v62, 5  ;;  %v7418_v51 = vrot.slane %v7393_v62, 6 }
0x225e   :  { %v7576_v55 = vsel %vm490_vm4, %v7575_v40, %v7574_v13  ;;  %v7419_v5 = vrot.slane %v7393_v62, 7  ;;  %v12421_v56 = vsub.f32 %v12256_v14, %v7393_v62  ;;  %v12424_v35 = vsub.f32 %v12227_v33, %v7413_v21 }
0x225f   :  { %v7578_v44 = vsel %vm493_vm5, %v7577_v9, %v7576_v55  ;;  %v12428_v6 = vsub.f32 %v12232_v28, %v7414_v60  ;;  %v12431_v16 = vsub.f32 %v12237_v47, %v7415_v19  ;;  %v12434_v3 = vsub.f32 %v12243_v45, %v7416_v53 }
0x2260   :  { %v7580_v4 = vsel %vm496_vm6, %v7579_v61, %v7578_v44  ;;  %v12438_v63 = vsub.f32 %v12248_v12, %v7417_v39  ;;  %v12441_v14 = vsub.f32 %v12251_v8, %v7418_v51  ;;  %v12444_v33 = vsub.f32 %v12262_v42, %v7419_v5 }
0x2261   :  { %v7582_v28 = vsel %vm499_vm7, %v7581_v30, %v7580_v4  ;;  %v7507_v47 = vmul.f32 %v12421_v56, %v12421_v56  ;;  %v7508_v45 = vmul.f32 %v12424_v35, %v12424_v35  ;;  %v7509_v62 = vmul.f32 %v12428_v6, %v12428_v6 }
0x2262   :  { %v7618_v12 = vsel %vm557_vm8, %v7582_v28, 0.0  ;;  %v7510_v8 = vmul.f32 %v12431_v16, %v12431_v16  ;;  %v7511_v42 = vmul.f32 %v12434_v3, %v12434_v3  ;;  %v7512_v15 = vmul.f32 %v12438_v63, %v12438_v63 }
0x2263   :  { %7619 = vadd.xlane.f32.xlu1 %v7618_v12  ;;  %v7513_v48 = vmul.f32 %v12441_v14, %v12441_v14  ;;  %v7514_v23 = vmul.f32 %v12444_v33, %v12444_v33  ;;  %v7583_v7 = vrot.slane %v7508_v45, 7  ;;  %v7585_v40 = vrot.slane %v7509_v62, 6 }
0x2264   :  { %v7587_v9 = vrot.slane %v7510_v8, 5  ;;  %v7589_v43 = vrot.slane %v7511_v42, 4  ;;  %v7399_v22 = vrot.slane %v7391_v54, 1  ;;  %v7591_v30 = vrot.slane %v7512_v15, 3 }
0x2265   :  { %v7584_v61 = vsel %vm481_vm1, %v7583_v7, %v7507_v47  ;;  %v7593_v21 = vrot.slane %v7513_v48, 2  ;;  %v7400_v50 = vrot.slane %v7391_v54, 2  ;;  %v7401_v19 = vrot.slane %v7391_v54, 3 }
0x2266   :  { %v7586_v60 = vsel %vm484_vm2, %v7585_v40, %v7584_v61  ;;  %v7402_v13 = vrot.slane %v7391_v54, 4  ;;  %v7403_v53 = vrot.slane %v7391_v54, 5  ;;  %v7595_v51 = vrot.slane %v7514_v23, 1 }
0x2267   :  { %v7588_v39 = vsel %vm487_vm3, %v7587_v9, %v7586_v60  ;;  %v7404_v55 = vrot.slane %v7391_v54, 6  ;;  %v7405_v5 = vrot.slane %v7391_v54, 7  ;;  %v12469_v4 = vsub.f32 %v12285_v57, %v7399_v22 }
0x2268   :  { %v7590_v44 = vsel %vm490_vm4, %v7589_v43, %v7588_v39  ;;  %v12472_v28 = vsub.f32 %v12288_v17, %v7400_v50  ;;  %v12475_v47 = vsub.f32 %v12291_v27, %v7401_v19  ;;  %v12479_v62 = vsub.f32 %v12296_v41, %v7391_v54 }
0x2269   :  { %v7592_v45 = vsel %vm493_vm5, %v7591_v30, %v7590_v44  ;;  %v12482_v12 = vsub.f32 %v12299_v0, %v7402_v13  ;;  %v12485_v8 = vsub.f32 %v12303_v37, %v7403_v53  ;;  %v12489_v42 = vsub.f32 %v12309_v20, %v7404_v55 }
0x226a   :  { %v7594_v57 = vsel %vm496_vm6, %v7593_v21, %v7592_v45  ;;  %v7492_v17 = vmul.f32 %v12469_v4, %v12469_v4  ;;  %v12495_v15 = vsub.f32 %v12312_v49, %v7405_v5  ;;  %v7493_v41 = vmul.f32 %v12472_v28, %v12472_v28 }
0x226b   :  { %v7596_v27 = vsel %vm499_vm7, %v7595_v51, %v7594_v57  ;;  %v7494_v0 = vmul.f32 %v12475_v47, %v12475_v47  ;;  %v7495_v20 = vmul.f32 %v12482_v12, %v12482_v12  ;;  %v7491_v54 = vmul.f32 %v12479_v62, %v12479_v62 }
0x226c   :  { %v7621_v37 = vsel %vm557_vm8, %v7596_v27, 0.0  ;;  %v7496_v48 = vmul.f32 %v12485_v8, %v12485_v8  ;;  %v7555_v49 = vrot.slane %v7492_v17, 7  ;;  %v7557_v23 = vrot.slane %v7493_v41, 6 }
0x226d   :  { %7622 = vadd.xlane.f32.xlu0 %v7621_v37  ;;  %v7497_v7 = vmul.f32 %v12489_v42, %v12489_v42  ;;  %v7498_v40 = vmul.f32 %v12495_v15, %v12495_v15  ;;  %v7559_v43 = vrot.slane %v7494_v0, 5  ;;  %v7561_v61 = vrot.slane %v7495_v20, 4 }
0x226e   :  { %v7556_v9 = vsel %vm481_vm1, %v7555_v49, %v7491_v54  ;;  %v7563_v21 = vrot.slane %v7496_v48, 3  ;;  %v12794_v41 = vsub.s32 4, %v12779_v31 }
0x226f   :  { %v7558_v22 = vsel %vm484_vm2, %v7557_v23, %v7556_v9  ;;  %v7565_v60 = vrot.slane %v7497_v7, 2  ;;  %v7567_v13 = vrot.slane %v7498_v40, 1  ;;  %v12795_v9 = vsub.s32 5, %v12779_v31 }
0x2270   :  { %v7560_v30 = vsel %vm487_vm3, %v7559_v43, %v7558_v22  ;;  %v12523_v0 = vrot.slane %v12133_v52, %v12794_v41 }
0x2271   :  { %v7562_v50 = vsel %vm490_vm4, %v7561_v61, %v7560_v30  ;;  %v12529_v43 = vrot.slane %v12133_v52, %v12795_v9 }
0x2272   :  { %v7564_v19 = vsel %vm493_vm5, %v7563_v21, %v7562_v50 }
0x2273   :  { %v7566_v53 = vsel %vm496_vm6, %v7565_v60, %v7564_v19 }
0x2274   :  { %v7568_v39 = vsel %vm499_vm7, %v7567_v13, %v7566_v53 }
0x2275   :  { %v7615_v51 = vsel %vm557_vm8, %v7568_v39, 0.0 }
0x2276   :  { %7616 = vadd.xlane.f32.xlu1 %v7615_v51 }
0x22e7   :  { %v7626_v55 = vpop.xlane.xlu0 %7625 }
0x22e8   :  { %v7630_v5 = vmul.f32 0.03125, %v7626_v55 }
0x22ea   :  { %v7634_v44 = vadd.f32 1e-05, %v7630_v5 }
0x22ec   :  { %8932 = vrsqrt.f32 %v7634_v44 }
0x22f0   :  { %v7620_v45 = vpop.xlane.xlu1 %7619 }
0x22f1   :  { %v7628_v57 = vmul.f32 0.03125, %v7620_v45 }
0x22f3   :  { %v7632_v17 = vadd.f32 1e-05, %v7628_v57 }
0x22f5   :  { %8934 = vrsqrt.f32 %v7632_v17 }
0x22f6   :  { %v8933_v27 = vpop.eup %8932 }
0x22f7   :  { %v7664_v37 = vrot.slane %v8933_v27, 1  ;;  %v7665_v20 = vrot.slane %v8933_v27, 2  ;;  %v7666_v54 = vrot.slane %v8933_v27, 3  ;;  %v7667_v48 = vrot.slane %v8933_v27, 4 }
0x22f8   :  { %v7668_v49 = vrot.slane %v8933_v27, 5  ;;  %v7669_v23 = vrot.slane %v8933_v27, 6  ;;  %v7670_v7 = vrot.slane %v8933_v27, 7  ;;  %v7727_v40 = vmul.f32 %v8933_v27, %v12329_v59 }
0x22f9   :  { %v7728_v22 = vmul.f32 %v7664_v37, %v12332_v10  ;;  %v7729_v61 = vmul.f32 %v7665_v20, %v12335_v32  ;;  %v7730_v30 = vmul.f32 %v7666_v54, %v12338_v26  ;;  %v7731_v50 = vmul.f32 %v7667_v48, %v12341_v24 }
0x22fa   :  { %v7623_v21 = vpop.xlane.xlu0 %7622  ;;  %v7732_v60 = vmul.f32 %v7668_v49, %v12344_v11  ;;  %v7733_v19 = vmul.f32 %v7669_v23, %v12347_v2  ;;  %v7763_v59 = vmul.f32 %v12523_v0, %v7727_v40  ;;  %v7734_v31 = vmul.f32 %v7670_v7, %v12350_v25 }
0x22fb   :  { %v7629_v13 = vmul.f32 0.03125, %v7623_v21  ;;  %v7764_v52 = vmul.f32 %v12523_v0, %v7728_v22  ;;  %v7765_v10 = vmul.f32 %v12523_v0, %v7729_v61  ;;  %v7766_v32 = vmul.f32 %v12523_v0, %v7730_v30 }
0x22fc   :  { %v7799_v53 = vadd.f32 %v12529_v43, %v7763_v59  ;;  %v7767_v2 = vmul.f32 %v12523_v0, %v7731_v50  ;;  %v7768_v39 = vmul.f32 %v12523_v0, %v7732_v60  ;;  %v7769_v25 = vmul.f32 %v12523_v0, %v7733_v19 }
0x22fd   :  { %v7633_v26 = vadd.f32 1e-05, %v7629_v13  ;;  %v7800_v24 = vadd.f32 %v12529_v43, %v7764_v52  ;;  %v7801_v11 = vadd.f32 %v12529_v43, %v7765_v10  ;;  %v7770_v51 = vmul.f32 %v12523_v0, %v7734_v31 }
0x22fe   :  { %v7853_v55 = vsel %vm7807_vm15, %v7799_v53, -inf  ;;  %v7802_v45 = vadd.f32 %v12529_v43, %v7766_v32  ;;  %v7803_v27 = vadd.f32 %v12529_v43, %v7767_v2  ;;  %v7804_v41 = vadd.f32 %v12529_v43, %v7768_v39 }
0x22ff   :  { %8936 = vrsqrt.f32 %v7633_v26  ;;  %v7854_v5 = vsel %vm7807_vm15, %v7800_v24, -inf  ;;  %v8935_v44 = vpop.eup %8934  ;;  %v7856_v17 = vsel %vm7807_vm15, %v7801_v11, -inf  ;;  %v7805_v37 = vadd.f32 %v12529_v43, %v7769_v25 }
0x2300   :  { %v7855_v57 = vmax.f32 %v7853_v55, %v7854_v5  ;;  %v7806_v54 = vadd.f32 %v12529_v43, %v7770_v51  ;;  %v7858_v49 = vsel %vm7807_vm15, %v7802_v45, -inf  ;;  %v7650_v23 = vrot.slane %v8935_v44, 1 }
0x2301   :  { %v7651_v7 = vrot.slane %v8935_v44, 2  ;;  %v7652_v40 = vrot.slane %v8935_v44, 3  ;;  %v7653_v61 = vrot.slane %v8935_v44, 4  ;;  %v7654_v30 = vrot.slane %v8935_v44, 5 }
0x2302   :  { %v7857_v20 = vmax.f32 %v7855_v57, %v7856_v17  ;;  %v7860_v21 = vsel %vm7807_vm15, %v7803_v27, -inf  ;;  %v7862_v50 = vsel %vm7807_vm15, %v7804_v41, -inf  ;;  %v7864_v60 = vsel %vm7807_vm15, %v7805_v37, -inf }
0x2303   :  { %v7617_v48 = vpop.xlane.xlu1 %7616  ;;  %v12562_v59 = vsel %vm7807_vm15, %v7806_v54, -inf  ;;  %v7655_v13 = vrot.slane %v8935_v44, 6  ;;  %v7656_v31 = vrot.slane %v8935_v44, 7  ;;  %v7711_v52 = vmul.f32 %v8935_v44, %v12372_v1 }
0x2304   :  { %v7627_v9 = vmul.f32 0.03125, %v7617_v48  ;;  %v7859_v22 = vmax.f32 %v7857_v20, %v7858_v49  ;;  %v7712_v10 = vmul.f32 %v7650_v23, %v12375_v34  ;;  %v7713_v32 = vmul.f32 %v7651_v7, %v12379_v46 }
0x2305   :  { %v7714_v26 = vmul.f32 %v7652_v40, %v12382_v36  ;;  %v7715_v11 = vmul.f32 %v7653_v61, %v12385_v29  ;;  %v12570_v2 = vmul.f32 %v7654_v30, %v12389_v58  ;;  %v7717_v27 = vmul.f32 %v7655_v13, %v12392_v18 }
0x2306   :  { %v7631_v19 = vadd.f32 1e-05, %v7627_v9  ;;  %v7861_v24 = vmax.f32 %v7859_v22, %v7860_v21  ;;  %v7748_v54 = vmul.f32 %v12523_v0, %v7712_v10  ;;  %v7749_v49 = vmul.f32 %v12523_v0, %v7713_v32 }
0x2307   :  { %v12604_v9 = vmul.f32 %v12523_v0, %v7715_v11 }
0x2308   :  { %8938 = vrsqrt.f32 %v7631_v19  ;;  %v7863_v20 = vmax.f32 %v7861_v24, %v7862_v50 }
0x2309   :  { %v8937_v53 = vpop.eup %8936 }
0x230a   :  { %v7657_v39 = vrot.slane %v8937_v53, 1  ;;  %v7658_v25 = vrot.slane %v8937_v53, 2  ;;  %v7659_v51 = vrot.slane %v8937_v53, 3  ;;  %v7660_v55 = vrot.slane %v8937_v53, 4 }
0x230b   :  { %v7661_v5 = vrot.slane %v8937_v53, 5  ;;  %v7662_v1 = vrot.slane %v8937_v53, 6  ;;  %v7663_v44 = vrot.slane %v8937_v53, 7  ;;  %v7719_v34 = vmul.f32 %v8937_v53, %v12421_v56 }
0x230c   :  { %v7720_v46 = vmul.f32 %v7657_v39, %v12424_v35  ;;  %v7721_v36 = vmul.f32 %v7658_v25, %v12428_v6  ;;  %v7722_v45 = vmul.f32 %v7659_v51, %v12431_v16  ;;  %v7723_v29 = vmul.f32 %v7660_v55, %v12434_v3 }
0x230d   :  { %v7724_v58 = vmul.f32 %v7661_v5, %v12438_v63  ;;  %v7725_v57 = vmul.f32 %v7662_v1, %v12441_v14  ;;  %v7755_v17 = vmul.f32 %v12523_v0, %v7719_v34  ;;  %v12585_v6 = vmul.f32 %v7656_v31, %v12395_v38 }
0x230e   :  { %v7756_v41 = vmul.f32 %v12523_v0, %v7720_v46  ;;  %v7757_v56 = vmul.f32 %v12523_v0, %v7721_v36  ;;  %v7758_v35 = vmul.f32 %v12523_v0, %v7722_v45  ;;  %v7726_v16 = vmul.f32 %v7663_v44, %v12444_v33 }
0x230f   :  { %v7759_v3 = vmul.f32 %v12523_v0, %v7723_v29  ;;  %v7791_v63 = vadd.f32 %v12529_v43, %v7755_v17  ;;  %v7747_v14 = vmul.f32 %v12523_v0, %v7711_v52  ;;  %v7760_v48 = vmul.f32 %v12523_v0, %v7724_v58 }
0x2310   :  { %v7792_v37 = vadd.f32 %v12529_v43, %v7756_v41  ;;  %v7793_v18 = vadd.f32 %v12529_v43, %v7757_v56  ;;  %v7761_v38 = vmul.f32 %v12523_v0, %v7725_v57  ;;  %v12598_v33 = vmul.f32 %v12523_v0, %v7714_v26 }
0x2311   :  { %v7794_v23 = vadd.f32 %v12529_v43, %v7758_v35  ;;  %v7838_v7 = vsel %vm7807_vm15, %v7791_v63, -inf  ;;  %v7762_v61 = vmul.f32 %v12523_v0, %v7726_v16  ;;  %v7795_v30 = vadd.f32 %v12529_v43, %v7759_v3 }
0x2312   :  { %v7839_v40 = vsel %vm7807_vm15, %v7792_v37, -inf  ;;  %v8939_v22 = vpop.eup %8938  ;;  %v7841_v50 = vsel %vm7807_vm15, %v7793_v18, -inf  ;;  %v7865_v19 = vmax.f32 %v7863_v20, %v7864_v60  ;;  %v7796_v10 = vadd.f32 %v12529_v43, %v7760_v48 }
0x2313   :  { %v7840_v21 = vmax.f32 %v7838_v7, %v7839_v40  ;;  %v7643_v13 = vrot.slane %v8939_v22, 1  ;;  %v7644_v31 = vrot.slane %v8939_v22, 2  ;;  %v7645_v52 = vrot.slane %v8939_v22, 3 }
0x2314   :  { %v7797_v32 = vadd.f32 %v12529_v43, %v7761_v38  ;;  %v7646_v53 = vrot.slane %v8939_v22, 4  ;;  %v7843_v24 = vsel %vm7807_vm15, %v7794_v23, -inf  ;;  %v7647_v11 = vrot.slane %v8939_v22, 5 }
0x2315   :  { %v7842_v26 = vmax.f32 %v7840_v21, %v7841_v50  ;;  %v7703_v39 = vmul.f32 %v8939_v22, %v12479_v62  ;;  %v7704_v25 = vmul.f32 %v7643_v13, %v12469_v4  ;;  %v7845_v55 = vsel %vm7807_vm15, %v7795_v30, -inf }
0x2316   :  { %v7705_v60 = vmul.f32 %v7644_v31, %v12472_v28  ;;  %v7706_v5 = vmul.f32 %v7645_v52, %v12475_v47  ;;  %v12618_v1 = vmax.f32 %v7865_v19, %v12562_v59  ;;  %v7648_v44 = vrot.slane %v8939_v22, 6 }
0x2317   :  { %v7844_v51 = vmax.f32 %v7842_v26, %v7843_v24  ;;  %v7649_v34 = vrot.slane %v8939_v22, 7  ;;  %v7707_v46 = vmul.f32 %v7646_v53, %v12482_v12  ;;  %v7739_v62 = vmul.f32 %v12523_v0, %v7703_v39 }
0x2318   :  { %v7740_v4 = vmul.f32 %v12523_v0, %v7704_v25  ;;  %v7741_v45 = vmul.f32 %v12523_v0, %v7705_v60  ;;  %v7798_v29 = vadd.f32 %v12529_v43, %v7762_v61  ;;  %v7847_v28 = vsel %vm7807_vm15, %v7796_v10, -inf }
0x2319   :  { %v7846_v36 = vmax.f32 %v7844_v51, %v7845_v55  ;;  %v7708_v47 = vmul.f32 %v7647_v11, %v12485_v8  ;;  %v7752_v59 = vmul.f32 %v12523_v0, %v12570_v2  ;;  %v7742_v12 = vmul.f32 %v12523_v0, %v7706_v5 }
0x231a   :  { %v7753_v57 = vmul.f32 %v12523_v0, %v7717_v27  ;;  %v7775_v17 = vadd.f32 %v12529_v43, %v7739_v62  ;;  %v7849_v41 = vsel %vm7807_vm15, %v7797_v32, -inf  ;;  %v7898_v56 = vmul.f32 %v12618_v1, %v12618_v1 }
0x231b   :  { %v7848_v58 = vmax.f32 %v7846_v36, %v7847_v28  ;;  %v7709_v35 = vmul.f32 %v7648_v44, %v12489_v42  ;;  %v7776_v16 = vadd.f32 %v12529_v43, %v7740_v4  ;;  %v7710_v3 = vmul.f32 %v7649_v34, %v12495_v15 }
0x231c   :  { %v7743_v2 = vmul.f32 %v12523_v0, %v7707_v46  ;;  %v7777_v63 = vadd.f32 %v12529_v43, %v7741_v45  ;;  %v7851_v27 = vsel %vm7807_vm15, %v7798_v29, -inf  ;;  %v7744_v37 = vmul.f32 %v12523_v0, %v7708_v47 }
0x231d   :  { %v7850_v8 = vmax.f32 %v7848_v58, %v7849_v41  ;;  %v7783_v18 = vadd.f32 %v12529_v43, %v7747_v14  ;;  %v7784_v20 = vadd.f32 %v12529_v43, %v7748_v54  ;;  %v7778_v42 = vadd.f32 %v12529_v43, %v7742_v12 }
0x231e   :  { %v7808_v38 = vsel %vm7807_vm15, %v7775_v17, -inf  ;;  %v7809_v23 = vsel %vm7807_vm15, %v7776_v16, -inf  ;;  %v7901_v15 = vrot.slane %v7898_v56, 7  ;;  %v7745_v7 = vmul.f32 %v12523_v0, %v7709_v35 }
0x231f   :  { %v7852_v48 = vmax.f32 %v7850_v8, %v7851_v27  ;;  %v7785_v40 = vadd.f32 %v12529_v43, %v7749_v49  ;;  %v7810_v22 = vmax.f32 %v7808_v38, %v7809_v23  ;;  %v7746_v30 = vmul.f32 %v12523_v0, %v7710_v3 }
0x2320   :  { %v7779_v14 = vadd.f32 %v12529_v43, %v7743_v2  ;;  %v7811_v54 = vsel %vm7807_vm15, %v7777_v63, -inf  ;;  %v7786_v21 = vadd.f32 %v12529_v43, %v12598_v33  ;;  %v7823_v19 = vsel %vm7807_vm15, %v7783_v18, -inf }
0x2321   :  { %v7897_v61 = vmul.f32 %v7852_v48, %v7852_v48  ;;  %v7812_v50 = vmax.f32 %v7810_v22, %v7811_v54  ;;  %v7824_v13 = vsel %vm7807_vm15, %v7784_v20, -inf  ;;  %v7780_v49 = vadd.f32 %v12529_v43, %v7744_v37 }
0x2322   :  { %v7813_v52 = vsel %vm7807_vm15, %v7778_v42, -inf  ;;  %v7825_v10 = vmax.f32 %v7823_v19, %v7824_v13  ;;  %v7787_v26 = vadd.f32 %v12529_v43, %v12604_v9  ;;  %v7826_v33 = vsel %vm7807_vm15, %v7785_v40, -inf  ;;  %v12796_v13 = vld [vmem:[#allocation7_spill] sm:$0xff] }
0x2323   :  { %v7902_v31 = vsel %vm481_vm1, %v7901_v15, %v7897_v61  ;;  %v7814_v53 = vmax.f32 %v7812_v50, %v7813_v52  ;;  %v7781_v24 = vadd.f32 %v12529_v43, %v7745_v7  ;;  %v7815_v11 = vsel %vm7807_vm15, %v7779_v14, -inf }
0x2324   :  { %v7904_v32 = vsel %vm7875_vm0, %v7902_v31, 0.0  ;;  %v7827_v39 = vmax.f32 %v7825_v10, %v7826_v33  ;;  %v7754_v25 = vmul.f32 %v12523_v0, %v12585_v6  ;;  %v7788_v51 = vadd.f32 %v12529_v43, %v7752_v59 }
0x2325   :  { %7905 = vadd.xlane.f32.xlu0 %v7904_v32  ;;  %v7816_v55 = vmax.f32 %v7814_v53, %v7815_v11  ;;  %v7828_v60 = vsel %vm7807_vm15, %v7786_v21, -inf  ;;  %v7817_v5 = vsel %vm7807_vm15, %v7780_v49, -inf  ;;  %v7782_v44 = vadd.f32 %v12529_v43, %v7746_v30  ;;  %v12797_v49 = vld [vmem:[#allocation2_spill] sm:$0xff] }
0x2326   :  { %v7829_v9 = vmax.f32 %v7827_v39, %v7828_v60  ;;  %v7789_v34 = vadd.f32 %v12529_v43, %v7753_v57  ;;  %v7830_v36 = vsel %vm7807_vm15, %v7787_v26, -inf  ;;  %v7819_v62 = vsel %vm7807_vm15, %v7781_v24, -inf }
0x2327   :  { %v7818_v46 = vmax.f32 %v7816_v55, %v7817_v5  ;;  %v7790_v0 = vadd.f32 %v12529_v43, %v7754_v25  ;;  %v7832_v45 = vsel %vm7807_vm15, %v7788_v51, -inf  ;;  %v7821_v28 = vsel %vm7807_vm15, %v7782_v44, -inf }
0x2328   :  { %v7831_v4 = vmax.f32 %v7829_v9, %v7830_v36  ;;  %v7834_v47 = vsel %vm7807_vm15, %v7789_v34, -inf }
0x2329   :  { %v7820_v6 = vmax.f32 %v7818_v46, %v7819_v62  ;;  %v7836_v12 = vsel %vm7807_vm15, %v7790_v0, -inf }
0x232a   :  { %v7833_v29 = vmax.f32 %v7831_v4, %v7832_v45 }
0x232b   :  { %v7822_v59 = vmax.f32 %v7820_v6, %v7821_v28 }
0x232c   :  { %v7835_v58 = vmax.f32 %v7833_v29, %v7834_v47 }
0x232d   :  { %v7879_v17 = vmul.f32 %v7822_v59, %v7822_v59  ;;  %v7868_v16 = vmul.f32 %v7852_v48, %v7822_v59 }
0x232e   :  { %v7837_v57 = vmax.f32 %v7835_v58, %v7836_v12 }
0x2330   :  { %v7880_v41 = vmul.f32 %v7837_v57, %v7837_v57  ;;  %v7869_v56 = vmul.f32 %v12618_v1, %v7837_v57 }
0x2332   :  { %v7883_v35 = vrot.slane %v7880_v41, 7  ;;  %v7872_v8 = vrot.slane %v7869_v56, 7 }
0x2334   :  { %v7884_v43 = vsel %vm481_vm1, %v7883_v35, %v7879_v17  ;;  %v7873_v2 = vsel %vm481_vm1, %v7872_v8, %v7868_v16 }
0x2335   :  { %v7886_v3 = vsel %vm7875_vm0, %v7884_v43, 0.0  ;;  %v7876_v63 = vsel %vm7875_vm0, %v7873_v2, 0.0 }
0x2336   :  { %7887 = vadd.xlane.f32.xlu1 %v7886_v3 }
0x233a   :  { %7877 = vadd.xlane.f32.xlu1 %v7876_v63 }
0x23b2   :  { %v7906_v27 = vpop.xlane.xlu0 %7905 }
0x23b3   :  { %8940 = vrsqrt.f32 %v7906_v27  ;;  %vm7909_vm2 = vcmp.eq.f32.partialorder %v7906_v27, inf  ;;  %v7912_v48 = vand.u32 2147483648, %v7906_v27  ;;  %vm7911_vm3 = vcmp.eq.f32.partialorder %v7906_v27, 0.0 }
0x23bd   :  { %v8941_v18 = vpop.eup %8940 }
0x23be   :  { %v7908_v20 = vmul.f32 %v8941_v18, %v7906_v27 }
0x23c0   :  { %v7910_v1 = vsel %vm7909_vm2, %v7906_v27, %v7908_v20 }
0x23c1   :  { %v7913_v38 = vsel %vm7911_vm3, %v7912_v48, %v7910_v1 }
0x23c2   :  { %v7914_v7 = vmax.f32 %v7913_v38, 1e-08 }
0x23c3   :  { %v7888_v37 = vpop.xlane.xlu1 %7887 }
0x23c4   :  { %8942 = vrsqrt.f32 %v7888_v37  ;;  %vm7891_vm4 = vcmp.eq.f32.partialorder %v7888_v37, inf  ;;  %v7894_v15 = vand.u32 2147483648, %v7888_v37  ;;  %vm7893_vm1 = vcmp.eq.f32.partialorder %v7888_v37, 0.0 }
0x23c7   :  { %v7878_v54 = vpop.xlane.xlu1 %7877 }
0x23ce   :  { %v8943_v42 = vpop.eup %8942 }
0x23cf   :  { %v7890_v23 = vmul.f32 %v8943_v42, %v7888_v37 }
0x23d1   :  { %v7892_v40 = vsel %vm7891_vm4, %v7888_v37, %v7890_v23 }
0x23d2   :  { %v7895_v22 = vsel %vm7893_vm1, %v7894_v15, %v7892_v40 }
0x23d3   :  { %v7896_v61 = vmax.f32 %v7895_v22, 1e-08 }
0x23d5   :  { %v7915_v30 = vmul.f32 %v7914_v7, %v7896_v61 }
0x23d7   :  { %8944 = vrcp.f32 %v7915_v30 }
0x23e1   :  { %v8945_v14 = vpop.eup %8944 }
0x23e2   :  { %v7917_v21 = vmul.f32 %v8945_v14, %v7878_v54 }
0x23e4   :  { %v7918_v50 = vmax.f32 %v7917_v21, 0.0 }
0x23e6   :  { %v7919_v19 = vmin.f32 %v7918_v50, 1.0 }
0x23e8   :  { %v7924_v31 = vrot.slane %v7919_v19, %v12796_v13  ;;  %v7928_v52 = vrot.slane %v7919_v19, %v12797_v49 }
0x23ea   :  { %7931 = vst [vmem:[%s12701_s9] sm:$0xff] %v7924_v31  ;;  %7932 = vst [vmem:[%s12701_s9 + $0x8] sm:$0xff] %v7928_v52 }

</bundles_post_ra>
